<compile_context>
chip_gen: v5e
topology: v5e:2x2
jax: 0.10.0
libtpu: 0.0.40
codegen_flags: <defaults>
</compile_context>

<pallas_src>
import functools

import jax
import jax.numpy as jnp
import numpy as np
from jax.experimental import pallas as pl
from jax.experimental.pallas import tpu as pltpu


# ------------------------------ fused kernel --------------------------------

def _fused_conv_kernel(xs_ref, w1q_ref, w2q_ref, w3_ref, b_ref, mp_ref,
                       o_ref, p1s_ref, a2_ref, *,
                       ho1, wo1, ho2, wo2, ho3, wo3):
    """One grid step == one image.

    xs_ref : (1, H/4, W/4, 16*Cin) bf16   stride-4 space-to-depth input
    w1q_ref: (4, 16*Cin, 128)      bf16   conv1 weights, one matrix per (qh,qw) phase
    w2q_ref: (4, 512, 128)         bf16   conv2 weights, one matrix per (qh,qw) phase
    w3_ref : (9, 128, 128)         bf16   conv3 weights, one matrix per (dh,dw) tap
    b_ref  : (3, 128)              f32    biases (conv1/2/3), zero padded
    mp_ref : (wo1/2, wo1)          f32    2x2 avg-pool + even/odd column split matrix
    o_ref  : (1, ho3*wo3, 128)     f32    conv3 output, spatial-major, lane padded
    p1s_ref: VMEM (ho1/4, wo1/4, 512) f32 pooled conv1 output in s2d(2) layout
    a2_ref : VMEM (ho2, wo2, 128)  f32    conv2 output
    """
    f32 = jnp.float32
    bf16 = jnp.bfloat16
    b1 = b_ref[0:1, :]
    b2 = b_ref[1:2, :]
    b3 = b_ref[2:3, :]
    hp = ho1 // 2          # pooled height
    wh = wo1 // 4          # half of pooled width
    pool_even = mp_ref[0:wh, :]          # (wh, wo1)
    pool_odd = mp_ref[wh:2 * wh, :]      # (wh, wo1)

    # ---- conv1 (k=8,s=4) + leaky_relu + 2x2 avg-pool, stored space-to-depth(2) ----
    for ph in range(hp):                      # one pooled row per iteration
        i, rh = ph // 2, ph % 2
        rsum = None
        for u in range(2):                    # the two conv1 rows under this pool row
            oh = 2 * ph + u
            acc = None
            for qh in range(2):
                for qw in range(2):
                    lhs = xs_ref[0, oh + qh, qw:qw + wo1, :]          # (wo1, 16*Cin)
                    t = jnp.dot(lhs, w1q_ref[qh * 2 + qw],
                                preferred_element_type=f32)           # (wo1, 128)
                    acc = t if acc is None else acc + t
            acc = acc + b1
            act = jnp.where(acc >= 0.0, acc, 0.01 * acc)              # leaky_relu
            rsum = act if rsum is None else rsum + act
        # 0.25*(pairwise column sums), split into even / odd pooled columns
        ev = jnp.dot(pool_even, rsum, preferred_element_type=f32)     # (wh, 128)
        od = jnp.dot(pool_odd, rsum, preferred_element_type=f32)      # (wh, 128)
        p1s_ref[i, :, (rh * 2) * 128:(rh * 2) * 128 + 128] = ev
        p1s_ref[i, :, (rh * 2 + 1) * 128:(rh * 2 + 1) * 128 + 128] = od

    # ---- conv2 (k=4,s=2) + relu, read from the s2d scratch ----
    for oh2 in range(ho2):
        acc = None
        for qh in range(2):
            for qw in range(2):
                lhs = p1s_ref[oh2 + qh, qw:qw + wo2, :].astype(bf16)  # (wo2, 512)
                t = jnp.dot(lhs, w2q_ref[qh * 2 + qw],
                            preferred_element_type=f32)               # (wo2, 128)
                acc = t if acc is None else acc + t
        a2_ref[oh2, :, :] = jnp.maximum(acc + b2, 0.0)

    # ---- conv3 (k=3,s=1) + relu ----
    for oh3 in range(ho3):
        acc = None
        for dh in range(3):
            for dw in range(3):
                lhs = a2_ref[oh3 + dh, dw:dw + wo3, :].astype(bf16)   # (wo3, 128)
                t = jnp.dot(lhs, w3_ref[dh * 3 + dw],
                            preferred_element_type=f32)               # (wo3, 128)
                acc = t if acc is None else acc + t
        o_ref[0, oh3 * wo3:oh3 * wo3 + wo3, :] = jnp.maximum(acc + b3, 0.0)


# ----------------------------- host-side packing ----------------------------

def _pool_matrix(wo1):
    """(wo1/2, wo1) matrix: rows 0..wh-1 -> even pooled cols, wh.. -> odd pooled cols."""
    wp, wh = wo1 // 2, wo1 // 4
    m = np.zeros((wp, wo1), np.float32)
    for j in range(wh):
        m[j, 4 * j] = 0.25
        m[j, 4 * j + 1] = 0.25
        m[wh + j, 4 * j + 2] = 0.25
        m[wh + j, 4 * j + 3] = 0.25
    return jnp.asarray(m)


def _build_inputs(x_nchw, params):
    """Cheap, non-expanding XLA packing: s2d input + phase-packed, lane-padded weights."""
    N, Cin, H, W = x_nchw.shape

    # input: stride-4 space-to-depth, channels last -> (N, H/4, W/4, 16*Cin)
    xs = jnp.transpose(x_nchw, (0, 2, 3, 1))
    xs = xs.reshape(N, H // 4, 4, W // 4, 4, Cin)
    xs = jnp.transpose(xs, (0, 1, 3, 2, 4, 5))
    xs = xs.reshape(N, H // 4, W // 4, 16 * Cin).astype(jnp.bfloat16)

    # conv1 (32,Cin,8,8): dh=4*qh+rh, dw=4*qw+rw -> (4, 16*Cin, 128)
    w1 = params["w1"].reshape(32, Cin, 2, 4, 2, 4)                 # co,c,qh,rh,qw,rw
    w1 = jnp.transpose(w1, (2, 4, 3, 5, 1, 0)).reshape(4, 16 * Cin, 32)
    w1 = jnp.pad(w1, ((0, 0), (0, 0), (0, 96))).astype(jnp.bfloat16)

    # conv2 (64,32,4,4): dh=2*qh+rh, dw=2*qw+rw, channels padded to 128 -> (4, 512, 128)
    w2 = jnp.pad(params["w2"], ((0, 0), (0, 96), (0, 0), (0, 0)))  # (64,128,4,4)
    w2 = w2.reshape(64, 128, 2, 2, 2, 2)                           # co,c,qh,rh,qw,rw
    w2 = jnp.transpose(w2, (2, 4, 3, 5, 1, 0)).reshape(4, 4 * 128, 64)
    w2 = jnp.pad(w2, ((0, 0), (0, 0), (0, 64))).astype(jnp.bfloat16)

    # conv3 (64,64,3,3): one (128,128) matrix per tap -> (9, 128, 128)
    w3 = jnp.pad(params["w3"], ((0, 0), (0, 64), (0, 0), (0, 0)))  # (64,128,3,3)
    w3 = jnp.transpose(w3, (2, 3, 1, 0)).reshape(9, 128, 64)
    w3 = jnp.pad(w3, ((0, 0), (0, 0), (0, 64))).astype(jnp.bfloat16)

    b = jnp.stack([jnp.pad(params["b1"], (0, 96)),
                   jnp.pad(params["b2"], (0, 64)),
                   jnp.pad(params["b3"], (0, 64))]).astype(jnp.float32)   # (3,128)
    return xs, w1, w2, w3, b


@jax.jit
def conv_forward(x_nchw, params):
    """Equivalent of CONV.forward. Input NCHW, output (N, 64*Hout*Wout) in NCHW order."""
    N, Cin, H, W = x_nchw.shape
    assert H % 4 == 0 and W % 4 == 0, "spatial dims must be multiples of 4"
    ho1, wo1 = (H - 8) // 4 + 1, (W - 8) // 4 + 1          # conv1 output
    assert ho1 % 2 == 0 and wo1 % 2 == 0
    hp, wp = ho1 // 2, wo1 // 2                            # after 2x2 avg-pool
    assert hp % 2 == 0 and wp % 2 == 0 and hp >= 4 and wp >= 4
    ho2, wo2 = (hp - 4) // 2 + 1, (wp - 4) // 2 + 1        # conv2 output
    ho3, wo3 = ho2 - 2, wo2 - 2                            # conv3 output
    assert ho3 >= 1 and wo3 >= 1

    xs, w1, w2, w3, b = _build_inputs(x_nchw, params)
    mp = _pool_matrix(wo1)
    k1 = 16 * Cin

    kernel = functools.partial(_fused_conv_kernel, ho1=ho1, wo1=wo1,
                               ho2=ho2, wo2=wo2, ho3=ho3, wo3=wo3)

    y = pl.pallas_call(
        kernel,
        out_shape=jax.ShapeDtypeStruct((N, ho3 * wo3, 128), jnp.float32),
        grid=(N,),
        in_specs=[
            pl.BlockSpec((1, H // 4, W // 4, k1), lambda n: (n, 0, 0, 0)),
            pl.BlockSpec((4, k1, 128), lambda n: (0, 0, 0)),
            pl.BlockSpec((4, 4 * 128, 128), lambda n: (0, 0, 0)),
            pl.BlockSpec((9, 128, 128), lambda n: (0, 0, 0)),
            pl.BlockSpec((3, 128), lambda n: (0, 0)),
            pl.BlockSpec((wp, wo1), lambda n: (0, 0)),
        ],
        out_specs=pl.BlockSpec((1, ho3 * wo3, 128), lambda n: (n, 0, 0)),
        scratch_shapes=[
            pltpu.VMEM((hp // 2, wp // 2, 4 * 128), jnp.float32),   # pooled conv1 (s2d)
            pltpu.VMEM((ho2, wo2, 128), jnp.float32),               # conv2 output
        ],
        compiler_params=pltpu.CompilerParams(
            dimension_semantics=("parallel",)),
    )(xs, w1, w2, w3, b, mp)

    # drop lane padding and flatten in NCHW order to match torch's x.view(N, -1)
    y = y[:, :, :64]                                       # (N, S, 64), S = ho3*wo3
    return jnp.transpose(y, (0, 2, 1)).reshape(N, 64 * ho3 * wo3)


# --------------------------- parameter creation -----------------------------

def init_params(key, cin):
    def conv_init(k, cout, cin_, ksz):
        kw_, kb_ = jax.random.split(k)
        fan_in = cin_ * ksz * ksz
        bound = 1.0 / np.sqrt(fan_in)            # PyTorch-style uniform bound
        w = jax.random.uniform(kw_, (cout, cin_, ksz, ksz), jnp.float32, -bound, bound)
        bvec = jax.random.uniform(kb_, (cout,), jnp.float32, -bound, bound)
        return w, bvec

    k1, k2, k3 = jax.random.split(key, 3)
    w1, b1 = conv_init(k1, 32, cin, 8)
    w2, b2 = conv_init(k2, 64, 32, 4)
    w3, b3 = conv_init(k3, 64, 64, 3)
    return {"w1": w1, "b1": b1, "w2": w2, "b2": b2, "w3": w3, "b3": b3}


# ------------------------------ pure-JAX ref --------------------------------

def ref_forward(x_nchw, p):
    def conv(x, w, b, s):
        y = jax.lax.conv_general_dilated(
            x, w, window_strides=(s, s), padding="VALID",
            dimension_numbers=("NCHW", "OIHW", "NCHW"),
            precision=jax.lax.Precision.HIGHEST)
        return y + b.reshape(1, -1, 1, 1)

    x = conv(x_nchw, p["w1"], p["b1"], 4)
    x = jnp.where(x >= 0, x, 0.01 * x)
    N, C, H, W = x.shape
    x = x.reshape(N, C, H // 2, 2, W // 2, 2).mean(axis=(3, 5))
    x = jnp.maximum(conv(x, p["w2"], p["b2"], 2), 0.0)
    x = jnp.maximum(conv(x, p["w3"], p["b3"], 1), 0.0)
    return x.reshape(N, -1)


# ---------------------------------- main ------------------------------------

if __name__ == "__main__":
    # Atari-style input implied by the conv chain (needs >= 68x68 spatial).
    batch, cin, hw = 2, 4, 84
    key = jax.random.PRNGKey(0)
    kx, kp = jax.random.split(key)
    x = jax.random.normal(kx, (batch, cin, hw, hw), dtype=jnp.float32)
    params = init_params(kp, cin)

    out = jax.block_until_ready(conv_forward(x, params))
    ref = jax.block_until_ready(ref_forward(x, params))
    assert out.shape == ref.shape == (batch, 64 * 2 * 2), (out.shape, ref.shape)
    np.testing.assert_allclose(np.asarray(out), np.asarray(ref), rtol=5e-2, atol=5e-2)

    print("KERNEL_OK")
</pallas_src>

<mosaic_0001>
module attributes {stable_mosaic.version = 11 : i64} {
  func.func @_fused_conv_kernel(%arg0: i32, %arg1: memref<1x21x21x64xbf16, #tpu.memory_space<vmem>>, %arg2: memref<4x64x128xbf16, #tpu.memory_space<vmem>>, %arg3: memref<4x512x128xbf16, #tpu.memory_space<vmem>>, %arg4: memref<9x128x128xbf16, #tpu.memory_space<vmem>>, %arg5: memref<3x128xf32, #tpu.memory_space<vmem>>, %arg6: memref<10x20xf32, #tpu.memory_space<vmem>>, %arg7: memref<1x4x128xf32, #tpu.memory_space<vmem>>, %arg8: memref<5x5x512xf32, #tpu.memory_space<vmem>>, %arg9: memref<4x4x128xf32, #tpu.memory_space<vmem>>) attributes {dimension_semantics = [#tpu.dimension_semantics<parallel>], iteration_bounds = array<i64: 2>, scalar_prefetch = 0 : i64, scratch_operands = 2 : i64, tpu.core_type = #tpu.core_type<tc>, window_params = [{transform_indices = @transform_0, window_bounds = array<i64: 1, 21, 21, 64>}, {pipeline_mode = #tpu.pipeline_mode<synchronous>, transform_indices = @transform_1, window_bounds = array<i64: 4, 64, 128>}, {pipeline_mode = #tpu.pipeline_mode<synchronous>, transform_indices = @transform_2, window_bounds = array<i64: 4, 512, 128>}, {pipeline_mode = #tpu.pipeline_mode<synchronous>, transform_indices = @transform_3, window_bounds = array<i64: 9, 128, 128>}, {pipeline_mode = #tpu.pipeline_mode<synchronous>, transform_indices = @transform_4, window_bounds = array<i64: 3, 128>}, {pipeline_mode = #tpu.pipeline_mode<synchronous>, transform_indices = @transform_5, window_bounds = array<i64: 10, 20>}, {transform_indices = @transform_6, window_bounds = array<i64: 1, 4, 128>}]} {
    %c0 = arith.constant 0 : index
    %c0_0 = arith.constant 0 : index
    %0 = vector.load %arg5[%c0, %c0_0] : memref<3x128xf32, #tpu.memory_space<vmem>>, vector<1x128xf32>
    %c1 = arith.constant 1 : index
    %c0_1 = arith.constant 0 : index
    %1 = vector.load %arg5[%c1, %c0_1] : memref<3x128xf32, #tpu.memory_space<vmem>>, vector<1x128xf32>
    %c2 = arith.constant 2 : index
    %c0_2 = arith.constant 0 : index
    %2 = vector.load %arg5[%c2, %c0_2] : memref<3x128xf32, #tpu.memory_space<vmem>>, vector<1x128xf32>
    %c0_3 = arith.constant 0 : index
    %c0_4 = arith.constant 0 : index
    %3 = vector.load %arg6[%c0_3, %c0_4] : memref<10x20xf32, #tpu.memory_space<vmem>>, vector<5x20xf32>
    %c5 = arith.constant 5 : index
    %c0_5 = arith.constant 0 : index
    %4 = vector.load %arg6[%c5, %c0_5] : memref<10x20xf32, #tpu.memory_space<vmem>>, vector<5x20xf32>
    %c0_6 = arith.constant 0 : index
    %c0_7 = arith.constant 0 : index
    %c0_8 = arith.constant 0 : index
    %c0_9 = arith.constant 0 : index
    %5 = vector.load %arg1[%c0_6, %c0_7, %c0_8, %c0_9] : memref<1x21x21x64xbf16, #tpu.memory_space<vmem>>, vector<1x1x20x64xbf16>
    %6 = vector.shape_cast %5 : vector<1x1x20x64xbf16> to vector<20x64xbf16>
    %c0_10 = arith.constant 0 : index
    %c0_11 = arith.constant 0 : index
    %c0_12 = arith.constant 0 : index
    %7 = vector.load %arg2[%c0_10, %c0_11, %c0_12] : memref<4x64x128xbf16, #tpu.memory_space<vmem>>, vector<1x64x128xbf16>
    %8 = vector.shape_cast %7 : vector<1x64x128xbf16> to vector<64x128xbf16>
    %cst = arith.constant dense<0.000000e+00> : vector<20x128xf32>
    %9 = tpu.matmul %6, %8, %cst {dimension_numbers = #tpu.dot_dimension_numbers<[1], [0], [0], [1], [0, 0, 1, 1], [], []>} : vector<20x64xbf16>, vector<64x128xbf16>, vector<20x128xf32> -> vector<20x128xf32>
    %c0_13 = arith.constant 0 : index
    %c0_14 = arith.constant 0 : index
    %c1_15 = arith.constant 1 : index
    %c0_16 = arith.constant 0 : index
    %10 = vector.load %arg1[%c0_13, %c0_14, %c1_15, %c0_16] : memref<1x21x21x64xbf16, #tpu.memory_space<vmem>>, vector<1x1x20x64xbf16>
    %11 = vector.shape_cast %10 : vector<1x1x20x64xbf16> to vector<20x64xbf16>
    %c1_17 = arith.constant 1 : index
    %c0_18 = arith.constant 0 : index
    %c0_19 = arith.constant 0 : index
    %12 = vector.load %arg2[%c1_17, %c0_18, %c0_19] : memref<4x64x128xbf16, #tpu.memory_space<vmem>>, vector<1x64x128xbf16>
    %13 = vector.shape_cast %12 : vector<1x64x128xbf16> to vector<64x128xbf16>
    %cst_20 = arith.constant dense<0.000000e+00> : vector<20x128xf32>
    %14 = tpu.matmul %11, %13, %cst_20 {dimension_numbers = #tpu.dot_dimension_numbers<[1], [0], [0], [1], [0, 0, 1, 1], [], []>} : vector<20x64xbf16>, vector<64x128xbf16>, vector<20x128xf32> -> vector<20x128xf32>
    %15 = arith.addf %9, %14 : vector<20x128xf32>
    %c0_21 = arith.constant 0 : index
    %c1_22 = arith.constant 1 : index
    %c0_23 = arith.constant 0 : index
    %c0_24 = arith.constant 0 : index
    %16 = vector.load %arg1[%c0_21, %c1_22, %c0_23, %c0_24] : memref<1x21x21x64xbf16, #tpu.memory_space<vmem>>, vector<1x1x20x64xbf16>
    %17 = vector.shape_cast %16 : vector<1x1x20x64xbf16> to vector<20x64xbf16>
    %c2_25 = arith.constant 2 : index
    %c0_26 = arith.constant 0 : index
    %c0_27 = arith.constant 0 : index
    %18 = vector.load %arg2[%c2_25, %c0_26, %c0_27] : memref<4x64x128xbf16, #tpu.memory_space<vmem>>, vector<1x64x128xbf16>
    %19 = vector.shape_cast %18 : vector<1x64x128xbf16> to vector<64x128xbf16>
    %cst_28 = arith.constant dense<0.000000e+00> : vector<20x128xf32>
    %20 = tpu.matmul %17, %19, %cst_28 {dimension_numbers = #tpu.dot_dimension_numbers<[1], [0], [0], [1], [0, 0, 1, 1], [], []>} : vector<20x64xbf16>, vector<64x128xbf16>, vector<20x128xf32> -> vector<20x128xf32>
    %21 = arith.addf %15, %20 : vector<20x128xf32>
    %c0_29 = arith.constant 0 : index
    %c1_30 = arith.constant 1 : index
    %c1_31 = arith.constant 1 : index
    %c0_32 = arith.constant 0 : index
    %22 = vector.load %arg1[%c0_29, %c1_30, %c1_31, %c0_32] : memref<1x21x21x64xbf16, #tpu.memory_space<vmem>>, vector<1x1x20x64xbf16>
    %23 = vector.shape_cast %22 : vector<1x1x20x64xbf16> to vector<20x64xbf16>
    %c3 = arith.constant 3 : index
    %c0_33 = arith.constant 0 : index
    %c0_34 = arith.constant 0 : index
    %24 = vector.load %arg2[%c3, %c0_33, %c0_34] : memref<4x64x128xbf16, #tpu.memory_space<vmem>>, vector<1x64x128xbf16>
    %25 = vector.shape_cast %24 : vector<1x64x128xbf16> to vector<64x128xbf16>
    %cst_35 = arith.constant dense<0.000000e+00> : vector<20x128xf32>
    %26 = tpu.matmul %23, %25, %cst_35 {dimension_numbers = #tpu.dot_dimension_numbers<[1], [0], [0], [1], [0, 0, 1, 1], [], []>} : vector<20x64xbf16>, vector<64x128xbf16>, vector<20x128xf32> -> vector<20x128xf32>
    %27 = arith.addf %21, %26 : vector<20x128xf32>
    %28 = vector.broadcast %0 : vector<1x128xf32> to vector<20x128xf32>
    %29 = arith.addf %27, %28 : vector<20x128xf32>
    %cst_36 = arith.constant 0.000000e+00 : f32
    %30 = vector.broadcast %cst_36 : f32 to vector<20x128xf32>
    %31 = arith.cmpf oge, %29, %30 : vector<20x128xf32>
    %cst_37 = arith.constant 0.00999999977 : f32
    %32 = vector.broadcast %cst_37 : f32 to vector<20x128xf32>
    %33 = arith.mulf %32, %29 : vector<20x128xf32>
    %34 = arith.select %31, %29, %33 : vector<20x128xi1>, vector<20x128xf32>
    %c0_38 = arith.constant 0 : index
    %c1_39 = arith.constant 1 : index
    %c0_40 = arith.constant 0 : index
    %c0_41 = arith.constant 0 : index
    %35 = vector.load %arg1[%c0_38, %c1_39, %c0_40, %c0_41] : memref<1x21x21x64xbf16, #tpu.memory_space<vmem>>, vector<1x1x20x64xbf16>
    %36 = vector.shape_cast %35 : vector<1x1x20x64xbf16> to vector<20x64xbf16>
    %c0_42 = arith.constant 0 : index
    %c0_43 = arith.constant 0 : index
    %c0_44 = arith.constant 0 : index
    %37 = vector.load %arg2[%c0_42, %c0_43, %c0_44] : memref<4x64x128xbf16, #tpu.memory_space<vmem>>, vector<1x64x128xbf16>
    %38 = vector.shape_cast %37 : vector<1x64x128xbf16> to vector<64x128xbf16>
    %cst_45 = arith.constant dense<0.000000e+00> : vector<20x128xf32>
    %39 = tpu.matmul %36, %38, %cst_45 {dimension_numbers = #tpu.dot_dimension_numbers<[1], [0], [0], [1], [0, 0, 1, 1], [], []>} : vector<20x64xbf16>, vector<64x128xbf16>, vector<20x128xf32> -> vector<20x128xf32>
    %c0_46 = arith.constant 0 : index
    %c1_47 = arith.constant 1 : index
    %c1_48 = arith.constant 1 : index
    %c0_49 = arith.constant 0 : index
    %40 = vector.load %arg1[%c0_46, %c1_47, %c1_48, %c0_49] : memref<1x21x21x64xbf16, #tpu.memory_space<vmem>>, vector<1x1x20x64xbf16>
    %41 = vector.shape_cast %40 : vector<1x1x20x64xbf16> to vector<20x64xbf16>
    %c1_50 = arith.constant 1 : index
    %c0_51 = arith.constant 0 : index
    %c0_52 = arith.constant 0 : index
    %42 = vector.load %arg2[%c1_50, %c0_51, %c0_52] : memref<4x64x128xbf16, #tpu.memory_space<vmem>>, vector<1x64x128xbf16>
    %43 = vector.shape_cast %42 : vector<1x64x128xbf16> to vector<64x128xbf16>
    %cst_53 = arith.constant dense<0.000000e+00> : vector<20x128xf32>
    %44 = tpu.matmul %41, %43, %cst_53 {dimension_numbers = #tpu.dot_dimension_numbers<[1], [0], [0], [1], [0, 0, 1, 1], [], []>} : vector<20x64xbf16>, vector<64x128xbf16>, vector<20x128xf32> -> vector<20x128xf32>
    %45 = arith.addf %39, %44 : vector<20x128xf32>
    %c0_54 = arith.constant 0 : index
    %c2_55 = arith.constant 2 : index
    %c0_56 = arith.constant 0 : index
    %c0_57 = arith.constant 0 : index
    %46 = vector.load %arg1[%c0_54, %c2_55, %c0_56, %c0_57] : memref<1x21x21x64xbf16, #tpu.memory_space<vmem>>, vector<1x1x20x64xbf16>
    %47 = vector.shape_cast %46 : vector<1x1x20x64xbf16> to vector<20x64xbf16>
    %c2_58 = arith.constant 2 : index
    %c0_59 = arith.constant 0 : index
    %c0_60 = arith.constant 0 : index
    %48 = vector.load %arg2[%c2_58, %c0_59, %c0_60] : memref<4x64x128xbf16, #tpu.memory_space<vmem>>, vector<1x64x128xbf16>
    %49 = vector.shape_cast %48 : vector<1x64x128xbf16> to vector<64x128xbf16>
    %cst_61 = arith.constant dense<0.000000e+00> : vector<20x128xf32>
    %50 = tpu.matmul %47, %49, %cst_61 {dimension_numbers = #tpu.dot_dimension_numbers<[1], [0], [0], [1], [0, 0, 1, 1], [], []>} : vector<20x64xbf16>, vector<64x128xbf16>, vector<20x128xf32> -> vector<20x128xf32>
    %51 = arith.addf %45, %50 : vector<20x128xf32>
    %c0_62 = arith.constant 0 : index
    %c2_63 = arith.constant 2 : index
    %c1_64 = arith.constant 1 : index
    %c0_65 = arith.constant 0 : index
    %52 = vector.load %arg1[%c0_62, %c2_63, %c1_64, %c0_65] : memref<1x21x21x64xbf16, #tpu.memory_space<vmem>>, vector<1x1x20x64xbf16>
    %53 = vector.shape_cast %52 : vector<1x1x20x64xbf16> to vector<20x64xbf16>
    %c3_66 = arith.constant 3 : index
    %c0_67 = arith.constant 0 : index
    %c0_68 = arith.constant 0 : index
    %54 = vector.load %arg2[%c3_66, %c0_67, %c0_68] : memref<4x64x128xbf16, #tpu.memory_space<vmem>>, vector<1x64x128xbf16>
    %55 = vector.shape_cast %54 : vector<1x64x128xbf16> to vector<64x128xbf16>
    %cst_69 = arith.constant dense<0.000000e+00> : vector<20x128xf32>
    %56 = tpu.matmul %53, %55, %cst_69 {dimension_numbers = #tpu.dot_dimension_numbers<[1], [0], [0], [1], [0, 0, 1, 1], [], []>} : vector<20x64xbf16>, vector<64x128xbf16>, vector<20x128xf32> -> vector<20x128xf32>
    %57 = arith.addf %51, %56 : vector<20x128xf32>
    %58 = vector.broadcast %0 : vector<1x128xf32> to vector<20x128xf32>
    %59 = arith.addf %57, %58 : vector<20x128xf32>
    %cst_70 = arith.constant 0.000000e+00 : f32
    %60 = vector.broadcast %cst_70 : f32 to vector<20x128xf32>
    %61 = arith.cmpf oge, %59, %60 : vector<20x128xf32>
    %cst_71 = arith.constant 0.00999999977 : f32
    %62 = vector.broadcast %cst_71 : f32 to vector<20x128xf32>
    %63 = arith.mulf %62, %59 : vector<20x128xf32>
    %64 = arith.select %61, %59, %63 : vector<20x128xi1>, vector<20x128xf32>
    %65 = arith.addf %34, %64 : vector<20x128xf32>
    %cst_72 = arith.constant dense<0.000000e+00> : vector<5x128xf32>
    %66 = tpu.matmul %3, %65, %cst_72 {dimension_numbers = #tpu.dot_dimension_numbers<[1], [0], [0], [1], [0, 0, 1, 1], [], []>} : vector<5x20xf32>, vector<20x128xf32>, vector<5x128xf32> -> vector<5x128xf32>
    %cst_73 = arith.constant dense<0.000000e+00> : vector<5x128xf32>
    %67 = tpu.matmul %4, %65, %cst_73 {dimension_numbers = #tpu.dot_dimension_numbers<[1], [0], [0], [1], [0, 0, 1, 1], [], []>} : vector<5x20xf32>, vector<20x128xf32>, vector<5x128xf32> -> vector<5x128xf32>
    %c0_74 = arith.constant 0 : index
    %c0_75 = arith.constant 0 : index
    %c0_76 = arith.constant 0 : index
    %68 = vector.load %arg8[%c0_74, %c0_75, %c0_76] : memref<5x5x512xf32, #tpu.memory_space<vmem>>, vector<1x5x128xf32>
    %69 = vector.shape_cast %68 : vector<1x5x128xf32> to vector<5x128xf32>
    %70 = vector.shape_cast %66 : vector<5x128xf32> to vector<1x5x128xf32>
    tpu.vector_store %arg8[%c0_74, %c0_75, %c0_76], %70 {strides = array<i32>} : memref<5x5x512xf32, #tpu.memory_space<vmem>>, vector<1x5x128xf32>,
    %c0_77 = arith.constant 0 : index
    %c0_78 = arith.constant 0 : index
    %c128 = arith.constant 128 : index
    %71 = vector.load %arg8[%c0_77, %c0_78, %c128] : memref<5x5x512xf32, #tpu.memory_space<vmem>>, vector<1x5x128xf32>
    %72 = vector.shape_cast %71 : vector<1x5x128xf32> to vector<5x128xf32>
    %73 = vector.shape_cast %67 : vector<5x128xf32> to vector<1x5x128xf32>
    tpu.vector_store %arg8[%c0_77, %c0_78, %c128], %73 {strides = array<i32>} : memref<5x5x512xf32, #tpu.memory_space<vmem>>, vector<1x5x128xf32>,
    %c0_79 = arith.constant 0 : index
    %c2_80 = arith.constant 2 : index
    %c0_81 = arith.constant 0 : index
    %c0_82 = arith.constant 0 : index
    %74 = vector.load %arg1[%c0_79, %c2_80, %c0_81, %c0_82] : memref<1x21x21x64xbf16, #tpu.memory_space<vmem>>, vector<1x1x20x64xbf16>
    %75 = vector.shape_cast %74 : vector<1x1x20x64xbf16> to vector<20x64xbf16>
    %c0_83 = arith.constant 0 : index
    %c0_84 = arith.constant 0 : index
    %c0_85 = arith.constant 0 : index
    %76 = vector.load %arg2[%c0_83, %c0_84, %c0_85] : memref<4x64x128xbf16, #tpu.memory_space<vmem>>, vector<1x64x128xbf16>
    %77 = vector.shape_cast %76 : vector<1x64x128xbf16> to vector<64x128xbf16>
    %cst_86 = arith.constant dense<0.000000e+00> : vector<20x128xf32>
    %78 = tpu.matmul %75, %77, %cst_86 {dimension_numbers = #tpu.dot_dimension_numbers<[1], [0], [0], [1], [0, 0, 1, 1], [], []>} : vector<20x64xbf16>, vector<64x128xbf16>, vector<20x128xf32> -> vector<20x128xf32>
    %c0_87 = arith.constant 0 : index
    %c2_88 = arith.constant 2 : index
    %c1_89 = arith.constant 1 : index
    %c0_90 = arith.constant 0 : index
    %79 = vector.load %arg1[%c0_87, %c2_88, %c1_89, %c0_90] : memref<1x21x21x64xbf16, #tpu.memory_space<vmem>>, vector<1x1x20x64xbf16>
    %80 = vector.shape_cast %79 : vector<1x1x20x64xbf16> to vector<20x64xbf16>
    %c1_91 = arith.constant 1 : index
    %c0_92 = arith.constant 0 : index
    %c0_93 = arith.constant 0 : index
    %81 = vector.load %arg2[%c1_91, %c0_92, %c0_93] : memref<4x64x128xbf16, #tpu.memory_space<vmem>>, vector<1x64x128xbf16>
    %82 = vector.shape_cast %81 : vector<1x64x128xbf16> to vector<64x128xbf16>
    %cst_94 = arith.constant dense<0.000000e+00> : vector<20x128xf32>
    %83 = tpu.matmul %80, %82, %cst_94 {dimension_numbers = #tpu.dot_dimension_numbers<[1], [0], [0], [1], [0, 0, 1, 1], [], []>} : vector<20x64xbf16>, vector<64x128xbf16>, vector<20x128xf32> -> vector<20x128xf32>
    %84 = arith.addf %78, %83 : vector<20x128xf32>
    %c0_95 = arith.constant 0 : index
    %c3_96 = arith.constant 3 : index
    %c0_97 = arith.constant 0 : index
    %c0_98 = arith.constant 0 : index
    %85 = vector.load %arg1[%c0_95, %c3_96, %c0_97, %c0_98] : memref<1x21x21x64xbf16, #tpu.memory_space<vmem>>, vector<1x1x20x64xbf16>
    %86 = vector.shape_cast %85 : vector<1x1x20x64xbf16> to vector<20x64xbf16>
    %c2_99 = arith.constant 2 : index
    %c0_100 = arith.constant 0 : index
    %c0_101 = arith.constant 0 : index
    %87 = vector.load %arg2[%c2_99, %c0_100, %c0_101] : memref<4x64x128xbf16, #tpu.memory_space<vmem>>, vector<1x64x128xbf16>
    %88 = vector.shape_cast %87 : vector<1x64x128xbf16> to vector<64x128xbf16>
    %cst_102 = arith.constant dense<0.000000e+00> : vector<20x128xf32>
    %89 = tpu.matmul %86, %88, %cst_102 {dimension_numbers = #tpu.dot_dimension_numbers<[1], [0], [0], [1], [0, 0, 1, 1], [], []>} : vector<20x64xbf16>, vector<64x128xbf16>, vector<20x128xf32> -> vector<20x128xf32>
    %90 = arith.addf %84, %89 : vector<20x128xf32>
    %c0_103 = arith.constant 0 : index
    %c3_104 = arith.constant 3 : index
    %c1_105 = arith.constant 1 : index
    %c0_106 = arith.constant 0 : index
    %91 = vector.load %arg1[%c0_103, %c3_104, %c1_105, %c0_106] : memref<1x21x21x64xbf16, #tpu.memory_space<vmem>>, vector<1x1x20x64xbf16>
    %92 = vector.shape_cast %91 : vector<1x1x20x64xbf16> to vector<20x64xbf16>
    %c3_107 = arith.constant 3 : index
    %c0_108 = arith.constant 0 : index
    %c0_109 = arith.constant 0 : index
    %93 = vector.load %arg2[%c3_107, %c0_108, %c0_109] : memref<4x64x128xbf16, #tpu.memory_space<vmem>>, vector<1x64x128xbf16>
    %94 = vector.shape_cast %93 : vector<1x64x128xbf16> to vector<64x128xbf16>
    %cst_110 = arith.constant dense<0.000000e+00> : vector<20x128xf32>
    %95 = tpu.matmul %92, %94, %cst_110 {dimension_numbers = #tpu.dot_dimension_numbers<[1], [0], [0], [1], [0, 0, 1, 1], [], []>} : vector<20x64xbf16>, vector<64x128xbf16>, vector<20x128xf32> -> vector<20x128xf32>
    %96 = arith.addf %90, %95 : vector<20x128xf32>
    %97 = vector.broadcast %0 : vector<1x128xf32> to vector<20x128xf32>
    %98 = arith.addf %96, %97 : vector<20x128xf32>
    %cst_111 = arith.constant 0.000000e+00 : f32
    %99 = vector.broadcast %cst_111 : f32 to vector<20x128xf32>
    %100 = arith.cmpf oge, %98, %99 : vector<20x128xf32>
    %cst_112 = arith.constant 0.00999999977 : f32
    %101 = vector.broadcast %cst_112 : f32 to vector<20x128xf32>
    %102 = arith.mulf %101, %98 : vector<20x128xf32>
    %103 = arith.select %100, %98, %102 : vector<20x128xi1>, vector<20x128xf32>
    %c0_113 = arith.constant 0 : index
    %c3_114 = arith.constant 3 : index
    %c0_115 = arith.constant 0 : index
    %c0_116 = arith.constant 0 : index
    %104 = vector.load %arg1[%c0_113, %c3_114, %c0_115, %c0_116] : memref<1x21x21x64xbf16, #tpu.memory_space<vmem>>, vector<1x1x20x64xbf16>
    %105 = vector.shape_cast %104 : vector<1x1x20x64xbf16> to vector<20x64xbf16>
    %c0_117 = arith.constant 0 : index
    %c0_118 = arith.constant 0 : index
    %c0_119 = arith.constant 0 : index
    %106 = vector.load %arg2[%c0_117, %c0_118, %c0_119] : memref<4x64x128xbf16, #tpu.memory_space<vmem>>, vector<1x64x128xbf16>
    %107 = vector.shape_cast %106 : vector<1x64x128xbf16> to vector<64x128xbf16>
    %cst_120 = arith.constant dense<0.000000e+00> : vector<20x128xf32>
    %108 = tpu.matmul %105, %107, %cst_120 {dimension_numbers = #tpu.dot_dimension_numbers<[1], [0], [0], [1], [0, 0, 1, 1], [], []>} : vector<20x64xbf16>, vector<64x128xbf16>, vector<20x128xf32> -> vector<20x128xf32>
    %c0_121 = arith.constant 0 : index
    %c3_122 = arith.constant 3 : index
    %c1_123 = arith.constant 1 : index
    %c0_124 = arith.constant 0 : index
    %109 = vector.load %arg1[%c0_121, %c3_122, %c1_123, %c0_124] : memref<1x21x21x64xbf16, #tpu.memory_space<vmem>>, vector<1x1x20x64xbf16>
    %110 = vector.shape_cast %109 : vector<1x1x20x64xbf16> to vector<20x64xbf16>
    %c1_125 = arith.constant 1 : index
    %c0_126 = arith.constant 0 : index
    %c0_127 = arith.constant 0 : index
    %111 = vector.load %arg2[%c1_125, %c0_126, %c0_127] : memref<4x64x128xbf16, #tpu.memory_space<vmem>>, vector<1x64x128xbf16>
    %112 = vector.shape_cast %111 : vector<1x64x128xbf16> to vector<64x128xbf16>
    %cst_128 = arith.constant dense<0.000000e+00> : vector<20x128xf32>
    %113 = tpu.matmul %110, %112, %cst_128 {dimension_numbers = #tpu.dot_dimension_numbers<[1], [0], [0], [1], [0, 0, 1, 1], [], []>} : vector<20x64xbf16>, vector<64x128xbf16>, vector<20x128xf32> -> vector<20x128xf32>
    %114 = arith.addf %108, %113 : vector<20x128xf32>
    %c0_129 = arith.constant 0 : index
    %c4 = arith.constant 4 : index
    %c0_130 = arith.constant 0 : index
    %c0_131 = arith.constant 0 : index
    %115 = vector.load %arg1[%c0_129, %c4, %c0_130, %c0_131] : memref<1x21x21x64xbf16, #tpu.memory_space<vmem>>, vector<1x1x20x64xbf16>
    %116 = vector.shape_cast %115 : vector<1x1x20x64xbf16> to vector<20x64xbf16>
    %c2_132 = arith.constant 2 : index
    %c0_133 = arith.constant 0 : index
    %c0_134 = arith.constant 0 : index
    %117 = vector.load %arg2[%c2_132, %c0_133, %c0_134] : memref<4x64x128xbf16, #tpu.memory_space<vmem>>, vector<1x64x128xbf16>
    %118 = vector.shape_cast %117 : vector<1x64x128xbf16> to vector<64x128xbf16>
    %cst_135 = arith.constant dense<0.000000e+00> : vector<20x128xf32>
    %119 = tpu.matmul %116, %118, %cst_135 {dimension_numbers = #tpu.dot_dimension_numbers<[1], [0], [0], [1], [0, 0, 1, 1], [], []>} : vector<20x64xbf16>, vector<64x128xbf16>, vector<20x128xf32> -> vector<20x128xf32>
    %120 = arith.addf %114, %119 : vector<20x128xf32>
    %c0_136 = arith.constant 0 : index
    %c4_137 = arith.constant 4 : index
    %c1_138 = arith.constant 1 : index
    %c0_139 = arith.constant 0 : index
    %121 = vector.load %arg1[%c0_136, %c4_137, %c1_138, %c0_139] : memref<1x21x21x64xbf16, #tpu.memory_space<vmem>>, vector<1x1x20x64xbf16>
    %122 = vector.shape_cast %121 : vector<1x1x20x64xbf16> to vector<20x64xbf16>
    %c3_140 = arith.constant 3 : index
    %c0_141 = arith.constant 0 : index
    %c0_142 = arith.constant 0 : index
    %123 = vector.load %arg2[%c3_140, %c0_141, %c0_142] : memref<4x64x128xbf16, #tpu.memory_space<vmem>>, vector<1x64x128xbf16>
    %124 = vector.shape_cast %123 : vector<1x64x128xbf16> to vector<64x128xbf16>
    %cst_143 = arith.constant dense<0.000000e+00> : vector<20x128xf32>
    %125 = tpu.matmul %122, %124, %cst_143 {dimension_numbers = #tpu.dot_dimension_numbers<[1], [0], [0], [1], [0, 0, 1, 1], [], []>} : vector<20x64xbf16>, vector<64x128xbf16>, vector<20x128xf32> -> vector<20x128xf32>
    %126 = arith.addf %120, %125 : vector<20x128xf32>
    %127 = vector.broadcast %0 : vector<1x128xf32> to vector<20x128xf32>
    %128 = arith.addf %126, %127 : vector<20x128xf32>
    %cst_144 = arith.constant 0.000000e+00 : f32
    %129 = vector.broadcast %cst_144 : f32 to vector<20x128xf32>
    %130 = arith.cmpf oge, %128, %129 : vector<20x128xf32>
    %cst_145 = arith.constant 0.00999999977 : f32
    %131 = vector.broadcast %cst_145 : f32 to vector<20x128xf32>
    %132 = arith.mulf %131, %128 : vector<20x128xf32>
    %133 = arith.select %130, %128, %132 : vector<20x128xi1>, vector<20x128xf32>
    %134 = arith.addf %103, %133 : vector<20x128xf32>
    %cst_146 = arith.constant dense<0.000000e+00> : vector<5x128xf32>
    %135 = tpu.matmul %3, %134, %cst_146 {dimension_numbers = #tpu.dot_dimension_numbers<[1], [0], [0], [1], [0, 0, 1, 1], [], []>} : vector<5x20xf32>, vector<20x128xf32>, vector<5x128xf32> -> vector<5x128xf32>
    %cst_147 = arith.constant dense<0.000000e+00> : vector<5x128xf32>
    %136 = tpu.matmul %4, %134, %cst_147 {dimension_numbers = #tpu.dot_dimension_numbers<[1], [0], [0], [1], [0, 0, 1, 1], [], []>} : vector<5x20xf32>, vector<20x128xf32>, vector<5x128xf32> -> vector<5x128xf32>
    %c0_148 = arith.constant 0 : index
    %c0_149 = arith.constant 0 : index
    %c256 = arith.constant 256 : index
    %137 = vector.load %arg8[%c0_148, %c0_149, %c256] : memref<5x5x512xf32, #tpu.memory_space<vmem>>, vector<1x5x128xf32>
    %138 = vector.shape_cast %137 : vector<1x5x128xf32> to vector<5x128xf32>
    %139 = vector.shape_cast %135 : vector<5x128xf32> to vector<1x5x128xf32>
    tpu.vector_store %arg8[%c0_148, %c0_149, %c256], %139 {strides = array<i32>} : memref<5x5x512xf32, #tpu.memory_space<vmem>>, vector<1x5x128xf32>,
    %c0_150 = arith.constant 0 : index
    %c0_151 = arith.constant 0 : index
    %c384 = arith.constant 384 : index
    %140 = vector.load %arg8[%c0_150, %c0_151, %c384] : memref<5x5x512xf32, #tpu.memory_space<vmem>>, vector<1x5x128xf32>
    %141 = vector.shape_cast %140 : vector<1x5x128xf32> to vector<5x128xf32>
    %142 = vector.shape_cast %136 : vector<5x128xf32> to vector<1x5x128xf32>
    tpu.vector_store %arg8[%c0_150, %c0_151, %c384], %142 {strides = array<i32>} : memref<5x5x512xf32, #tpu.memory_space<vmem>>, vector<1x5x128xf32>,
    %c0_152 = arith.constant 0 : index
    %c4_153 = arith.constant 4 : index
    %c0_154 = arith.constant 0 : index
    %c0_155 = arith.constant 0 : index
    %143 = vector.load %arg1[%c0_152, %c4_153, %c0_154, %c0_155] : memref<1x21x21x64xbf16, #tpu.memory_space<vmem>>, vector<1x1x20x64xbf16>
    %144 = vector.shape_cast %143 : vector<1x1x20x64xbf16> to vector<20x64xbf16>
    %c0_156 = arith.constant 0 : index
    %c0_157 = arith.constant 0 : index
    %c0_158 = arith.constant 0 : index
    %145 = vector.load %arg2[%c0_156, %c0_157, %c0_158] : memref<4x64x128xbf16, #tpu.memory_space<vmem>>, vector<1x64x128xbf16>
    %146 = vector.shape_cast %145 : vector<1x64x128xbf16> to vector<64x128xbf16>
    %cst_159 = arith.constant dense<0.000000e+00> : vector<20x128xf32>
    %147 = tpu.matmul %144, %146, %cst_159 {dimension_numbers = #tpu.dot_dimension_numbers<[1], [0], [0], [1], [0, 0, 1, 1], [], []>} : vector<20x64xbf16>, vector<64x128xbf16>, vector<20x128xf32> -> vector<20x128xf32>
    %c0_160 = arith.constant 0 : index
    %c4_161 = arith.constant 4 : index
    %c1_162 = arith.constant 1 : index
    %c0_163 = arith.constant 0 : index
    %148 = vector.load %arg1[%c0_160, %c4_161, %c1_162, %c0_163] : memref<1x21x21x64xbf16, #tpu.memory_space<vmem>>, vector<1x1x20x64xbf16>
    %149 = vector.shape_cast %148 : vector<1x1x20x64xbf16> to vector<20x64xbf16>
    %c1_164 = arith.constant 1 : index
    %c0_165 = arith.constant 0 : index
    %c0_166 = arith.constant 0 : index
    %150 = vector.load %arg2[%c1_164, %c0_165, %c0_166] : memref<4x64x128xbf16, #tpu.memory_space<vmem>>, vector<1x64x128xbf16>
    %151 = vector.shape_cast %150 : vector<1x64x128xbf16> to vector<64x128xbf16>
    %cst_167 = arith.constant dense<0.000000e+00> : vector<20x128xf32>
    %152 = tpu.matmul %149, %151, %cst_167 {dimension_numbers = #tpu.dot_dimension_numbers<[1], [0], [0], [1], [0, 0, 1, 1], [], []>} : vector<20x64xbf16>, vector<64x128xbf16>, vector<20x128xf32> -> vector<20x128xf32>
    %153 = arith.addf %147, %152 : vector<20x128xf32>
    %c0_168 = arith.constant 0 : index
    %c5_169 = arith.constant 5 : index
    %c0_170 = arith.constant 0 : index
    %c0_171 = arith.constant 0 : index
    %154 = vector.load %arg1[%c0_168, %c5_169, %c0_170, %c0_171] : memref<1x21x21x64xbf16, #tpu.memory_space<vmem>>, vector<1x1x20x64xbf16>
    %155 = vector.shape_cast %154 : vector<1x1x20x64xbf16> to vector<20x64xbf16>
    %c2_172 = arith.constant 2 : index
    %c0_173 = arith.constant 0 : index
    %c0_174 = arith.constant 0 : index
    %156 = vector.load %arg2[%c2_172, %c0_173, %c0_174] : memref<4x64x128xbf16, #tpu.memory_space<vmem>>, vector<1x64x128xbf16>
    %157 = vector.shape_cast %156 : vector<1x64x128xbf16> to vector<64x128xbf16>
    %cst_175 = arith.constant dense<0.000000e+00> : vector<20x128xf32>
    %158 = tpu.matmul %155, %157, %cst_175 {dimension_numbers = #tpu.dot_dimension_numbers<[1], [0], [0], [1], [0, 0, 1, 1], [], []>} : vector<20x64xbf16>, vector<64x128xbf16>, vector<20x128xf32> -> vector<20x128xf32>
    %159 = arith.addf %153, %158 : vector<20x128xf32>
    %c0_176 = arith.constant 0 : index
    %c5_177 = arith.constant 5 : index
    %c1_178 = arith.constant 1 : index
    %c0_179 = arith.constant 0 : index
    %160 = vector.load %arg1[%c0_176, %c5_177, %c1_178, %c0_179] : memref<1x21x21x64xbf16, #tpu.memory_space<vmem>>, vector<1x1x20x64xbf16>
    %161 = vector.shape_cast %160 : vector<1x1x20x64xbf16> to vector<20x64xbf16>
    %c3_180 = arith.constant 3 : index
    %c0_181 = arith.constant 0 : index
    %c0_182 = arith.constant 0 : index
    %162 = vector.load %arg2[%c3_180, %c0_181, %c0_182] : memref<4x64x128xbf16, #tpu.memory_space<vmem>>, vector<1x64x128xbf16>
    %163 = vector.shape_cast %162 : vector<1x64x128xbf16> to vector<64x128xbf16>
    %cst_183 = arith.constant dense<0.000000e+00> : vector<20x128xf32>
    %164 = tpu.matmul %161, %163, %cst_183 {dimension_numbers = #tpu.dot_dimension_numbers<[1], [0], [0], [1], [0, 0, 1, 1], [], []>} : vector<20x64xbf16>, vector<64x128xbf16>, vector<20x128xf32> -> vector<20x128xf32>
    %165 = arith.addf %159, %164 : vector<20x128xf32>
    %166 = vector.broadcast %0 : vector<1x128xf32> to vector<20x128xf32>
    %167 = arith.addf %165, %166 : vector<20x128xf32>
    %cst_184 = arith.constant 0.000000e+00 : f32
    %168 = vector.broadcast %cst_184 : f32 to vector<20x128xf32>
    %169 = arith.cmpf oge, %167, %168 : vector<20x128xf32>
    %cst_185 = arith.constant 0.00999999977 : f32
    %170 = vector.broadcast %cst_185 : f32 to vector<20x128xf32>
    %171 = arith.mulf %170, %167 : vector<20x128xf32>
    %172 = arith.select %169, %167, %171 : vector<20x128xi1>, vector<20x128xf32>
    %c0_186 = arith.constant 0 : index
    %c5_187 = arith.constant 5 : index
    %c0_188 = arith.constant 0 : index
    %c0_189 = arith.constant 0 : index
    %173 = vector.load %arg1[%c0_186, %c5_187, %c0_188, %c0_189] : memref<1x21x21x64xbf16, #tpu.memory_space<vmem>>, vector<1x1x20x64xbf16>
    %174 = vector.shape_cast %173 : vector<1x1x20x64xbf16> to vector<20x64xbf16>
    %c0_190 = arith.constant 0 : index
    %c0_191 = arith.constant 0 : index
    %c0_192 = arith.constant 0 : index
    %175 = vector.load %arg2[%c0_190, %c0_191, %c0_192] : memref<4x64x128xbf16, #tpu.memory_space<vmem>>, vector<1x64x128xbf16>
    %176 = vector.shape_cast %175 : vector<1x64x128xbf16> to vector<64x128xbf16>
    %cst_193 = arith.constant dense<0.000000e+00> : vector<20x128xf32>
    %177 = tpu.matmul %174, %176, %cst_193 {dimension_numbers = #tpu.dot_dimension_numbers<[1], [0], [0], [1], [0, 0, 1, 1], [], []>} : vector<20x64xbf16>, vector<64x128xbf16>, vector<20x128xf32> -> vector<20x128xf32>
    %c0_194 = arith.constant 0 : index
    %c5_195 = arith.constant 5 : index
    %c1_196 = arith.constant 1 : index
    %c0_197 = arith.constant 0 : index
    %178 = vector.load %arg1[%c0_194, %c5_195, %c1_196, %c0_197] : memref<1x21x21x64xbf16, #tpu.memory_space<vmem>>, vector<1x1x20x64xbf16>
    %179 = vector.shape_cast %178 : vector<1x1x20x64xbf16> to vector<20x64xbf16>
    %c1_198 = arith.constant 1 : index
    %c0_199 = arith.constant 0 : index
    %c0_200 = arith.constant 0 : index
    %180 = vector.load %arg2[%c1_198, %c0_199, %c0_200] : memref<4x64x128xbf16, #tpu.memory_space<vmem>>, vector<1x64x128xbf16>
    %181 = vector.shape_cast %180 : vector<1x64x128xbf16> to vector<64x128xbf16>
    %cst_201 = arith.constant dense<0.000000e+00> : vector<20x128xf32>
    %182 = tpu.matmul %179, %181, %cst_201 {dimension_numbers = #tpu.dot_dimension_numbers<[1], [0], [0], [1], [0, 0, 1, 1], [], []>} : vector<20x64xbf16>, vector<64x128xbf16>, vector<20x128xf32> -> vector<20x128xf32>
    %183 = arith.addf %177, %182 : vector<20x128xf32>
    %c0_202 = arith.constant 0 : index
    %c6 = arith.constant 6 : index
    %c0_203 = arith.constant 0 : index
    %c0_204 = arith.constant 0 : index
    %184 = vector.load %arg1[%c0_202, %c6, %c0_203, %c0_204] : memref<1x21x21x64xbf16, #tpu.memory_space<vmem>>, vector<1x1x20x64xbf16>
    %185 = vector.shape_cast %184 : vector<1x1x20x64xbf16> to vector<20x64xbf16>
    %c2_205 = arith.constant 2 : index
    %c0_206 = arith.constant 0 : index
    %c0_207 = arith.constant 0 : index
    %186 = vector.load %arg2[%c2_205, %c0_206, %c0_207] : memref<4x64x128xbf16, #tpu.memory_space<vmem>>, vector<1x64x128xbf16>
    %187 = vector.shape_cast %186 : vector<1x64x128xbf16> to vector<64x128xbf16>
    %cst_208 = arith.constant dense<0.000000e+00> : vector<20x128xf32>
    %188 = tpu.matmul %185, %187, %cst_208 {dimension_numbers = #tpu.dot_dimension_numbers<[1], [0], [0], [1], [0, 0, 1, 1], [], []>} : vector<20x64xbf16>, vector<64x128xbf16>, vector<20x128xf32> -> vector<20x128xf32>
    %189 = arith.addf %183, %188 : vector<20x128xf32>
    %c0_209 = arith.constant 0 : index
    %c6_210 = arith.constant 6 : index
    %c1_211 = arith.constant 1 : index
    %c0_212 = arith.constant 0 : index
    %190 = vector.load %arg1[%c0_209, %c6_210, %c1_211, %c0_212] : memref<1x21x21x64xbf16, #tpu.memory_space<vmem>>, vector<1x1x20x64xbf16>
    %191 = vector.shape_cast %190 : vector<1x1x20x64xbf16> to vector<20x64xbf16>
    %c3_213 = arith.constant 3 : index
    %c0_214 = arith.constant 0 : index
    %c0_215 = arith.constant 0 : index
    %192 = vector.load %arg2[%c3_213, %c0_214, %c0_215] : memref<4x64x128xbf16, #tpu.memory_space<vmem>>, vector<1x64x128xbf16>
    %193 = vector.shape_cast %192 : vector<1x64x128xbf16> to vector<64x128xbf16>
    %cst_216 = arith.constant dense<0.000000e+00> : vector<20x128xf32>
    %194 = tpu.matmul %191, %193, %cst_216 {dimension_numbers = #tpu.dot_dimension_numbers<[1], [0], [0], [1], [0, 0, 1, 1], [], []>} : vector<20x64xbf16>, vector<64x128xbf16>, vector<20x128xf32> -> vector<20x128xf32>
    %195 = arith.addf %189, %194 : vector<20x128xf32>
    %196 = vector.broadcast %0 : vector<1x128xf32> to vector<20x128xf32>
    %197 = arith.addf %195, %196 : vector<20x128xf32>
    %cst_217 = arith.constant 0.000000e+00 : f32
    %198 = vector.broadcast %cst_217 : f32 to vector<20x128xf32>
    %199 = arith.cmpf oge, %197, %198 : vector<20x128xf32>
    %cst_218 = arith.constant 0.00999999977 : f32
    %200 = vector.broadcast %cst_218 : f32 to vector<20x128xf32>
    %201 = arith.mulf %200, %197 : vector<20x128xf32>
    %202 = arith.select %199, %197, %201 : vector<20x128xi1>, vector<20x128xf32>
    %203 = arith.addf %172, %202 : vector<20x128xf32>
    %cst_219 = arith.constant dense<0.000000e+00> : vector<5x128xf32>
    %204 = tpu.matmul %3, %203, %cst_219 {dimension_numbers = #tpu.dot_dimension_numbers<[1], [0], [0], [1], [0, 0, 1, 1], [], []>} : vector<5x20xf32>, vector<20x128xf32>, vector<5x128xf32> -> vector<5x128xf32>
    %cst_220 = arith.constant dense<0.000000e+00> : vector<5x128xf32>
    %205 = tpu.matmul %4, %203, %cst_220 {dimension_numbers = #tpu.dot_dimension_numbers<[1], [0], [0], [1], [0, 0, 1, 1], [], []>} : vector<5x20xf32>, vector<20x128xf32>, vector<5x128xf32> -> vector<5x128xf32>
    %c1_221 = arith.constant 1 : index
    %c0_222 = arith.constant 0 : index
    %c0_223 = arith.constant 0 : index
    %206 = vector.load %arg8[%c1_221, %c0_222, %c0_223] : memref<5x5x512xf32, #tpu.memory_space<vmem>>, vector<1x5x128xf32>
    %207 = vector.shape_cast %206 : vector<1x5x128xf32> to vector<5x128xf32>
    %208 = vector.shape_cast %204 : vector<5x128xf32> to vector<1x5x128xf32>
    tpu.vector_store %arg8[%c1_221, %c0_222, %c0_223], %208 {strides = array<i32>} : memref<5x5x512xf32, #tpu.memory_space<vmem>>, vector<1x5x128xf32>,
    %c1_224 = arith.constant 1 : index
    %c0_225 = arith.constant 0 : index
    %c128_226 = arith.constant 128 : index
    %209 = vector.load %arg8[%c1_224, %c0_225, %c128_226] : memref<5x5x512xf32, #tpu.memory_space<vmem>>, vector<1x5x128xf32>
    %210 = vector.shape_cast %209 : vector<1x5x128xf32> to vector<5x128xf32>
    %211 = vector.shape_cast %205 : vector<5x128xf32> to vector<1x5x128xf32>
    tpu.vector_store %arg8[%c1_224, %c0_225, %c128_226], %211 {strides = array<i32>} : memref<5x5x512xf32, #tpu.memory_space<vmem>>, vector<1x5x128xf32>,
    %c0_227 = arith.constant 0 : index
    %c6_228 = arith.constant 6 : index
    %c0_229 = arith.constant 0 : index
    %c0_230 = arith.constant 0 : index
    %212 = vector.load %arg1[%c0_227, %c6_228, %c0_229, %c0_230] : memref<1x21x21x64xbf16, #tpu.memory_space<vmem>>, vector<1x1x20x64xbf16>
    %213 = vector.shape_cast %212 : vector<1x1x20x64xbf16> to vector<20x64xbf16>
    %c0_231 = arith.constant 0 : index
    %c0_232 = arith.constant 0 : index
    %c0_233 = arith.constant 0 : index
    %214 = vector.load %arg2[%c0_231, %c0_232, %c0_233] : memref<4x64x128xbf16, #tpu.memory_space<vmem>>, vector<1x64x128xbf16>
    %215 = vector.shape_cast %214 : vector<1x64x128xbf16> to vector<64x128xbf16>
    %cst_234 = arith.constant dense<0.000000e+00> : vector<20x128xf32>
    %216 = tpu.matmul %213, %215, %cst_234 {dimension_numbers = #tpu.dot_dimension_numbers<[1], [0], [0], [1], [0, 0, 1, 1], [], []>} : vector<20x64xbf16>, vector<64x128xbf16>, vector<20x128xf32> -> vector<20x128xf32>
    %c0_235 = arith.constant 0 : index
    %c6_236 = arith.constant 6 : index
    %c1_237 = arith.constant 1 : index
    %c0_238 = arith.constant 0 : index
    %217 = vector.load %arg1[%c0_235, %c6_236, %c1_237, %c0_238] : memref<1x21x21x64xbf16, #tpu.memory_space<vmem>>, vector<1x1x20x64xbf16>
    %218 = vector.shape_cast %217 : vector<1x1x20x64xbf16> to vector<20x64xbf16>
    %c1_239 = arith.constant 1 : index
    %c0_240 = arith.constant 0 : index
    %c0_241 = arith.constant 0 : index
    %219 = vector.load %arg2[%c1_239, %c0_240, %c0_241] : memref<4x64x128xbf16, #tpu.memory_space<vmem>>, vector<1x64x128xbf16>
    %220 = vector.shape_cast %219 : vector<1x64x128xbf16> to vector<64x128xbf16>
    %cst_242 = arith.constant dense<0.000000e+00> : vector<20x128xf32>
    %221 = tpu.matmul %218, %220, %cst_242 {dimension_numbers = #tpu.dot_dimension_numbers<[1], [0], [0], [1], [0, 0, 1, 1], [], []>} : vector<20x64xbf16>, vector<64x128xbf16>, vector<20x128xf32> -> vector<20x128xf32>
    %222 = arith.addf %216, %221 : vector<20x128xf32>
    %c0_243 = arith.constant 0 : index
    %c7 = arith.constant 7 : index
    %c0_244 = arith.constant 0 : index
    %c0_245 = arith.constant 0 : index
    %223 = vector.load %arg1[%c0_243, %c7, %c0_244, %c0_245] : memref<1x21x21x64xbf16, #tpu.memory_space<vmem>>, vector<1x1x20x64xbf16>
    %224 = vector.shape_cast %223 : vector<1x1x20x64xbf16> to vector<20x64xbf16>
    %c2_246 = arith.constant 2 : index
    %c0_247 = arith.constant 0 : index
    %c0_248 = arith.constant 0 : index
    %225 = vector.load %arg2[%c2_246, %c0_247, %c0_248] : memref<4x64x128xbf16, #tpu.memory_space<vmem>>, vector<1x64x128xbf16>
    %226 = vector.shape_cast %225 : vector<1x64x128xbf16> to vector<64x128xbf16>
    %cst_249 = arith.constant dense<0.000000e+00> : vector<20x128xf32>
    %227 = tpu.matmul %224, %226, %cst_249 {dimension_numbers = #tpu.dot_dimension_numbers<[1], [0], [0], [1], [0, 0, 1, 1], [], []>} : vector<20x64xbf16>, vector<64x128xbf16>, vector<20x128xf32> -> vector<20x128xf32>
    %228 = arith.addf %222, %227 : vector<20x128xf32>
    %c0_250 = arith.constant 0 : index
    %c7_251 = arith.constant 7 : index
    %c1_252 = arith.constant 1 : index
    %c0_253 = arith.constant 0 : index
    %229 = vector.load %arg1[%c0_250, %c7_251, %c1_252, %c0_253] : memref<1x21x21x64xbf16, #tpu.memory_space<vmem>>, vector<1x1x20x64xbf16>
    %230 = vector.shape_cast %229 : vector<1x1x20x64xbf16> to vector<20x64xbf16>
    %c3_254 = arith.constant 3 : index
    %c0_255 = arith.constant 0 : index
    %c0_256 = arith.constant 0 : index
    %231 = vector.load %arg2[%c3_254, %c0_255, %c0_256] : memref<4x64x128xbf16, #tpu.memory_space<vmem>>, vector<1x64x128xbf16>
    %232 = vector.shape_cast %231 : vector<1x64x128xbf16> to vector<64x128xbf16>
    %cst_257 = arith.constant dense<0.000000e+00> : vector<20x128xf32>
    %233 = tpu.matmul %230, %232, %cst_257 {dimension_numbers = #tpu.dot_dimension_numbers<[1], [0], [0], [1], [0, 0, 1, 1], [], []>} : vector<20x64xbf16>, vector<64x128xbf16>, vector<20x128xf32> -> vector<20x128xf32>
    %234 = arith.addf %228, %233 : vector<20x128xf32>
    %235 = vector.broadcast %0 : vector<1x128xf32> to vector<20x128xf32>
    %236 = arith.addf %234, %235 : vector<20x128xf32>
    %cst_258 = arith.constant 0.000000e+00 : f32
    %237 = vector.broadcast %cst_258 : f32 to vector<20x128xf32>
    %238 = arith.cmpf oge, %236, %237 : vector<20x128xf32>
    %cst_259 = arith.constant 0.00999999977 : f32
    %239 = vector.broadcast %cst_259 : f32 to vector<20x128xf32>
    %240 = arith.mulf %239, %236 : vector<20x128xf32>
    %241 = arith.select %238, %236, %240 : vector<20x128xi1>, vector<20x128xf32>
    %c0_260 = arith.constant 0 : index
    %c7_261 = arith.constant 7 : index
    %c0_262 = arith.constant 0 : index
    %c0_263 = arith.constant 0 : index
    %242 = vector.load %arg1[%c0_260, %c7_261, %c0_262, %c0_263] : memref<1x21x21x64xbf16, #tpu.memory_space<vmem>>, vector<1x1x20x64xbf16>
    %243 = vector.shape_cast %242 : vector<1x1x20x64xbf16> to vector<20x64xbf16>
    %c0_264 = arith.constant 0 : index
    %c0_265 = arith.constant 0 : index
    %c0_266 = arith.constant 0 : index
    %244 = vector.load %arg2[%c0_264, %c0_265, %c0_266] : memref<4x64x128xbf16, #tpu.memory_space<vmem>>, vector<1x64x128xbf16>
    %245 = vector.shape_cast %244 : vector<1x64x128xbf16> to vector<64x128xbf16>
    %cst_267 = arith.constant dense<0.000000e+00> : vector<20x128xf32>
    %246 = tpu.matmul %243, %245, %cst_267 {dimension_numbers = #tpu.dot_dimension_numbers<[1], [0], [0], [1], [0, 0, 1, 1], [], []>} : vector<20x64xbf16>, vector<64x128xbf16>, vector<20x128xf32> -> vector<20x128xf32>
    %c0_268 = arith.constant 0 : index
    %c7_269 = arith.constant 7 : index
    %c1_270 = arith.constant 1 : index
    %c0_271 = arith.constant 0 : index
    %247 = vector.load %arg1[%c0_268, %c7_269, %c1_270, %c0_271] : memref<1x21x21x64xbf16, #tpu.memory_space<vmem>>, vector<1x1x20x64xbf16>
    %248 = vector.shape_cast %247 : vector<1x1x20x64xbf16> to vector<20x64xbf16>
    %c1_272 = arith.constant 1 : index
    %c0_273 = arith.constant 0 : index
    %c0_274 = arith.constant 0 : index
    %249 = vector.load %arg2[%c1_272, %c0_273, %c0_274] : memref<4x64x128xbf16, #tpu.memory_space<vmem>>, vector<1x64x128xbf16>
    %250 = vector.shape_cast %249 : vector<1x64x128xbf16> to vector<64x128xbf16>
    %cst_275 = arith.constant dense<0.000000e+00> : vector<20x128xf32>
    %251 = tpu.matmul %248, %250, %cst_275 {dimension_numbers = #tpu.dot_dimension_numbers<[1], [0], [0], [1], [0, 0, 1, 1], [], []>} : vector<20x64xbf16>, vector<64x128xbf16>, vector<20x128xf32> -> vector<20x128xf32>
    %252 = arith.addf %246, %251 : vector<20x128xf32>
    %c0_276 = arith.constant 0 : index
    %c8 = arith.constant 8 : index
    %c0_277 = arith.constant 0 : index
    %c0_278 = arith.constant 0 : index
    %253 = vector.load %arg1[%c0_276, %c8, %c0_277, %c0_278] : memref<1x21x21x64xbf16, #tpu.memory_space<vmem>>, vector<1x1x20x64xbf16>
    %254 = vector.shape_cast %253 : vector<1x1x20x64xbf16> to vector<20x64xbf16>
    %c2_279 = arith.constant 2 : index
    %c0_280 = arith.constant 0 : index
    %c0_281 = arith.constant 0 : index
    %255 = vector.load %arg2[%c2_279, %c0_280, %c0_281] : memref<4x64x128xbf16, #tpu.memory_space<vmem>>, vector<1x64x128xbf16>
    %256 = vector.shape_cast %255 : vector<1x64x128xbf16> to vector<64x128xbf16>
    %cst_282 = arith.constant dense<0.000000e+00> : vector<20x128xf32>
    %257 = tpu.matmul %254, %256, %cst_282 {dimension_numbers = #tpu.dot_dimension_numbers<[1], [0], [0], [1], [0, 0, 1, 1], [], []>} : vector<20x64xbf16>, vector<64x128xbf16>, vector<20x128xf32> -> vector<20x128xf32>
    %258 = arith.addf %252, %257 : vector<20x128xf32>
    %c0_283 = arith.constant 0 : index
    %c8_284 = arith.constant 8 : index
    %c1_285 = arith.constant 1 : index
    %c0_286 = arith.constant 0 : index
    %259 = vector.load %arg1[%c0_283, %c8_284, %c1_285, %c0_286] : memref<1x21x21x64xbf16, #tpu.memory_space<vmem>>, vector<1x1x20x64xbf16>
    %260 = vector.shape_cast %259 : vector<1x1x20x64xbf16> to vector<20x64xbf16>
    %c3_287 = arith.constant 3 : index
    %c0_288 = arith.constant 0 : index
    %c0_289 = arith.constant 0 : index
    %261 = vector.load %arg2[%c3_287, %c0_288, %c0_289] : memref<4x64x128xbf16, #tpu.memory_space<vmem>>, vector<1x64x128xbf16>
    %262 = vector.shape_cast %261 : vector<1x64x128xbf16> to vector<64x128xbf16>
    %cst_290 = arith.constant dense<0.000000e+00> : vector<20x128xf32>
    %263 = tpu.matmul %260, %262, %cst_290 {dimension_numbers = #tpu.dot_dimension_numbers<[1], [0], [0], [1], [0, 0, 1, 1], [], []>} : vector<20x64xbf16>, vector<64x128xbf16>, vector<20x128xf32> -> vector<20x128xf32>
    %264 = arith.addf %258, %263 : vector<20x128xf32>
    %265 = vector.broadcast %0 : vector<1x128xf32> to vector<20x128xf32>
    %266 = arith.addf %264, %265 : vector<20x128xf32>
    %cst_291 = arith.constant 0.000000e+00 : f32
    %267 = vector.broadcast %cst_291 : f32 to vector<20x128xf32>
    %268 = arith.cmpf oge, %266, %267 : vector<20x128xf32>
    %cst_292 = arith.constant 0.00999999977 : f32
    %269 = vector.broadcast %cst_292 : f32 to vector<20x128xf32>
    %270 = arith.mulf %269, %266 : vector<20x128xf32>
    %271 = arith.select %268, %266, %270 : vector<20x128xi1>, vector<20x128xf32>
    %272 = arith.addf %241, %271 : vector<20x128xf32>
    %cst_293 = arith.constant dense<0.000000e+00> : vector<5x128xf32>
    %273 = tpu.matmul %3, %272, %cst_293 {dimension_numbers = #tpu.dot_dimension_numbers<[1], [0], [0], [1], [0, 0, 1, 1], [], []>} : vector<5x20xf32>, vector<20x128xf32>, vector<5x128xf32> -> vector<5x128xf32>
    %cst_294 = arith.constant dense<0.000000e+00> : vector<5x128xf32>
    %274 = tpu.matmul %4, %272, %cst_294 {dimension_numbers = #tpu.dot_dimension_numbers<[1], [0], [0], [1], [0, 0, 1, 1], [], []>} : vector<5x20xf32>, vector<20x128xf32>, vector<5x128xf32> -> vector<5x128xf32>
    %c1_295 = arith.constant 1 : index
    %c0_296 = arith.constant 0 : index
    %c256_297 = arith.constant 256 : index
    %275 = vector.load %arg8[%c1_295, %c0_296, %c256_297] : memref<5x5x512xf32, #tpu.memory_space<vmem>>, vector<1x5x128xf32>
    %276 = vector.shape_cast %275 : vector<1x5x128xf32> to vector<5x128xf32>
    %277 = vector.shape_cast %273 : vector<5x128xf32> to vector<1x5x128xf32>
    tpu.vector_store %arg8[%c1_295, %c0_296, %c256_297], %277 {strides = array<i32>} : memref<5x5x512xf32, #tpu.memory_space<vmem>>, vector<1x5x128xf32>,
    %c1_298 = arith.constant 1 : index
    %c0_299 = arith.constant 0 : index
    %c384_300 = arith.constant 384 : index
    %278 = vector.load %arg8[%c1_298, %c0_299, %c384_300] : memref<5x5x512xf32, #tpu.memory_space<vmem>>, vector<1x5x128xf32>
    %279 = vector.shape_cast %278 : vector<1x5x128xf32> to vector<5x128xf32>
    %280 = vector.shape_cast %274 : vector<5x128xf32> to vector<1x5x128xf32>
    tpu.vector_store %arg8[%c1_298, %c0_299, %c384_300], %280 {strides = array<i32>} : memref<5x5x512xf32, #tpu.memory_space<vmem>>, vector<1x5x128xf32>,
    %c0_301 = arith.constant 0 : index
    %c8_302 = arith.constant 8 : index
    %c0_303 = arith.constant 0 : index
    %c0_304 = arith.constant 0 : index
    %281 = vector.load %arg1[%c0_301, %c8_302, %c0_303, %c0_304] : memref<1x21x21x64xbf16, #tpu.memory_space<vmem>>, vector<1x1x20x64xbf16>
    %282 = vector.shape_cast %281 : vector<1x1x20x64xbf16> to vector<20x64xbf16>
    %c0_305 = arith.constant 0 : index
    %c0_306 = arith.constant 0 : index
    %c0_307 = arith.constant 0 : index
    %283 = vector.load %arg2[%c0_305, %c0_306, %c0_307] : memref<4x64x128xbf16, #tpu.memory_space<vmem>>, vector<1x64x128xbf16>
    %284 = vector.shape_cast %283 : vector<1x64x128xbf16> to vector<64x128xbf16>
    %cst_308 = arith.constant dense<0.000000e+00> : vector<20x128xf32>
    %285 = tpu.matmul %282, %284, %cst_308 {dimension_numbers = #tpu.dot_dimension_numbers<[1], [0], [0], [1], [0, 0, 1, 1], [], []>} : vector<20x64xbf16>, vector<64x128xbf16>, vector<20x128xf32> -> vector<20x128xf32>
    %c0_309 = arith.constant 0 : index
    %c8_310 = arith.constant 8 : index
    %c1_311 = arith.constant 1 : index
    %c0_312 = arith.constant 0 : index
    %286 = vector.load %arg1[%c0_309, %c8_310, %c1_311, %c0_312] : memref<1x21x21x64xbf16, #tpu.memory_space<vmem>>, vector<1x1x20x64xbf16>
    %287 = vector.shape_cast %286 : vector<1x1x20x64xbf16> to vector<20x64xbf16>
    %c1_313 = arith.constant 1 : index
    %c0_314 = arith.constant 0 : index
    %c0_315 = arith.constant 0 : index
    %288 = vector.load %arg2[%c1_313, %c0_314, %c0_315] : memref<4x64x128xbf16, #tpu.memory_space<vmem>>, vector<1x64x128xbf16>
    %289 = vector.shape_cast %288 : vector<1x64x128xbf16> to vector<64x128xbf16>
    %cst_316 = arith.constant dense<0.000000e+00> : vector<20x128xf32>
    %290 = tpu.matmul %287, %289, %cst_316 {dimension_numbers = #tpu.dot_dimension_numbers<[1], [0], [0], [1], [0, 0, 1, 1], [], []>} : vector<20x64xbf16>, vector<64x128xbf16>, vector<20x128xf32> -> vector<20x128xf32>
    %291 = arith.addf %285, %290 : vector<20x128xf32>
    %c0_317 = arith.constant 0 : index
    %c9 = arith.constant 9 : index
    %c0_318 = arith.constant 0 : index
    %c0_319 = arith.constant 0 : index
    %292 = vector.load %arg1[%c0_317, %c9, %c0_318, %c0_319] : memref<1x21x21x64xbf16, #tpu.memory_space<vmem>>, vector<1x1x20x64xbf16>
    %293 = vector.shape_cast %292 : vector<1x1x20x64xbf16> to vector<20x64xbf16>
    %c2_320 = arith.constant 2 : index
    %c0_321 = arith.constant 0 : index
    %c0_322 = arith.constant 0 : index
    %294 = vector.load %arg2[%c2_320, %c0_321, %c0_322] : memref<4x64x128xbf16, #tpu.memory_space<vmem>>, vector<1x64x128xbf16>
    %295 = vector.shape_cast %294 : vector<1x64x128xbf16> to vector<64x128xbf16>
    %cst_323 = arith.constant dense<0.000000e+00> : vector<20x128xf32>
    %296 = tpu.matmul %293, %295, %cst_323 {dimension_numbers = #tpu.dot_dimension_numbers<[1], [0], [0], [1], [0, 0, 1, 1], [], []>} : vector<20x64xbf16>, vector<64x128xbf16>, vector<20x128xf32> -> vector<20x128xf32>
    %297 = arith.addf %291, %296 : vector<20x128xf32>
    %c0_324 = arith.constant 0 : index
    %c9_325 = arith.constant 9 : index
    %c1_326 = arith.constant 1 : index
    %c0_327 = arith.constant 0 : index
    %298 = vector.load %arg1[%c0_324, %c9_325, %c1_326, %c0_327] : memref<1x21x21x64xbf16, #tpu.memory_space<vmem>>, vector<1x1x20x64xbf16>
    %299 = vector.shape_cast %298 : vector<1x1x20x64xbf16> to vector<20x64xbf16>
    %c3_328 = arith.constant 3 : index
    %c0_329 = arith.constant 0 : index
    %c0_330 = arith.constant 0 : index
    %300 = vector.load %arg2[%c3_328, %c0_329, %c0_330] : memref<4x64x128xbf16, #tpu.memory_space<vmem>>, vector<1x64x128xbf16>
    %301 = vector.shape_cast %300 : vector<1x64x128xbf16> to vector<64x128xbf16>
    %cst_331 = arith.constant dense<0.000000e+00> : vector<20x128xf32>
    %302 = tpu.matmul %299, %301, %cst_331 {dimension_numbers = #tpu.dot_dimension_numbers<[1], [0], [0], [1], [0, 0, 1, 1], [], []>} : vector<20x64xbf16>, vector<64x128xbf16>, vector<20x128xf32> -> vector<20x128xf32>
    %303 = arith.addf %297, %302 : vector<20x128xf32>
    %304 = vector.broadcast %0 : vector<1x128xf32> to vector<20x128xf32>
    %305 = arith.addf %303, %304 : vector<20x128xf32>
    %cst_332 = arith.constant 0.000000e+00 : f32
    %306 = vector.broadcast %cst_332 : f32 to vector<20x128xf32>
    %307 = arith.cmpf oge, %305, %306 : vector<20x128xf32>
    %cst_333 = arith.constant 0.00999999977 : f32
    %308 = vector.broadcast %cst_333 : f32 to vector<20x128xf32>
    %309 = arith.mulf %308, %305 : vector<20x128xf32>
    %310 = arith.select %307, %305, %309 : vector<20x128xi1>, vector<20x128xf32>
    %c0_334 = arith.constant 0 : index
    %c9_335 = arith.constant 9 : index
    %c0_336 = arith.constant 0 : index
    %c0_337 = arith.constant 0 : index
    %311 = vector.load %arg1[%c0_334, %c9_335, %c0_336, %c0_337] : memref<1x21x21x64xbf16, #tpu.memory_space<vmem>>, vector<1x1x20x64xbf16>
    %312 = vector.shape_cast %311 : vector<1x1x20x64xbf16> to vector<20x64xbf16>
    %c0_338 = arith.constant 0 : index
    %c0_339 = arith.constant 0 : index
    %c0_340 = arith.constant 0 : index
    %313 = vector.load %arg2[%c0_338, %c0_339, %c0_340] : memref<4x64x128xbf16, #tpu.memory_space<vmem>>, vector<1x64x128xbf16>
    %314 = vector.shape_cast %313 : vector<1x64x128xbf16> to vector<64x128xbf16>
    %cst_341 = arith.constant dense<0.000000e+00> : vector<20x128xf32>
    %315 = tpu.matmul %312, %314, %cst_341 {dimension_numbers = #tpu.dot_dimension_numbers<[1], [0], [0], [1], [0, 0, 1, 1], [], []>} : vector<20x64xbf16>, vector<64x128xbf16>, vector<20x128xf32> -> vector<20x128xf32>
    %c0_342 = arith.constant 0 : index
    %c9_343 = arith.constant 9 : index
    %c1_344 = arith.constant 1 : index
    %c0_345 = arith.constant 0 : index
    %316 = vector.load %arg1[%c0_342, %c9_343, %c1_344, %c0_345] : memref<1x21x21x64xbf16, #tpu.memory_space<vmem>>, vector<1x1x20x64xbf16>
    %317 = vector.shape_cast %316 : vector<1x1x20x64xbf16> to vector<20x64xbf16>
    %c1_346 = arith.constant 1 : index
    %c0_347 = arith.constant 0 : index
    %c0_348 = arith.constant 0 : index
    %318 = vector.load %arg2[%c1_346, %c0_347, %c0_348] : memref<4x64x128xbf16, #tpu.memory_space<vmem>>, vector<1x64x128xbf16>
    %319 = vector.shape_cast %318 : vector<1x64x128xbf16> to vector<64x128xbf16>
    %cst_349 = arith.constant dense<0.000000e+00> : vector<20x128xf32>
    %320 = tpu.matmul %317, %319, %cst_349 {dimension_numbers = #tpu.dot_dimension_numbers<[1], [0], [0], [1], [0, 0, 1, 1], [], []>} : vector<20x64xbf16>, vector<64x128xbf16>, vector<20x128xf32> -> vector<20x128xf32>
    %321 = arith.addf %315, %320 : vector<20x128xf32>
    %c0_350 = arith.constant 0 : index
    %c10 = arith.constant 10 : index
    %c0_351 = arith.constant 0 : index
    %c0_352 = arith.constant 0 : index
    %322 = vector.load %arg1[%c0_350, %c10, %c0_351, %c0_352] : memref<1x21x21x64xbf16, #tpu.memory_space<vmem>>, vector<1x1x20x64xbf16>
    %323 = vector.shape_cast %322 : vector<1x1x20x64xbf16> to vector<20x64xbf16>
    %c2_353 = arith.constant 2 : index
    %c0_354 = arith.constant 0 : index
    %c0_355 = arith.constant 0 : index
    %324 = vector.load %arg2[%c2_353, %c0_354, %c0_355] : memref<4x64x128xbf16, #tpu.memory_space<vmem>>, vector<1x64x128xbf16>
    %325 = vector.shape_cast %324 : vector<1x64x128xbf16> to vector<64x128xbf16>
    %cst_356 = arith.constant dense<0.000000e+00> : vector<20x128xf32>
    %326 = tpu.matmul %323, %325, %cst_356 {dimension_numbers = #tpu.dot_dimension_numbers<[1], [0], [0], [1], [0, 0, 1, 1], [], []>} : vector<20x64xbf16>, vector<64x128xbf16>, vector<20x128xf32> -> vector<20x128xf32>
    %327 = arith.addf %321, %326 : vector<20x128xf32>
    %c0_357 = arith.constant 0 : index
    %c10_358 = arith.constant 10 : index
    %c1_359 = arith.constant 1 : index
    %c0_360 = arith.constant 0 : index
    %328 = vector.load %arg1[%c0_357, %c10_358, %c1_359, %c0_360] : memref<1x21x21x64xbf16, #tpu.memory_space<vmem>>, vector<1x1x20x64xbf16>
    %329 = vector.shape_cast %328 : vector<1x1x20x64xbf16> to vector<20x64xbf16>
    %c3_361 = arith.constant 3 : index
    %c0_362 = arith.constant 0 : index
    %c0_363 = arith.constant 0 : index
    %330 = vector.load %arg2[%c3_361, %c0_362, %c0_363] : memref<4x64x128xbf16, #tpu.memory_space<vmem>>, vector<1x64x128xbf16>
    %331 = vector.shape_cast %330 : vector<1x64x128xbf16> to vector<64x128xbf16>
    %cst_364 = arith.constant dense<0.000000e+00> : vector<20x128xf32>
    %332 = tpu.matmul %329, %331, %cst_364 {dimension_numbers = #tpu.dot_dimension_numbers<[1], [0], [0], [1], [0, 0, 1, 1], [], []>} : vector<20x64xbf16>, vector<64x128xbf16>, vector<20x128xf32> -> vector<20x128xf32>
    %333 = arith.addf %327, %332 : vector<20x128xf32>
    %334 = vector.broadcast %0 : vector<1x128xf32> to vector<20x128xf32>
    %335 = arith.addf %333, %334 : vector<20x128xf32>
    %cst_365 = arith.constant 0.000000e+00 : f32
    %336 = vector.broadcast %cst_365 : f32 to vector<20x128xf32>
    %337 = arith.cmpf oge, %335, %336 : vector<20x128xf32>
    %cst_366 = arith.constant 0.00999999977 : f32
    %338 = vector.broadcast %cst_366 : f32 to vector<20x128xf32>
    %339 = arith.mulf %338, %335 : vector<20x128xf32>
    %340 = arith.select %337, %335, %339 : vector<20x128xi1>, vector<20x128xf32>
    %341 = arith.addf %310, %340 : vector<20x128xf32>
    %cst_367 = arith.constant dense<0.000000e+00> : vector<5x128xf32>
    %342 = tpu.matmul %3, %341, %cst_367 {dimension_numbers = #tpu.dot_dimension_numbers<[1], [0], [0], [1], [0, 0, 1, 1], [], []>} : vector<5x20xf32>, vector<20x128xf32>, vector<5x128xf32> -> vector<5x128xf32>
    %cst_368 = arith.constant dense<0.000000e+00> : vector<5x128xf32>
    %343 = tpu.matmul %4, %341, %cst_368 {dimension_numbers = #tpu.dot_dimension_numbers<[1], [0], [0], [1], [0, 0, 1, 1], [], []>} : vector<5x20xf32>, vector<20x128xf32>, vector<5x128xf32> -> vector<5x128xf32>
    %c2_369 = arith.constant 2 : index
    %c0_370 = arith.constant 0 : index
    %c0_371 = arith.constant 0 : index
    %344 = vector.load %arg8[%c2_369, %c0_370, %c0_371] : memref<5x5x512xf32, #tpu.memory_space<vmem>>, vector<1x5x128xf32>
    %345 = vector.shape_cast %344 : vector<1x5x128xf32> to vector<5x128xf32>
    %346 = vector.shape_cast %342 : vector<5x128xf32> to vector<1x5x128xf32>
    tpu.vector_store %arg8[%c2_369, %c0_370, %c0_371], %346 {strides = array<i32>} : memref<5x5x512xf32, #tpu.memory_space<vmem>>, vector<1x5x128xf32>,
    %c2_372 = arith.constant 2 : index
    %c0_373 = arith.constant 0 : index
    %c128_374 = arith.constant 128 : index
    %347 = vector.load %arg8[%c2_372, %c0_373, %c128_374] : memref<5x5x512xf32, #tpu.memory_space<vmem>>, vector<1x5x128xf32>
    %348 = vector.shape_cast %347 : vector<1x5x128xf32> to vector<5x128xf32>
    %349 = vector.shape_cast %343 : vector<5x128xf32> to vector<1x5x128xf32>
    tpu.vector_store %arg8[%c2_372, %c0_373, %c128_374], %349 {strides = array<i32>} : memref<5x5x512xf32, #tpu.memory_space<vmem>>, vector<1x5x128xf32>,
    %c0_375 = arith.constant 0 : index
    %c10_376 = arith.constant 10 : index
    %c0_377 = arith.constant 0 : index
    %c0_378 = arith.constant 0 : index
    %350 = vector.load %arg1[%c0_375, %c10_376, %c0_377, %c0_378] : memref<1x21x21x64xbf16, #tpu.memory_space<vmem>>, vector<1x1x20x64xbf16>
    %351 = vector.shape_cast %350 : vector<1x1x20x64xbf16> to vector<20x64xbf16>
    %c0_379 = arith.constant 0 : index
    %c0_380 = arith.constant 0 : index
    %c0_381 = arith.constant 0 : index
    %352 = vector.load %arg2[%c0_379, %c0_380, %c0_381] : memref<4x64x128xbf16, #tpu.memory_space<vmem>>, vector<1x64x128xbf16>
    %353 = vector.shape_cast %352 : vector<1x64x128xbf16> to vector<64x128xbf16>
    %cst_382 = arith.constant dense<0.000000e+00> : vector<20x128xf32>
    %354 = tpu.matmul %351, %353, %cst_382 {dimension_numbers = #tpu.dot_dimension_numbers<[1], [0], [0], [1], [0, 0, 1, 1], [], []>} : vector<20x64xbf16>, vector<64x128xbf16>, vector<20x128xf32> -> vector<20x128xf32>
    %c0_383 = arith.constant 0 : index
    %c10_384 = arith.constant 10 : index
    %c1_385 = arith.constant 1 : index
    %c0_386 = arith.constant 0 : index
    %355 = vector.load %arg1[%c0_383, %c10_384, %c1_385, %c0_386] : memref<1x21x21x64xbf16, #tpu.memory_space<vmem>>, vector<1x1x20x64xbf16>
    %356 = vector.shape_cast %355 : vector<1x1x20x64xbf16> to vector<20x64xbf16>
    %c1_387 = arith.constant 1 : index
    %c0_388 = arith.constant 0 : index
    %c0_389 = arith.constant 0 : index
    %357 = vector.load %arg2[%c1_387, %c0_388, %c0_389] : memref<4x64x128xbf16, #tpu.memory_space<vmem>>, vector<1x64x128xbf16>
    %358 = vector.shape_cast %357 : vector<1x64x128xbf16> to vector<64x128xbf16>
    %cst_390 = arith.constant dense<0.000000e+00> : vector<20x128xf32>
    %359 = tpu.matmul %356, %358, %cst_390 {dimension_numbers = #tpu.dot_dimension_numbers<[1], [0], [0], [1], [0, 0, 1, 1], [], []>} : vector<20x64xbf16>, vector<64x128xbf16>, vector<20x128xf32> -> vector<20x128xf32>
    %360 = arith.addf %354, %359 : vector<20x128xf32>
    %c0_391 = arith.constant 0 : index
    %c11 = arith.constant 11 : index
    %c0_392 = arith.constant 0 : index
    %c0_393 = arith.constant 0 : index
    %361 = vector.load %arg1[%c0_391, %c11, %c0_392, %c0_393] : memref<1x21x21x64xbf16, #tpu.memory_space<vmem>>, vector<1x1x20x64xbf16>
    %362 = vector.shape_cast %361 : vector<1x1x20x64xbf16> to vector<20x64xbf16>
    %c2_394 = arith.constant 2 : index
    %c0_395 = arith.constant 0 : index
    %c0_396 = arith.constant 0 : index
    %363 = vector.load %arg2[%c2_394, %c0_395, %c0_396] : memref<4x64x128xbf16, #tpu.memory_space<vmem>>, vector<1x64x128xbf16>
    %364 = vector.shape_cast %363 : vector<1x64x128xbf16> to vector<64x128xbf16>
    %cst_397 = arith.constant dense<0.000000e+00> : vector<20x128xf32>
    %365 = tpu.matmul %362, %364, %cst_397 {dimension_numbers = #tpu.dot_dimension_numbers<[1], [0], [0], [1], [0, 0, 1, 1], [], []>} : vector<20x64xbf16>, vector<64x128xbf16>, vector<20x128xf32> -> vector<20x128xf32>
    %366 = arith.addf %360, %365 : vector<20x128xf32>
    %c0_398 = arith.constant 0 : index
    %c11_399 = arith.constant 11 : index
    %c1_400 = arith.constant 1 : index
    %c0_401 = arith.constant 0 : index
    %367 = vector.load %arg1[%c0_398, %c11_399, %c1_400, %c0_401] : memref<1x21x21x64xbf16, #tpu.memory_space<vmem>>, vector<1x1x20x64xbf16>
    %368 = vector.shape_cast %367 : vector<1x1x20x64xbf16> to vector<20x64xbf16>
    %c3_402 = arith.constant 3 : index
    %c0_403 = arith.constant 0 : index
    %c0_404 = arith.constant 0 : index
    %369 = vector.load %arg2[%c3_402, %c0_403, %c0_404] : memref<4x64x128xbf16, #tpu.memory_space<vmem>>, vector<1x64x128xbf16>
    %370 = vector.shape_cast %369 : vector<1x64x128xbf16> to vector<64x128xbf16>
    %cst_405 = arith.constant dense<0.000000e+00> : vector<20x128xf32>
    %371 = tpu.matmul %368, %370, %cst_405 {dimension_numbers = #tpu.dot_dimension_numbers<[1], [0], [0], [1], [0, 0, 1, 1], [], []>} : vector<20x64xbf16>, vector<64x128xbf16>, vector<20x128xf32> -> vector<20x128xf32>
    %372 = arith.addf %366, %371 : vector<20x128xf32>
    %373 = vector.broadcast %0 : vector<1x128xf32> to vector<20x128xf32>
    %374 = arith.addf %372, %373 : vector<20x128xf32>
    %cst_406 = arith.constant 0.000000e+00 : f32
    %375 = vector.broadcast %cst_406 : f32 to vector<20x128xf32>
    %376 = arith.cmpf oge, %374, %375 : vector<20x128xf32>
    %cst_407 = arith.constant 0.00999999977 : f32
    %377 = vector.broadcast %cst_407 : f32 to vector<20x128xf32>
    %378 = arith.mulf %377, %374 : vector<20x128xf32>
    %379 = arith.select %376, %374, %378 : vector<20x128xi1>, vector<20x128xf32>
    %c0_408 = arith.constant 0 : index
    %c11_409 = arith.constant 11 : index
    %c0_410 = arith.constant 0 : index
    %c0_411 = arith.constant 0 : index
    %380 = vector.load %arg1[%c0_408, %c11_409, %c0_410, %c0_411] : memref<1x21x21x64xbf16, #tpu.memory_space<vmem>>, vector<1x1x20x64xbf16>
    %381 = vector.shape_cast %380 : vector<1x1x20x64xbf16> to vector<20x64xbf16>
    %c0_412 = arith.constant 0 : index
    %c0_413 = arith.constant 0 : index
    %c0_414 = arith.constant 0 : index
    %382 = vector.load %arg2[%c0_412, %c0_413, %c0_414] : memref<4x64x128xbf16, #tpu.memory_space<vmem>>, vector<1x64x128xbf16>
    %383 = vector.shape_cast %382 : vector<1x64x128xbf16> to vector<64x128xbf16>
    %cst_415 = arith.constant dense<0.000000e+00> : vector<20x128xf32>
    %384 = tpu.matmul %381, %383, %cst_415 {dimension_numbers = #tpu.dot_dimension_numbers<[1], [0], [0], [1], [0, 0, 1, 1], [], []>} : vector<20x64xbf16>, vector<64x128xbf16>, vector<20x128xf32> -> vector<20x128xf32>
    %c0_416 = arith.constant 0 : index
    %c11_417 = arith.constant 11 : index
    %c1_418 = arith.constant 1 : index
    %c0_419 = arith.constant 0 : index
    %385 = vector.load %arg1[%c0_416, %c11_417, %c1_418, %c0_419] : memref<1x21x21x64xbf16, #tpu.memory_space<vmem>>, vector<1x1x20x64xbf16>
    %386 = vector.shape_cast %385 : vector<1x1x20x64xbf16> to vector<20x64xbf16>
    %c1_420 = arith.constant 1 : index
    %c0_421 = arith.constant 0 : index
    %c0_422 = arith.constant 0 : index
    %387 = vector.load %arg2[%c1_420, %c0_421, %c0_422] : memref<4x64x128xbf16, #tpu.memory_space<vmem>>, vector<1x64x128xbf16>
    %388 = vector.shape_cast %387 : vector<1x64x128xbf16> to vector<64x128xbf16>
    %cst_423 = arith.constant dense<0.000000e+00> : vector<20x128xf32>
    %389 = tpu.matmul %386, %388, %cst_423 {dimension_numbers = #tpu.dot_dimension_numbers<[1], [0], [0], [1], [0, 0, 1, 1], [], []>} : vector<20x64xbf16>, vector<64x128xbf16>, vector<20x128xf32> -> vector<20x128xf32>
    %390 = arith.addf %384, %389 : vector<20x128xf32>
    %c0_424 = arith.constant 0 : index
    %c12 = arith.constant 12 : index
    %c0_425 = arith.constant 0 : index
    %c0_426 = arith.constant 0 : index
    %391 = vector.load %arg1[%c0_424, %c12, %c0_425, %c0_426] : memref<1x21x21x64xbf16, #tpu.memory_space<vmem>>, vector<1x1x20x64xbf16>
    %392 = vector.shape_cast %391 : vector<1x1x20x64xbf16> to vector<20x64xbf16>
    %c2_427 = arith.constant 2 : index
    %c0_428 = arith.constant 0 : index
    %c0_429 = arith.constant 0 : index
    %393 = vector.load %arg2[%c2_427, %c0_428, %c0_429] : memref<4x64x128xbf16, #tpu.memory_space<vmem>>, vector<1x64x128xbf16>
    %394 = vector.shape_cast %393 : vector<1x64x128xbf16> to vector<64x128xbf16>
    %cst_430 = arith.constant dense<0.000000e+00> : vector<20x128xf32>
    %395 = tpu.matmul %392, %394, %cst_430 {dimension_numbers = #tpu.dot_dimension_numbers<[1], [0], [0], [1], [0, 0, 1, 1], [], []>} : vector<20x64xbf16>, vector<64x128xbf16>, vector<20x128xf32> -> vector<20x128xf32>
    %396 = arith.addf %390, %395 : vector<20x128xf32>
    %c0_431 = arith.constant 0 : index
    %c12_432 = arith.constant 12 : index
    %c1_433 = arith.constant 1 : index
    %c0_434 = arith.constant 0 : index
    %397 = vector.load %arg1[%c0_431, %c12_432, %c1_433, %c0_434] : memref<1x21x21x64xbf16, #tpu.memory_space<vmem>>, vector<1x1x20x64xbf16>
    %398 = vector.shape_cast %397 : vector<1x1x20x64xbf16> to vector<20x64xbf16>
    %c3_435 = arith.constant 3 : index
    %c0_436 = arith.constant 0 : index
    %c0_437 = arith.constant 0 : index
    %399 = vector.load %arg2[%c3_435, %c0_436, %c0_437] : memref<4x64x128xbf16, #tpu.memory_space<vmem>>, vector<1x64x128xbf16>
    %400 = vector.shape_cast %399 : vector<1x64x128xbf16> to vector<64x128xbf16>
    %cst_438 = arith.constant dense<0.000000e+00> : vector<20x128xf32>
    %401 = tpu.matmul %398, %400, %cst_438 {dimension_numbers = #tpu.dot_dimension_numbers<[1], [0], [0], [1], [0, 0, 1, 1], [], []>} : vector<20x64xbf16>, vector<64x128xbf16>, vector<20x128xf32> -> vector<20x128xf32>
    %402 = arith.addf %396, %401 : vector<20x128xf32>
    %403 = vector.broadcast %0 : vector<1x128xf32> to vector<20x128xf32>
    %404 = arith.addf %402, %403 : vector<20x128xf32>
    %cst_439 = arith.constant 0.000000e+00 : f32
    %405 = vector.broadcast %cst_439 : f32 to vector<20x128xf32>
    %406 = arith.cmpf oge, %404, %405 : vector<20x128xf32>
    %cst_440 = arith.constant 0.00999999977 : f32
    %407 = vector.broadcast %cst_440 : f32 to vector<20x128xf32>
    %408 = arith.mulf %407, %404 : vector<20x128xf32>
    %409 = arith.select %406, %404, %408 : vector<20x128xi1>, vector<20x128xf32>
    %410 = arith.addf %379, %409 : vector<20x128xf32>
    %cst_441 = arith.constant dense<0.000000e+00> : vector<5x128xf32>
    %411 = tpu.matmul %3, %410, %cst_441 {dimension_numbers = #tpu.dot_dimension_numbers<[1], [0], [0], [1], [0, 0, 1, 1], [], []>} : vector<5x20xf32>, vector<20x128xf32>, vector<5x128xf32> -> vector<5x128xf32>
    %cst_442 = arith.constant dense<0.000000e+00> : vector<5x128xf32>
    %412 = tpu.matmul %4, %410, %cst_442 {dimension_numbers = #tpu.dot_dimension_numbers<[1], [0], [0], [1], [0, 0, 1, 1], [], []>} : vector<5x20xf32>, vector<20x128xf32>, vector<5x128xf32> -> vector<5x128xf32>
    %c2_443 = arith.constant 2 : index
    %c0_444 = arith.constant 0 : index
    %c256_445 = arith.constant 256 : index
    %413 = vector.load %arg8[%c2_443, %c0_444, %c256_445] : memref<5x5x512xf32, #tpu.memory_space<vmem>>, vector<1x5x128xf32>
    %414 = vector.shape_cast %413 : vector<1x5x128xf32> to vector<5x128xf32>
    %415 = vector.shape_cast %411 : vector<5x128xf32> to vector<1x5x128xf32>
    tpu.vector_store %arg8[%c2_443, %c0_444, %c256_445], %415 {strides = array<i32>} : memref<5x5x512xf32, #tpu.memory_space<vmem>>, vector<1x5x128xf32>,
    %c2_446 = arith.constant 2 : index
    %c0_447 = arith.constant 0 : index
    %c384_448 = arith.constant 384 : index
    %416 = vector.load %arg8[%c2_446, %c0_447, %c384_448] : memref<5x5x512xf32, #tpu.memory_space<vmem>>, vector<1x5x128xf32>
    %417 = vector.shape_cast %416 : vector<1x5x128xf32> to vector<5x128xf32>
    %418 = vector.shape_cast %412 : vector<5x128xf32> to vector<1x5x128xf32>
    tpu.vector_store %arg8[%c2_446, %c0_447, %c384_448], %418 {strides = array<i32>} : memref<5x5x512xf32, #tpu.memory_space<vmem>>, vector<1x5x128xf32>,
    %c0_449 = arith.constant 0 : index
    %c12_450 = arith.constant 12 : index
    %c0_451 = arith.constant 0 : index
    %c0_452 = arith.constant 0 : index
    %419 = vector.load %arg1[%c0_449, %c12_450, %c0_451, %c0_452] : memref<1x21x21x64xbf16, #tpu.memory_space<vmem>>, vector<1x1x20x64xbf16>
    %420 = vector.shape_cast %419 : vector<1x1x20x64xbf16> to vector<20x64xbf16>
    %c0_453 = arith.constant 0 : index
    %c0_454 = arith.constant 0 : index
    %c0_455 = arith.constant 0 : index
    %421 = vector.load %arg2[%c0_453, %c0_454, %c0_455] : memref<4x64x128xbf16, #tpu.memory_space<vmem>>, vector<1x64x128xbf16>
    %422 = vector.shape_cast %421 : vector<1x64x128xbf16> to vector<64x128xbf16>
    %cst_456 = arith.constant dense<0.000000e+00> : vector<20x128xf32>
    %423 = tpu.matmul %420, %422, %cst_456 {dimension_numbers = #tpu.dot_dimension_numbers<[1], [0], [0], [1], [0, 0, 1, 1], [], []>} : vector<20x64xbf16>, vector<64x128xbf16>, vector<20x128xf32> -> vector<20x128xf32>
    %c0_457 = arith.constant 0 : index
    %c12_458 = arith.constant 12 : index
    %c1_459 = arith.constant 1 : index
    %c0_460 = arith.constant 0 : index
    %424 = vector.load %arg1[%c0_457, %c12_458, %c1_459, %c0_460] : memref<1x21x21x64xbf16, #tpu.memory_space<vmem>>, vector<1x1x20x64xbf16>
    %425 = vector.shape_cast %424 : vector<1x1x20x64xbf16> to vector<20x64xbf16>
    %c1_461 = arith.constant 1 : index
    %c0_462 = arith.constant 0 : index
    %c0_463 = arith.constant 0 : index
    %426 = vector.load %arg2[%c1_461, %c0_462, %c0_463] : memref<4x64x128xbf16, #tpu.memory_space<vmem>>, vector<1x64x128xbf16>
    %427 = vector.shape_cast %426 : vector<1x64x128xbf16> to vector<64x128xbf16>
    %cst_464 = arith.constant dense<0.000000e+00> : vector<20x128xf32>
    %428 = tpu.matmul %425, %427, %cst_464 {dimension_numbers = #tpu.dot_dimension_numbers<[1], [0], [0], [1], [0, 0, 1, 1], [], []>} : vector<20x64xbf16>, vector<64x128xbf16>, vector<20x128xf32> -> vector<20x128xf32>
    %429 = arith.addf %423, %428 : vector<20x128xf32>
    %c0_465 = arith.constant 0 : index
    %c13 = arith.constant 13 : index
    %c0_466 = arith.constant 0 : index
    %c0_467 = arith.constant 0 : index
    %430 = vector.load %arg1[%c0_465, %c13, %c0_466, %c0_467] : memref<1x21x21x64xbf16, #tpu.memory_space<vmem>>, vector<1x1x20x64xbf16>
    %431 = vector.shape_cast %430 : vector<1x1x20x64xbf16> to vector<20x64xbf16>
    %c2_468 = arith.constant 2 : index
    %c0_469 = arith.constant 0 : index
    %c0_470 = arith.constant 0 : index
    %432 = vector.load %arg2[%c2_468, %c0_469, %c0_470] : memref<4x64x128xbf16, #tpu.memory_space<vmem>>, vector<1x64x128xbf16>
    %433 = vector.shape_cast %432 : vector<1x64x128xbf16> to vector<64x128xbf16>
    %cst_471 = arith.constant dense<0.000000e+00> : vector<20x128xf32>
    %434 = tpu.matmul %431, %433, %cst_471 {dimension_numbers = #tpu.dot_dimension_numbers<[1], [0], [0], [1], [0, 0, 1, 1], [], []>} : vector<20x64xbf16>, vector<64x128xbf16>, vector<20x128xf32> -> vector<20x128xf32>
    %435 = arith.addf %429, %434 : vector<20x128xf32>
    %c0_472 = arith.constant 0 : index
    %c13_473 = arith.constant 13 : index
    %c1_474 = arith.constant 1 : index
    %c0_475 = arith.constant 0 : index
    %436 = vector.load %arg1[%c0_472, %c13_473, %c1_474, %c0_475] : memref<1x21x21x64xbf16, #tpu.memory_space<vmem>>, vector<1x1x20x64xbf16>
    %437 = vector.shape_cast %436 : vector<1x1x20x64xbf16> to vector<20x64xbf16>
    %c3_476 = arith.constant 3 : index
    %c0_477 = arith.constant 0 : index
    %c0_478 = arith.constant 0 : index
    %438 = vector.load %arg2[%c3_476, %c0_477, %c0_478] : memref<4x64x128xbf16, #tpu.memory_space<vmem>>, vector<1x64x128xbf16>
    %439 = vector.shape_cast %438 : vector<1x64x128xbf16> to vector<64x128xbf16>
    %cst_479 = arith.constant dense<0.000000e+00> : vector<20x128xf32>
    %440 = tpu.matmul %437, %439, %cst_479 {dimension_numbers = #tpu.dot_dimension_numbers<[1], [0], [0], [1], [0, 0, 1, 1], [], []>} : vector<20x64xbf16>, vector<64x128xbf16>, vector<20x128xf32> -> vector<20x128xf32>
    %441 = arith.addf %435, %440 : vector<20x128xf32>
    %442 = vector.broadcast %0 : vector<1x128xf32> to vector<20x128xf32>
    %443 = arith.addf %441, %442 : vector<20x128xf32>
    %cst_480 = arith.constant 0.000000e+00 : f32
    %444 = vector.broadcast %cst_480 : f32 to vector<20x128xf32>
    %445 = arith.cmpf oge, %443, %444 : vector<20x128xf32>
    %cst_481 = arith.constant 0.00999999977 : f32
    %446 = vector.broadcast %cst_481 : f32 to vector<20x128xf32>
    %447 = arith.mulf %446, %443 : vector<20x128xf32>
    %448 = arith.select %445, %443, %447 : vector<20x128xi1>, vector<20x128xf32>
    %c0_482 = arith.constant 0 : index
    %c13_483 = arith.constant 13 : index
    %c0_484 = arith.constant 0 : index
    %c0_485 = arith.constant 0 : index
    %449 = vector.load %arg1[%c0_482, %c13_483, %c0_484, %c0_485] : memref<1x21x21x64xbf16, #tpu.memory_space<vmem>>, vector<1x1x20x64xbf16>
    %450 = vector.shape_cast %449 : vector<1x1x20x64xbf16> to vector<20x64xbf16>
    %c0_486 = arith.constant 0 : index
    %c0_487 = arith.constant 0 : index
    %c0_488 = arith.constant 0 : index
    %451 = vector.load %arg2[%c0_486, %c0_487, %c0_488] : memref<4x64x128xbf16, #tpu.memory_space<vmem>>, vector<1x64x128xbf16>
    %452 = vector.shape_cast %451 : vector<1x64x128xbf16> to vector<64x128xbf16>
    %cst_489 = arith.constant dense<0.000000e+00> : vector<20x128xf32>
    %453 = tpu.matmul %450, %452, %cst_489 {dimension_numbers = #tpu.dot_dimension_numbers<[1], [0], [0], [1], [0, 0, 1, 1], [], []>} : vector<20x64xbf16>, vector<64x128xbf16>, vector<20x128xf32> -> vector<20x128xf32>
    %c0_490 = arith.constant 0 : index
    %c13_491 = arith.constant 13 : index
    %c1_492 = arith.constant 1 : index
    %c0_493 = arith.constant 0 : index
    %454 = vector.load %arg1[%c0_490, %c13_491, %c1_492, %c0_493] : memref<1x21x21x64xbf16, #tpu.memory_space<vmem>>, vector<1x1x20x64xbf16>
    %455 = vector.shape_cast %454 : vector<1x1x20x64xbf16> to vector<20x64xbf16>
    %c1_494 = arith.constant 1 : index
    %c0_495 = arith.constant 0 : index
    %c0_496 = arith.constant 0 : index
    %456 = vector.load %arg2[%c1_494, %c0_495, %c0_496] : memref<4x64x128xbf16, #tpu.memory_space<vmem>>, vector<1x64x128xbf16>
    %457 = vector.shape_cast %456 : vector<1x64x128xbf16> to vector<64x128xbf16>
    %cst_497 = arith.constant dense<0.000000e+00> : vector<20x128xf32>
    %458 = tpu.matmul %455, %457, %cst_497 {dimension_numbers = #tpu.dot_dimension_numbers<[1], [0], [0], [1], [0, 0, 1, 1], [], []>} : vector<20x64xbf16>, vector<64x128xbf16>, vector<20x128xf32> -> vector<20x128xf32>
    %459 = arith.addf %453, %458 : vector<20x128xf32>
    %c0_498 = arith.constant 0 : index
    %c14 = arith.constant 14 : index
    %c0_499 = arith.constant 0 : index
    %c0_500 = arith.constant 0 : index
    %460 = vector.load %arg1[%c0_498, %c14, %c0_499, %c0_500] : memref<1x21x21x64xbf16, #tpu.memory_space<vmem>>, vector<1x1x20x64xbf16>
    %461 = vector.shape_cast %460 : vector<1x1x20x64xbf16> to vector<20x64xbf16>
    %c2_501 = arith.constant 2 : index
    %c0_502 = arith.constant 0 : index
    %c0_503 = arith.constant 0 : index
    %462 = vector.load %arg2[%c2_501, %c0_502, %c0_503] : memref<4x64x128xbf16, #tpu.memory_space<vmem>>, vector<1x64x128xbf16>
    %463 = vector.shape_cast %462 : vector<1x64x128xbf16> to vector<64x128xbf16>
    %cst_504 = arith.constant dense<0.000000e+00> : vector<20x128xf32>
    %464 = tpu.matmul %461, %463, %cst_504 {dimension_numbers = #tpu.dot_dimension_numbers<[1], [0], [0], [1], [0, 0, 1, 1], [], []>} : vector<20x64xbf16>, vector<64x128xbf16>, vector<20x128xf32> -> vector<20x128xf32>
    %465 = arith.addf %459, %464 : vector<20x128xf32>
    %c0_505 = arith.constant 0 : index
    %c14_506 = arith.constant 14 : index
    %c1_507 = arith.constant 1 : index
    %c0_508 = arith.constant 0 : index
    %466 = vector.load %arg1[%c0_505, %c14_506, %c1_507, %c0_508] : memref<1x21x21x64xbf16, #tpu.memory_space<vmem>>, vector<1x1x20x64xbf16>
    %467 = vector.shape_cast %466 : vector<1x1x20x64xbf16> to vector<20x64xbf16>
    %c3_509 = arith.constant 3 : index
    %c0_510 = arith.constant 0 : index
    %c0_511 = arith.constant 0 : index
    %468 = vector.load %arg2[%c3_509, %c0_510, %c0_511] : memref<4x64x128xbf16, #tpu.memory_space<vmem>>, vector<1x64x128xbf16>
    %469 = vector.shape_cast %468 : vector<1x64x128xbf16> to vector<64x128xbf16>
    %cst_512 = arith.constant dense<0.000000e+00> : vector<20x128xf32>
    %470 = tpu.matmul %467, %469, %cst_512 {dimension_numbers = #tpu.dot_dimension_numbers<[1], [0], [0], [1], [0, 0, 1, 1], [], []>} : vector<20x64xbf16>, vector<64x128xbf16>, vector<20x128xf32> -> vector<20x128xf32>
    %471 = arith.addf %465, %470 : vector<20x128xf32>
    %472 = vector.broadcast %0 : vector<1x128xf32> to vector<20x128xf32>
    %473 = arith.addf %471, %472 : vector<20x128xf32>
    %cst_513 = arith.constant 0.000000e+00 : f32
    %474 = vector.broadcast %cst_513 : f32 to vector<20x128xf32>
    %475 = arith.cmpf oge, %473, %474 : vector<20x128xf32>
    %cst_514 = arith.constant 0.00999999977 : f32
    %476 = vector.broadcast %cst_514 : f32 to vector<20x128xf32>
    %477 = arith.mulf %476, %473 : vector<20x128xf32>
    %478 = arith.select %475, %473, %477 : vector<20x128xi1>, vector<20x128xf32>
    %479 = arith.addf %448, %478 : vector<20x128xf32>
    %cst_515 = arith.constant dense<0.000000e+00> : vector<5x128xf32>
    %480 = tpu.matmul %3, %479, %cst_515 {dimension_numbers = #tpu.dot_dimension_numbers<[1], [0], [0], [1], [0, 0, 1, 1], [], []>} : vector<5x20xf32>, vector<20x128xf32>, vector<5x128xf32> -> vector<5x128xf32>
    %cst_516 = arith.constant dense<0.000000e+00> : vector<5x128xf32>
    %481 = tpu.matmul %4, %479, %cst_516 {dimension_numbers = #tpu.dot_dimension_numbers<[1], [0], [0], [1], [0, 0, 1, 1], [], []>} : vector<5x20xf32>, vector<20x128xf32>, vector<5x128xf32> -> vector<5x128xf32>
    %c3_517 = arith.constant 3 : index
    %c0_518 = arith.constant 0 : index
    %c0_519 = arith.constant 0 : index
    %482 = vector.load %arg8[%c3_517, %c0_518, %c0_519] : memref<5x5x512xf32, #tpu.memory_space<vmem>>, vector<1x5x128xf32>
    %483 = vector.shape_cast %482 : vector<1x5x128xf32> to vector<5x128xf32>
    %484 = vector.shape_cast %480 : vector<5x128xf32> to vector<1x5x128xf32>
    tpu.vector_store %arg8[%c3_517, %c0_518, %c0_519], %484 {strides = array<i32>} : memref<5x5x512xf32, #tpu.memory_space<vmem>>, vector<1x5x128xf32>,
    %c3_520 = arith.constant 3 : index
    %c0_521 = arith.constant 0 : index
    %c128_522 = arith.constant 128 : index
    %485 = vector.load %arg8[%c3_520, %c0_521, %c128_522] : memref<5x5x512xf32, #tpu.memory_space<vmem>>, vector<1x5x128xf32>
    %486 = vector.shape_cast %485 : vector<1x5x128xf32> to vector<5x128xf32>
    %487 = vector.shape_cast %481 : vector<5x128xf32> to vector<1x5x128xf32>
    tpu.vector_store %arg8[%c3_520, %c0_521, %c128_522], %487 {strides = array<i32>} : memref<5x5x512xf32, #tpu.memory_space<vmem>>, vector<1x5x128xf32>,
    %c0_523 = arith.constant 0 : index
    %c14_524 = arith.constant 14 : index
    %c0_525 = arith.constant 0 : index
    %c0_526 = arith.constant 0 : index
    %488 = vector.load %arg1[%c0_523, %c14_524, %c0_525, %c0_526] : memref<1x21x21x64xbf16, #tpu.memory_space<vmem>>, vector<1x1x20x64xbf16>
    %489 = vector.shape_cast %488 : vector<1x1x20x64xbf16> to vector<20x64xbf16>
    %c0_527 = arith.constant 0 : index
    %c0_528 = arith.constant 0 : index
    %c0_529 = arith.constant 0 : index
    %490 = vector.load %arg2[%c0_527, %c0_528, %c0_529] : memref<4x64x128xbf16, #tpu.memory_space<vmem>>, vector<1x64x128xbf16>
    %491 = vector.shape_cast %490 : vector<1x64x128xbf16> to vector<64x128xbf16>
    %cst_530 = arith.constant dense<0.000000e+00> : vector<20x128xf32>
    %492 = tpu.matmul %489, %491, %cst_530 {dimension_numbers = #tpu.dot_dimension_numbers<[1], [0], [0], [1], [0, 0, 1, 1], [], []>} : vector<20x64xbf16>, vector<64x128xbf16>, vector<20x128xf32> -> vector<20x128xf32>
    %c0_531 = arith.constant 0 : index
    %c14_532 = arith.constant 14 : index
    %c1_533 = arith.constant 1 : index
    %c0_534 = arith.constant 0 : index
    %493 = vector.load %arg1[%c0_531, %c14_532, %c1_533, %c0_534] : memref<1x21x21x64xbf16, #tpu.memory_space<vmem>>, vector<1x1x20x64xbf16>
    %494 = vector.shape_cast %493 : vector<1x1x20x64xbf16> to vector<20x64xbf16>
    %c1_535 = arith.constant 1 : index
    %c0_536 = arith.constant 0 : index
    %c0_537 = arith.constant 0 : index
    %495 = vector.load %arg2[%c1_535, %c0_536, %c0_537] : memref<4x64x128xbf16, #tpu.memory_space<vmem>>, vector<1x64x128xbf16>
    %496 = vector.shape_cast %495 : vector<1x64x128xbf16> to vector<64x128xbf16>
    %cst_538 = arith.constant dense<0.000000e+00> : vector<20x128xf32>
    %497 = tpu.matmul %494, %496, %cst_538 {dimension_numbers = #tpu.dot_dimension_numbers<[1], [0], [0], [1], [0, 0, 1, 1], [], []>} : vector<20x64xbf16>, vector<64x128xbf16>, vector<20x128xf32> -> vector<20x128xf32>
    %498 = arith.addf %492, %497 : vector<20x128xf32>
    %c0_539 = arith.constant 0 : index
    %c15 = arith.constant 15 : index
    %c0_540 = arith.constant 0 : index
    %c0_541 = arith.constant 0 : index
    %499 = vector.load %arg1[%c0_539, %c15, %c0_540, %c0_541] : memref<1x21x21x64xbf16, #tpu.memory_space<vmem>>, vector<1x1x20x64xbf16>
    %500 = vector.shape_cast %499 : vector<1x1x20x64xbf16> to vector<20x64xbf16>
    %c2_542 = arith.constant 2 : index
    %c0_543 = arith.constant 0 : index
    %c0_544 = arith.constant 0 : index
    %501 = vector.load %arg2[%c2_542, %c0_543, %c0_544] : memref<4x64x128xbf16, #tpu.memory_space<vmem>>, vector<1x64x128xbf16>
    %502 = vector.shape_cast %501 : vector<1x64x128xbf16> to vector<64x128xbf16>
    %cst_545 = arith.constant dense<0.000000e+00> : vector<20x128xf32>
    %503 = tpu.matmul %500, %502, %cst_545 {dimension_numbers = #tpu.dot_dimension_numbers<[1], [0], [0], [1], [0, 0, 1, 1], [], []>} : vector<20x64xbf16>, vector<64x128xbf16>, vector<20x128xf32> -> vector<20x128xf32>
    %504 = arith.addf %498, %503 : vector<20x128xf32>
    %c0_546 = arith.constant 0 : index
    %c15_547 = arith.constant 15 : index
    %c1_548 = arith.constant 1 : index
    %c0_549 = arith.constant 0 : index
    %505 = vector.load %arg1[%c0_546, %c15_547, %c1_548, %c0_549] : memref<1x21x21x64xbf16, #tpu.memory_space<vmem>>, vector<1x1x20x64xbf16>
    %506 = vector.shape_cast %505 : vector<1x1x20x64xbf16> to vector<20x64xbf16>
    %c3_550 = arith.constant 3 : index
    %c0_551 = arith.constant 0 : index
    %c0_552 = arith.constant 0 : index
    %507 = vector.load %arg2[%c3_550, %c0_551, %c0_552] : memref<4x64x128xbf16, #tpu.memory_space<vmem>>, vector<1x64x128xbf16>
    %508 = vector.shape_cast %507 : vector<1x64x128xbf16> to vector<64x128xbf16>
    %cst_553 = arith.constant dense<0.000000e+00> : vector<20x128xf32>
    %509 = tpu.matmul %506, %508, %cst_553 {dimension_numbers = #tpu.dot_dimension_numbers<[1], [0], [0], [1], [0, 0, 1, 1], [], []>} : vector<20x64xbf16>, vector<64x128xbf16>, vector<20x128xf32> -> vector<20x128xf32>
    %510 = arith.addf %504, %509 : vector<20x128xf32>
    %511 = vector.broadcast %0 : vector<1x128xf32> to vector<20x128xf32>
    %512 = arith.addf %510, %511 : vector<20x128xf32>
    %cst_554 = arith.constant 0.000000e+00 : f32
    %513 = vector.broadcast %cst_554 : f32 to vector<20x128xf32>
    %514 = arith.cmpf oge, %512, %513 : vector<20x128xf32>
    %cst_555 = arith.constant 0.00999999977 : f32
    %515 = vector.broadcast %cst_555 : f32 to vector<20x128xf32>
    %516 = arith.mulf %515, %512 : vector<20x128xf32>
    %517 = arith.select %514, %512, %516 : vector<20x128xi1>, vector<20x128xf32>
    %c0_556 = arith.constant 0 : index
    %c15_557 = arith.constant 15 : index
    %c0_558 = arith.constant 0 : index
    %c0_559 = arith.constant 0 : index
    %518 = vector.load %arg1[%c0_556, %c15_557, %c0_558, %c0_559] : memref<1x21x21x64xbf16, #tpu.memory_space<vmem>>, vector<1x1x20x64xbf16>
    %519 = vector.shape_cast %518 : vector<1x1x20x64xbf16> to vector<20x64xbf16>
    %c0_560 = arith.constant 0 : index
    %c0_561 = arith.constant 0 : index
    %c0_562 = arith.constant 0 : index
    %520 = vector.load %arg2[%c0_560, %c0_561, %c0_562] : memref<4x64x128xbf16, #tpu.memory_space<vmem>>, vector<1x64x128xbf16>
    %521 = vector.shape_cast %520 : vector<1x64x128xbf16> to vector<64x128xbf16>
    %cst_563 = arith.constant dense<0.000000e+00> : vector<20x128xf32>
    %522 = tpu.matmul %519, %521, %cst_563 {dimension_numbers = #tpu.dot_dimension_numbers<[1], [0], [0], [1], [0, 0, 1, 1], [], []>} : vector<20x64xbf16>, vector<64x128xbf16>, vector<20x128xf32> -> vector<20x128xf32>
    %c0_564 = arith.constant 0 : index
    %c15_565 = arith.constant 15 : index
    %c1_566 = arith.constant 1 : index
    %c0_567 = arith.constant 0 : index
    %523 = vector.load %arg1[%c0_564, %c15_565, %c1_566, %c0_567] : memref<1x21x21x64xbf16, #tpu.memory_space<vmem>>, vector<1x1x20x64xbf16>
    %524 = vector.shape_cast %523 : vector<1x1x20x64xbf16> to vector<20x64xbf16>
    %c1_568 = arith.constant 1 : index
    %c0_569 = arith.constant 0 : index
    %c0_570 = arith.constant 0 : index
    %525 = vector.load %arg2[%c1_568, %c0_569, %c0_570] : memref<4x64x128xbf16, #tpu.memory_space<vmem>>, vector<1x64x128xbf16>
    %526 = vector.shape_cast %525 : vector<1x64x128xbf16> to vector<64x128xbf16>
    %cst_571 = arith.constant dense<0.000000e+00> : vector<20x128xf32>
    %527 = tpu.matmul %524, %526, %cst_571 {dimension_numbers = #tpu.dot_dimension_numbers<[1], [0], [0], [1], [0, 0, 1, 1], [], []>} : vector<20x64xbf16>, vector<64x128xbf16>, vector<20x128xf32> -> vector<20x128xf32>
    %528 = arith.addf %522, %527 : vector<20x128xf32>
    %c0_572 = arith.constant 0 : index
    %c16 = arith.constant 16 : index
    %c0_573 = arith.constant 0 : index
    %c0_574 = arith.constant 0 : index
    %529 = vector.load %arg1[%c0_572, %c16, %c0_573, %c0_574] : memref<1x21x21x64xbf16, #tpu.memory_space<vmem>>, vector<1x1x20x64xbf16>
    %530 = vector.shape_cast %529 : vector<1x1x20x64xbf16> to vector<20x64xbf16>
    %c2_575 = arith.constant 2 : index
    %c0_576 = arith.constant 0 : index
    %c0_577 = arith.constant 0 : index
    %531 = vector.load %arg2[%c2_575, %c0_576, %c0_577] : memref<4x64x128xbf16, #tpu.memory_space<vmem>>, vector<1x64x128xbf16>
    %532 = vector.shape_cast %531 : vector<1x64x128xbf16> to vector<64x128xbf16>
    %cst_578 = arith.constant dense<0.000000e+00> : vector<20x128xf32>
    %533 = tpu.matmul %530, %532, %cst_578 {dimension_numbers = #tpu.dot_dimension_numbers<[1], [0], [0], [1], [0, 0, 1, 1], [], []>} : vector<20x64xbf16>, vector<64x128xbf16>, vector<20x128xf32> -> vector<20x128xf32>
    %534 = arith.addf %528, %533 : vector<20x128xf32>
    %c0_579 = arith.constant 0 : index
    %c16_580 = arith.constant 16 : index
    %c1_581 = arith.constant 1 : index
    %c0_582 = arith.constant 0 : index
    %535 = vector.load %arg1[%c0_579, %c16_580, %c1_581, %c0_582] : memref<1x21x21x64xbf16, #tpu.memory_space<vmem>>, vector<1x1x20x64xbf16>
    %536 = vector.shape_cast %535 : vector<1x1x20x64xbf16> to vector<20x64xbf16>
    %c3_583 = arith.constant 3 : index
    %c0_584 = arith.constant 0 : index
    %c0_585 = arith.constant 0 : index
    %537 = vector.load %arg2[%c3_583, %c0_584, %c0_585] : memref<4x64x128xbf16, #tpu.memory_space<vmem>>, vector<1x64x128xbf16>
    %538 = vector.shape_cast %537 : vector<1x64x128xbf16> to vector<64x128xbf16>
    %cst_586 = arith.constant dense<0.000000e+00> : vector<20x128xf32>
    %539 = tpu.matmul %536, %538, %cst_586 {dimension_numbers = #tpu.dot_dimension_numbers<[1], [0], [0], [1], [0, 0, 1, 1], [], []>} : vector<20x64xbf16>, vector<64x128xbf16>, vector<20x128xf32> -> vector<20x128xf32>
    %540 = arith.addf %534, %539 : vector<20x128xf32>
    %541 = vector.broadcast %0 : vector<1x128xf32> to vector<20x128xf32>
    %542 = arith.addf %540, %541 : vector<20x128xf32>
    %cst_587 = arith.constant 0.000000e+00 : f32
    %543 = vector.broadcast %cst_587 : f32 to vector<20x128xf32>
    %544 = arith.cmpf oge, %542, %543 : vector<20x128xf32>
    %cst_588 = arith.constant 0.00999999977 : f32
    %545 = vector.broadcast %cst_588 : f32 to vector<20x128xf32>
    %546 = arith.mulf %545, %542 : vector<20x128xf32>
    %547 = arith.select %544, %542, %546 : vector<20x128xi1>, vector<20x128xf32>
    %548 = arith.addf %517, %547 : vector<20x128xf32>
    %cst_589 = arith.constant dense<0.000000e+00> : vector<5x128xf32>
    %549 = tpu.matmul %3, %548, %cst_589 {dimension_numbers = #tpu.dot_dimension_numbers<[1], [0], [0], [1], [0, 0, 1, 1], [], []>} : vector<5x20xf32>, vector<20x128xf32>, vector<5x128xf32> -> vector<5x128xf32>
    %cst_590 = arith.constant dense<0.000000e+00> : vector<5x128xf32>
    %550 = tpu.matmul %4, %548, %cst_590 {dimension_numbers = #tpu.dot_dimension_numbers<[1], [0], [0], [1], [0, 0, 1, 1], [], []>} : vector<5x20xf32>, vector<20x128xf32>, vector<5x128xf32> -> vector<5x128xf32>
    %c3_591 = arith.constant 3 : index
    %c0_592 = arith.constant 0 : index
    %c256_593 = arith.constant 256 : index
    %551 = vector.load %arg8[%c3_591, %c0_592, %c256_593] : memref<5x5x512xf32, #tpu.memory_space<vmem>>, vector<1x5x128xf32>
    %552 = vector.shape_cast %551 : vector<1x5x128xf32> to vector<5x128xf32>
    %553 = vector.shape_cast %549 : vector<5x128xf32> to vector<1x5x128xf32>
    tpu.vector_store %arg8[%c3_591, %c0_592, %c256_593], %553 {strides = array<i32>} : memref<5x5x512xf32, #tpu.memory_space<vmem>>, vector<1x5x128xf32>,
    %c3_594 = arith.constant 3 : index
    %c0_595 = arith.constant 0 : index
    %c384_596 = arith.constant 384 : index
    %554 = vector.load %arg8[%c3_594, %c0_595, %c384_596] : memref<5x5x512xf32, #tpu.memory_space<vmem>>, vector<1x5x128xf32>
    %555 = vector.shape_cast %554 : vector<1x5x128xf32> to vector<5x128xf32>
    %556 = vector.shape_cast %550 : vector<5x128xf32> to vector<1x5x128xf32>
    tpu.vector_store %arg8[%c3_594, %c0_595, %c384_596], %556 {strides = array<i32>} : memref<5x5x512xf32, #tpu.memory_space<vmem>>, vector<1x5x128xf32>,
    %c0_597 = arith.constant 0 : index
    %c16_598 = arith.constant 16 : index
    %c0_599 = arith.constant 0 : index
    %c0_600 = arith.constant 0 : index
    %557 = vector.load %arg1[%c0_597, %c16_598, %c0_599, %c0_600] : memref<1x21x21x64xbf16, #tpu.memory_space<vmem>>, vector<1x1x20x64xbf16>
    %558 = vector.shape_cast %557 : vector<1x1x20x64xbf16> to vector<20x64xbf16>
    %c0_601 = arith.constant 0 : index
    %c0_602 = arith.constant 0 : index
    %c0_603 = arith.constant 0 : index
    %559 = vector.load %arg2[%c0_601, %c0_602, %c0_603] : memref<4x64x128xbf16, #tpu.memory_space<vmem>>, vector<1x64x128xbf16>
    %560 = vector.shape_cast %559 : vector<1x64x128xbf16> to vector<64x128xbf16>
    %cst_604 = arith.constant dense<0.000000e+00> : vector<20x128xf32>
    %561 = tpu.matmul %558, %560, %cst_604 {dimension_numbers = #tpu.dot_dimension_numbers<[1], [0], [0], [1], [0, 0, 1, 1], [], []>} : vector<20x64xbf16>, vector<64x128xbf16>, vector<20x128xf32> -> vector<20x128xf32>
    %c0_605 = arith.constant 0 : index
    %c16_606 = arith.constant 16 : index
    %c1_607 = arith.constant 1 : index
    %c0_608 = arith.constant 0 : index
    %562 = vector.load %arg1[%c0_605, %c16_606, %c1_607, %c0_608] : memref<1x21x21x64xbf16, #tpu.memory_space<vmem>>, vector<1x1x20x64xbf16>
    %563 = vector.shape_cast %562 : vector<1x1x20x64xbf16> to vector<20x64xbf16>
    %c1_609 = arith.constant 1 : index
    %c0_610 = arith.constant 0 : index
    %c0_611 = arith.constant 0 : index
    %564 = vector.load %arg2[%c1_609, %c0_610, %c0_611] : memref<4x64x128xbf16, #tpu.memory_space<vmem>>, vector<1x64x128xbf16>
    %565 = vector.shape_cast %564 : vector<1x64x128xbf16> to vector<64x128xbf16>
    %cst_612 = arith.constant dense<0.000000e+00> : vector<20x128xf32>
    %566 = tpu.matmul %563, %565, %cst_612 {dimension_numbers = #tpu.dot_dimension_numbers<[1], [0], [0], [1], [0, 0, 1, 1], [], []>} : vector<20x64xbf16>, vector<64x128xbf16>, vector<20x128xf32> -> vector<20x128xf32>
    %567 = arith.addf %561, %566 : vector<20x128xf32>
    %c0_613 = arith.constant 0 : index
    %c17 = arith.constant 17 : index
    %c0_614 = arith.constant 0 : index
    %c0_615 = arith.constant 0 : index
    %568 = vector.load %arg1[%c0_613, %c17, %c0_614, %c0_615] : memref<1x21x21x64xbf16, #tpu.memory_space<vmem>>, vector<1x1x20x64xbf16>
    %569 = vector.shape_cast %568 : vector<1x1x20x64xbf16> to vector<20x64xbf16>
    %c2_616 = arith.constant 2 : index
    %c0_617 = arith.constant 0 : index
    %c0_618 = arith.constant 0 : index
    %570 = vector.load %arg2[%c2_616, %c0_617, %c0_618] : memref<4x64x128xbf16, #tpu.memory_space<vmem>>, vector<1x64x128xbf16>
    %571 = vector.shape_cast %570 : vector<1x64x128xbf16> to vector<64x128xbf16>
    %cst_619 = arith.constant dense<0.000000e+00> : vector<20x128xf32>
    %572 = tpu.matmul %569, %571, %cst_619 {dimension_numbers = #tpu.dot_dimension_numbers<[1], [0], [0], [1], [0, 0, 1, 1], [], []>} : vector<20x64xbf16>, vector<64x128xbf16>, vector<20x128xf32> -> vector<20x128xf32>
    %573 = arith.addf %567, %572 : vector<20x128xf32>
    %c0_620 = arith.constant 0 : index
    %c17_621 = arith.constant 17 : index
    %c1_622 = arith.constant 1 : index
    %c0_623 = arith.constant 0 : index
    %574 = vector.load %arg1[%c0_620, %c17_621, %c1_622, %c0_623] : memref<1x21x21x64xbf16, #tpu.memory_space<vmem>>, vector<1x1x20x64xbf16>
    %575 = vector.shape_cast %574 : vector<1x1x20x64xbf16> to vector<20x64xbf16>
    %c3_624 = arith.constant 3 : index
    %c0_625 = arith.constant 0 : index
    %c0_626 = arith.constant 0 : index
    %576 = vector.load %arg2[%c3_624, %c0_625, %c0_626] : memref<4x64x128xbf16, #tpu.memory_space<vmem>>, vector<1x64x128xbf16>
    %577 = vector.shape_cast %576 : vector<1x64x128xbf16> to vector<64x128xbf16>
    %cst_627 = arith.constant dense<0.000000e+00> : vector<20x128xf32>
    %578 = tpu.matmul %575, %577, %cst_627 {dimension_numbers = #tpu.dot_dimension_numbers<[1], [0], [0], [1], [0, 0, 1, 1], [], []>} : vector<20x64xbf16>, vector<64x128xbf16>, vector<20x128xf32> -> vector<20x128xf32>
    %579 = arith.addf %573, %578 : vector<20x128xf32>
    %580 = vector.broadcast %0 : vector<1x128xf32> to vector<20x128xf32>
    %581 = arith.addf %579, %580 : vector<20x128xf32>
    %cst_628 = arith.constant 0.000000e+00 : f32
    %582 = vector.broadcast %cst_628 : f32 to vector<20x128xf32>
    %583 = arith.cmpf oge, %581, %582 : vector<20x128xf32>
    %cst_629 = arith.constant 0.00999999977 : f32
    %584 = vector.broadcast %cst_629 : f32 to vector<20x128xf32>
    %585 = arith.mulf %584, %581 : vector<20x128xf32>
    %586 = arith.select %583, %581, %585 : vector<20x128xi1>, vector<20x128xf32>
    %c0_630 = arith.constant 0 : index
    %c17_631 = arith.constant 17 : index
    %c0_632 = arith.constant 0 : index
    %c0_633 = arith.constant 0 : index
    %587 = vector.load %arg1[%c0_630, %c17_631, %c0_632, %c0_633] : memref<1x21x21x64xbf16, #tpu.memory_space<vmem>>, vector<1x1x20x64xbf16>
    %588 = vector.shape_cast %587 : vector<1x1x20x64xbf16> to vector<20x64xbf16>
    %c0_634 = arith.constant 0 : index
    %c0_635 = arith.constant 0 : index
    %c0_636 = arith.constant 0 : index
    %589 = vector.load %arg2[%c0_634, %c0_635, %c0_636] : memref<4x64x128xbf16, #tpu.memory_space<vmem>>, vector<1x64x128xbf16>
    %590 = vector.shape_cast %589 : vector<1x64x128xbf16> to vector<64x128xbf16>
    %cst_637 = arith.constant dense<0.000000e+00> : vector<20x128xf32>
    %591 = tpu.matmul %588, %590, %cst_637 {dimension_numbers = #tpu.dot_dimension_numbers<[1], [0], [0], [1], [0, 0, 1, 1], [], []>} : vector<20x64xbf16>, vector<64x128xbf16>, vector<20x128xf32> -> vector<20x128xf32>
    %c0_638 = arith.constant 0 : index
    %c17_639 = arith.constant 17 : index
    %c1_640 = arith.constant 1 : index
    %c0_641 = arith.constant 0 : index
    %592 = vector.load %arg1[%c0_638, %c17_639, %c1_640, %c0_641] : memref<1x21x21x64xbf16, #tpu.memory_space<vmem>>, vector<1x1x20x64xbf16>
    %593 = vector.shape_cast %592 : vector<1x1x20x64xbf16> to vector<20x64xbf16>
    %c1_642 = arith.constant 1 : index
    %c0_643 = arith.constant 0 : index
    %c0_644 = arith.constant 0 : index
    %594 = vector.load %arg2[%c1_642, %c0_643, %c0_644] : memref<4x64x128xbf16, #tpu.memory_space<vmem>>, vector<1x64x128xbf16>
    %595 = vector.shape_cast %594 : vector<1x64x128xbf16> to vector<64x128xbf16>
    %cst_645 = arith.constant dense<0.000000e+00> : vector<20x128xf32>
    %596 = tpu.matmul %593, %595, %cst_645 {dimension_numbers = #tpu.dot_dimension_numbers<[1], [0], [0], [1], [0, 0, 1, 1], [], []>} : vector<20x64xbf16>, vector<64x128xbf16>, vector<20x128xf32> -> vector<20x128xf32>
    %597 = arith.addf %591, %596 : vector<20x128xf32>
    %c0_646 = arith.constant 0 : index
    %c18 = arith.constant 18 : index
    %c0_647 = arith.constant 0 : index
    %c0_648 = arith.constant 0 : index
    %598 = vector.load %arg1[%c0_646, %c18, %c0_647, %c0_648] : memref<1x21x21x64xbf16, #tpu.memory_space<vmem>>, vector<1x1x20x64xbf16>
    %599 = vector.shape_cast %598 : vector<1x1x20x64xbf16> to vector<20x64xbf16>
    %c2_649 = arith.constant 2 : index
    %c0_650 = arith.constant 0 : index
    %c0_651 = arith.constant 0 : index
    %600 = vector.load %arg2[%c2_649, %c0_650, %c0_651] : memref<4x64x128xbf16, #tpu.memory_space<vmem>>, vector<1x64x128xbf16>
    %601 = vector.shape_cast %600 : vector<1x64x128xbf16> to vector<64x128xbf16>
    %cst_652 = arith.constant dense<0.000000e+00> : vector<20x128xf32>
    %602 = tpu.matmul %599, %601, %cst_652 {dimension_numbers = #tpu.dot_dimension_numbers<[1], [0], [0], [1], [0, 0, 1, 1], [], []>} : vector<20x64xbf16>, vector<64x128xbf16>, vector<20x128xf32> -> vector<20x128xf32>
    %603 = arith.addf %597, %602 : vector<20x128xf32>
    %c0_653 = arith.constant 0 : index
    %c18_654 = arith.constant 18 : index
    %c1_655 = arith.constant 1 : index
    %c0_656 = arith.constant 0 : index
    %604 = vector.load %arg1[%c0_653, %c18_654, %c1_655, %c0_656] : memref<1x21x21x64xbf16, #tpu.memory_space<vmem>>, vector<1x1x20x64xbf16>
    %605 = vector.shape_cast %604 : vector<1x1x20x64xbf16> to vector<20x64xbf16>
    %c3_657 = arith.constant 3 : index
    %c0_658 = arith.constant 0 : index
    %c0_659 = arith.constant 0 : index
    %606 = vector.load %arg2[%c3_657, %c0_658, %c0_659] : memref<4x64x128xbf16, #tpu.memory_space<vmem>>, vector<1x64x128xbf16>
    %607 = vector.shape_cast %606 : vector<1x64x128xbf16> to vector<64x128xbf16>
    %cst_660 = arith.constant dense<0.000000e+00> : vector<20x128xf32>
    %608 = tpu.matmul %605, %607, %cst_660 {dimension_numbers = #tpu.dot_dimension_numbers<[1], [0], [0], [1], [0, 0, 1, 1], [], []>} : vector<20x64xbf16>, vector<64x128xbf16>, vector<20x128xf32> -> vector<20x128xf32>
    %609 = arith.addf %603, %608 : vector<20x128xf32>
    %610 = vector.broadcast %0 : vector<1x128xf32> to vector<20x128xf32>
    %611 = arith.addf %609, %610 : vector<20x128xf32>
    %cst_661 = arith.constant 0.000000e+00 : f32
    %612 = vector.broadcast %cst_661 : f32 to vector<20x128xf32>
    %613 = arith.cmpf oge, %611, %612 : vector<20x128xf32>
    %cst_662 = arith.constant 0.00999999977 : f32
    %614 = vector.broadcast %cst_662 : f32 to vector<20x128xf32>
    %615 = arith.mulf %614, %611 : vector<20x128xf32>
    %616 = arith.select %613, %611, %615 : vector<20x128xi1>, vector<20x128xf32>
    %617 = arith.addf %586, %616 : vector<20x128xf32>
    %cst_663 = arith.constant dense<0.000000e+00> : vector<5x128xf32>
    %618 = tpu.matmul %3, %617, %cst_663 {dimension_numbers = #tpu.dot_dimension_numbers<[1], [0], [0], [1], [0, 0, 1, 1], [], []>} : vector<5x20xf32>, vector<20x128xf32>, vector<5x128xf32> -> vector<5x128xf32>
    %cst_664 = arith.constant dense<0.000000e+00> : vector<5x128xf32>
    %619 = tpu.matmul %4, %617, %cst_664 {dimension_numbers = #tpu.dot_dimension_numbers<[1], [0], [0], [1], [0, 0, 1, 1], [], []>} : vector<5x20xf32>, vector<20x128xf32>, vector<5x128xf32> -> vector<5x128xf32>
    %c4_665 = arith.constant 4 : index
    %c0_666 = arith.constant 0 : index
    %c0_667 = arith.constant 0 : index
    %620 = vector.load %arg8[%c4_665, %c0_666, %c0_667] : memref<5x5x512xf32, #tpu.memory_space<vmem>>, vector<1x5x128xf32>
    %621 = vector.shape_cast %620 : vector<1x5x128xf32> to vector<5x128xf32>
    %622 = vector.shape_cast %618 : vector<5x128xf32> to vector<1x5x128xf32>
    tpu.vector_store %arg8[%c4_665, %c0_666, %c0_667], %622 {strides = array<i32>} : memref<5x5x512xf32, #tpu.memory_space<vmem>>, vector<1x5x128xf32>,
    %c4_668 = arith.constant 4 : index
    %c0_669 = arith.constant 0 : index
    %c128_670 = arith.constant 128 : index
    %623 = vector.load %arg8[%c4_668, %c0_669, %c128_670] : memref<5x5x512xf32, #tpu.memory_space<vmem>>, vector<1x5x128xf32>
    %624 = vector.shape_cast %623 : vector<1x5x128xf32> to vector<5x128xf32>
    %625 = vector.shape_cast %619 : vector<5x128xf32> to vector<1x5x128xf32>
    tpu.vector_store %arg8[%c4_668, %c0_669, %c128_670], %625 {strides = array<i32>} : memref<5x5x512xf32, #tpu.memory_space<vmem>>, vector<1x5x128xf32>,
    %c0_671 = arith.constant 0 : index
    %c18_672 = arith.constant 18 : index
    %c0_673 = arith.constant 0 : index
    %c0_674 = arith.constant 0 : index
    %626 = vector.load %arg1[%c0_671, %c18_672, %c0_673, %c0_674] : memref<1x21x21x64xbf16, #tpu.memory_space<vmem>>, vector<1x1x20x64xbf16>
    %627 = vector.shape_cast %626 : vector<1x1x20x64xbf16> to vector<20x64xbf16>
    %c0_675 = arith.constant 0 : index
    %c0_676 = arith.constant 0 : index
    %c0_677 = arith.constant 0 : index
    %628 = vector.load %arg2[%c0_675, %c0_676, %c0_677] : memref<4x64x128xbf16, #tpu.memory_space<vmem>>, vector<1x64x128xbf16>
    %629 = vector.shape_cast %628 : vector<1x64x128xbf16> to vector<64x128xbf16>
    %cst_678 = arith.constant dense<0.000000e+00> : vector<20x128xf32>
    %630 = tpu.matmul %627, %629, %cst_678 {dimension_numbers = #tpu.dot_dimension_numbers<[1], [0], [0], [1], [0, 0, 1, 1], [], []>} : vector<20x64xbf16>, vector<64x128xbf16>, vector<20x128xf32> -> vector<20x128xf32>
    %c0_679 = arith.constant 0 : index
    %c18_680 = arith.constant 18 : index
    %c1_681 = arith.constant 1 : index
    %c0_682 = arith.constant 0 : index
    %631 = vector.load %arg1[%c0_679, %c18_680, %c1_681, %c0_682] : memref<1x21x21x64xbf16, #tpu.memory_space<vmem>>, vector<1x1x20x64xbf16>
    %632 = vector.shape_cast %631 : vector<1x1x20x64xbf16> to vector<20x64xbf16>
    %c1_683 = arith.constant 1 : index
    %c0_684 = arith.constant 0 : index
    %c0_685 = arith.constant 0 : index
    %633 = vector.load %arg2[%c1_683, %c0_684, %c0_685] : memref<4x64x128xbf16, #tpu.memory_space<vmem>>, vector<1x64x128xbf16>
    %634 = vector.shape_cast %633 : vector<1x64x128xbf16> to vector<64x128xbf16>
    %cst_686 = arith.constant dense<0.000000e+00> : vector<20x128xf32>
    %635 = tpu.matmul %632, %634, %cst_686 {dimension_numbers = #tpu.dot_dimension_numbers<[1], [0], [0], [1], [0, 0, 1, 1], [], []>} : vector<20x64xbf16>, vector<64x128xbf16>, vector<20x128xf32> -> vector<20x128xf32>
    %636 = arith.addf %630, %635 : vector<20x128xf32>
    %c0_687 = arith.constant 0 : index
    %c19 = arith.constant 19 : index
    %c0_688 = arith.constant 0 : index
    %c0_689 = arith.constant 0 : index
    %637 = vector.load %arg1[%c0_687, %c19, %c0_688, %c0_689] : memref<1x21x21x64xbf16, #tpu.memory_space<vmem>>, vector<1x1x20x64xbf16>
    %638 = vector.shape_cast %637 : vector<1x1x20x64xbf16> to vector<20x64xbf16>
    %c2_690 = arith.constant 2 : index
    %c0_691 = arith.constant 0 : index
    %c0_692 = arith.constant 0 : index
    %639 = vector.load %arg2[%c2_690, %c0_691, %c0_692] : memref<4x64x128xbf16, #tpu.memory_space<vmem>>, vector<1x64x128xbf16>
    %640 = vector.shape_cast %639 : vector<1x64x128xbf16> to vector<64x128xbf16>
    %cst_693 = arith.constant dense<0.000000e+00> : vector<20x128xf32>
    %641 = tpu.matmul %638, %640, %cst_693 {dimension_numbers = #tpu.dot_dimension_numbers<[1], [0], [0], [1], [0, 0, 1, 1], [], []>} : vector<20x64xbf16>, vector<64x128xbf16>, vector<20x128xf32> -> vector<20x128xf32>
    %642 = arith.addf %636, %641 : vector<20x128xf32>
    %c0_694 = arith.constant 0 : index
    %c19_695 = arith.constant 19 : index
    %c1_696 = arith.constant 1 : index
    %c0_697 = arith.constant 0 : index
    %643 = vector.load %arg1[%c0_694, %c19_695, %c1_696, %c0_697] : memref<1x21x21x64xbf16, #tpu.memory_space<vmem>>, vector<1x1x20x64xbf16>
    %644 = vector.shape_cast %643 : vector<1x1x20x64xbf16> to vector<20x64xbf16>
    %c3_698 = arith.constant 3 : index
    %c0_699 = arith.constant 0 : index
    %c0_700 = arith.constant 0 : index
    %645 = vector.load %arg2[%c3_698, %c0_699, %c0_700] : memref<4x64x128xbf16, #tpu.memory_space<vmem>>, vector<1x64x128xbf16>
    %646 = vector.shape_cast %645 : vector<1x64x128xbf16> to vector<64x128xbf16>
    %cst_701 = arith.constant dense<0.000000e+00> : vector<20x128xf32>
    %647 = tpu.matmul %644, %646, %cst_701 {dimension_numbers = #tpu.dot_dimension_numbers<[1], [0], [0], [1], [0, 0, 1, 1], [], []>} : vector<20x64xbf16>, vector<64x128xbf16>, vector<20x128xf32> -> vector<20x128xf32>
    %648 = arith.addf %642, %647 : vector<20x128xf32>
    %649 = vector.broadcast %0 : vector<1x128xf32> to vector<20x128xf32>
    %650 = arith.addf %648, %649 : vector<20x128xf32>
    %cst_702 = arith.constant 0.000000e+00 : f32
    %651 = vector.broadcast %cst_702 : f32 to vector<20x128xf32>
    %652 = arith.cmpf oge, %650, %651 : vector<20x128xf32>
    %cst_703 = arith.constant 0.00999999977 : f32
    %653 = vector.broadcast %cst_703 : f32 to vector<20x128xf32>
    %654 = arith.mulf %653, %650 : vector<20x128xf32>
    %655 = arith.select %652, %650, %654 : vector<20x128xi1>, vector<20x128xf32>
    %c0_704 = arith.constant 0 : index
    %c19_705 = arith.constant 19 : index
    %c0_706 = arith.constant 0 : index
    %c0_707 = arith.constant 0 : index
    %656 = vector.load %arg1[%c0_704, %c19_705, %c0_706, %c0_707] : memref<1x21x21x64xbf16, #tpu.memory_space<vmem>>, vector<1x1x20x64xbf16>
    %657 = vector.shape_cast %656 : vector<1x1x20x64xbf16> to vector<20x64xbf16>
    %c0_708 = arith.constant 0 : index
    %c0_709 = arith.constant 0 : index
    %c0_710 = arith.constant 0 : index
    %658 = vector.load %arg2[%c0_708, %c0_709, %c0_710] : memref<4x64x128xbf16, #tpu.memory_space<vmem>>, vector<1x64x128xbf16>
    %659 = vector.shape_cast %658 : vector<1x64x128xbf16> to vector<64x128xbf16>
    %cst_711 = arith.constant dense<0.000000e+00> : vector<20x128xf32>
    %660 = tpu.matmul %657, %659, %cst_711 {dimension_numbers = #tpu.dot_dimension_numbers<[1], [0], [0], [1], [0, 0, 1, 1], [], []>} : vector<20x64xbf16>, vector<64x128xbf16>, vector<20x128xf32> -> vector<20x128xf32>
    %c0_712 = arith.constant 0 : index
    %c19_713 = arith.constant 19 : index
    %c1_714 = arith.constant 1 : index
    %c0_715 = arith.constant 0 : index
    %661 = vector.load %arg1[%c0_712, %c19_713, %c1_714, %c0_715] : memref<1x21x21x64xbf16, #tpu.memory_space<vmem>>, vector<1x1x20x64xbf16>
    %662 = vector.shape_cast %661 : vector<1x1x20x64xbf16> to vector<20x64xbf16>
    %c1_716 = arith.constant 1 : index
    %c0_717 = arith.constant 0 : index
    %c0_718 = arith.constant 0 : index
    %663 = vector.load %arg2[%c1_716, %c0_717, %c0_718] : memref<4x64x128xbf16, #tpu.memory_space<vmem>>, vector<1x64x128xbf16>
    %664 = vector.shape_cast %663 : vector<1x64x128xbf16> to vector<64x128xbf16>
    %cst_719 = arith.constant dense<0.000000e+00> : vector<20x128xf32>
    %665 = tpu.matmul %662, %664, %cst_719 {dimension_numbers = #tpu.dot_dimension_numbers<[1], [0], [0], [1], [0, 0, 1, 1], [], []>} : vector<20x64xbf16>, vector<64x128xbf16>, vector<20x128xf32> -> vector<20x128xf32>
    %666 = arith.addf %660, %665 : vector<20x128xf32>
    %c0_720 = arith.constant 0 : index
    %c20 = arith.constant 20 : index
    %c0_721 = arith.constant 0 : index
    %c0_722 = arith.constant 0 : index
    %667 = vector.load %arg1[%c0_720, %c20, %c0_721, %c0_722] : memref<1x21x21x64xbf16, #tpu.memory_space<vmem>>, vector<1x1x20x64xbf16>
    %668 = vector.shape_cast %667 : vector<1x1x20x64xbf16> to vector<20x64xbf16>
    %c2_723 = arith.constant 2 : index
    %c0_724 = arith.constant 0 : index
    %c0_725 = arith.constant 0 : index
    %669 = vector.load %arg2[%c2_723, %c0_724, %c0_725] : memref<4x64x128xbf16, #tpu.memory_space<vmem>>, vector<1x64x128xbf16>
    %670 = vector.shape_cast %669 : vector<1x64x128xbf16> to vector<64x128xbf16>
    %cst_726 = arith.constant dense<0.000000e+00> : vector<20x128xf32>
    %671 = tpu.matmul %668, %670, %cst_726 {dimension_numbers = #tpu.dot_dimension_numbers<[1], [0], [0], [1], [0, 0, 1, 1], [], []>} : vector<20x64xbf16>, vector<64x128xbf16>, vector<20x128xf32> -> vector<20x128xf32>
    %672 = arith.addf %666, %671 : vector<20x128xf32>
    %c0_727 = arith.constant 0 : index
    %c20_728 = arith.constant 20 : index
    %c1_729 = arith.constant 1 : index
    %c0_730 = arith.constant 0 : index
    %673 = vector.load %arg1[%c0_727, %c20_728, %c1_729, %c0_730] : memref<1x21x21x64xbf16, #tpu.memory_space<vmem>>, vector<1x1x20x64xbf16>
    %674 = vector.shape_cast %673 : vector<1x1x20x64xbf16> to vector<20x64xbf16>
    %c3_731 = arith.constant 3 : index
    %c0_732 = arith.constant 0 : index
    %c0_733 = arith.constant 0 : index
    %675 = vector.load %arg2[%c3_731, %c0_732, %c0_733] : memref<4x64x128xbf16, #tpu.memory_space<vmem>>, vector<1x64x128xbf16>
    %676 = vector.shape_cast %675 : vector<1x64x128xbf16> to vector<64x128xbf16>
    %cst_734 = arith.constant dense<0.000000e+00> : vector<20x128xf32>
    %677 = tpu.matmul %674, %676, %cst_734 {dimension_numbers = #tpu.dot_dimension_numbers<[1], [0], [0], [1], [0, 0, 1, 1], [], []>} : vector<20x64xbf16>, vector<64x128xbf16>, vector<20x128xf32> -> vector<20x128xf32>
    %678 = arith.addf %672, %677 : vector<20x128xf32>
    %679 = vector.broadcast %0 : vector<1x128xf32> to vector<20x128xf32>
    %680 = arith.addf %678, %679 : vector<20x128xf32>
    %cst_735 = arith.constant 0.000000e+00 : f32
    %681 = vector.broadcast %cst_735 : f32 to vector<20x128xf32>
    %682 = arith.cmpf oge, %680, %681 : vector<20x128xf32>
    %cst_736 = arith.constant 0.00999999977 : f32
    %683 = vector.broadcast %cst_736 : f32 to vector<20x128xf32>
    %684 = arith.mulf %683, %680 : vector<20x128xf32>
    %685 = arith.select %682, %680, %684 : vector<20x128xi1>, vector<20x128xf32>
    %686 = arith.addf %655, %685 : vector<20x128xf32>
    %cst_737 = arith.constant dense<0.000000e+00> : vector<5x128xf32>
    %687 = tpu.matmul %3, %686, %cst_737 {dimension_numbers = #tpu.dot_dimension_numbers<[1], [0], [0], [1], [0, 0, 1, 1], [], []>} : vector<5x20xf32>, vector<20x128xf32>, vector<5x128xf32> -> vector<5x128xf32>
    %cst_738 = arith.constant dense<0.000000e+00> : vector<5x128xf32>
    %688 = tpu.matmul %4, %686, %cst_738 {dimension_numbers = #tpu.dot_dimension_numbers<[1], [0], [0], [1], [0, 0, 1, 1], [], []>} : vector<5x20xf32>, vector<20x128xf32>, vector<5x128xf32> -> vector<5x128xf32>
    %c4_739 = arith.constant 4 : index
    %c0_740 = arith.constant 0 : index
    %c256_741 = arith.constant 256 : index
    %689 = vector.load %arg8[%c4_739, %c0_740, %c256_741] : memref<5x5x512xf32, #tpu.memory_space<vmem>>, vector<1x5x128xf32>
    %690 = vector.shape_cast %689 : vector<1x5x128xf32> to vector<5x128xf32>
    %691 = vector.shape_cast %687 : vector<5x128xf32> to vector<1x5x128xf32>
    tpu.vector_store %arg8[%c4_739, %c0_740, %c256_741], %691 {strides = array<i32>} : memref<5x5x512xf32, #tpu.memory_space<vmem>>, vector<1x5x128xf32>,
    %c4_742 = arith.constant 4 : index
    %c0_743 = arith.constant 0 : index
    %c384_744 = arith.constant 384 : index
    %692 = vector.load %arg8[%c4_742, %c0_743, %c384_744] : memref<5x5x512xf32, #tpu.memory_space<vmem>>, vector<1x5x128xf32>
    %693 = vector.shape_cast %692 : vector<1x5x128xf32> to vector<5x128xf32>
    %694 = vector.shape_cast %688 : vector<5x128xf32> to vector<1x5x128xf32>
    tpu.vector_store %arg8[%c4_742, %c0_743, %c384_744], %694 {strides = array<i32>} : memref<5x5x512xf32, #tpu.memory_space<vmem>>, vector<1x5x128xf32>,
    %c0_745 = arith.constant 0 : index
    %c0_746 = arith.constant 0 : index
    %c0_747 = arith.constant 0 : index
    %695 = vector.load %arg8[%c0_745, %c0_746, %c0_747] : memref<5x5x512xf32, #tpu.memory_space<vmem>>, vector<1x4x512xf32>
    %696 = vector.shape_cast %695 : vector<1x4x512xf32> to vector<4x512xf32>
    %697 = arith.truncf %696 : vector<4x512xf32> to vector<4x512xbf16>
    %c0_748 = arith.constant 0 : index
    %c0_749 = arith.constant 0 : index
    %c0_750 = arith.constant 0 : index
    %698 = vector.load %arg3[%c0_748, %c0_749, %c0_750] : memref<4x512x128xbf16, #tpu.memory_space<vmem>>, vector<1x512x128xbf16>
    %699 = vector.shape_cast %698 : vector<1x512x128xbf16> to vector<512x128xbf16>
    %cst_751 = arith.constant dense<0.000000e+00> : vector<4x128xf32>
    %700 = tpu.matmul %697, %699, %cst_751 {dimension_numbers = #tpu.dot_dimension_numbers<[1], [0], [0], [1], [0, 0, 1, 1], [], []>} : vector<4x512xbf16>, vector<512x128xbf16>, vector<4x128xf32> -> vector<4x128xf32>
    %c0_752 = arith.constant 0 : index
    %c1_753 = arith.constant 1 : index
    %c0_754 = arith.constant 0 : index
    %701 = vector.load %arg8[%c0_752, %c1_753, %c0_754] : memref<5x5x512xf32, #tpu.memory_space<vmem>>, vector<1x4x512xf32>
    %702 = vector.shape_cast %701 : vector<1x4x512xf32> to vector<4x512xf32>
    %703 = arith.truncf %702 : vector<4x512xf32> to vector<4x512xbf16>
    %c1_755 = arith.constant 1 : index
    %c0_756 = arith.constant 0 : index
    %c0_757 = arith.constant 0 : index
    %704 = vector.load %arg3[%c1_755, %c0_756, %c0_757] : memref<4x512x128xbf16, #tpu.memory_space<vmem>>, vector<1x512x128xbf16>
    %705 = vector.shape_cast %704 : vector<1x512x128xbf16> to vector<512x128xbf16>
    %cst_758 = arith.constant dense<0.000000e+00> : vector<4x128xf32>
    %706 = tpu.matmul %703, %705, %cst_758 {dimension_numbers = #tpu.dot_dimension_numbers<[1], [0], [0], [1], [0, 0, 1, 1], [], []>} : vector<4x512xbf16>, vector<512x128xbf16>, vector<4x128xf32> -> vector<4x128xf32>
    %707 = arith.addf %700, %706 : vector<4x128xf32>
    %c1_759 = arith.constant 1 : index
    %c0_760 = arith.constant 0 : index
    %c0_761 = arith.constant 0 : index
    %708 = vector.load %arg8[%c1_759, %c0_760, %c0_761] : memref<5x5x512xf32, #tpu.memory_space<vmem>>, vector<1x4x512xf32>
    %709 = vector.shape_cast %708 : vector<1x4x512xf32> to vector<4x512xf32>
    %710 = arith.truncf %709 : vector<4x512xf32> to vector<4x512xbf16>
    %c2_762 = arith.constant 2 : index
    %c0_763 = arith.constant 0 : index
    %c0_764 = arith.constant 0 : index
    %711 = vector.load %arg3[%c2_762, %c0_763, %c0_764] : memref<4x512x128xbf16, #tpu.memory_space<vmem>>, vector<1x512x128xbf16>
    %712 = vector.shape_cast %711 : vector<1x512x128xbf16> to vector<512x128xbf16>
    %cst_765 = arith.constant dense<0.000000e+00> : vector<4x128xf32>
    %713 = tpu.matmul %710, %712, %cst_765 {dimension_numbers = #tpu.dot_dimension_numbers<[1], [0], [0], [1], [0, 0, 1, 1], [], []>} : vector<4x512xbf16>, vector<512x128xbf16>, vector<4x128xf32> -> vector<4x128xf32>
    %714 = arith.addf %707, %713 : vector<4x128xf32>
    %c1_766 = arith.constant 1 : index
    %c1_767 = arith.constant 1 : index
    %c0_768 = arith.constant 0 : index
    %715 = vector.load %arg8[%c1_766, %c1_767, %c0_768] : memref<5x5x512xf32, #tpu.memory_space<vmem>>, vector<1x4x512xf32>
    %716 = vector.shape_cast %715 : vector<1x4x512xf32> to vector<4x512xf32>
    %717 = arith.truncf %716 : vector<4x512xf32> to vector<4x512xbf16>
    %c3_769 = arith.constant 3 : index
    %c0_770 = arith.constant 0 : index
    %c0_771 = arith.constant 0 : index
    %718 = vector.load %arg3[%c3_769, %c0_770, %c0_771] : memref<4x512x128xbf16, #tpu.memory_space<vmem>>, vector<1x512x128xbf16>
    %719 = vector.shape_cast %718 : vector<1x512x128xbf16> to vector<512x128xbf16>
    %cst_772 = arith.constant dense<0.000000e+00> : vector<4x128xf32>
    %720 = tpu.matmul %717, %719, %cst_772 {dimension_numbers = #tpu.dot_dimension_numbers<[1], [0], [0], [1], [0, 0, 1, 1], [], []>} : vector<4x512xbf16>, vector<512x128xbf16>, vector<4x128xf32> -> vector<4x128xf32>
    %721 = arith.addf %714, %720 : vector<4x128xf32>
    %722 = vector.broadcast %1 : vector<1x128xf32> to vector<4x128xf32>
    %723 = arith.addf %721, %722 : vector<4x128xf32>
    %cst_773 = arith.constant 0.000000e+00 : f32
    %724 = vector.broadcast %cst_773 : f32 to vector<4x128xf32>
    %725 = arith.maximumf %723, %724 : vector<4x128xf32>
    %c0_774 = arith.constant 0 : index
    %c0_775 = arith.constant 0 : index
    %c0_776 = arith.constant 0 : index
    %726 = vector.load %arg9[%c0_774, %c0_775, %c0_776] : memref<4x4x128xf32, #tpu.memory_space<vmem>>, vector<1x4x128xf32>
    %727 = vector.shape_cast %726 : vector<1x4x128xf32> to vector<4x128xf32>
    %728 = vector.shape_cast %725 : vector<4x128xf32> to vector<1x4x128xf32>
    tpu.vector_store %arg9[%c0_774, %c0_775, %c0_776], %728 {strides = array<i32>} : memref<4x4x128xf32, #tpu.memory_space<vmem>>, vector<1x4x128xf32>,
    %c1_777 = arith.constant 1 : index
    %c0_778 = arith.constant 0 : index
    %c0_779 = arith.constant 0 : index
    %729 = vector.load %arg8[%c1_777, %c0_778, %c0_779] : memref<5x5x512xf32, #tpu.memory_space<vmem>>, vector<1x4x512xf32>
    %730 = vector.shape_cast %729 : vector<1x4x512xf32> to vector<4x512xf32>
    %731 = arith.truncf %730 : vector<4x512xf32> to vector<4x512xbf16>
    %c0_780 = arith.constant 0 : index
    %c0_781 = arith.constant 0 : index
    %c0_782 = arith.constant 0 : index
    %732 = vector.load %arg3[%c0_780, %c0_781, %c0_782] : memref<4x512x128xbf16, #tpu.memory_space<vmem>>, vector<1x512x128xbf16>
    %733 = vector.shape_cast %732 : vector<1x512x128xbf16> to vector<512x128xbf16>
    %cst_783 = arith.constant dense<0.000000e+00> : vector<4x128xf32>
    %734 = tpu.matmul %731, %733, %cst_783 {dimension_numbers = #tpu.dot_dimension_numbers<[1], [0], [0], [1], [0, 0, 1, 1], [], []>} : vector<4x512xbf16>, vector<512x128xbf16>, vector<4x128xf32> -> vector<4x128xf32>
    %c1_784 = arith.constant 1 : index
    %c1_785 = arith.constant 1 : index
    %c0_786 = arith.constant 0 : index
    %735 = vector.load %arg8[%c1_784, %c1_785, %c0_786] : memref<5x5x512xf32, #tpu.memory_space<vmem>>, vector<1x4x512xf32>
    %736 = vector.shape_cast %735 : vector<1x4x512xf32> to vector<4x512xf32>
    %737 = arith.truncf %736 : vector<4x512xf32> to vector<4x512xbf16>
    %c1_787 = arith.constant 1 : index
    %c0_788 = arith.constant 0 : index
    %c0_789 = arith.constant 0 : index
    %738 = vector.load %arg3[%c1_787, %c0_788, %c0_789] : memref<4x512x128xbf16, #tpu.memory_space<vmem>>, vector<1x512x128xbf16>
    %739 = vector.shape_cast %738 : vector<1x512x128xbf16> to vector<512x128xbf16>
    %cst_790 = arith.constant dense<0.000000e+00> : vector<4x128xf32>
    %740 = tpu.matmul %737, %739, %cst_790 {dimension_numbers = #tpu.dot_dimension_numbers<[1], [0], [0], [1], [0, 0, 1, 1], [], []>} : vector<4x512xbf16>, vector<512x128xbf16>, vector<4x128xf32> -> vector<4x128xf32>
    %741 = arith.addf %734, %740 : vector<4x128xf32>
    %c2_791 = arith.constant 2 : index
    %c0_792 = arith.constant 0 : index
    %c0_793 = arith.constant 0 : index
    %742 = vector.load %arg8[%c2_791, %c0_792, %c0_793] : memref<5x5x512xf32, #tpu.memory_space<vmem>>, vector<1x4x512xf32>
    %743 = vector.shape_cast %742 : vector<1x4x512xf32> to vector<4x512xf32>
    %744 = arith.truncf %743 : vector<4x512xf32> to vector<4x512xbf16>
    %c2_794 = arith.constant 2 : index
    %c0_795 = arith.constant 0 : index
    %c0_796 = arith.constant 0 : index
    %745 = vector.load %arg3[%c2_794, %c0_795, %c0_796] : memref<4x512x128xbf16, #tpu.memory_space<vmem>>, vector<1x512x128xbf16>
    %746 = vector.shape_cast %745 : vector<1x512x128xbf16> to vector<512x128xbf16>
    %cst_797 = arith.constant dense<0.000000e+00> : vector<4x128xf32>
    %747 = tpu.matmul %744, %746, %cst_797 {dimension_numbers = #tpu.dot_dimension_numbers<[1], [0], [0], [1], [0, 0, 1, 1], [], []>} : vector<4x512xbf16>, vector<512x128xbf16>, vector<4x128xf32> -> vector<4x128xf32>
    %748 = arith.addf %741, %747 : vector<4x128xf32>
    %c2_798 = arith.constant 2 : index
    %c1_799 = arith.constant 1 : index
    %c0_800 = arith.constant 0 : index
    %749 = vector.load %arg8[%c2_798, %c1_799, %c0_800] : memref<5x5x512xf32, #tpu.memory_space<vmem>>, vector<1x4x512xf32>
    %750 = vector.shape_cast %749 : vector<1x4x512xf32> to vector<4x512xf32>
    %751 = arith.truncf %750 : vector<4x512xf32> to vector<4x512xbf16>
    %c3_801 = arith.constant 3 : index
    %c0_802 = arith.constant 0 : index
    %c0_803 = arith.constant 0 : index
    %752 = vector.load %arg3[%c3_801, %c0_802, %c0_803] : memref<4x512x128xbf16, #tpu.memory_space<vmem>>, vector<1x512x128xbf16>
    %753 = vector.shape_cast %752 : vector<1x512x128xbf16> to vector<512x128xbf16>
    %cst_804 = arith.constant dense<0.000000e+00> : vector<4x128xf32>
    %754 = tpu.matmul %751, %753, %cst_804 {dimension_numbers = #tpu.dot_dimension_numbers<[1], [0], [0], [1], [0, 0, 1, 1], [], []>} : vector<4x512xbf16>, vector<512x128xbf16>, vector<4x128xf32> -> vector<4x128xf32>
    %755 = arith.addf %748, %754 : vector<4x128xf32>
    %756 = vector.broadcast %1 : vector<1x128xf32> to vector<4x128xf32>
    %757 = arith.addf %755, %756 : vector<4x128xf32>
    %cst_805 = arith.constant 0.000000e+00 : f32
    %758 = vector.broadcast %cst_805 : f32 to vector<4x128xf32>
    %759 = arith.maximumf %757, %758 : vector<4x128xf32>
    %c1_806 = arith.constant 1 : index
    %c0_807 = arith.constant 0 : index
    %c0_808 = arith.constant 0 : index
    %760 = vector.load %arg9[%c1_806, %c0_807, %c0_808] : memref<4x4x128xf32, #tpu.memory_space<vmem>>, vector<1x4x128xf32>
    %761 = vector.shape_cast %760 : vector<1x4x128xf32> to vector<4x128xf32>
    %762 = vector.shape_cast %759 : vector<4x128xf32> to vector<1x4x128xf32>
    tpu.vector_store %arg9[%c1_806, %c0_807, %c0_808], %762 {strides = array<i32>} : memref<4x4x128xf32, #tpu.memory_space<vmem>>, vector<1x4x128xf32>,
    %c2_809 = arith.constant 2 : index
    %c0_810 = arith.constant 0 : index
    %c0_811 = arith.constant 0 : index
    %763 = vector.load %arg8[%c2_809, %c0_810, %c0_811] : memref<5x5x512xf32, #tpu.memory_space<vmem>>, vector<1x4x512xf32>
    %764 = vector.shape_cast %763 : vector<1x4x512xf32> to vector<4x512xf32>
    %765 = arith.truncf %764 : vector<4x512xf32> to vector<4x512xbf16>
    %c0_812 = arith.constant 0 : index
    %c0_813 = arith.constant 0 : index
    %c0_814 = arith.constant 0 : index
    %766 = vector.load %arg3[%c0_812, %c0_813, %c0_814] : memref<4x512x128xbf16, #tpu.memory_space<vmem>>, vector<1x512x128xbf16>
    %767 = vector.shape_cast %766 : vector<1x512x128xbf16> to vector<512x128xbf16>
    %cst_815 = arith.constant dense<0.000000e+00> : vector<4x128xf32>
    %768 = tpu.matmul %765, %767, %cst_815 {dimension_numbers = #tpu.dot_dimension_numbers<[1], [0], [0], [1], [0, 0, 1, 1], [], []>} : vector<4x512xbf16>, vector<512x128xbf16>, vector<4x128xf32> -> vector<4x128xf32>
    %c2_816 = arith.constant 2 : index
    %c1_817 = arith.constant 1 : index
    %c0_818 = arith.constant 0 : index
    %769 = vector.load %arg8[%c2_816, %c1_817, %c0_818] : memref<5x5x512xf32, #tpu.memory_space<vmem>>, vector<1x4x512xf32>
    %770 = vector.shape_cast %769 : vector<1x4x512xf32> to vector<4x512xf32>
    %771 = arith.truncf %770 : vector<4x512xf32> to vector<4x512xbf16>
    %c1_819 = arith.constant 1 : index
    %c0_820 = arith.constant 0 : index
    %c0_821 = arith.constant 0 : index
    %772 = vector.load %arg3[%c1_819, %c0_820, %c0_821] : memref<4x512x128xbf16, #tpu.memory_space<vmem>>, vector<1x512x128xbf16>
    %773 = vector.shape_cast %772 : vector<1x512x128xbf16> to vector<512x128xbf16>
    %cst_822 = arith.constant dense<0.000000e+00> : vector<4x128xf32>
    %774 = tpu.matmul %771, %773, %cst_822 {dimension_numbers = #tpu.dot_dimension_numbers<[1], [0], [0], [1], [0, 0, 1, 1], [], []>} : vector<4x512xbf16>, vector<512x128xbf16>, vector<4x128xf32> -> vector<4x128xf32>
    %775 = arith.addf %768, %774 : vector<4x128xf32>
    %c3_823 = arith.constant 3 : index
    %c0_824 = arith.constant 0 : index
    %c0_825 = arith.constant 0 : index
    %776 = vector.load %arg8[%c3_823, %c0_824, %c0_825] : memref<5x5x512xf32, #tpu.memory_space<vmem>>, vector<1x4x512xf32>
    %777 = vector.shape_cast %776 : vector<1x4x512xf32> to vector<4x512xf32>
    %778 = arith.truncf %777 : vector<4x512xf32> to vector<4x512xbf16>
    %c2_826 = arith.constant 2 : index
    %c0_827 = arith.constant 0 : index
    %c0_828 = arith.constant 0 : index
    %779 = vector.load %arg3[%c2_826, %c0_827, %c0_828] : memref<4x512x128xbf16, #tpu.memory_space<vmem>>, vector<1x512x128xbf16>
    %780 = vector.shape_cast %779 : vector<1x512x128xbf16> to vector<512x128xbf16>
    %cst_829 = arith.constant dense<0.000000e+00> : vector<4x128xf32>
    %781 = tpu.matmul %778, %780, %cst_829 {dimension_numbers = #tpu.dot_dimension_numbers<[1], [0], [0], [1], [0, 0, 1, 1], [], []>} : vector<4x512xbf16>, vector<512x128xbf16>, vector<4x128xf32> -> vector<4x128xf32>
    %782 = arith.addf %775, %781 : vector<4x128xf32>
    %c3_830 = arith.constant 3 : index
    %c1_831 = arith.constant 1 : index
    %c0_832 = arith.constant 0 : index
    %783 = vector.load %arg8[%c3_830, %c1_831, %c0_832] : memref<5x5x512xf32, #tpu.memory_space<vmem>>, vector<1x4x512xf32>
    %784 = vector.shape_cast %783 : vector<1x4x512xf32> to vector<4x512xf32>
    %785 = arith.truncf %784 : vector<4x512xf32> to vector<4x512xbf16>
    %c3_833 = arith.constant 3 : index
    %c0_834 = arith.constant 0 : index
    %c0_835 = arith.constant 0 : index
    %786 = vector.load %arg3[%c3_833, %c0_834, %c0_835] : memref<4x512x128xbf16, #tpu.memory_space<vmem>>, vector<1x512x128xbf16>
    %787 = vector.shape_cast %786 : vector<1x512x128xbf16> to vector<512x128xbf16>
    %cst_836 = arith.constant dense<0.000000e+00> : vector<4x128xf32>
    %788 = tpu.matmul %785, %787, %cst_836 {dimension_numbers = #tpu.dot_dimension_numbers<[1], [0], [0], [1], [0, 0, 1, 1], [], []>} : vector<4x512xbf16>, vector<512x128xbf16>, vector<4x128xf32> -> vector<4x128xf32>
    %789 = arith.addf %782, %788 : vector<4x128xf32>
    %790 = vector.broadcast %1 : vector<1x128xf32> to vector<4x128xf32>
    %791 = arith.addf %789, %790 : vector<4x128xf32>
    %cst_837 = arith.constant 0.000000e+00 : f32
    %792 = vector.broadcast %cst_837 : f32 to vector<4x128xf32>
    %793 = arith.maximumf %791, %792 : vector<4x128xf32>
    %c2_838 = arith.constant 2 : index
    %c0_839 = arith.constant 0 : index
    %c0_840 = arith.constant 0 : index
    %794 = vector.load %arg9[%c2_838, %c0_839, %c0_840] : memref<4x4x128xf32, #tpu.memory_space<vmem>>, vector<1x4x128xf32>
    %795 = vector.shape_cast %794 : vector<1x4x128xf32> to vector<4x128xf32>
    %796 = vector.shape_cast %793 : vector<4x128xf32> to vector<1x4x128xf32>
    tpu.vector_store %arg9[%c2_838, %c0_839, %c0_840], %796 {strides = array<i32>} : memref<4x4x128xf32, #tpu.memory_space<vmem>>, vector<1x4x128xf32>,
    %c3_841 = arith.constant 3 : index
    %c0_842 = arith.constant 0 : index
    %c0_843 = arith.constant 0 : index
    %797 = vector.load %arg8[%c3_841, %c0_842, %c0_843] : memref<5x5x512xf32, #tpu.memory_space<vmem>>, vector<1x4x512xf32>
    %798 = vector.shape_cast %797 : vector<1x4x512xf32> to vector<4x512xf32>
    %799 = arith.truncf %798 : vector<4x512xf32> to vector<4x512xbf16>
    %c0_844 = arith.constant 0 : index
    %c0_845 = arith.constant 0 : index
    %c0_846 = arith.constant 0 : index
    %800 = vector.load %arg3[%c0_844, %c0_845, %c0_846] : memref<4x512x128xbf16, #tpu.memory_space<vmem>>, vector<1x512x128xbf16>
    %801 = vector.shape_cast %800 : vector<1x512x128xbf16> to vector<512x128xbf16>
    %cst_847 = arith.constant dense<0.000000e+00> : vector<4x128xf32>
    %802 = tpu.matmul %799, %801, %cst_847 {dimension_numbers = #tpu.dot_dimension_numbers<[1], [0], [0], [1], [0, 0, 1, 1], [], []>} : vector<4x512xbf16>, vector<512x128xbf16>, vector<4x128xf32> -> vector<4x128xf32>
    %c3_848 = arith.constant 3 : index
    %c1_849 = arith.constant 1 : index
    %c0_850 = arith.constant 0 : index
    %803 = vector.load %arg8[%c3_848, %c1_849, %c0_850] : memref<5x5x512xf32, #tpu.memory_space<vmem>>, vector<1x4x512xf32>
    %804 = vector.shape_cast %803 : vector<1x4x512xf32> to vector<4x512xf32>
    %805 = arith.truncf %804 : vector<4x512xf32> to vector<4x512xbf16>
    %c1_851 = arith.constant 1 : index
    %c0_852 = arith.constant 0 : index
    %c0_853 = arith.constant 0 : index
    %806 = vector.load %arg3[%c1_851, %c0_852, %c0_853] : memref<4x512x128xbf16, #tpu.memory_space<vmem>>, vector<1x512x128xbf16>
    %807 = vector.shape_cast %806 : vector<1x512x128xbf16> to vector<512x128xbf16>
    %cst_854 = arith.constant dense<0.000000e+00> : vector<4x128xf32>
    %808 = tpu.matmul %805, %807, %cst_854 {dimension_numbers = #tpu.dot_dimension_numbers<[1], [0], [0], [1], [0, 0, 1, 1], [], []>} : vector<4x512xbf16>, vector<512x128xbf16>, vector<4x128xf32> -> vector<4x128xf32>
    %809 = arith.addf %802, %808 : vector<4x128xf32>
    %c4_855 = arith.constant 4 : index
    %c0_856 = arith.constant 0 : index
    %c0_857 = arith.constant 0 : index
    %810 = vector.load %arg8[%c4_855, %c0_856, %c0_857] : memref<5x5x512xf32, #tpu.memory_space<vmem>>, vector<1x4x512xf32>
    %811 = vector.shape_cast %810 : vector<1x4x512xf32> to vector<4x512xf32>
    %812 = arith.truncf %811 : vector<4x512xf32> to vector<4x512xbf16>
    %c2_858 = arith.constant 2 : index
    %c0_859 = arith.constant 0 : index
    %c0_860 = arith.constant 0 : index
    %813 = vector.load %arg3[%c2_858, %c0_859, %c0_860] : memref<4x512x128xbf16, #tpu.memory_space<vmem>>, vector<1x512x128xbf16>
    %814 = vector.shape_cast %813 : vector<1x512x128xbf16> to vector<512x128xbf16>
    %cst_861 = arith.constant dense<0.000000e+00> : vector<4x128xf32>
    %815 = tpu.matmul %812, %814, %cst_861 {dimension_numbers = #tpu.dot_dimension_numbers<[1], [0], [0], [1], [0, 0, 1, 1], [], []>} : vector<4x512xbf16>, vector<512x128xbf16>, vector<4x128xf32> -> vector<4x128xf32>
    %816 = arith.addf %809, %815 : vector<4x128xf32>
    %c4_862 = arith.constant 4 : index
    %c1_863 = arith.constant 1 : index
    %c0_864 = arith.constant 0 : index
    %817 = vector.load %arg8[%c4_862, %c1_863, %c0_864] : memref<5x5x512xf32, #tpu.memory_space<vmem>>, vector<1x4x512xf32>
    %818 = vector.shape_cast %817 : vector<1x4x512xf32> to vector<4x512xf32>
    %819 = arith.truncf %818 : vector<4x512xf32> to vector<4x512xbf16>
    %c3_865 = arith.constant 3 : index
    %c0_866 = arith.constant 0 : index
    %c0_867 = arith.constant 0 : index
    %820 = vector.load %arg3[%c3_865, %c0_866, %c0_867] : memref<4x512x128xbf16, #tpu.memory_space<vmem>>, vector<1x512x128xbf16>
    %821 = vector.shape_cast %820 : vector<1x512x128xbf16> to vector<512x128xbf16>
    %cst_868 = arith.constant dense<0.000000e+00> : vector<4x128xf32>
    %822 = tpu.matmul %819, %821, %cst_868 {dimension_numbers = #tpu.dot_dimension_numbers<[1], [0], [0], [1], [0, 0, 1, 1], [], []>} : vector<4x512xbf16>, vector<512x128xbf16>, vector<4x128xf32> -> vector<4x128xf32>
    %823 = arith.addf %816, %822 : vector<4x128xf32>
    %824 = vector.broadcast %1 : vector<1x128xf32> to vector<4x128xf32>
    %825 = arith.addf %823, %824 : vector<4x128xf32>
    %cst_869 = arith.constant 0.000000e+00 : f32
    %826 = vector.broadcast %cst_869 : f32 to vector<4x128xf32>
    %827 = arith.maximumf %825, %826 : vector<4x128xf32>
    %c3_870 = arith.constant 3 : index
    %c0_871 = arith.constant 0 : index
    %c0_872 = arith.constant 0 : index
    %828 = vector.load %arg9[%c3_870, %c0_871, %c0_872] : memref<4x4x128xf32, #tpu.memory_space<vmem>>, vector<1x4x128xf32>
    %829 = vector.shape_cast %828 : vector<1x4x128xf32> to vector<4x128xf32>
    %830 = vector.shape_cast %827 : vector<4x128xf32> to vector<1x4x128xf32>
    tpu.vector_store %arg9[%c3_870, %c0_871, %c0_872], %830 {strides = array<i32>} : memref<4x4x128xf32, #tpu.memory_space<vmem>>, vector<1x4x128xf32>,
    %c0_873 = arith.constant 0 : index
    %c0_874 = arith.constant 0 : index
    %c0_875 = arith.constant 0 : index
    %831 = vector.load %arg9[%c0_873, %c0_874, %c0_875] : memref<4x4x128xf32, #tpu.memory_space<vmem>>, vector<1x2x128xf32>
    %832 = vector.shape_cast %831 : vector<1x2x128xf32> to vector<2x128xf32>
    %833 = arith.truncf %832 : vector<2x128xf32> to vector<2x128xbf16>
    %c0_876 = arith.constant 0 : index
    %c0_877 = arith.constant 0 : index
    %c0_878 = arith.constant 0 : index
    %834 = vector.load %arg4[%c0_876, %c0_877, %c0_878] : memref<9x128x128xbf16, #tpu.memory_space<vmem>>, vector<1x128x128xbf16>
    %835 = vector.shape_cast %834 : vector<1x128x128xbf16> to vector<128x128xbf16>
    %cst_879 = arith.constant dense<0.000000e+00> : vector<2x128xf32>
    %836 = tpu.matmul %833, %835, %cst_879 {dimension_numbers = #tpu.dot_dimension_numbers<[1], [0], [0], [1], [0, 0, 1, 1], [], []>} : vector<2x128xbf16>, vector<128x128xbf16>, vector<2x128xf32> -> vector<2x128xf32>
    %c0_880 = arith.constant 0 : index
    %c1_881 = arith.constant 1 : index
    %c0_882 = arith.constant 0 : index
    %837 = vector.load %arg9[%c0_880, %c1_881, %c0_882] : memref<4x4x128xf32, #tpu.memory_space<vmem>>, vector<1x2x128xf32>
    %838 = vector.shape_cast %837 : vector<1x2x128xf32> to vector<2x128xf32>
    %839 = arith.truncf %838 : vector<2x128xf32> to vector<2x128xbf16>
    %c1_883 = arith.constant 1 : index
    %c0_884 = arith.constant 0 : index
    %c0_885 = arith.constant 0 : index
    %840 = vector.load %arg4[%c1_883, %c0_884, %c0_885] : memref<9x128x128xbf16, #tpu.memory_space<vmem>>, vector<1x128x128xbf16>
    %841 = vector.shape_cast %840 : vector<1x128x128xbf16> to vector<128x128xbf16>
    %cst_886 = arith.constant dense<0.000000e+00> : vector<2x128xf32>
    %842 = tpu.matmul %839, %841, %cst_886 {dimension_numbers = #tpu.dot_dimension_numbers<[1], [0], [0], [1], [0, 0, 1, 1], [], []>} : vector<2x128xbf16>, vector<128x128xbf16>, vector<2x128xf32> -> vector<2x128xf32>
    %843 = arith.addf %836, %842 : vector<2x128xf32>
    %c0_887 = arith.constant 0 : index
    %c2_888 = arith.constant 2 : index
    %c0_889 = arith.constant 0 : index
    %844 = vector.load %arg9[%c0_887, %c2_888, %c0_889] : memref<4x4x128xf32, #tpu.memory_space<vmem>>, vector<1x2x128xf32>
    %845 = vector.shape_cast %844 : vector<1x2x128xf32> to vector<2x128xf32>
    %846 = arith.truncf %845 : vector<2x128xf32> to vector<2x128xbf16>
    %c2_890 = arith.constant 2 : index
    %c0_891 = arith.constant 0 : index
    %c0_892 = arith.constant 0 : index
    %847 = vector.load %arg4[%c2_890, %c0_891, %c0_892] : memref<9x128x128xbf16, #tpu.memory_space<vmem>>, vector<1x128x128xbf16>
    %848 = vector.shape_cast %847 : vector<1x128x128xbf16> to vector<128x128xbf16>
    %cst_893 = arith.constant dense<0.000000e+00> : vector<2x128xf32>
    %849 = tpu.matmul %846, %848, %cst_893 {dimension_numbers = #tpu.dot_dimension_numbers<[1], [0], [0], [1], [0, 0, 1, 1], [], []>} : vector<2x128xbf16>, vector<128x128xbf16>, vector<2x128xf32> -> vector<2x128xf32>
    %850 = arith.addf %843, %849 : vector<2x128xf32>
    %c1_894 = arith.constant 1 : index
    %c0_895 = arith.constant 0 : index
    %c0_896 = arith.constant 0 : index
    %851 = vector.load %arg9[%c1_894, %c0_895, %c0_896] : memref<4x4x128xf32, #tpu.memory_space<vmem>>, vector<1x2x128xf32>
    %852 = vector.shape_cast %851 : vector<1x2x128xf32> to vector<2x128xf32>
    %853 = arith.truncf %852 : vector<2x128xf32> to vector<2x128xbf16>
    %c3_897 = arith.constant 3 : index
    %c0_898 = arith.constant 0 : index
    %c0_899 = arith.constant 0 : index
    %854 = vector.load %arg4[%c3_897, %c0_898, %c0_899] : memref<9x128x128xbf16, #tpu.memory_space<vmem>>, vector<1x128x128xbf16>
    %855 = vector.shape_cast %854 : vector<1x128x128xbf16> to vector<128x128xbf16>
    %cst_900 = arith.constant dense<0.000000e+00> : vector<2x128xf32>
    %856 = tpu.matmul %853, %855, %cst_900 {dimension_numbers = #tpu.dot_dimension_numbers<[1], [0], [0], [1], [0, 0, 1, 1], [], []>} : vector<2x128xbf16>, vector<128x128xbf16>, vector<2x128xf32> -> vector<2x128xf32>
    %857 = arith.addf %850, %856 : vector<2x128xf32>
    %c1_901 = arith.constant 1 : index
    %c1_902 = arith.constant 1 : index
    %c0_903 = arith.constant 0 : index
    %858 = vector.load %arg9[%c1_901, %c1_902, %c0_903] : memref<4x4x128xf32, #tpu.memory_space<vmem>>, vector<1x2x128xf32>
    %859 = vector.shape_cast %858 : vector<1x2x128xf32> to vector<2x128xf32>
    %860 = arith.truncf %859 : vector<2x128xf32> to vector<2x128xbf16>
    %c4_904 = arith.constant 4 : index
    %c0_905 = arith.constant 0 : index
    %c0_906 = arith.constant 0 : index
    %861 = vector.load %arg4[%c4_904, %c0_905, %c0_906] : memref<9x128x128xbf16, #tpu.memory_space<vmem>>, vector<1x128x128xbf16>
    %862 = vector.shape_cast %861 : vector<1x128x128xbf16> to vector<128x128xbf16>
    %cst_907 = arith.constant dense<0.000000e+00> : vector<2x128xf32>
    %863 = tpu.matmul %860, %862, %cst_907 {dimension_numbers = #tpu.dot_dimension_numbers<[1], [0], [0], [1], [0, 0, 1, 1], [], []>} : vector<2x128xbf16>, vector<128x128xbf16>, vector<2x128xf32> -> vector<2x128xf32>
    %864 = arith.addf %857, %863 : vector<2x128xf32>
    %c1_908 = arith.constant 1 : index
    %c2_909 = arith.constant 2 : index
    %c0_910 = arith.constant 0 : index
    %865 = vector.load %arg9[%c1_908, %c2_909, %c0_910] : memref<4x4x128xf32, #tpu.memory_space<vmem>>, vector<1x2x128xf32>
    %866 = vector.shape_cast %865 : vector<1x2x128xf32> to vector<2x128xf32>
    %867 = arith.truncf %866 : vector<2x128xf32> to vector<2x128xbf16>
    %c5_911 = arith.constant 5 : index
    %c0_912 = arith.constant 0 : index
    %c0_913 = arith.constant 0 : index
    %868 = vector.load %arg4[%c5_911, %c0_912, %c0_913] : memref<9x128x128xbf16, #tpu.memory_space<vmem>>, vector<1x128x128xbf16>
    %869 = vector.shape_cast %868 : vector<1x128x128xbf16> to vector<128x128xbf16>
    %cst_914 = arith.constant dense<0.000000e+00> : vector<2x128xf32>
    %870 = tpu.matmul %867, %869, %cst_914 {dimension_numbers = #tpu.dot_dimension_numbers<[1], [0], [0], [1], [0, 0, 1, 1], [], []>} : vector<2x128xbf16>, vector<128x128xbf16>, vector<2x128xf32> -> vector<2x128xf32>
    %871 = arith.addf %864, %870 : vector<2x128xf32>
    %c2_915 = arith.constant 2 : index
    %c0_916 = arith.constant 0 : index
    %c0_917 = arith.constant 0 : index
    %872 = vector.load %arg9[%c2_915, %c0_916, %c0_917] : memref<4x4x128xf32, #tpu.memory_space<vmem>>, vector<1x2x128xf32>
    %873 = vector.shape_cast %872 : vector<1x2x128xf32> to vector<2x128xf32>
    %874 = arith.truncf %873 : vector<2x128xf32> to vector<2x128xbf16>
    %c6_918 = arith.constant 6 : index
    %c0_919 = arith.constant 0 : index
    %c0_920 = arith.constant 0 : index
    %875 = vector.load %arg4[%c6_918, %c0_919, %c0_920] : memref<9x128x128xbf16, #tpu.memory_space<vmem>>, vector<1x128x128xbf16>
    %876 = vector.shape_cast %875 : vector<1x128x128xbf16> to vector<128x128xbf16>
    %cst_921 = arith.constant dense<0.000000e+00> : vector<2x128xf32>
    %877 = tpu.matmul %874, %876, %cst_921 {dimension_numbers = #tpu.dot_dimension_numbers<[1], [0], [0], [1], [0, 0, 1, 1], [], []>} : vector<2x128xbf16>, vector<128x128xbf16>, vector<2x128xf32> -> vector<2x128xf32>
    %878 = arith.addf %871, %877 : vector<2x128xf32>
    %c2_922 = arith.constant 2 : index
    %c1_923 = arith.constant 1 : index
    %c0_924 = arith.constant 0 : index
    %879 = vector.load %arg9[%c2_922, %c1_923, %c0_924] : memref<4x4x128xf32, #tpu.memory_space<vmem>>, vector<1x2x128xf32>
    %880 = vector.shape_cast %879 : vector<1x2x128xf32> to vector<2x128xf32>
    %881 = arith.truncf %880 : vector<2x128xf32> to vector<2x128xbf16>
    %c7_925 = arith.constant 7 : index
    %c0_926 = arith.constant 0 : index
    %c0_927 = arith.constant 0 : index
    %882 = vector.load %arg4[%c7_925, %c0_926, %c0_927] : memref<9x128x128xbf16, #tpu.memory_space<vmem>>, vector<1x128x128xbf16>
    %883 = vector.shape_cast %882 : vector<1x128x128xbf16> to vector<128x128xbf16>
    %cst_928 = arith.constant dense<0.000000e+00> : vector<2x128xf32>
    %884 = tpu.matmul %881, %883, %cst_928 {dimension_numbers = #tpu.dot_dimension_numbers<[1], [0], [0], [1], [0, 0, 1, 1], [], []>} : vector<2x128xbf16>, vector<128x128xbf16>, vector<2x128xf32> -> vector<2x128xf32>
    %885 = arith.addf %878, %884 : vector<2x128xf32>
    %c2_929 = arith.constant 2 : index
    %c2_930 = arith.constant 2 : index
    %c0_931 = arith.constant 0 : index
    %886 = vector.load %arg9[%c2_929, %c2_930, %c0_931] : memref<4x4x128xf32, #tpu.memory_space<vmem>>, vector<1x2x128xf32>
    %887 = vector.shape_cast %886 : vector<1x2x128xf32> to vector<2x128xf32>
    %888 = arith.truncf %887 : vector<2x128xf32> to vector<2x128xbf16>
    %c8_932 = arith.constant 8 : index
    %c0_933 = arith.constant 0 : index
    %c0_934 = arith.constant 0 : index
    %889 = vector.load %arg4[%c8_932, %c0_933, %c0_934] : memref<9x128x128xbf16, #tpu.memory_space<vmem>>, vector<1x128x128xbf16>
    %890 = vector.shape_cast %889 : vector<1x128x128xbf16> to vector<128x128xbf16>
    %cst_935 = arith.constant dense<0.000000e+00> : vector<2x128xf32>
    %891 = tpu.matmul %888, %890, %cst_935 {dimension_numbers = #tpu.dot_dimension_numbers<[1], [0], [0], [1], [0, 0, 1, 1], [], []>} : vector<2x128xbf16>, vector<128x128xbf16>, vector<2x128xf32> -> vector<2x128xf32>
    %892 = arith.addf %885, %891 : vector<2x128xf32>
    %893 = vector.broadcast %2 : vector<1x128xf32> to vector<2x128xf32>
    %894 = arith.addf %892, %893 : vector<2x128xf32>
    %cst_936 = arith.constant 0.000000e+00 : f32
    %895 = vector.broadcast %cst_936 : f32 to vector<2x128xf32>
    %896 = arith.maximumf %894, %895 : vector<2x128xf32>
    %c0_937 = arith.constant 0 : index
    %c0_938 = arith.constant 0 : index
    %c0_939 = arith.constant 0 : index
    %897 = vector.load %arg7[%c0_937, %c0_938, %c0_939] : memref<1x4x128xf32, #tpu.memory_space<vmem>>, vector<1x2x128xf32>
    %898 = vector.shape_cast %897 : vector<1x2x128xf32> to vector<2x128xf32>
    %899 = vector.shape_cast %896 : vector<2x128xf32> to vector<1x2x128xf32>
    tpu.vector_store %arg7[%c0_937, %c0_938, %c0_939], %899 {strides = array<i32>} : memref<1x4x128xf32, #tpu.memory_space<vmem>>, vector<1x2x128xf32>,
    %c1_940 = arith.constant 1 : index
    %c0_941 = arith.constant 0 : index
    %c0_942 = arith.constant 0 : index
    %900 = vector.load %arg9[%c1_940, %c0_941, %c0_942] : memref<4x4x128xf32, #tpu.memory_space<vmem>>, vector<1x2x128xf32>
    %901 = vector.shape_cast %900 : vector<1x2x128xf32> to vector<2x128xf32>
    %902 = arith.truncf %901 : vector<2x128xf32> to vector<2x128xbf16>
    %c0_943 = arith.constant 0 : index
    %c0_944 = arith.constant 0 : index
    %c0_945 = arith.constant 0 : index
    %903 = vector.load %arg4[%c0_943, %c0_944, %c0_945] : memref<9x128x128xbf16, #tpu.memory_space<vmem>>, vector<1x128x128xbf16>
    %904 = vector.shape_cast %903 : vector<1x128x128xbf16> to vector<128x128xbf16>
    %cst_946 = arith.constant dense<0.000000e+00> : vector<2x128xf32>
    %905 = tpu.matmul %902, %904, %cst_946 {dimension_numbers = #tpu.dot_dimension_numbers<[1], [0], [0], [1], [0, 0, 1, 1], [], []>} : vector<2x128xbf16>, vector<128x128xbf16>, vector<2x128xf32> -> vector<2x128xf32>
    %c1_947 = arith.constant 1 : index
    %c1_948 = arith.constant 1 : index
    %c0_949 = arith.constant 0 : index
    %906 = vector.load %arg9[%c1_947, %c1_948, %c0_949] : memref<4x4x128xf32, #tpu.memory_space<vmem>>, vector<1x2x128xf32>
    %907 = vector.shape_cast %906 : vector<1x2x128xf32> to vector<2x128xf32>
    %908 = arith.truncf %907 : vector<2x128xf32> to vector<2x128xbf16>
    %c1_950 = arith.constant 1 : index
    %c0_951 = arith.constant 0 : index
    %c0_952 = arith.constant 0 : index
    %909 = vector.load %arg4[%c1_950, %c0_951, %c0_952] : memref<9x128x128xbf16, #tpu.memory_space<vmem>>, vector<1x128x128xbf16>
    %910 = vector.shape_cast %909 : vector<1x128x128xbf16> to vector<128x128xbf16>
    %cst_953 = arith.constant dense<0.000000e+00> : vector<2x128xf32>
    %911 = tpu.matmul %908, %910, %cst_953 {dimension_numbers = #tpu.dot_dimension_numbers<[1], [0], [0], [1], [0, 0, 1, 1], [], []>} : vector<2x128xbf16>, vector<128x128xbf16>, vector<2x128xf32> -> vector<2x128xf32>
    %912 = arith.addf %905, %911 : vector<2x128xf32>
    %c1_954 = arith.constant 1 : index
    %c2_955 = arith.constant 2 : index
    %c0_956 = arith.constant 0 : index
    %913 = vector.load %arg9[%c1_954, %c2_955, %c0_956] : memref<4x4x128xf32, #tpu.memory_space<vmem>>, vector<1x2x128xf32>
    %914 = vector.shape_cast %913 : vector<1x2x128xf32> to vector<2x128xf32>
    %915 = arith.truncf %914 : vector<2x128xf32> to vector<2x128xbf16>
    %c2_957 = arith.constant 2 : index
    %c0_958 = arith.constant 0 : index
    %c0_959 = arith.constant 0 : index
    %916 = vector.load %arg4[%c2_957, %c0_958, %c0_959] : memref<9x128x128xbf16, #tpu.memory_space<vmem>>, vector<1x128x128xbf16>
    %917 = vector.shape_cast %916 : vector<1x128x128xbf16> to vector<128x128xbf16>
    %cst_960 = arith.constant dense<0.000000e+00> : vector<2x128xf32>
    %918 = tpu.matmul %915, %917, %cst_960 {dimension_numbers = #tpu.dot_dimension_numbers<[1], [0], [0], [1], [0, 0, 1, 1], [], []>} : vector<2x128xbf16>, vector<128x128xbf16>, vector<2x128xf32> -> vector<2x128xf32>
    %919 = arith.addf %912, %918 : vector<2x128xf32>
    %c2_961 = arith.constant 2 : index
    %c0_962 = arith.constant 0 : index
    %c0_963 = arith.constant 0 : index
    %920 = vector.load %arg9[%c2_961, %c0_962, %c0_963] : memref<4x4x128xf32, #tpu.memory_space<vmem>>, vector<1x2x128xf32>
    %921 = vector.shape_cast %920 : vector<1x2x128xf32> to vector<2x128xf32>
    %922 = arith.truncf %921 : vector<2x128xf32> to vector<2x128xbf16>
    %c3_964 = arith.constant 3 : index
    %c0_965 = arith.constant 0 : index
    %c0_966 = arith.constant 0 : index
    %923 = vector.load %arg4[%c3_964, %c0_965, %c0_966] : memref<9x128x128xbf16, #tpu.memory_space<vmem>>, vector<1x128x128xbf16>
    %924 = vector.shape_cast %923 : vector<1x128x128xbf16> to vector<128x128xbf16>
    %cst_967 = arith.constant dense<0.000000e+00> : vector<2x128xf32>
    %925 = tpu.matmul %922, %924, %cst_967 {dimension_numbers = #tpu.dot_dimension_numbers<[1], [0], [0], [1], [0, 0, 1, 1], [], []>} : vector<2x128xbf16>, vector<128x128xbf16>, vector<2x128xf32> -> vector<2x128xf32>
    %926 = arith.addf %919, %925 : vector<2x128xf32>
    %c2_968 = arith.constant 2 : index
    %c1_969 = arith.constant 1 : index
    %c0_970 = arith.constant 0 : index
    %927 = vector.load %arg9[%c2_968, %c1_969, %c0_970] : memref<4x4x128xf32, #tpu.memory_space<vmem>>, vector<1x2x128xf32>
    %928 = vector.shape_cast %927 : vector<1x2x128xf32> to vector<2x128xf32>
    %929 = arith.truncf %928 : vector<2x128xf32> to vector<2x128xbf16>
    %c4_971 = arith.constant 4 : index
    %c0_972 = arith.constant 0 : index
    %c0_973 = arith.constant 0 : index
    %930 = vector.load %arg4[%c4_971, %c0_972, %c0_973] : memref<9x128x128xbf16, #tpu.memory_space<vmem>>, vector<1x128x128xbf16>
    %931 = vector.shape_cast %930 : vector<1x128x128xbf16> to vector<128x128xbf16>
    %cst_974 = arith.constant dense<0.000000e+00> : vector<2x128xf32>
    %932 = tpu.matmul %929, %931, %cst_974 {dimension_numbers = #tpu.dot_dimension_numbers<[1], [0], [0], [1], [0, 0, 1, 1], [], []>} : vector<2x128xbf16>, vector<128x128xbf16>, vector<2x128xf32> -> vector<2x128xf32>
    %933 = arith.addf %926, %932 : vector<2x128xf32>
    %c2_975 = arith.constant 2 : index
    %c2_976 = arith.constant 2 : index
    %c0_977 = arith.constant 0 : index
    %934 = vector.load %arg9[%c2_975, %c2_976, %c0_977] : memref<4x4x128xf32, #tpu.memory_space<vmem>>, vector<1x2x128xf32>
    %935 = vector.shape_cast %934 : vector<1x2x128xf32> to vector<2x128xf32>
    %936 = arith.truncf %935 : vector<2x128xf32> to vector<2x128xbf16>
    %c5_978 = arith.constant 5 : index
    %c0_979 = arith.constant 0 : index
    %c0_980 = arith.constant 0 : index
    %937 = vector.load %arg4[%c5_978, %c0_979, %c0_980] : memref<9x128x128xbf16, #tpu.memory_space<vmem>>, vector<1x128x128xbf16>
    %938 = vector.shape_cast %937 : vector<1x128x128xbf16> to vector<128x128xbf16>
    %cst_981 = arith.constant dense<0.000000e+00> : vector<2x128xf32>
    %939 = tpu.matmul %936, %938, %cst_981 {dimension_numbers = #tpu.dot_dimension_numbers<[1], [0], [0], [1], [0, 0, 1, 1], [], []>} : vector<2x128xbf16>, vector<128x128xbf16>, vector<2x128xf32> -> vector<2x128xf32>
    %940 = arith.addf %933, %939 : vector<2x128xf32>
    %c3_982 = arith.constant 3 : index
    %c0_983 = arith.constant 0 : index
    %c0_984 = arith.constant 0 : index
    %941 = vector.load %arg9[%c3_982, %c0_983, %c0_984] : memref<4x4x128xf32, #tpu.memory_space<vmem>>, vector<1x2x128xf32>
    %942 = vector.shape_cast %941 : vector<1x2x128xf32> to vector<2x128xf32>
    %943 = arith.truncf %942 : vector<2x128xf32> to vector<2x128xbf16>
    %c6_985 = arith.constant 6 : index
    %c0_986 = arith.constant 0 : index
    %c0_987 = arith.constant 0 : index
    %944 = vector.load %arg4[%c6_985, %c0_986, %c0_987] : memref<9x128x128xbf16, #tpu.memory_space<vmem>>, vector<1x128x128xbf16>
    %945 = vector.shape_cast %944 : vector<1x128x128xbf16> to vector<128x128xbf16>
    %cst_988 = arith.constant dense<0.000000e+00> : vector<2x128xf32>
    %946 = tpu.matmul %943, %945, %cst_988 {dimension_numbers = #tpu.dot_dimension_numbers<[1], [0], [0], [1], [0, 0, 1, 1], [], []>} : vector<2x128xbf16>, vector<128x128xbf16>, vector<2x128xf32> -> vector<2x128xf32>
    %947 = arith.addf %940, %946 : vector<2x128xf32>
    %c3_989 = arith.constant 3 : index
    %c1_990 = arith.constant 1 : index
    %c0_991 = arith.constant 0 : index
    %948 = vector.load %arg9[%c3_989, %c1_990, %c0_991] : memref<4x4x128xf32, #tpu.memory_space<vmem>>, vector<1x2x128xf32>
    %949 = vector.shape_cast %948 : vector<1x2x128xf32> to vector<2x128xf32>
    %950 = arith.truncf %949 : vector<2x128xf32> to vector<2x128xbf16>
    %c7_992 = arith.constant 7 : index
    %c0_993 = arith.constant 0 : index
    %c0_994 = arith.constant 0 : index
    %951 = vector.load %arg4[%c7_992, %c0_993, %c0_994] : memref<9x128x128xbf16, #tpu.memory_space<vmem>>, vector<1x128x128xbf16>
    %952 = vector.shape_cast %951 : vector<1x128x128xbf16> to vector<128x128xbf16>
    %cst_995 = arith.constant dense<0.000000e+00> : vector<2x128xf32>
    %953 = tpu.matmul %950, %952, %cst_995 {dimension_numbers = #tpu.dot_dimension_numbers<[1], [0], [0], [1], [0, 0, 1, 1], [], []>} : vector<2x128xbf16>, vector<128x128xbf16>, vector<2x128xf32> -> vector<2x128xf32>
    %954 = arith.addf %947, %953 : vector<2x128xf32>
    %c3_996 = arith.constant 3 : index
    %c2_997 = arith.constant 2 : index
    %c0_998 = arith.constant 0 : index
    %955 = vector.load %arg9[%c3_996, %c2_997, %c0_998] : memref<4x4x128xf32, #tpu.memory_space<vmem>>, vector<1x2x128xf32>
    %956 = vector.shape_cast %955 : vector<1x2x128xf32> to vector<2x128xf32>
    %957 = arith.truncf %956 : vector<2x128xf32> to vector<2x128xbf16>
    %c8_999 = arith.constant 8 : index
    %c0_1000 = arith.constant 0 : index
    %c0_1001 = arith.constant 0 : index
    %958 = vector.load %arg4[%c8_999, %c0_1000, %c0_1001] : memref<9x128x128xbf16, #tpu.memory_space<vmem>>, vector<1x128x128xbf16>
    %959 = vector.shape_cast %958 : vector<1x128x128xbf16> to vector<128x128xbf16>
    %cst_1002 = arith.constant dense<0.000000e+00> : vector<2x128xf32>
    %960 = tpu.matmul %957, %959, %cst_1002 {dimension_numbers = #tpu.dot_dimension_numbers<[1], [0], [0], [1], [0, 0, 1, 1], [], []>} : vector<2x128xbf16>, vector<128x128xbf16>, vector<2x128xf32> -> vector<2x128xf32>
    %961 = arith.addf %954, %960 : vector<2x128xf32>
    %962 = vector.broadcast %2 : vector<1x128xf32> to vector<2x128xf32>
    %963 = arith.addf %961, %962 : vector<2x128xf32>
    %cst_1003 = arith.constant 0.000000e+00 : f32
    %964 = vector.broadcast %cst_1003 : f32 to vector<2x128xf32>
    %965 = arith.maximumf %963, %964 : vector<2x128xf32>
    %c0_1004 = arith.constant 0 : index
    %c2_1005 = arith.constant 2 : index
    %c0_1006 = arith.constant 0 : index
    %966 = vector.load %arg7[%c0_1004, %c2_1005, %c0_1006] : memref<1x4x128xf32, #tpu.memory_space<vmem>>, vector<1x2x128xf32>
    %967 = vector.shape_cast %966 : vector<1x2x128xf32> to vector<2x128xf32>
    %968 = vector.shape_cast %965 : vector<2x128xf32> to vector<1x2x128xf32>
    tpu.vector_store %arg7[%c0_1004, %c2_1005, %c0_1006], %968 {strides = array<i32>} : memref<1x4x128xf32, #tpu.memory_space<vmem>>, vector<1x2x128xf32>,
    return
  }
  func.func @transform_0(%arg0: i32) -> (i32, i32, i32, i32) {
    %c0_i32 = arith.constant 0 : i32
    %c0_i32_0 = arith.constant 0 : i32
    %c0_i32_1 = arith.constant 0 : i32
    %c0_i32_2 = arith.constant 0 : i32
    return %arg0, %c0_i32, %c0_i32_0, %c0_i32_1 : i32, i32, i32, i32
  }
  func.func @transform_1(%arg0: i32) -> (i32, i32, i32) {
    %c0_i32 = arith.constant 0 : i32
    %c0_i32_0 = arith.constant 0 : i32
    %c0_i32_1 = arith.constant 0 : i32
    %c0_i32_2 = arith.constant 0 : i32
    return %c0_i32, %c0_i32_0, %c0_i32_1 : i32, i32, i32
  }
  func.func @transform_2(%arg0: i32) -> (i32, i32, i32) {
    %c0_i32 = arith.constant 0 : i32
    %c0_i32_0 = arith.constant 0 : i32
    %c0_i32_1 = arith.constant 0 : i32
    %c0_i32_2 = arith.constant 0 : i32
    return %c0_i32, %c0_i32_0, %c0_i32_1 : i32, i32, i32
  }
  func.func @transform_3(%arg0: i32) -> (i32, i32, i32) {
    %c0_i32 = arith.constant 0 : i32
    %c0_i32_0 = arith.constant 0 : i32
    %c0_i32_1 = arith.constant 0 : i32
    %c0_i32_2 = arith.constant 0 : i32
    return %c0_i32, %c0_i32_0, %c0_i32_1 : i32, i32, i32
  }
  func.func @transform_4(%arg0: i32) -> (i32, i32) {
    %c0_i32 = arith.constant 0 : i32
    %c0_i32_0 = arith.constant 0 : i32
    %c0_i32_1 = arith.constant 0 : i32
    return %c0_i32, %c0_i32_0 : i32, i32
  }
  func.func @transform_5(%arg0: i32) -> (i32, i32) {
    %c0_i32 = arith.constant 0 : i32
    %c0_i32_0 = arith.constant 0 : i32
    %c0_i32_1 = arith.constant 0 : i32
    return %c0_i32, %c0_i32_0 : i32, i32
  }
  func.func @transform_6(%arg0: i32) -> (i32, i32, i32) {
    %c0_i32 = arith.constant 0 : i32
    %c0_i32_0 = arith.constant 0 : i32
    %c0_i32_1 = arith.constant 0 : i32
    return %arg0, %c0_i32, %c0_i32_0 : i32, i32, i32
  }
}

</mosaic_0001>

<bundles_post_ra>
// kernel: conv_forward.1
= control target key start
LH: loop header
LB: loop body
LE: loop exit
PB: predicated region body
PF: predicated region fallthrough
CT: control target
= control target key end

     0   :  { %s17811_s21 = smov 0   ;;  %s21086_s0 = inlined_call_operand.vmem [shape: bf16[2,21,21,64], index: 0, kind: input, shape index: {}]   ;;  %s21087_s1 = inlined_call_operand.vmem [shape: bf16[4,64,128], index: 1, kind: input, shape index: {}]   ;;  %s21088_s2 = inlined_call_operand.vmem [shape: bf16[4,512,128], index: 2, kind: input, shape index: {}]   ;;  %s21089_s3 = inlined_call_operand.vmem [shape: bf16[9,128,128], index: 3, kind: input, shape index: {}]   ;;  %s21090_s4 = inlined_call_operand.vmem [shape: f32[3,128], index: 4, kind: input, shape index: {}]   ;;  %s21091_s5 = inlined_call_operand.vmem [shape: f32[10,20], index: 5, kind: input, shape index: {}]   ;;  %s21092_s6 = inlined_call_operand.vmem [shape: f32[2,4,128], index: 6, kind: output, shape index: {}]  }
   0x1 LB: > { %s11927_s22 = sadd.s32 4294967295, %s17774_s21   ;;  %p11931_p0 = scmp.ge.s32.totalorder %s17774_s21, 1  ;;  %s17774_s21 = sphi %s17811_s21, %s16_s21  }
   0x2   : > { %p212_p1 = scmp.lt.s32.totalorder %s17774_s21, 3 }
   0x4   : > { %p213_p2 = pnand %p11931_p0, %p212_p1 }
   0x5   : > { %p241_p3 = scmp.lt.s32.totalorder (!%p213_p2), %s11927_s22, 1 }
   0x6   : > { %216 = sbr.rel (%p213_p2) target bundleno = 2913 (0xb61), region = 44 }
   0xb   : > { %v16908_v0 = vld [vmem:[%s21087_s1 + $0x38] sm:$0xff]  ;;  %v16907_v4 = vld [vmem:[%s21087_s1 + $0x30] sm:$0xff]  ;;  %s21094_s22 = smov (!%p241_p3, %s11927_s22), 1  ;;  %v16906_v8 = vld [vmem:[%s21087_s1 + $0x28] sm:$0xff]  ;;  %vm285_vm0 = vsmask.f32 7424 }
   0xc   : > { %v16904_v1 = vld [vmem:[%s21087_s1 + $0x18] sm:$0xff]  ;;  %336 = vmatpush.bf16.msra.mxu0 %v16908_v0  ;;  %v16903_v5 = vld [vmem:[%s21087_s1 + $0x10] sm:$0xff]  ;;  %s17746_s17 = smul.u32 252, %s21094_s22  ;;  %v16902_v9 = vld [vmem:[%s21087_s1 + $0x8] sm:$0xff]  ;;  %vm325_vm1 = vcmask 523264   ;;  %vm702_vm8 = vcmask 1043456  }
   0xd   : > { %v17828_v2 = vld [vmem:[%s21087_s1 + $0x58] sm:$0xff]  ;;  %386 = vmatpush.bf16.msra.mxu1 %v16904_v1  ;;  %v16912_v6 = vld [vmem:[%s21087_s1 + $0x50] sm:$0xff]  ;;  %v16911_v10 = vld [vmem:[%s21087_s1 + $0x48] sm:$0xff]  ;;  %vm698_vm9 = vcmask 162816   ;;  %s11933_s9 = sshll.u32 %s21094_s22, 2 }
   0xe   : > { %v16917_v3 = vld [vmem:[%s21087_s1 + $0x78] sm:$0xff]  ;;  %455 = vmatpush.bf16.msra.mxu2 %v17828_v2  ;;  %v16916_v7 = vld [vmem:[%s21087_s1 + $0x70] sm:$0xff]  ;;  %v16915_v11 = vld [vmem:[%s21087_s1 + $0x68] sm:$0xff]  ;;  %s17864_s28 = scalar_lea.vmem %s21086_s0, %s17746_s17  ;;  %s249_s12 = scalar_lea.vmem %s21092_s6, %s11933_s9 }
   0xf   : > { %533 = vmatpush.bf16.msra.mxu3 %v16917_v3  ;;  %v16900_v12 = vld [vmem:[%s17864_s28] sm:$0xff]  ;;  %v267_v13 = vld [vmem:[%s17864_s28 + $0x8] sm:$0x7]  ;;  %v17869_v14 = vld [vmem:[%s17864_s28 + $0xc] sm:$0xff] }
  0x10   : > { %337 = vmatpush.bf16.msra.mxu0 %v16907_v4  ;;  %v282_v15 = vunpack.c.l.b16 %v267_v13  ;;  %v12015_v16 = vld [vmem:[%s17864_s28 + $0x14] sm:$0x7]  ;;  %v287_v17 = vshrl.u32 %v16900_v12, 16  ;;  %v289_v18 = vshll.u32 %v16900_v12, 16  ;;  %v16905_v20 = vld [vmem:[%s21087_s1 + $0x20] sm:$0xff]  ;;  %v485_v23 = vshrl.u32 %v17869_v14, 16 }
  0x11   : > { %387 = vmatpush.bf16.msra.mxu1 %v16903_v5  ;;  %v483_v19 = vunpack.c.l.b16 %v12015_v16  ;;  %v16901_v21 = vld [vmem:[%s21087_s1] sm:$0xff]  ;;  %v487_v24 = vshll.u32 %v17869_v14, 16  ;;  %v258_v38 = vld [vmem:[%s17864_s28 + $0x8] sm:$0x3]  ;;  %v11984_v39 = vld [vmem:[%s17864_s28 + $0x14] sm:$0x3] }
  0x12   : > { %456 = vmatpush.bf16.msra.mxu2 %v16912_v6  ;;  %v284_v22 = vpack.c.b16 %v282_v15, %v282_v15  ;;  %v16910_v25 = vld [vmem:[%s21087_s1 + $0x40] sm:$0xff]  ;;  %v291_v27 = vrot.slane %v289_v18, 1  ;;  %v351_v41 = vunpack.c.l.b16 %v258_v38  ;;  %v418_v42 = vunpack.c.l.b16 %v11984_v39  ;;  %v16918_v49 = vld [vmem:[%s17864_s28 + $0x18] sm:$0xff]  ;;  %v16926_v16 = vld [vmem:[%s21087_s1 + $0x30] sm:$0xff] }
  0x13   : > { %534 = vmatpush.bf16.msra.mxu3 %v16916_v7  ;;  %v16914_v26 = vld [vmem:[%s21087_s1 + $0x60] sm:$0xff]  ;;  %v484_v28 = vpack.c.b16 %v483_v19, %v483_v19  ;;  %v489_v30 = vrot.slane %v487_v24, 1  ;;  %v644_v52 = vshll.u32 %v16918_v49, 16  ;;  %v642_v53 = vshrl.u32 %v16918_v49, 16  ;;  %v16925_v19 = vld [vmem:[%s21087_s1 + $0x28] sm:$0xff] }
  0x14   : > { %338 = vmatpush.bf16.msra.mxu0 %v16906_v8  ;;  %v294_v29 = vshll.u32 %v284_v22, 16  ;;  %v292_v31 = vor.u32 %v291_v27, %v287_v17  ;;  %v298_v40 = vshrl.u32 %v284_v22, 16  ;;  %v12055_v44 = vld [vmem:[%s17864_s28 + $0x20] sm:$0x7]  ;;  %v352_v46 = vpack.c.b16 %v351_v41, %v351_v41  ;;  %v16922_v17 = vld [vmem:[%s21087_s1 + $0x10] sm:$0xff] }
  0x15   : > { %388 = vmatpush.bf16.msra.mxu1 %v16902_v9  ;;  %v492_v32 = vshll.u32 %v484_v28, 16  ;;  %v490_v34 = vor.u32 %v489_v30, %v485_v23  ;;  %v496_v43 = vshrl.u32 %v484_v28, 16  ;;  %v420_v47 = vpack.c.b16 %v418_v42, %v418_v42  ;;  %v12048_v59 = vld [vmem:[%s17864_s28 + $0x20] sm:$0x3] }
  0x16   : > { %457 = vmatpush.bf16.msra.mxu2 %v16911_v10  ;;  %v296_v33 = vrot.slane %v294_v29, 1  ;;  %v640_v50 = vunpack.c.l.b16 %v12055_v44  ;;  %v646_v54 = vrot.slane %v644_v52, 1  ;;  %v608_v60 = vunpack.c.l.b16 %v12048_v59  ;;  %v12065_v18 = vld [vmem:[%s17864_s28 + $0x20] sm:$0x7] }
  0x17   : > { %535 = vmatpush.bf16.msra.mxu3 %v16915_v11  ;;  %v494_v35 = vrot.slane %v492_v32, 1  ;;  %v776_v22 = vunpack.c.l.b16 %v12065_v18  ;;  %v16924_v29 = vld [vmem:[%s21087_s1 + $0x20] sm:$0xff] }
  0x18   : > { %339 = vmatpush.bf16.msra.mxu0 %v16905_v20  ;;  %v297_v36 = vsel %vm285_vm0, %v292_v31, %v296_v33  ;;  %v300_v45 = vor.u32 %v298_v40, %v296_v33  ;;  %v641_v51 = vpack.c.b16 %v640_v50, %v640_v50  ;;  %v647_v56 = vor.u32 %v646_v54, %v642_v53  ;;  %v16920_v30 = vld [vmem:[%s21087_s1] sm:$0xff] }
  0x19   : > { %389 = vmatpush.bf16.msra.mxu1 %v16901_v21  ;;  %v495_v37 = vsel %vm285_vm0, %v490_v34, %v494_v35  ;;  %v498_v48 = vor.u32 %v496_v43, %v494_v35  ;;  %v610_v62 = vpack.c.b16 %v608_v60, %v608_v60  ;;  %v778_v27 = vpack.c.b16 %v776_v22, %v776_v22  ;;  %v12064_v54 = vld [vmem:[%s17864_s28 + $0x20] sm:$0x3] }
  0x1a   : > { %458 = vmatpush.bf16.msra.mxu2 %v16910_v25  ;;  %v649_v55 = vshll.u32 %v641_v51, 16  ;;  %v653_v61 = vshrl.u32 %v641_v51, 16 }
  0x1b   : > { %536 = vmatpush.bf16.msra.mxu3 %v16914_v26  ;;  %11962 = vmatmul.msk.bf16.vlgmr.msra.gmra.mxu0 %vm325_vm1, %v297_v36  ;;  %v787_v33 = vshll.u32 %v778_v27, 16 }
  0x1c   : > { %567 = vmatpush.bf16.msrb.mxu0 %v16908_v0  ;;  %11980 = vmatmul.msk.bf16.vlgmr.msra.gmra.mxu1 %vm325_vm1, %v16900_v12  ;;  %v651_v57 = vrot.slane %v649_v55, 1 }
  0x1d   : > { %585 = vmatpush.bf16.msrb.mxu1 %v16904_v1  ;;  %12013 = vmatmul.msk.bf16.vlgmr.msra.gmra.mxu2 %vm325_vm1, %v17869_v14  ;;  %v789_v35 = vrot.slane %v787_v33, 1 }
  0x1e   : > { %12040 = vmatmul.msk.bf16.vlgmr.msra.gmra.mxu3 %vm325_vm1, %v495_v37  ;;  %621 = vmatpush.bf16.msrb.mxu2 %v17828_v2  ;;  %v652_v58 = vsel %vm285_vm0, %v647_v56, %v651_v57  ;;  %v655_v63 = vor.u32 %v653_v61, %v651_v57  ;;  %v791_v56 = vshrl.u32 %v778_v27, 16  ;;  %v843_v57 = vunpack.c.l.b16 %v12064_v54 }
  0x1f   : > { %666 = vmatpush.bf16.msrb.mxu3 %v16917_v3 }
  0x20   : > { %568 = vmatpush.bf16.msrb.mxu0 %v16907_v4 }
  0x21   : > { %586 = vmatpush.bf16.msrb.mxu1 %v16903_v5 }
  0x22   : > { %622 = vmatpush.bf16.msrb.mxu2 %v16912_v6 }
  0x23   : > { %667 = vmatpush.bf16.msrb.mxu3 %v16916_v7 }
  0x24   : > { %569 = vmatpush.bf16.msrb.mxu0 %v16906_v8 }
  0x25   : > { %587 = vmatpush.bf16.msrb.mxu1 %v16902_v9 }
  0x26   : > { %623 = vmatpush.bf16.msrb.mxu2 %v16911_v10  ;;  %v16927_v10 = vld [vmem:[%s21087_s1 + $0x38] sm:$0xff] }
  0x27   : > { %668 = vmatpush.bf16.msrb.mxu3 %v16915_v11  ;;  %v16923_v11 = vld [vmem:[%s21087_s1 + $0x18] sm:$0xff] }
  0x28   : > { %570 = vmatpush.bf16.msrb.mxu0 %v16905_v20  ;;  %v16921_v20 = vld [vmem:[%s21087_s1 + $0x8] sm:$0xff] }
  0x29   : > { %588 = vmatpush.bf16.msrb.mxu1 %v16901_v21  ;;  %v16919_v21 = vld [vmem:[%s17864_s28 + $0x18] sm:$0xff] }
  0x2a   : > { %624 = vmatpush.bf16.msrb.mxu2 %v16910_v25  ;;  %v782_v28 = vshll.u32 %v16919_v21, 16  ;;  %v780_v31 = vshrl.u32 %v16919_v21, 16 }
  0x2b   : > { %669 = vmatpush.bf16.msrb.mxu3 %v16914_v26  ;;  %11963 = vmatmul.msk.bf16.gmra.mxu0 %vm325_vm1, %v300_v45 }
  0x2c   : > { %11981 = vmatmul.msk.bf16.gmra.mxu1 %vm325_vm1, %v352_v46  ;;  %v784_v32 = vrot.slane %v782_v28, 1 }
  0x2d   : > { %12014 = vmatmul.msk.bf16.gmra.mxu2 %vm325_vm1, %v420_v47 }
  0x2e   : > { %12041 = vmatmul.msk.bf16.gmra.mxu3 %vm325_vm1, %v498_v48  ;;  %828 = vmatpush.bf16.msra.mxu2 %v16927_v10  ;;  %v785_v34 = vor.u32 %v784_v32, %v780_v31 }
  0x2f   : > { %878 = vmatpush.bf16.msra.mxu3 %v16923_v11 }
  0x30   : > { %v790_v36 = vsel %vm285_vm0, %v785_v34, %v789_v35 }
  0x32   : > { %829 = vmatpush.bf16.msra.mxu2 %v16926_v16 }
  0x33   : > { %879 = vmatpush.bf16.msra.mxu3 %v16922_v17 }
  0x36   : > { %830 = vmatpush.bf16.msra.mxu2 %v16925_v19 }
  0x37   : > { %880 = vmatpush.bf16.msra.mxu3 %v16921_v20 }
  0x3a   : > { %831 = vmatpush.bf16.msra.mxu2 %v16924_v29 }
  0x3b   : > { %12042 = vmatmul.msk.bf16.vlgmr.msrb.gmra.mxu0 %vm325_vm1, %v495_v37  ;;  %881 = vmatpush.bf16.msra.mxu3 %v16920_v30 }
  0x3c   : > { %12044 = vmatmul.msk.bf16.vlgmr.msrb.gmra.mxu1 %vm325_vm1, %v17869_v14 }
  0x3d   : > { %12053 = vmatmul.msk.bf16.vlgmr.msrb.gmra.mxu2 %vm325_vm1, %v16918_v49 }
  0x3e   : > { %12056 = vmatmul.msk.bf16.vlgmr.msrb.gmra.mxu3 %vm325_vm1, %v652_v58  ;;  %1056 = vmatpush.bf16.msrb.mxu2 %v16927_v10 }
  0x3f   : > { %1074 = vmatpush.bf16.msrb.mxu3 %v16923_v11 }
  0x42   : > { %1057 = vmatpush.bf16.msrb.mxu2 %v16926_v16 }
  0x43   : > { %1075 = vmatpush.bf16.msrb.mxu3 %v16922_v17 }
  0x46   : > { %1058 = vmatpush.bf16.msrb.mxu2 %v16925_v19 }
  0x47   : > { %1076 = vmatpush.bf16.msrb.mxu3 %v16921_v20 }
  0x4a   : > { %1059 = vmatpush.bf16.msrb.mxu2 %v16924_v29 }
  0x4b   : > { %12043 = vmatmul.msk.bf16.gmra.mxu0 %vm325_vm1, %v498_v48  ;;  %1077 = vmatpush.bf16.msrb.mxu3 %v16920_v30 }
  0x4c   : > { %12045 = vmatmul.msk.bf16.gmra.mxu1 %vm325_vm1, %v420_v47 }
  0x4d   : > { %12054 = vmatmul.msk.bf16.gmra.mxu2 %vm325_vm1, %v610_v62  ;;  %v793_v62 = vor.u32 %v791_v56, %v789_v35 }
  0x4e   : > { %12057 = vmatmul.msk.bf16.gmra.mxu3 %vm325_vm1, %v655_v63  ;;  %v844_v63 = vpack.c.b16 %v843_v57, %v843_v57 }
  0x5d   : > { %12094 = vmatmul.msk.bf16.vlgmr.msra.gmra.mxu2 %vm325_vm1, %v790_v36 }
  0x5e   : > { %12112 = vmatmul.msk.bf16.vlgmr.msra.gmra.mxu3 %vm325_vm1, %v16919_v21 }
  0x6d   : > { %12095 = vmatmul.msk.bf16.gmra.mxu2 %vm325_vm1, %v793_v62 }
  0x6e   : > { %12113 = vmatmul.msk.bf16.gmra.mxu3 %vm325_vm1, %v844_v63 }
  0x98   : > { %v341_v0 = vpop.f32.mrf.mxu0 }
  0x99   : > { %v391_v1 = vpop.f32.mrf.mxu1 }
  0x9a   : > { %v392_v45 = vadd.f32 %v391_v1, %v341_v0  ;;  %v17957_v0 = vld [vmem:[%s21090_s4] ss:$0 sm:$0xff] }
  0xa0   : > { %v17913_v2 = vpop.f32.mrf.mxu2  ;;  %v343_v4 = vpop.f32.mrf.mxu0 }
  0xa1   : > { %v17915_v3 = vpop.f32.mrf.mxu3  ;;  %v393_v5 = vpop.f32.mrf.mxu1  ;;  %v469_v55 = vadd.f32 %v17913_v2, %v392_v45  ;;  %v17993_v45 = vld [vmem:[%s21091_s5 + $0x5] sm:$0x1f] }
  0xa2   : > { %v394_v42 = vadd.f32 %v393_v5, %v343_v4  ;;  %v12147_v4 = vld [vmem:[%s17864_s28 + $0x2c] sm:$0x7] }
  0xa3   : > { %v547_v2 = vadd.f32 %v17915_v3, %v469_v55 }
  0xa5   : > { %v551_v16 = vadd.f32 %v17957_v0, %v547_v2 }
  0xa7   : > { %vm554_vm6 = vcmp.ge.f32.partialorder %v551_v16, 0.0 }
  0xa8   : > { %v462_v6 = vpop.f32.mrf.mxu2  ;;  %v346_v8 = vpop.f32.mrf.mxu0 }
  0xa9   : > { %v17917_v7 = vpop.f32.mrf.mxu3  ;;  %v396_v9 = vpop.f32.mrf.mxu1  ;;  %v470_v48 = vadd.f32 %v462_v6, %v394_v42 }
  0xaa   : > { %v397_v41 = vadd.f32 %v396_v9, %v346_v8 }
  0xab   : > { %v548_v58 = vadd.f32 %v17917_v7, %v470_v48 }
  0xad   : > { %v552_v7 = vadd.f32 %v17957_v0, %v548_v58  ;;  %v12187_v58 = vld [vmem:[%s17864_s28 + $0x38] sm:$0x7] }
  0xaf   : > { %v558_v17 = vmul.f32 0.01, %v552_v7  ;;  %vm555_vm5 = vcmp.ge.f32.partialorder %v552_v7, 0.0 }
  0xb0   : > { %v465_v12 = vpop.f32.mrf.mxu2  ;;  %v348_v14 = vpop.f32.mrf.mxu0 }
  0xb1   : > { %v17925_v13 = vpop.f32.mrf.mxu3  ;;  %v398_v15 = vpop.f32.mrf.mxu1  ;;  %v471_v49 = vadd.f32 %v465_v12, %v397_v41  ;;  %v973_v14 = vunpack.c.l.b16 %v12147_v4  ;;  %v561_v35 = vsel %vm555_vm5, %v552_v7, %v558_v17  ;;  %v12180_v7 = vld [vmem:[%s17864_s28 + $0x38] sm:$0x3] }
  0xb3   : > { %v549_v59 = vadd.f32 %v17925_v13, %v471_v49  ;;  %v17967_v13 = vld [vmem:[%s17864_s28 + $0x24] sm:$0xff]  ;;  %v17972_v21 = vpack.c.b16 %v973_v14, %v973_v14 }
  0xb4   : > { %v977_v22 = vshll.u32 %v17967_v13, 16  ;;  %v975_v32 = vshrl.u32 %v17967_v13, 16  ;;  %12176 = vmatmul.msk.bf16.vlgmr.msrb.gmra.mxu3 %vm325_vm1, %v17967_v13  ;;  %v16930_v49 = vld [vmem:[%s21087_s1 + $0x48] sm:$0xff] }
  0xb5   : > { %v553_v8 = vadd.f32 %v17957_v0, %v549_v59  ;;  %v982_v34 = vshll.u32 %v17972_v21, 16  ;;  %v986_v55 = vshrl.u32 %v17972_v21, 16  ;;  %v16937_v59 = vld [vmem:[%s17864_s28 + $0x30] sm:$0xff] }
  0xb6   : > { %v979_v33 = vrot.slane %v977_v22, 1  ;;  %v1133_v62 = vshll.u32 %v16937_v59, 16  ;;  %v1131_v63 = vshrl.u32 %v16937_v59, 16 }
  0xb7   : > { %v559_v18 = vmul.f32 0.01, %v553_v8  ;;  %vm556_vm2 = vcmp.ge.f32.partialorder %v553_v8, 0.0 }
  0xb8   : > { %v467_v23 = vpop.f32.mrf.mxu2  ;;  %v572_v25 = vpop.f32.mrf.mxu0  ;;  %v980_v42 = vor.u32 %v979_v33, %v975_v32 }
  0xb9   : > { %v545_v24 = vpop.f32.mrf.mxu3  ;;  %v590_v26 = vpop.f32.mrf.mxu1  ;;  %v562_v28 = vsel %vm556_vm2, %v553_v8, %v559_v18  ;;  %v1097_v8 = vunpack.c.l.b16 %v12180_v7 }
  0xba   : > { %v591_v43 = vadd.f32 %v590_v26, %v572_v25  ;;  %v557_v25 = vmul.f32 0.01, %v551_v16 }
  0xc0   : > { %v626_v37 = vpop.f32.mrf.mxu2  ;;  %v574_v39 = vpop.f32.mrf.mxu0 }
  0xc1   : > { %v671_v38 = vpop.f32.mrf.mxu3  ;;  %v592_v40 = vpop.f32.mrf.mxu1  ;;  %v635_v53 = vadd.f32 %v626_v37, %v591_v43  ;;  %v984_v43 = vrot.slane %v982_v34, 1 }
  0xc2   : > { %v593_v44 = vadd.f32 %v592_v40, %v574_v39  ;;  %v16932_v39 = vld [vmem:[%s21087_s1 + $0x58] sm:$0xff] }
  0xc3   : > { %v680_v1 = vadd.f32 %v671_v38, %v635_v53  ;;  %v560_v38 = vsel %vm554_vm6, %v551_v16, %v557_v25  ;;  %v16936_v40 = vld [vmem:[%s21087_s1 + $0x78] sm:$0xff]  ;;  %v985_v48 = vsel %vm285_vm0, %v980_v42, %v984_v43  ;;  %v12116_v53 = vld [vmem:[%s17864_s28 + $0x2c] sm:$0x3]  ;;  %v988_v57 = vor.u32 %v986_v55, %v984_v43 }
  0xc4   : > { %12174 = vmatmul.msk.bf16.vlgmr.msrb.gmra.mxu2 %vm325_vm1, %v985_v48  ;;  %v909_v54 = vunpack.c.l.b16 %v12116_v53 }
  0xc5   : > { %v683_v3 = vadd.f32 %v17957_v0, %v680_v1  ;;  %v1135_v1 = vrot.slane %v1133_v62, 1 }
  0xc6   : > { %v911_v56 = vpack.c.b16 %v909_v54, %v909_v54 }
  0xc7   : > { %v689_v23 = vmul.f32 0.01, %v683_v3  ;;  %vm686_vm7 = vcmp.ge.f32.partialorder %v683_v3, 0.0  ;;  %v1136_v2 = vor.u32 %v1135_v1, %v1131_v63 }
  0xc8   : > { %v628_v46 = vpop.f32.mrf.mxu2  ;;  %v577_v51 = vpop.f32.mrf.mxu0  ;;  %12177 = vmatmul.msk.bf16.gmra.mxu3 %vm325_vm1, %v911_v56 }
  0xc9   : > { %v673_v47 = vpop.f32.mrf.mxu3  ;;  %v636_v50 = vadd.f32 %v628_v46, %v593_v44  ;;  %v595_v52 = vpop.f32.mrf.mxu1  ;;  %v692_v36 = vsel %vm686_vm7, %v683_v3, %v689_v23  ;;  %v17988_v44 = vld [vmem:[%s21091_s5] sm:$0x1f]  ;;  %v16931_v46 = vld [vmem:[%s21087_s1 + $0x50] sm:$0xff] }
  0xca   : > { %v596_v61 = vadd.f32 %v595_v52, %v577_v51  ;;  %v695_v41 = vadd.f32 %v692_v36, %v560_v38  ;;  %v16929_v51 = vld [vmem:[%s21087_s1 + $0x40] sm:$0xff]  ;;  %v16946_v38 = vld [vmem:[%s21087_s1 + $0x38] sm:$0xff] }
  0xcb   : > { %v681_v60 = vadd.f32 %v673_v47, %v636_v50  ;;  %v16935_v47 = vld [vmem:[%s21087_s1 + $0x70] sm:$0xff]  ;;  %v16934_v50 = vld [vmem:[%s21087_s1 + $0x68] sm:$0xff]  ;;  %v16933_v52 = vld [vmem:[%s21087_s1 + $0x60] sm:$0xff] }
  0xcd   : > { %v684_v9 = vadd.f32 %v17957_v0, %v681_v60  ;;  %v1129_v60 = vunpack.c.l.b16 %v12187_v58 }
  0xcf   : > { %v690_v19 = vmul.f32 0.01, %v684_v9  ;;  %vm687_vm3 = vcmp.ge.f32.partialorder %v684_v9, 0.0 }
  0xd0   : > { %v631_v5 = vpop.f32.mrf.mxu2  ;;  %v579_v11 = vpop.f32.mrf.mxu0 }
  0xd1   : > { %v676_v6 = vpop.f32.mrf.mxu3  ;;  %v637_v10 = vadd.f32 %v631_v5, %v596_v61  ;;  %v597_v12 = vpop.f32.mrf.mxu1  ;;  %v693_v30 = vsel %vm687_vm3, %v684_v9, %v690_v19  ;;  %v1130_v61 = vpack.c.b16 %v1129_v60, %v1129_v60 }
  0xd2   : > { %v696_v37 = vadd.f32 %v693_v30, %v561_v35 }
  0xd3   : > { %v682_v15 = vadd.f32 %v676_v6, %v637_v10  ;;  %v1138_v4 = vshll.u32 %v1130_v61, 16  ;;  %v1142_v9 = vshrl.u32 %v1130_v61, 16  ;;  %v1099_v10 = vpack.c.b16 %v1097_v8, %v1097_v8 }
  0xd4   : > { %12175 = vmatmul.msk.bf16.gmra.mxu2 %vm325_vm1, %v988_v57 }
  0xd5   : > { %v685_v20 = vadd.f32 %v17957_v0, %v682_v15  ;;  %v1140_v5 = vrot.slane %v1138_v4, 1 }
  0xd7   : > { %vm688_vm4 = vcmp.ge.f32.partialorder %v685_v20, 0.0  ;;  %v691_v24 = vmul.f32 0.01, %v685_v20  ;;  %v1141_v6 = vsel %vm285_vm0, %v1136_v2, %v1140_v5  ;;  %v1144_v11 = vor.u32 %v1142_v9, %v1140_v5 }
  0xd8   : > { %v633_v26 = vpop.f32.mrf.mxu2 }
  0xd9   : > { %v678_v27 = vpop.f32.mrf.mxu3  ;;  %v694_v29 = vsel %vm688_vm4, %v685_v20, %v691_v24 }
  0xda   : > { %v697_v31 = vadd.f32 %v694_v29, %v562_v28 }
  0xdc   : > { %12058 = vmatpush.msk.msra.mxu0 %vm702_vm8, %v697_v31  ;;  %12060 = vmatpush.msk.msra.mxu1 %vm702_vm8, %v697_v31 }
  0xde   : > { %720 = vmatpush.msra.mxu0 %v696_v37  ;;  %743 = vmatpush.msra.mxu1 %v696_v37 }
  0xe0   : > { %721 = vmatpush.msra.mxu0 %v695_v41  ;;  %744 = vmatpush.msra.mxu1 %v695_v41  ;;  %v833_v12 = vpop.f32.mrf.mxu2  ;;  %v16941_v41 = vld [vmem:[%s21087_s1 + $0x10] sm:$0xff] }
  0xe1   : > { %12059 = vmatmul.msk.f32.vlgmr.msra.gmra.mxu0 %vm698_vm9, %v17988_v44  ;;  %12061 = vmatmul.msk.f32.vlgmr.msra.gmra.mxu1 %vm698_vm9, %v17993_v45 }
  0xe2   : > { %946 = vmatpush.bf16.msrb.mxu0 %v16932_v39  ;;  %1023 = vmatpush.bf16.msrb.mxu1 %v16936_v40 }
  0xe6   : > { %947 = vmatpush.bf16.msrb.mxu0 %v16931_v46  ;;  %1024 = vmatpush.bf16.msrb.mxu1 %v16935_v47 }
  0xe8   : > { %v835_v14 = vpop.f32.mrf.mxu2 }
  0xea   : > { %948 = vmatpush.bf16.msrb.mxu0 %v16930_v49  ;;  %1025 = vmatpush.bf16.msrb.mxu1 %v16934_v50 }
  0xee   : > { %949 = vmatpush.bf16.msrb.mxu0 %v16929_v51  ;;  %1026 = vmatpush.bf16.msrb.mxu1 %v16933_v52 }
  0xf0   : > { %v838_v15 = vpop.f32.mrf.mxu2 }
  0xf1   : > { %12145 = vmatmul.msk.bf16.vlgmr.msrb.gmra.mxu0 %vm325_vm1, %v17967_v13  ;;  %12172 = vmatmul.msk.bf16.vlgmr.msrb.gmra.mxu1 %vm325_vm1, %v985_v48  ;;  %v883_v13 = vpop.f32.mrf.mxu3  ;;  %v12197_v48 = vld [vmem:[%s17864_s28 + $0x38] sm:$0x7] }
  0xf2   : > { %1110 = vmatpush.bf16.msra.mxu0 %v16932_v39  ;;  %1155 = vmatpush.bf16.msra.mxu1 %v16936_v40  ;;  %v16942_v39 = vld [vmem:[%s21087_s1 + $0x18] sm:$0xff]  ;;  %v16945_v40 = vld [vmem:[%s21087_s1 + $0x30] sm:$0xff] }
  0xf6   : > { %1111 = vmatpush.bf16.msra.mxu0 %v16931_v46  ;;  %1156 = vmatpush.bf16.msra.mxu1 %v16935_v47  ;;  %v16944_v46 = vld [vmem:[%s21087_s1 + $0x28] sm:$0xff] }
  0xf7   : > { %v16940_v47 = vld [vmem:[%s21087_s1 + $0x8] sm:$0xff] }
  0xf8   : > { %v840_v18 = vpop.f32.mrf.mxu2 }
  0xf9   : > { %v885_v3 = vpop.f32.mrf.mxu3 }
  0xfa   : > { %1112 = vmatpush.bf16.msra.mxu0 %v16930_v49  ;;  %1157 = vmatpush.bf16.msra.mxu1 %v16934_v50  ;;  %v16938_v49 = vld [vmem:[%s17864_s28 + $0x30] sm:$0xff]  ;;  %v1257_v50 = vunpack.c.l.b16 %v12197_v48  ;;  %v886_v60 = vadd.f32 %v885_v3, %v835_v14 }
  0xfb   : > { %v1263_v54 = vshll.u32 %v16938_v49, 16 }
  0xfc   : > { %v18066_v53 = vpack.c.b16 %v1257_v50, %v1257_v50  ;;  %v16955_v50 = vld [vmem:[%s21087_s1 + $0x78] sm:$0xff] }
  0xfd   : > { %v1265_v58 = vrot.slane %v1263_v54, 1  ;;  %v16950_v54 = vld [vmem:[%s21087_s1 + $0x50] sm:$0xff] }
  0xfe   : > { %1113 = vmatpush.bf16.msra.mxu0 %v16929_v51  ;;  %1158 = vmatpush.bf16.msra.mxu1 %v16933_v52  ;;  %v16943_v51 = vld [vmem:[%s21087_s1 + $0x20] sm:$0xff]  ;;  %v1268_v1 = vshll.u32 %v18066_v53, 16 }
  0xff   : > { %v16939_v52 = vld [vmem:[%s21087_s1] sm:$0xff] }
 0x101   : > { %12146 = vmatmul.msk.bf16.gmra.mxu0 %vm325_vm1, %v911_v56  ;;  %12173 = vmatmul.msk.bf16.gmra.mxu1 %vm325_vm1, %v988_v57  ;;  %v888_v16 = vpop.f32.mrf.mxu3  ;;  %v1261_v57 = vshrl.u32 %v16938_v49, 16 }
 0x102   : > { %v889_v17 = vadd.f32 %v888_v16, %v838_v15  ;;  %1309 = vmatpush.bf16.msrb.mxu0 %v16946_v38  ;;  %1359 = vmatpush.bf16.msrb.mxu1 %v16942_v39 }
 0x103   : > { %v1266_v2 = vor.u32 %v1265_v58, %v1261_v57  ;;  %v16949_v58 = vld [vmem:[%s21087_s1 + $0x48] sm:$0xff] }
 0x106   : > { %1310 = vmatpush.bf16.msrb.mxu0 %v16945_v40  ;;  %1360 = vmatpush.bf16.msrb.mxu1 %v16941_v41 }
 0x109   : > { %v890_v19 = vpop.f32.mrf.mxu3 }
 0x10a   : > { %1311 = vmatpush.bf16.msrb.mxu0 %v16944_v46  ;;  %1361 = vmatpush.bf16.msrb.mxu1 %v16940_v47 }
 0x10e   : > { %1312 = vmatpush.bf16.msrb.mxu0 %v16943_v51  ;;  %1362 = vmatpush.bf16.msrb.mxu1 %v16939_v52 }
 0x111   : > { %12185 = vmatmul.msk.bf16.vlgmr.msra.gmra.mxu0 %vm325_vm1, %v16937_v59  ;;  %12188 = vmatmul.msk.bf16.vlgmr.msra.gmra.mxu1 %vm325_vm1, %v1141_v6  ;;  %v884_v59 = vadd.f32 %v883_v13, %v833_v12  ;;  %v1270_v6 = vrot.slane %v1268_v1, 1  ;;  %v16952_v1 = vld [vmem:[%s21087_s1 + $0x60] sm:$0xff] }
 0x112   : > { %1537 = vmatpush.bf16.msra.mxu0 %v16946_v38  ;;  %1555 = vmatpush.bf16.msra.mxu1 %v16942_v39 }
 0x116   : > { %1538 = vmatpush.bf16.msra.mxu0 %v16945_v40  ;;  %1556 = vmatpush.bf16.msra.mxu1 %v16941_v41 }
 0x11a   : > { %1539 = vmatpush.bf16.msra.mxu0 %v16944_v46  ;;  %1557 = vmatpush.bf16.msra.mxu1 %v16940_v47 }
 0x11e   : > { %1540 = vmatpush.bf16.msra.mxu0 %v16943_v51  ;;  %1558 = vmatpush.bf16.msra.mxu1 %v16939_v52  ;;  %v16947_v51 = vld [vmem:[%s17864_s28 + $0x3c] sm:$0xff] }
 0x11f   : > { %v1458_v57 = vshll.u32 %v16947_v51, 16 }
 0x121   : > { %12186 = vmatmul.msk.bf16.gmra.mxu0 %vm325_vm1, %v1099_v10  ;;  %12189 = vmatmul.msk.bf16.gmra.mxu1 %vm325_vm1, %v1144_v11  ;;  %v1271_v10 = vsel %vm285_vm0, %v1266_v2, %v1270_v6 }
 0x131   : > { %12244 = vmatmul.msk.bf16.vlgmr.msrb.gmra.mxu1 %vm325_vm1, %v16938_v49  ;;  %12226 = vmatmul.msk.bf16.vlgmr.msrb.gmra.mxu0 %vm325_vm1, %v1271_v10  ;;  %v16951_v49 = vld [vmem:[%s21087_s1 + $0x58] sm:$0xff] }
 0x137   : > { %v1079_v23 = vpop.f32.mrf.mxu3 }
 0x13f   : > { %v1081_v27 = vpop.f32.mrf.mxu3 }
 0x147   : > { %v1061_v22 = vpop.f32.mrf.mxu2 }
 0x148   : > { %v1080_v55 = vadd.f32 %v1079_v23, %v1061_v22 }
 0x14b   : > { %v1084_v31 = vpop.f32.mrf.mxu3 }
 0x14f   : > { %v1063_v26 = vpop.f32.mrf.mxu2 }
 0x150   : > { %v1082_v56 = vadd.f32 %v1081_v27, %v1063_v26 }
 0x153   : > { %v1086_v35 = vpop.f32.mrf.mxu3 }
 0x157   : > { %v1066_v30 = vpop.f32.mrf.mxu2 }
 0x158   : > { %v1085_v11 = vadd.f32 %v1084_v31, %v1066_v30 }
 0x15e   : > { %v723_v20 = vpop.f32.mrf.mxu0  ;;  %v746_v21 = vpop.f32.mrf.mxu1 }
 0x15f   : > { %749 = vst [vmem:[#allocation2] sm:$0x1f] %v723_v20  ;;  %v1068_v34 = vpop.f32.mrf.mxu2 }
 0x160   : > { %750 = vst [vmem:[#allocation2 + $0x38] sm:$0x1f] %v746_v21  ;;  %v12196_v21 = vld [vmem:[%s17864_s28 + $0x38] sm:$0x3] }
 0x16e   : > { %v951_v24 = vpop.f32.mrf.mxu0  ;;  %v18038_v25 = vpop.f32.mrf.mxu1 }
 0x16f   : > { %v960_v8 = vadd.f32 %v951_v24, %v884_v59  ;;  %v16953_v59 = vld [vmem:[%s21087_s1 + $0x68] sm:$0xff] }
 0x171   : > { %v1037_v3 = vadd.f32 %v18038_v25, %v960_v8 }
 0x173   : > { %v1040_v24 = vadd.f32 %v17957_v0, %v1037_v3 }
 0x175   : > { %vm1043_vm15 = vcmp.ge.f32.partialorder %v1040_v24, 0.0 }
 0x176   : > { %v953_v28 = vpop.f32.mrf.mxu0  ;;  %v1030_v29 = vpop.f32.mrf.mxu1 }
 0x177   : > { %v961_v5 = vadd.f32 %v953_v28, %v886_v60  ;;  %v1272_v28 = vshrl.u32 %v18066_v53, 16  ;;  %v1456_v60 = vshrl.u32 %v16947_v51, 16 }
 0x179   : > { %v1038_v13 = vadd.f32 %v1030_v29, %v961_v5  ;;  %v1324_v29 = vunpack.c.l.b16 %v12196_v21  ;;  %v1274_v39 = vor.u32 %v1272_v28, %v1270_v6  ;;  %v12248_v6 = vld [vmem:[%s17864_s28 + $0x44] sm:$0x3]  ;;  %v12312_v21 = vld [vmem:[%s17864_s28 + $0x50] sm:$0x3] }
 0x17b   : > { %v1041_v20 = vadd.f32 %v17957_v0, %v1038_v13  ;;  %v1325_v40 = vpack.c.b16 %v1324_v29, %v1324_v29  ;;  %12227 = vmatmul.msk.bf16.gmra.mxu0 %vm325_vm1, %v1274_v39 }
 0x17d   : > { %v1047_v30 = vmul.f32 0.01, %v1041_v20  ;;  %vm1044_vm13 = vcmp.ge.f32.partialorder %v1041_v20, 0.0  ;;  %12245 = vmatmul.msk.bf16.gmra.mxu1 %vm325_vm1, %v1325_v40 }
 0x17e   : > { %v956_v32 = vpop.f32.mrf.mxu0  ;;  %v1033_v33 = vpop.f32.mrf.mxu1 }
 0x17f   : > { %v962_v61 = vadd.f32 %v956_v32, %v889_v17 }
 0x181   : > { %v1039_v9 = vadd.f32 %v1033_v33, %v962_v61  ;;  %v1046_v33 = vmul.f32 0.01, %v1040_v24  ;;  %v1460_v61 = vrot.slane %v1458_v57, 1  ;;  %v12329_v57 = vld [vmem:[%s17864_s28 + $0x50] sm:$0x7] }
 0x183   : > { %v1042_v15 = vadd.f32 %v17957_v0, %v1039_v9  ;;  %v1049_v48 = vsel %vm1043_vm15, %v1040_v24, %v1046_v33  ;;  %v12319_v9 = vld [vmem:[%s17864_s28 + $0x50] sm:$0x7] }
 0x184   : > { %v1610_v13 = vunpack.c.l.b16 %v12319_v9 }
 0x185   : > { %vm1045_vm10 = vcmp.ge.f32.partialorder %v1042_v15, 0.0  ;;  %v1048_v26 = vmul.f32 0.01, %v1042_v15 }
 0x186   : > { %v958_v36 = vpop.f32.mrf.mxu0  ;;  %v1035_v37 = vpop.f32.mrf.mxu1 }
 0x187   : > { %v1051_v34 = vsel %vm1045_vm10, %v1042_v15, %v1048_v26 }
 0x18d   : > { %12308 = vmatmul.msk.bf16.vlgmr.msra.gmra.mxu1 %vm325_vm1, %v16947_v51 }
 0x18e   : > { %v1115_v42 = vpop.f32.mrf.mxu0  ;;  %v1160_v43 = vpop.f32.mrf.mxu1 }
 0x18f   : > { %v1124_v7 = vadd.f32 %v1115_v42, %v1080_v55  ;;  %v12279_v42 = vld [vmem:[%s17864_s28 + $0x44] sm:$0x7]  ;;  %v16954_v55 = vld [vmem:[%s21087_s1 + $0x70] sm:$0xff] }
 0x190   : > { %v1454_v52 = vunpack.c.l.b16 %v12279_v42 }
 0x191   : > { %v1169_v14 = vadd.f32 %v1160_v43, %v1124_v7  ;;  %v1050_v43 = vsel %vm1044_vm13, %v1041_v20, %v1047_v30  ;;  %v1390_v7 = vunpack.c.l.b16 %v12248_v6 }
 0x193   : > { %v1172_v22 = vadd.f32 %v17957_v0, %v1169_v14  ;;  %v1392_v10 = vpack.c.b16 %v1390_v7, %v1390_v7  ;;  %v1611_v14 = vpack.c.b16 %v1610_v13, %v1610_v13 }
 0x195   : > { %v1178_v31 = vmul.f32 0.01, %v1172_v22  ;;  %vm1175_vm14 = vcmp.ge.f32.partialorder %v1172_v22, 0.0 }
 0x196   : > { %v1117_v62 = vpop.f32.mrf.mxu0  ;;  %v1162_v63 = vpop.f32.mrf.mxu1 }
 0x197   : > { %v1125_v4 = vadd.f32 %v1117_v62, %v1082_v56  ;;  %v1181_v46 = vsel %vm1175_vm14, %v1172_v22, %v1178_v31  ;;  %v1455_v56 = vpack.c.b16 %v1454_v52, %v1454_v52  ;;  %v1578_v22 = vunpack.c.l.b16 %v12312_v21 }
 0x198   : > { %v1184_v53 = vadd.f32 %v1181_v46, %v1049_v48 }
 0x199   : > { %v1170_v12 = vadd.f32 %v1162_v63, %v1125_v4  ;;  %v1463_v62 = vshll.u32 %v1455_v56, 16  ;;  %v16948_v63 = vld [vmem:[%s21087_s1 + $0x40] sm:$0xff]  ;;  %v1461_v4 = vor.u32 %v1460_v61, %v1456_v60  ;;  %v1467_v8 = vshrl.u32 %v1455_v56, 16  ;;  %v16960_v56 = vld [vmem:[%s21087_s1 + $0x10] sm:$0xff]  ;;  %v16957_v60 = vld [vmem:[%s17864_s28 + $0x48] sm:$0xff] }
 0x19a   : > { %v1580_v24 = vpack.c.b16 %v1578_v22, %v1578_v22  ;;  %v1739_v61 = vunpack.c.l.b16 %v12329_v57  ;;  %v1743_v6 = vshrl.u32 %v16957_v60, 16 }
 0x19b   : > { %v1173_v18 = vadd.f32 %v17957_v0, %v1170_v12  ;;  %v1465_v2 = vrot.slane %v1463_v62, 1  ;;  %v16956_v12 = vld [vmem:[%s17864_s28 + $0x48] sm:$0xff] }
 0x19c   : > { %v1614_v3 = vshll.u32 %v16956_v12, 16  ;;  %v1612_v15 = vshrl.u32 %v16956_v12, 16 }
 0x19d   : > { %v1179_v25 = vmul.f32 0.01, %v1173_v18  ;;  %vm1176_vm11 = vcmp.ge.f32.partialorder %v1173_v18, 0.0  ;;  %v1466_v5 = vsel %vm285_vm0, %v1461_v4, %v1465_v2  ;;  %12309 = vmatmul.msk.bf16.gmra.mxu1 %vm325_vm1, %v1392_v10  ;;  %v1745_v4 = vshll.u32 %v16957_v60, 16 }
 0x19e   : > { %v1120_v16 = vpop.f32.mrf.mxu0  ;;  %v1165_v17 = vpop.f32.mrf.mxu1  ;;  %12306 = vmatmul.msk.bf16.vlgmr.msra.gmra.mxu0 %vm325_vm1, %v1466_v5 }
 0x19f   : > { %v1126_v19 = vadd.f32 %v1120_v16, %v1085_v11  ;;  %v1182_v38 = vsel %vm1176_vm11, %v1173_v18, %v1179_v25  ;;  %v1469_v11 = vor.u32 %v1467_v8, %v1465_v2  ;;  %v1616_v16 = vrot.slane %v1614_v3, 1  ;;  %v16962_v2 = vld [vmem:[%s21087_s1 + $0x20] sm:$0xff] }
 0x1a0   : > { %v1185_v47 = vadd.f32 %v1182_v38, %v1050_v43  ;;  %v1747_v7 = vrot.slane %v1745_v4, 1 }
 0x1a1   : > { %v1171_v23 = vadd.f32 %v1165_v17, %v1126_v19  ;;  %v1619_v17 = vshll.u32 %v1611_v14, 16  ;;  %v1617_v18 = vor.u32 %v1616_v16, %v1612_v15 }
 0x1a2   : > { %v1748_v9 = vor.u32 %v1747_v7, %v1743_v6 }
 0x1a3   : > { %v1174_v27 = vadd.f32 %v17957_v0, %v1171_v23  ;;  %v1621_v19 = vrot.slane %v1619_v17, 1  ;;  %v1623_v23 = vshrl.u32 %v1611_v14, 16 }
 0x1a5   : > { %vm1177_vm12 = vcmp.ge.f32.partialorder %v1174_v27, 0.0  ;;  %v1180_v32 = vmul.f32 0.01, %v1174_v27  ;;  %v1622_v20 = vsel %vm285_vm0, %v1617_v18, %v1621_v19  ;;  %v1625_v26 = vor.u32 %v1623_v23, %v1621_v19  ;;  %v12328_v23 = vld [vmem:[%s17864_s28 + $0x50] sm:$0x3] }
 0x1a6   : > { %v1122_v35 = vpop.f32.mrf.mxu0  ;;  %v1167_v36 = vpop.f32.mrf.mxu1 }
 0x1a7   : > { %v1183_v37 = vsel %vm1177_vm12, %v1174_v27, %v1180_v32 }
 0x1a8   : > { %v1186_v41 = vadd.f32 %v1183_v37, %v1051_v34 }
 0x1aa   : > { %12190 = vmatpush.msk.msra.mxu2 %vm702_vm8, %v1186_v41  ;;  %12192 = vmatpush.msk.msra.mxu3 %vm702_vm8, %v1186_v41 }
 0x1ac   : > { %1204 = vmatpush.msra.mxu2 %v1185_v47  ;;  %1224 = vmatpush.msra.mxu3 %v1185_v47 }
 0x1ae   : > { %1205 = vmatpush.msra.mxu2 %v1184_v53  ;;  %1225 = vmatpush.msra.mxu3 %v1184_v53  ;;  %v18133_v25 = vpop.f32.mrf.mxu1  ;;  %v18135_v27 = vpop.f32.mrf.mxu0 }
 0x1af   : > { %12191 = vmatmul.msk.f32.vlgmr.msra.gmra.mxu2 %vm698_vm9, %v17988_v44  ;;  %12193 = vmatmul.msk.f32.vlgmr.msra.gmra.mxu3 %vm698_vm9, %v17993_v45  ;;  %v1365_v16 = vadd.f32 %v18133_v25, %v18135_v27 }
 0x1b0   : > { %1427 = vmatpush.bf16.msrb.mxu2 %v16951_v49  ;;  %1504 = vmatpush.bf16.msrb.mxu3 %v16955_v50 }
 0x1b1   : > { %12307 = vmatmul.msk.bf16.gmra.mxu0 %vm325_vm1, %v1469_v11 }
 0x1b4   : > { %1428 = vmatpush.bf16.msrb.mxu2 %v16950_v54  ;;  %1505 = vmatpush.bf16.msrb.mxu3 %v16954_v55 }
 0x1b6   : > { %v18137_v28 = vpop.f32.mrf.mxu1  ;;  %v18139_v29 = vpop.f32.mrf.mxu0 }
 0x1b7   : > { %v1367_v14 = vadd.f32 %v18137_v28, %v18139_v29  ;;  %v1806_v28 = vunpack.c.l.b16 %v12328_v23  ;;  %v16975_v23 = vld [vmem:[%s17864_s28 + $0x60] sm:$0xff] }
 0x1b8   : > { %1429 = vmatpush.bf16.msrb.mxu2 %v16949_v58  ;;  %1506 = vmatpush.bf16.msrb.mxu3 %v16953_v59 }
 0x1bc   : > { %1430 = vmatpush.bf16.msrb.mxu2 %v16948_v63  ;;  %1507 = vmatpush.bf16.msrb.mxu3 %v16952_v1 }
 0x1bf   : > { %12277 = vmatmul.msk.bf16.vlgmr.msrb.gmra.mxu2 %vm325_vm1, %v16947_v51  ;;  %12304 = vmatmul.msk.bf16.vlgmr.msrb.gmra.mxu3 %vm325_vm1, %v1466_v5  ;;  %v16958_v5 = vld [vmem:[%s21087_s1] sm:$0xff] }
 0x1c0   : > { %1591 = vmatpush.bf16.msra.mxu2 %v16951_v49  ;;  %1636 = vmatpush.bf16.msra.mxu3 %v16955_v50  ;;  %v16965_v49 = vld [vmem:[%s21087_s1 + $0x38] sm:$0xff] }
 0x1c1   : > { %v16961_v50 = vld [vmem:[%s21087_s1 + $0x18] sm:$0xff] }
 0x1c4   : > { %1592 = vmatpush.bf16.msra.mxu2 %v16950_v54  ;;  %1637 = vmatpush.bf16.msra.mxu3 %v16954_v55  ;;  %v16964_v55 = vld [vmem:[%s21087_s1 + $0x30] sm:$0xff] }
 0x1c8   : > { %1593 = vmatpush.bf16.msra.mxu2 %v16949_v58  ;;  %1638 = vmatpush.bf16.msra.mxu3 %v16953_v59  ;;  %v16963_v58 = vld [vmem:[%s21087_s1 + $0x28] sm:$0xff] }
 0x1c9   : > { %v16959_v59 = vld [vmem:[%s21087_s1 + $0x8] sm:$0xff] }
 0x1cc   : > { %1594 = vmatpush.bf16.msra.mxu2 %v16948_v63  ;;  %1639 = vmatpush.bf16.msra.mxu3 %v16952_v1  ;;  %v1741_v1 = vpack.c.b16 %v1739_v61, %v1739_v61 }
 0x1ce   : > { %v1750_v8 = vshll.u32 %v1741_v1, 16 }
 0x1cf   : > { %12278 = vmatmul.msk.bf16.gmra.mxu2 %vm325_vm1, %v1392_v10  ;;  %12305 = vmatmul.msk.bf16.gmra.mxu3 %vm325_vm1, %v1469_v11 }
 0x1d0   : > { %1791 = vmatpush.bf16.msrb.mxu2 %v16965_v49  ;;  %1841 = vmatpush.bf16.msrb.mxu3 %v16961_v50  ;;  %v1752_v10 = vrot.slane %v1750_v8, 1  ;;  %v16970_v8 = vld [vmem:[%s21087_s1 + $0x58] sm:$0xff] }
 0x1d2   : > { %v1753_v11 = vsel %vm285_vm0, %v1748_v9, %v1752_v10  ;;  %v16974_v9 = vld [vmem:[%s21087_s1 + $0x78] sm:$0xff] }
 0x1d4   : > { %1792 = vmatpush.bf16.msrb.mxu2 %v16964_v55  ;;  %1842 = vmatpush.bf16.msrb.mxu3 %v16960_v56 }
 0x1d8   : > { %1793 = vmatpush.bf16.msrb.mxu2 %v16963_v58  ;;  %1843 = vmatpush.bf16.msrb.mxu3 %v16959_v59 }
 0x1dc   : > { %1794 = vmatpush.bf16.msrb.mxu2 %v16962_v2  ;;  %1844 = vmatpush.bf16.msrb.mxu3 %v16958_v5 }
 0x1df   : > { %12317 = vmatmul.msk.bf16.vlgmr.msra.gmra.mxu2 %vm325_vm1, %v16956_v12  ;;  %12320 = vmatmul.msk.bf16.vlgmr.msra.gmra.mxu3 %vm325_vm1, %v1622_v20 }
 0x1e0   : > { %2019 = vmatpush.bf16.msra.mxu2 %v16965_v49  ;;  %2037 = vmatpush.bf16.msra.mxu3 %v16961_v50 }
 0x1e4   : > { %2020 = vmatpush.bf16.msra.mxu2 %v16964_v55  ;;  %2038 = vmatpush.bf16.msra.mxu3 %v16960_v56 }
 0x1e8   : > { %2021 = vmatpush.bf16.msra.mxu2 %v16963_v58  ;;  %2039 = vmatpush.bf16.msra.mxu3 %v16959_v59 }
 0x1ec   : > { %2022 = vmatpush.bf16.msra.mxu2 %v16962_v2  ;;  %2040 = vmatpush.bf16.msra.mxu3 %v16958_v5 }
 0x1ef   : > { %12318 = vmatmul.msk.bf16.gmra.mxu2 %vm325_vm1, %v1580_v24  ;;  %12321 = vmatmul.msk.bf16.gmra.mxu3 %vm325_vm1, %v1625_v26  ;;  %v1754_v26 = vshrl.u32 %v1741_v1, 16 }
 0x1f8   : > { %v1319_v30 = vpop.f32.mrf.mxu0 }
 0x1fa   : > { %v1369_v31 = vpop.f32.mrf.mxu1 }
 0x1fb   : > { %v18141_v32 = vadd.f32 %v1369_v31, %v1319_v30  ;;  %v1756_v31 = vor.u32 %v1754_v26, %v1752_v10 }
 0x1ff   : > { %12358 = vmatmul.msk.bf16.vlgmr.msrb.gmra.mxu2 %vm325_vm1, %v1753_v11  ;;  %12376 = vmatmul.msk.bf16.vlgmr.msrb.gmra.mxu3 %vm325_vm1, %v16957_v60 }
 0x200   : > { %v1321_v33 = vpop.f32.mrf.mxu0 }
 0x201   : > { %v1807_v33 = vpack.c.b16 %v1806_v28, %v1806_v28  ;;  %v2096_v28 = vshll.u32 %v16975_v23, 16 }
 0x202   : > { %v1371_v34 = vpop.f32.mrf.mxu1 }
 0x20a   : > { %v1560_v38 = vpop.f32.mrf.mxu1 }
 0x20f   : > { %12359 = vmatmul.msk.bf16.gmra.mxu2 %vm325_vm1, %v1756_v31  ;;  %12377 = vmatmul.msk.bf16.gmra.mxu3 %vm325_vm1, %v1807_v33 }
 0x212   : > { %v1562_v42 = vpop.f32.mrf.mxu1 }
 0x21a   : > { %v1565_v48 = vpop.f32.mrf.mxu1 }
 0x21b   : > { %v1542_v37 = vpop.f32.mrf.mxu0 }
 0x21c   : > { %v1561_v3 = vadd.f32 %v1560_v38, %v1542_v37 }
 0x222   : > { %v1567_v54 = vpop.f32.mrf.mxu1 }
 0x223   : > { %v1544_v41 = vpop.f32.mrf.mxu0 }
 0x224   : > { %v1563_v15 = vadd.f32 %v1562_v42, %v1544_v41 }
 0x22e   : > { %v18147_v47 = vpop.f32.mrf.mxu0 }
 0x22f   : > { %v1566_v25 = vadd.f32 %v1565_v48, %v18147_v47 }
 0x232   : > { %v1207_v35 = vpop.f32.mrf.mxu2  ;;  %v1227_v36 = vpop.f32.mrf.mxu3 }
 0x233   : > { %1230 = vst [vmem:[#allocation2 + $0x50] sm:$0x1f] %v1207_v35 }
 0x234   : > { %1231 = vst [vmem:[#allocation2 + $0x18] sm:$0x1f] %v1227_v36 }
 0x236   : > { %v1549_v53 = vpop.f32.mrf.mxu0 }
 0x242   : > { %v18143_v39 = vpop.f32.mrf.mxu2  ;;  %v18145_v40 = vpop.f32.mrf.mxu3 }
 0x243   : > { %v1441_v24 = vadd.f32 %v18143_v39, %v1365_v16  ;;  %v16971_v16 = vld [vmem:[%s21087_s1 + $0x60] sm:$0xff] }
 0x245   : > { %v1518_v35 = vadd.f32 %v18145_v40, %v1441_v24 }
 0x247   : > { %v1521_v40 = vadd.f32 %v17957_v0, %v1518_v35 }
 0x249   : > { %v1527_v57 = vmul.f32 0.01, %v1521_v40  ;;  %vm1524_vm7 = vcmp.ge.f32.partialorder %v1521_v40, 0.0 }
 0x24a   : > { %v1434_v43 = vpop.f32.mrf.mxu2  ;;  %v1511_v46 = vpop.f32.mrf.mxu3 }
 0x24b   : > { %v1442_v19 = vadd.f32 %v1434_v43, %v1367_v14  ;;  %v18194_v43 = vld [vmem:[%s17864_s28 + $0x54] sm:$0xff]  ;;  %v1530_v7 = vsel %vm1524_vm7, %v1521_v40, %v1527_v57 }
 0x24c   : > { %v1940_v54 = vshll.u32 %v18194_v43, 16  ;;  %v16973_v14 = vld [vmem:[%s21087_s1 + $0x70] sm:$0xff]  ;;  %12440 = vmatmul.msk.bf16.vlgmr.msra.gmra.mxu3 %vm325_vm1, %v18194_v43 }
 0x24d   : > { %v1519_v29 = vadd.f32 %v1511_v46, %v1442_v19 }
 0x24e   : > { %v1942_v1 = vrot.slane %v1940_v54, 1 }
 0x24f   : > { %v1522_v38 = vadd.f32 %v17957_v0, %v1519_v29  ;;  %v2094_v29 = vshrl.u32 %v16975_v23, 16 }
 0x251   : > { %v1528_v49 = vmul.f32 0.01, %v1522_v38  ;;  %vm1525_vm5 = vcmp.ge.f32.partialorder %v1522_v38, 0.0 }
 0x252   : > { %v1437_v51 = vpop.f32.mrf.mxu2  ;;  %v1514_v52 = vpop.f32.mrf.mxu3 }
 0x253   : > { %v1443_v20 = vadd.f32 %v1437_v51, %v18141_v32  ;;  %v12411_v32 = vld [vmem:[%s17864_s28 + $0x5c] sm:$0x7]  ;;  %v1531_v2 = vsel %vm1525_vm5, %v1522_v38, %v1528_v49 }
 0x254   : > { %v1936_v46 = vunpack.c.l.b16 %v12411_v32 }
 0x255   : > { %v1520_v30 = vadd.f32 %v1514_v52, %v1443_v20 }
 0x256   : > { %v1937_v53 = vpack.c.b16 %v1936_v46, %v1936_v46 }
 0x257   : > { %v1523_v39 = vadd.f32 %v17957_v0, %v1520_v30  ;;  %v2098_v30 = vrot.slane %v2096_v28, 1 }
 0x258   : > { %v1945_v4 = vshll.u32 %v1937_v53, 16  ;;  %v1949_v19 = vshrl.u32 %v1937_v53, 16 }
 0x259   : > { %v1529_v50 = vmul.f32 0.01, %v1523_v39  ;;  %vm1526_vm2 = vcmp.ge.f32.partialorder %v1523_v39, 0.0 }
 0x25a   : > { %v1439_v62 = vpop.f32.mrf.mxu2  ;;  %v1516_v63 = vpop.f32.mrf.mxu3 }
 0x25b   : > { %v1532_v60 = vsel %vm1526_vm2, %v1523_v39, %v1529_v50 }
 0x262   : > { %v1596_v12 = vpop.f32.mrf.mxu2  ;;  %v1641_v13 = vpop.f32.mrf.mxu3 }
 0x263   : > { %v1605_v22 = vadd.f32 %v1596_v12, %v1561_v3  ;;  %v1947_v12 = vrot.slane %v1945_v4, 1 }
 0x265   : > { %v1650_v34 = vadd.f32 %v1641_v13, %v1605_v22  ;;  %v16969_v13 = vld [vmem:[%s21087_s1 + $0x50] sm:$0xff]  ;;  %v12451_v22 = vld [vmem:[%s17864_s28 + $0x68] sm:$0x7] }
 0x266   : > { %v2092_v24 = vunpack.c.l.b16 %v12451_v22 }
 0x267   : > { %v1653_v47 = vadd.f32 %v17957_v0, %v1650_v34  ;;  %v12444_v34 = vld [vmem:[%s17864_s28 + $0x68] sm:$0x3] }
 0x268   : > { %v2093_v26 = vpack.c.b16 %v2092_v24, %v2092_v24  ;;  %v2060_v32 = vunpack.c.l.b16 %v12444_v34 }
 0x269   : > { %v1659_v55 = vmul.f32 0.01, %v1653_v47  ;;  %vm1656_vm6 = vcmp.ge.f32.partialorder %v1653_v47, 0.0 }
 0x26a   : > { %v1598_v17 = vpop.f32.mrf.mxu2  ;;  %v1643_v18 = vpop.f32.mrf.mxu3  ;;  %v2105_v35 = vshrl.u32 %v2093_v26, 16 }
 0x26b   : > { %v1606_v21 = vadd.f32 %v1598_v17, %v1563_v15  ;;  %v1662_v5 = vsel %vm1656_vm6, %v1653_v47, %v1659_v55  ;;  %v16968_v15 = vld [vmem:[%s21087_s1 + $0x48] sm:$0xff]  ;;  %v12380_v17 = vld [vmem:[%s17864_s28 + $0x5c] sm:$0x3] }
 0x26c   : > { %v1665_v10 = vadd.f32 %v1662_v5, %v1530_v7  ;;  %v16980_v5 = vld [vmem:[%s21087_s1 + $0x18] sm:$0xff]  ;;  %v16979_v7 = vld [vmem:[%s21087_s1 + $0x10] sm:$0xff] }
 0x26d   : > { %v1651_v27 = vadd.f32 %v1643_v18, %v1606_v21  ;;  %v1872_v18 = vunpack.c.l.b16 %v12380_v17  ;;  %v1951_v21 = vor.u32 %v1949_v19, %v1947_v12 }
 0x26f   : > { %v1654_v41 = vadd.f32 %v17957_v0, %v1651_v27  ;;  %v1874_v20 = vpack.c.b16 %v1872_v18, %v1872_v18  ;;  %v2099_v27 = vor.u32 %v2098_v30, %v2094_v29 }
 0x271   : > { %v1660_v51 = vmul.f32 0.01, %v1654_v41  ;;  %vm1657_vm3 = vcmp.ge.f32.partialorder %v1654_v41, 0.0  ;;  %12441 = vmatmul.msk.bf16.gmra.mxu3 %vm325_vm1, %v1874_v20 }
 0x272   : > { %v1601_v36 = vpop.f32.mrf.mxu2  ;;  %v1646_v37 = vpop.f32.mrf.mxu3 }
 0x273   : > { %v1607_v42 = vadd.f32 %v1601_v36, %v1566_v25  ;;  %v1663_v62 = vsel %vm1657_vm3, %v1654_v41, %v1660_v51  ;;  %v2101_v25 = vshll.u32 %v2093_v26, 16  ;;  %v2062_v36 = vpack.c.b16 %v2060_v32, %v2060_v32 }
 0x274   : > { %v1666_v6 = vadd.f32 %v1663_v62, %v1531_v2  ;;  %v16984_v2 = vld [vmem:[%s21087_s1 + $0x38] sm:$0xff] }
 0x275   : > { %v1652_v48 = vadd.f32 %v1646_v37, %v1607_v42  ;;  %v2103_v31 = vrot.slane %v2101_v25, 1 }
 0x277   : > { %v1655_v52 = vadd.f32 %v17957_v0, %v1652_v48  ;;  %v1938_v0 = vshrl.u32 %v18194_v43, 16  ;;  %v2104_v33 = vsel %vm285_vm0, %v2099_v27, %v2103_v31  ;;  %v2107_v37 = vor.u32 %v2105_v35, %v2103_v31 }
 0x279   : > { %vm1658_vm4 = vcmp.ge.f32.partialorder %v1655_v52, 0.0  ;;  %v1661_v56 = vmul.f32 0.01, %v1655_v52  ;;  %v1943_v11 = vor.u32 %v1942_v1, %v1938_v0 }
 0x27a   : > { %v1603_v58 = vpop.f32.mrf.mxu2  ;;  %v1648_v59 = vpop.f32.mrf.mxu3 }
 0x27b   : > { %v1664_v61 = vsel %vm1658_vm4, %v1655_v52, %v1661_v56  ;;  %v1948_v3 = vsel %vm285_vm0, %v1943_v11, %v1947_v12  ;;  %v16978_v11 = vld [vmem:[%s21087_s1 + $0x8] sm:$0xff] }
 0x27c   : > { %v1667_v63 = vadd.f32 %v1664_v61, %v1532_v60  ;;  %12438 = vmatmul.msk.bf16.vlgmr.msra.gmra.mxu2 %vm325_vm1, %v1948_v3  ;;  %v12461_v12 = vld [vmem:[%s17864_s28 + $0x68] sm:$0x7] }
 0x27e   : > { %12322 = vmatpush.msk.msrb.mxu0 %vm702_vm8, %v1667_v63  ;;  %12324 = vmatpush.msk.msrb.mxu1 %vm702_vm8, %v1667_v63 }
 0x280   : > { %1685 = vmatpush.msrb.mxu0 %v1666_v6  ;;  %1705 = vmatpush.msrb.mxu1 %v1666_v6  ;;  %v16983_v6 = vld [vmem:[%s21087_s1 + $0x30] sm:$0xff] }
 0x282   : > { %1686 = vmatpush.msrb.mxu0 %v1665_v10  ;;  %1706 = vmatpush.msrb.mxu1 %v1665_v10  ;;  %v1796_v38 = vpop.f32.mrf.mxu2  ;;  %v1846_v39 = vpop.f32.mrf.mxu3  ;;  %v16982_v10 = vld [vmem:[%s21087_s1 + $0x28] sm:$0xff] }
 0x283   : > { %12323 = vmatmul.msk.f32.vlgmr.msrb.gmra.mxu0 %vm698_vm9, %v17988_v44  ;;  %12325 = vmatmul.msk.f32.vlgmr.msrb.gmra.mxu1 %vm698_vm9, %v17993_v45  ;;  %v16972_v44 = vld [vmem:[%s21087_s1 + $0x68] sm:$0xff]  ;;  %v16967_v45 = vld [vmem:[%s21087_s1 + $0x40] sm:$0xff] }
 0x284   : > { %1909 = vmatpush.bf16.msra.mxu0 %v16970_v8  ;;  %1986 = vmatpush.bf16.msra.mxu1 %v16974_v9 }
 0x288   : > { %1910 = vmatpush.bf16.msra.mxu0 %v16969_v13  ;;  %1987 = vmatpush.bf16.msra.mxu1 %v16973_v14 }
 0x28a   : > { %v1798_v41 = vpop.f32.mrf.mxu2  ;;  %v1848_v42 = vpop.f32.mrf.mxu3 }
 0x28c   : > { %1911 = vmatpush.bf16.msra.mxu0 %v16968_v15  ;;  %1988 = vmatpush.bf16.msra.mxu1 %v16972_v44 }
 0x28d   : > { %12439 = vmatmul.msk.bf16.gmra.mxu2 %vm325_vm1, %v1951_v21 }
 0x290   : > { %1912 = vmatpush.bf16.msra.mxu0 %v16967_v45  ;;  %1989 = vmatpush.bf16.msra.mxu1 %v16971_v16 }
 0x292   : > { %v1851_v46 = vpop.f32.mrf.mxu3 }
 0x293   : > { %12409 = vmatmul.msk.bf16.vlgmr.msra.gmra.mxu0 %vm325_vm1, %v18194_v43  ;;  %12436 = vmatmul.msk.bf16.vlgmr.msra.gmra.mxu1 %vm325_vm1, %v1948_v3  ;;  %v1801_v43 = vpop.f32.mrf.mxu2  ;;  %v16981_v3 = vld [vmem:[%s21087_s1 + $0x20] sm:$0xff] }
 0x294   : > { %2073 = vmatpush.bf16.msrb.mxu0 %v16970_v8  ;;  %2118 = vmatpush.bf16.msrb.mxu1 %v16974_v9  ;;  %v1852_v47 = vadd.f32 %v1851_v46, %v1801_v43 }
 0x298   : > { %2074 = vmatpush.bf16.msrb.mxu0 %v16969_v13  ;;  %2119 = vmatpush.bf16.msrb.mxu1 %v16973_v14  ;;  %v16976_v13 = vld [vmem:[%s17864_s28 + $0x60] sm:$0xff]  ;;  %v2220_v14 = vunpack.c.l.b16 %v12461_v12  ;;  %v16993_v12 = vld [vmem:[%s21087_s1 + $0x78] sm:$0xff] }
 0x299   : > { %v2224_v18 = vshrl.u32 %v16976_v13, 16 }
 0x29a   : > { %v1853_v40 = vpop.f32.mrf.mxu3 }
 0x29b   : > { %v1803_v48 = vpop.f32.mrf.mxu2  ;;  %v12460_v40 = vld [vmem:[%s17864_s28 + $0x68] sm:$0x3] }
 0x29c   : > { %2075 = vmatpush.bf16.msrb.mxu0 %v16968_v15  ;;  %2120 = vmatpush.bf16.msrb.mxu1 %v16972_v44  ;;  %v16977_v15 = vld [vmem:[%s21087_s1] sm:$0xff]  ;;  %v18279_v44 = vpack.c.b16 %v2220_v14, %v2220_v14 }
 0x29e   : > { %v2231_v26 = vshll.u32 %v18279_v44, 16 }
 0x2a0   : > { %2076 = vmatpush.bf16.msrb.mxu0 %v16967_v45  ;;  %2121 = vmatpush.bf16.msrb.mxu1 %v16971_v16  ;;  %v2226_v45 = vshll.u32 %v16976_v13, 16  ;;  %v2233_v25 = vrot.slane %v2231_v26, 1  ;;  %v16990_v26 = vld [vmem:[%s21087_s1 + $0x60] sm:$0xff] }
 0x2a2   : > { %v2228_v19 = vrot.slane %v2226_v45, 1 }
 0x2a3   : > { %12410 = vmatmul.msk.bf16.gmra.mxu0 %vm325_vm1, %v1874_v20  ;;  %12437 = vmatmul.msk.bf16.gmra.mxu1 %vm325_vm1, %v1951_v21  ;;  %v1847_v20 = vadd.f32 %v1846_v39, %v1796_v38  ;;  %v1849_v21 = vadd.f32 %v1848_v42, %v1798_v41  ;;  %v18289_v39 = vld [vmem:[%s21090_s4] ss:$0 sm:$0xff] }
 0x2a4   : > { %2272 = vmatpush.bf16.msra.mxu0 %v16984_v2  ;;  %2322 = vmatpush.bf16.msra.mxu1 %v16980_v5  ;;  %v2229_v29 = vor.u32 %v2228_v19, %v2224_v18  ;;  %v18327_v18 = vld [vmem:[%s21091_s5 + $0x5] sm:$0x1f] }
 0x2a5   : > { %v16987_v19 = vld [vmem:[%s21087_s1 + $0x48] sm:$0xff] }
 0x2a6   : > { %v2234_v34 = vsel %vm285_vm0, %v2229_v29, %v2233_v25 }
 0x2a8   : > { %2273 = vmatpush.bf16.msra.mxu0 %v16983_v6  ;;  %2323 = vmatpush.bf16.msra.mxu1 %v16979_v7 }
 0x2ac   : > { %2274 = vmatpush.bf16.msra.mxu0 %v16982_v10  ;;  %2324 = vmatpush.bf16.msra.mxu1 %v16978_v11 }
 0x2b0   : > { %2275 = vmatpush.bf16.msra.mxu0 %v16981_v3  ;;  %2325 = vmatpush.bf16.msra.mxu1 %v16977_v15 }
 0x2b3   : > { %12449 = vmatmul.msk.bf16.vlgmr.msrb.gmra.mxu0 %vm325_vm1, %v16975_v23  ;;  %12452 = vmatmul.msk.bf16.vlgmr.msrb.gmra.mxu1 %vm325_vm1, %v2104_v33 }
 0x2b4   : > { %2500 = vmatpush.bf16.msrb.mxu0 %v16984_v2  ;;  %2518 = vmatpush.bf16.msrb.mxu1 %v16980_v5 }
 0x2b8   : > { %2501 = vmatpush.bf16.msrb.mxu0 %v16983_v6  ;;  %2519 = vmatpush.bf16.msrb.mxu1 %v16979_v7  ;;  %v12543_v6 = vld [vmem:[%s17864_s28 + $0x74] sm:$0x7] }
 0x2b9   : > { %v2417_v14 = vunpack.c.l.b16 %v12543_v6 }
 0x2bb   : > { %v2418_v45 = vpack.c.b16 %v2417_v14, %v2417_v14 }
 0x2bc   : > { %2502 = vmatpush.bf16.msrb.mxu0 %v16982_v10  ;;  %2520 = vmatpush.bf16.msrb.mxu1 %v16978_v11  ;;  %v16989_v11 = vld [vmem:[%s21087_s1 + $0x58] sm:$0xff] }
 0x2c0   : > { %2503 = vmatpush.bf16.msrb.mxu0 %v16981_v3  ;;  %2521 = vmatpush.bf16.msrb.mxu1 %v16977_v15  ;;  %v16988_v15 = vld [vmem:[%s21087_s1 + $0x50] sm:$0xff] }
 0x2c3   : > { %12450 = vmatmul.msk.bf16.gmra.mxu0 %vm325_vm1, %v2062_v36  ;;  %12453 = vmatmul.msk.bf16.gmra.mxu1 %vm325_vm1, %v2107_v37 }
 0x2cf   : > { %v2042_v52 = vpop.f32.mrf.mxu3 }
 0x2d3   : > { %12508 = vmatmul.msk.bf16.vlgmr.msra.gmra.mxu1 %vm325_vm1, %v16976_v13  ;;  %12490 = vmatmul.msk.bf16.vlgmr.msra.gmra.mxu0 %vm325_vm1, %v2234_v34  ;;  %v16985_v13 = vld [vmem:[%s17864_s28 + $0x6c] sm:$0xff] }
 0x2d7   : > { %v2044_v56 = vpop.f32.mrf.mxu3 }
 0x2f4   : > { %v2047_v60 = vpop.f32.mrf.mxu3 }
 0x2fc   : > { %v2049_v0 = vpop.f32.mrf.mxu3 }
 0x2ff   : > { %v2024_v51 = vpop.f32.mrf.mxu2 }
 0x300   : > { %v1688_v49 = vpop.f32.mrf.mxu0  ;;  %v1708_v50 = vpop.f32.mrf.mxu1  ;;  %v2043_v16 = vadd.f32 %v2042_v52, %v2024_v51 }
 0x301   : > { %1712 = vst [vmem:[#allocation2 + $0x30] sm:$0x1f] %v1688_v49 }
 0x302   : > { %1713 = vst [vmem:[#allocation2 + $0x68] sm:$0x1f] %v1708_v50 }
 0x307   : > { %v2026_v55 = vpop.f32.mrf.mxu2 }
 0x308   : > { %v2045_v17 = vadd.f32 %v2044_v56, %v2026_v55  ;;  %v2235_v55 = vshrl.u32 %v18279_v44, 16  ;;  %v2287_v56 = vunpack.c.l.b16 %v12460_v40  ;;  %v16992_v44 = vld [vmem:[%s21087_s1 + $0x70] sm:$0xff]  ;;  %v12576_v40 = vld [vmem:[%s17864_s28 + $0x80] sm:$0x3] }
 0x30a   : > { %v2288_v2 = vpack.c.b16 %v2287_v56, %v2287_v56 }
 0x30c   : > { %12509 = vmatmul.msk.bf16.gmra.mxu1 %vm325_vm1, %v2288_v2 }
 0x310   : > { %v1914_v53 = vpop.f32.mrf.mxu0  ;;  %v18251_v54 = vpop.f32.mrf.mxu1 }
 0x311   : > { %v2029_v59 = vpop.f32.mrf.mxu2  ;;  %v1923_v31 = vadd.f32 %v1914_v53, %v1847_v20  ;;  %v16991_v20 = vld [vmem:[%s21087_s1 + $0x68] sm:$0xff] }
 0x312   : > { %v2048_v32 = vadd.f32 %v2047_v60, %v2029_v59 }
 0x313   : > { %v2000_v38 = vadd.f32 %v18251_v54, %v1923_v31  ;;  %v2430_v31 = vshrl.u32 %v2418_v45, 16 }
 0x315   : > { %v2003_v51 = vadd.f32 %v18289_v39, %v2000_v38 }
 0x317   : > { %v2009_v60 = vmul.f32 0.01, %v2003_v51  ;;  %vm2006_vm15 = vcmp.ge.f32.partialorder %v2003_v51, 0.0 }
 0x318   : > { %v1916_v57 = vpop.f32.mrf.mxu0  ;;  %v1993_v58 = vpop.f32.mrf.mxu1 }
 0x319   : > { %v2031_v63 = vpop.f32.mrf.mxu2  ;;  %v1924_v30 = vadd.f32 %v1916_v57, %v1849_v21  ;;  %v2012_v10 = vsel %vm2006_vm15, %v2003_v51, %v2009_v60  ;;  %v2419_v21 = vshrl.u32 %v16985_v13, 16 }
 0x31b   : > { %v2001_v36 = vadd.f32 %v1993_v58, %v1924_v30 }
 0x31c   : > { %12572 = vmatmul.msk.bf16.vlgmr.msrb.gmra.mxu1 %vm325_vm1, %v16985_v13 }
 0x31d   : > { %v2004_v48 = vadd.f32 %v18289_v39, %v2001_v36 }
 0x31f   : > { %v2010_v57 = vmul.f32 0.01, %v2004_v48  ;;  %vm2007_vm13 = vcmp.ge.f32.partialorder %v2004_v48, 0.0 }
 0x320   : > { %v1919_v61 = vpop.f32.mrf.mxu0  ;;  %v1996_v62 = vpop.f32.mrf.mxu1 }
 0x321   : > { %v1925_v22 = vadd.f32 %v1919_v61, %v1852_v47  ;;  %v2013_v7 = vsel %vm2007_vm13, %v2004_v48, %v2010_v57 }
 0x323   : > { %v2002_v33 = vadd.f32 %v1996_v62, %v1925_v22 }
 0x325   : > { %v2005_v41 = vadd.f32 %v18289_v39, %v2002_v33  ;;  %v12583_v33 = vld [vmem:[%s17864_s28 + $0x80] sm:$0x7] }
 0x326   : > { %v2573_v36 = vunpack.c.l.b16 %v12583_v33 }
 0x327   : > { %vm2008_vm10 = vcmp.ge.f32.partialorder %v2005_v41, 0.0  ;;  %v2011_v52 = vmul.f32 0.01, %v2005_v41 }
 0x328   : > { %v1921_v1 = vpop.f32.mrf.mxu0  ;;  %v1998_v4 = vpop.f32.mrf.mxu1 }
 0x329   : > { %v2014_v61 = vsel %vm2008_vm10, %v2005_v41, %v2011_v52  ;;  %v2237_v4 = vor.u32 %v2235_v55, %v2233_v25  ;;  %v12512_v25 = vld [vmem:[%s17864_s28 + $0x74] sm:$0x3] }
 0x32b   : > { %12491 = vmatmul.msk.bf16.gmra.mxu0 %vm325_vm1, %v2237_v4 }
 0x330   : > { %v2078_v8 = vpop.f32.mrf.mxu0  ;;  %v2123_v9 = vpop.f32.mrf.mxu1 }
 0x331   : > { %v2087_v27 = vadd.f32 %v2078_v8, %v2043_v16  ;;  %v2421_v16 = vshll.u32 %v16985_v13, 16 }
 0x333   : > { %v2132_v37 = vadd.f32 %v2123_v9, %v2087_v27  ;;  %v2423_v22 = vrot.slane %v2421_v16, 1  ;;  %v2353_v27 = vunpack.c.l.b16 %v12512_v25  ;;  %v12593_v16 = vld [vmem:[%s17864_s28 + $0x80] sm:$0x7] }
 0x335   : > { %v2135_v49 = vadd.f32 %v18289_v39, %v2132_v37  ;;  %v2355_v34 = vpack.c.b16 %v2353_v27, %v2353_v27  ;;  %v2574_v37 = vpack.c.b16 %v2573_v36, %v2573_v36 }
 0x337   : > { %v2141_v58 = vmul.f32 0.01, %v2135_v49  ;;  %vm2138_vm14 = vcmp.ge.f32.partialorder %v2135_v49, 0.0  ;;  %12573 = vmatmul.msk.bf16.gmra.mxu1 %vm325_vm1, %v2355_v34 }
 0x338   : > { %v2080_v23 = vpop.f32.mrf.mxu0  ;;  %v2125_v24 = vpop.f32.mrf.mxu1 }
 0x339   : > { %v2088_v28 = vadd.f32 %v2080_v23, %v2045_v17  ;;  %v2144_v8 = vsel %vm2138_vm14, %v2135_v49, %v2141_v58  ;;  %v18320_v17 = vld [vmem:[%s21091_s5] sm:$0x1f]  ;;  %v2426_v23 = vshll.u32 %v2418_v45, 16  ;;  %v2541_v49 = vunpack.c.l.b16 %v12576_v40  ;;  %v16998_v45 = vld [vmem:[%s21087_s1 + $0x10] sm:$0xff] }
 0x33a   : > { %v2147_v3 = vadd.f32 %v2144_v8, %v2012_v10 }
 0x33b   : > { %v2133_v35 = vadd.f32 %v2125_v24, %v2088_v28  ;;  %v16986_v24 = vld [vmem:[%s21087_s1 + $0x40] sm:$0xff]  ;;  %v2424_v28 = vor.u32 %v2423_v22, %v2419_v21  ;;  %v2428_v29 = vrot.slane %v2426_v23, 1  ;;  %v2543_v51 = vpack.c.b16 %v2541_v49, %v2541_v49  ;;  %v16995_v21 = vld [vmem:[%s17864_s28 + $0x78] sm:$0xff] }
 0x33c   : > { %v2702_v22 = vunpack.c.l.b16 %v12593_v16  ;;  %v2706_v25 = vshrl.u32 %v16995_v21, 16 }
 0x33d   : > { %v2136_v46 = vadd.f32 %v18289_v39, %v2133_v35  ;;  %v2429_v30 = vsel %vm285_vm0, %v2424_v28, %v2428_v29  ;;  %v16994_v35 = vld [vmem:[%s17864_s28 + $0x78] sm:$0xff]  ;;  %v2708_v28 = vshll.u32 %v16995_v21, 16 }
 0x33e   : > { %12570 = vmatmul.msk.bf16.vlgmr.msrb.gmra.mxu0 %vm325_vm1, %v2429_v30  ;;  %v2577_v38 = vshll.u32 %v16994_v35, 16  ;;  %v2575_v41 = vshrl.u32 %v16994_v35, 16 }
 0x33f   : > { %v2142_v53 = vmul.f32 0.01, %v2136_v46  ;;  %vm2139_vm11 = vcmp.ge.f32.partialorder %v2136_v46, 0.0  ;;  %v2710_v27 = vrot.slane %v2708_v28, 1 }
 0x340   : > { %v2083_v42 = vpop.f32.mrf.mxu0  ;;  %v2128_v43 = vpop.f32.mrf.mxu1 }
 0x341   : > { %v2089_v47 = vadd.f32 %v2083_v42, %v2048_v32  ;;  %v2145_v1 = vsel %vm2139_vm11, %v2136_v46, %v2142_v53  ;;  %v2432_v32 = vor.u32 %v2430_v31, %v2428_v29  ;;  %v2579_v42 = vrot.slane %v2577_v38, 1  ;;  %v17000_v29 = vld [vmem:[%s21087_s1 + $0x20] sm:$0xff] }
 0x342   : > { %v2148_v9 = vadd.f32 %v2145_v1, %v2013_v7  ;;  %v2711_v33 = vor.u32 %v2710_v27, %v2706_v25 }
 0x343   : > { %v2134_v50 = vadd.f32 %v2128_v43, %v2089_v47  ;;  %v2582_v43 = vshll.u32 %v2574_v37, 16  ;;  %v2580_v46 = vor.u32 %v2579_v42, %v2575_v41 }
 0x345   : > { %v2137_v54 = vadd.f32 %v18289_v39, %v2134_v50  ;;  %v2584_v47 = vrot.slane %v2582_v43, 1  ;;  %v2586_v50 = vshrl.u32 %v2574_v37, 16 }
 0x347   : > { %vm2140_vm12 = vcmp.ge.f32.partialorder %v2137_v54, 0.0  ;;  %v2143_v59 = vmul.f32 0.01, %v2137_v54  ;;  %v2585_v48 = vsel %vm285_vm0, %v2580_v46, %v2584_v47  ;;  %v2588_v52 = vor.u32 %v2586_v50, %v2584_v47  ;;  %v12592_v50 = vld [vmem:[%s17864_s28 + $0x80] sm:$0x3] }
 0x348   : > { %v2085_v62 = vpop.f32.mrf.mxu0  ;;  %v2130_v63 = vpop.f32.mrf.mxu1 }
 0x349   : > { %v2146_v0 = vsel %vm2140_vm12, %v2137_v54, %v2143_v59 }
 0x34a   : > { %v2149_v5 = vadd.f32 %v2146_v0, %v2014_v61 }
 0x34c   : > { %12454 = vmatpush.msk.msrb.mxu2 %vm702_vm8, %v2149_v5  ;;  %12456 = vmatpush.msk.msrb.mxu3 %vm702_vm8, %v2149_v5 }
 0x34e   : > { %2167 = vmatpush.msrb.mxu2 %v2148_v9  ;;  %2187 = vmatpush.msrb.mxu3 %v2148_v9 }
 0x34f   : > { %12571 = vmatmul.msk.bf16.gmra.mxu0 %vm325_vm1, %v2432_v32 }
 0x350   : > { %2168 = vmatpush.msrb.mxu2 %v2147_v3  ;;  %2188 = vmatpush.msrb.mxu3 %v2147_v3  ;;  %v18361_v53 = vpop.f32.mrf.mxu1  ;;  %v18363_v54 = vpop.f32.mrf.mxu0 }
 0x351   : > { %12455 = vmatmul.msk.f32.vlgmr.msrb.gmra.mxu2 %vm698_vm9, %v18320_v17  ;;  %12457 = vmatmul.msk.f32.vlgmr.msrb.gmra.mxu3 %vm698_vm9, %v18327_v18  ;;  %v2328_v42 = vadd.f32 %v18361_v53, %v18363_v54 }
 0x352   : > { %2390 = vmatpush.bf16.msra.mxu2 %v16989_v11  ;;  %2467 = vmatpush.bf16.msra.mxu3 %v16993_v12 }
 0x356   : > { %2391 = vmatpush.bf16.msra.mxu2 %v16988_v15  ;;  %2468 = vmatpush.bf16.msra.mxu3 %v16992_v44 }
 0x358   : > { %v18365_v55 = vpop.f32.mrf.mxu1  ;;  %v18367_v56 = vpop.f32.mrf.mxu0 }
 0x359   : > { %v2330_v37 = vadd.f32 %v18365_v55, %v18367_v56  ;;  %v2769_v55 = vunpack.c.l.b16 %v12592_v50 }
 0x35a   : > { %2392 = vmatpush.bf16.msra.mxu2 %v16987_v19  ;;  %2469 = vmatpush.bf16.msra.mxu3 %v16991_v20 }
 0x35e   : > { %2393 = vmatpush.bf16.msra.mxu2 %v16986_v24  ;;  %2470 = vmatpush.bf16.msra.mxu3 %v16990_v26 }
 0x361   : > { %12541 = vmatmul.msk.bf16.vlgmr.msra.gmra.mxu2 %vm325_vm1, %v16985_v13  ;;  %12568 = vmatmul.msk.bf16.vlgmr.msra.gmra.mxu3 %vm325_vm1, %v2429_v30  ;;  %v16996_v30 = vld [vmem:[%s21087_s1] sm:$0xff] }
 0x362   : > { %2554 = vmatpush.bf16.msrb.mxu2 %v16989_v11  ;;  %2599 = vmatpush.bf16.msrb.mxu3 %v16993_v12  ;;  %v17003_v11 = vld [vmem:[%s21087_s1 + $0x38] sm:$0xff] }
 0x363   : > { %v16999_v12 = vld [vmem:[%s21087_s1 + $0x18] sm:$0xff] }
 0x366   : > { %2555 = vmatpush.bf16.msrb.mxu2 %v16988_v15  ;;  %2600 = vmatpush.bf16.msrb.mxu3 %v16992_v44  ;;  %v17002_v44 = vld [vmem:[%s21087_s1 + $0x30] sm:$0xff] }
 0x36a   : > { %2556 = vmatpush.bf16.msrb.mxu2 %v16987_v19  ;;  %2601 = vmatpush.bf16.msrb.mxu3 %v16991_v20  ;;  %v17001_v19 = vld [vmem:[%s21087_s1 + $0x28] sm:$0xff] }
 0x36b   : > { %v16997_v20 = vld [vmem:[%s21087_s1 + $0x8] sm:$0xff] }
 0x36e   : > { %2557 = vmatpush.bf16.msrb.mxu2 %v16986_v24  ;;  %2602 = vmatpush.bf16.msrb.mxu3 %v16990_v26  ;;  %v2704_v26 = vpack.c.b16 %v2702_v22, %v2702_v22 }
 0x370   : > { %v2713_v31 = vshll.u32 %v2704_v26, 16 }
 0x371   : > { %12542 = vmatmul.msk.bf16.gmra.mxu2 %vm325_vm1, %v2355_v34  ;;  %12569 = vmatmul.msk.bf16.gmra.mxu3 %vm325_vm1, %v2432_v32 }
 0x372   : > { %2754 = vmatpush.bf16.msra.mxu2 %v17003_v11  ;;  %2804 = vmatpush.bf16.msra.mxu3 %v16999_v12  ;;  %v2715_v34 = vrot.slane %v2713_v31, 1 }
 0x374   : > { %v2716_v32 = vsel %vm285_vm0, %v2711_v33, %v2715_v34  ;;  %v17008_v33 = vld [vmem:[%s21087_s1 + $0x58] sm:$0xff] }
 0x376   : > { %2755 = vmatpush.bf16.msra.mxu2 %v17002_v44  ;;  %2805 = vmatpush.bf16.msra.mxu3 %v16998_v45 }
 0x37a   : > { %2756 = vmatpush.bf16.msra.mxu2 %v17001_v19  ;;  %2806 = vmatpush.bf16.msra.mxu3 %v16997_v20 }
 0x37e   : > { %2757 = vmatpush.bf16.msra.mxu2 %v17000_v29  ;;  %2807 = vmatpush.bf16.msra.mxu3 %v16996_v30 }
 0x381   : > { %12581 = vmatmul.msk.bf16.vlgmr.msrb.gmra.mxu2 %vm325_vm1, %v16994_v35  ;;  %12584 = vmatmul.msk.bf16.vlgmr.msrb.gmra.mxu3 %vm325_vm1, %v2585_v48 }
 0x382   : > { %2982 = vmatpush.bf16.msrb.mxu2 %v17003_v11  ;;  %3000 = vmatpush.bf16.msrb.mxu3 %v16999_v12 }
 0x386   : > { %2983 = vmatpush.bf16.msrb.mxu2 %v17002_v44  ;;  %3001 = vmatpush.bf16.msrb.mxu3 %v16998_v45 }
 0x389   : > { %v2332_v58 = vpop.f32.mrf.mxu1 }
 0x38a   : > { %2984 = vmatpush.bf16.msrb.mxu2 %v17001_v19  ;;  %3002 = vmatpush.bf16.msrb.mxu3 %v16997_v20 }
 0x38e   : > { %2985 = vmatpush.bf16.msrb.mxu2 %v17000_v29  ;;  %3003 = vmatpush.bf16.msrb.mxu3 %v16996_v30 }
 0x391   : > { %12582 = vmatmul.msk.bf16.gmra.mxu2 %vm325_vm1, %v2543_v51  ;;  %12585 = vmatmul.msk.bf16.gmra.mxu3 %vm325_vm1, %v2588_v52  ;;  %v2334_v61 = vpop.f32.mrf.mxu1  ;;  %v2717_v52 = vshrl.u32 %v2704_v26, 16 }
 0x399   : > { %v2523_v1 = vpop.f32.mrf.mxu1 }
 0x3a1   : > { %v2525_v6 = vpop.f32.mrf.mxu1  ;;  %12622 = vmatmul.msk.bf16.vlgmr.msra.gmra.mxu2 %vm325_vm1, %v2716_v32  ;;  %12640 = vmatmul.msk.bf16.vlgmr.msra.gmra.mxu3 %vm325_vm1, %v16995_v21 }
 0x3a8   : > { %v2282_v57 = vpop.f32.mrf.mxu0 }
 0x3a9   : > { %v18369_v59 = vadd.f32 %v2332_v58, %v2282_v57  ;;  %v2719_v58 = vor.u32 %v2717_v52, %v2715_v34  ;;  %v17012_v34 = vld [vmem:[%s21087_s1 + $0x78] sm:$0xff] }
 0x3aa   : > { %v12715_v52 = vld [vmem:[%s17864_s28 + $0x98] sm:$0x7] }
 0x3b0   : > { %v2284_v60 = vpop.f32.mrf.mxu0 }
 0x3b1   : > { %v2770_v60 = vpack.c.b16 %v2769_v55, %v2769_v55  ;;  %12623 = vmatmul.msk.bf16.gmra.mxu2 %vm325_vm1, %v2719_v58  ;;  %v17013_v55 = vld [vmem:[%s17864_s28 + $0x90] sm:$0xff] }
 0x3b3   : > { %12641 = vmatmul.msk.bf16.gmra.mxu3 %vm325_vm1, %v2770_v60 }
 0x3b4   : > { %v2528_v10 = vpop.f32.mrf.mxu1 }
 0x3bb   : > { %v2505_v0 = vpop.f32.mrf.mxu0 }
 0x3bc   : > { %v2530_v15 = vpop.f32.mrf.mxu1  ;;  %v2524_v38 = vadd.f32 %v2523_v1, %v2505_v0 }
 0x3c3   : > { %v2507_v5 = vpop.f32.mrf.mxu0 }
 0x3c4   : > { %v2526_v41 = vadd.f32 %v2525_v6, %v2507_v5 }
 0x3cc   : > { %v18375_v9 = vpop.f32.mrf.mxu0 }
 0x3cd   : > { %v2529_v53 = vadd.f32 %v2528_v10, %v18375_v9 }
 0x3d4   : > { %v2170_v62 = vpop.f32.mrf.mxu2  ;;  %v2190_v63 = vpop.f32.mrf.mxu3 }
 0x3d5   : > { %2193 = vst [vmem:[#allocation2 + $0x78] sm:$0x1f] %v2170_v62  ;;  %v2512_v3 = vpop.f32.mrf.mxu0 }
 0x3d6   : > { %2194 = vst [vmem:[#allocation2 + $0x80] sm:$0x1f] %v2190_v63 }
 0x3e4   : > { %v18371_v4 = vpop.f32.mrf.mxu2  ;;  %v18373_v2 = vpop.f32.mrf.mxu3 }
 0x3e5   : > { %v2404_v51 = vadd.f32 %v18371_v4, %v2328_v42  ;;  %v17006_v42 = vld [vmem:[%s21087_s1 + $0x48] sm:$0xff] }
 0x3e7   : > { %v2481_v62 = vadd.f32 %v18373_v2, %v2404_v51 }
 0x3e9   : > { %v2484_v2 = vadd.f32 %v18289_v39, %v2481_v62 }
 0x3eb   : > { %v2490_v16 = vmul.f32 0.01, %v2484_v2  ;;  %vm2487_vm7 = vcmp.ge.f32.partialorder %v2484_v2, 0.0 }
 0x3ec   : > { %v2397_v7 = vpop.f32.mrf.mxu2  ;;  %v2474_v8 = vpop.f32.mrf.mxu3 }
 0x3ed   : > { %v2405_v47 = vadd.f32 %v2397_v7, %v2330_v37  ;;  %v18422_v7 = vld [vmem:[%s17864_s28 + $0x84] sm:$0xff]  ;;  %v2493_v31 = vsel %vm2487_vm7, %v2484_v2, %v2490_v16  ;;  %v17007_v37 = vld [vmem:[%s21087_s1 + $0x50] sm:$0xff] }
 0x3ee   : > { %v2903_v15 = vshll.u32 %v18422_v7, 16  ;;  %v2901_v26 = vshrl.u32 %v18422_v7, 16  ;;  %12704 = vmatmul.msk.bf16.vlgmr.msrb.gmra.mxu3 %vm325_vm1, %v18422_v7 }
 0x3ef   : > { %v2482_v56 = vadd.f32 %v2474_v8, %v2405_v47  ;;  %v17009_v47 = vld [vmem:[%s21087_s1 + $0x60] sm:$0xff] }
 0x3f0   : > { %v2905_v28 = vrot.slane %v2903_v15, 1 }
 0x3f1   : > { %v2485_v1 = vadd.f32 %v18289_v39, %v2482_v56  ;;  %v3055_v56 = vunpack.c.l.b16 %v12715_v52 }
 0x3f3   : > { %v2491_v11 = vmul.f32 0.01, %v2485_v1  ;;  %vm2488_vm5 = vcmp.ge.f32.partialorder %v2485_v1, 0.0 }
 0x3f4   : > { %v2400_v13 = vpop.f32.mrf.mxu2  ;;  %v2477_v14 = vpop.f32.mrf.mxu3 }
 0x3f5   : > { %v2406_v48 = vadd.f32 %v2400_v13, %v18369_v59  ;;  %v12675_v59 = vld [vmem:[%s17864_s28 + $0x8c] sm:$0x7]  ;;  %v2494_v30 = vsel %vm2488_vm5, %v2485_v1, %v2491_v11 }
 0x3f6   : > { %v2899_v8 = vunpack.c.l.b16 %v12675_v59 }
 0x3f7   : > { %v2483_v57 = vadd.f32 %v2477_v14, %v2406_v48  ;;  %v12644_v48 = vld [vmem:[%s17864_s28 + $0x8c] sm:$0x3] }
 0x3f8   : > { %v2900_v3 = vpack.c.b16 %v2899_v8, %v2899_v8 }
 0x3f9   : > { %v2486_v4 = vadd.f32 %v18289_v39, %v2483_v57  ;;  %v3056_v57 = vpack.c.b16 %v3055_v56, %v3055_v56 }
 0x3fa   : > { %v2908_v29 = vshll.u32 %v2900_v3, 16 }
 0x3fb   : > { %v2492_v12 = vmul.f32 0.01, %v2486_v4  ;;  %vm2489_vm2 = vcmp.ge.f32.partialorder %v2486_v4, 0.0  ;;  %v3064_v60 = vshll.u32 %v3056_v57, 16  ;;  %v3068_v1 = vshrl.u32 %v3056_v57, 16 }
 0x3fc   : > { %v2402_v23 = vpop.f32.mrf.mxu2  ;;  %v2479_v24 = vpop.f32.mrf.mxu3 }
 0x3fd   : > { %v2495_v21 = vsel %vm2489_vm2, %v2486_v4, %v2492_v12  ;;  %v3066_v59 = vrot.slane %v3064_v60, 1 }
 0x404   : > { %v2559_v35 = vpop.f32.mrf.mxu2  ;;  %v2604_v36 = vpop.f32.mrf.mxu3 }
 0x405   : > { %v2568_v49 = vadd.f32 %v2559_v35, %v2524_v38  ;;  %v2906_v35 = vor.u32 %v2905_v28, %v2901_v26  ;;  %v17011_v38 = vld [vmem:[%s21087_s1 + $0x70] sm:$0xff] }
 0x407   : > { %v2613_v61 = vadd.f32 %v2604_v36, %v2568_v49  ;;  %v2910_v36 = vrot.slane %v2908_v29, 1  ;;  %v2912_v49 = vshrl.u32 %v2900_v3, 16 }
 0x409   : > { %v2616_v9 = vadd.f32 %v18289_v39, %v2613_v61  ;;  %v2914_v51 = vor.u32 %v2912_v49, %v2910_v36 }
 0x40b   : > { %v2622_v44 = vmul.f32 0.01, %v2616_v9  ;;  %vm2619_vm6 = vcmp.ge.f32.partialorder %v2616_v9, 0.0 }
 0x40c   : > { %v2561_v43 = vpop.f32.mrf.mxu2  ;;  %v2606_v46 = vpop.f32.mrf.mxu3 }
 0x40d   : > { %v2569_v40 = vadd.f32 %v2561_v43, %v2526_v41  ;;  %v2625_v25 = vsel %vm2619_vm6, %v2616_v9, %v2622_v44  ;;  %v2911_v41 = vsel %vm285_vm0, %v2906_v35, %v2910_v36  ;;  %v17010_v43 = vld [vmem:[%s21087_s1 + $0x68] sm:$0xff] }
 0x40e   : > { %v2628_v32 = vadd.f32 %v2625_v25, %v2493_v31  ;;  %12702 = vmatmul.msk.bf16.vlgmr.msrb.gmra.mxu2 %vm325_vm1, %v2911_v41  ;;  %v17022_v31 = vld [vmem:[%s21087_s1 + $0x38] sm:$0xff] }
 0x40f   : > { %v2614_v54 = vadd.f32 %v2606_v46, %v2569_v40  ;;  %v17005_v46 = vld [vmem:[%s21087_s1 + $0x40] sm:$0xff]  ;;  %v2835_v40 = vunpack.c.l.b16 %v12644_v48 }
 0x411   : > { %v2617_v5 = vadd.f32 %v18289_v39, %v2614_v54  ;;  %v2837_v50 = vpack.c.b16 %v2835_v40, %v2835_v40  ;;  %v3057_v54 = vshrl.u32 %v17013_v55, 16 }
 0x413   : > { %v2623_v13 = vmul.f32 0.01, %v2617_v5  ;;  %vm2620_vm3 = vcmp.ge.f32.partialorder %v2617_v5, 0.0  ;;  %12705 = vmatmul.msk.bf16.gmra.mxu3 %vm325_vm1, %v2837_v50 }
 0x414   : > { %v2564_v63 = vpop.f32.mrf.mxu2  ;;  %v2609_v0 = vpop.f32.mrf.mxu3 }
 0x415   : > { %v2570_v6 = vadd.f32 %v2564_v63, %v2529_v53  ;;  %v2626_v23 = vsel %vm2620_vm3, %v2617_v5, %v2623_v13  ;;  %v3059_v53 = vshll.u32 %v17013_v55, 16  ;;  %v12708_v63 = vld [vmem:[%s17864_s28 + $0x98] sm:$0x3]  ;;  %v3070_v5 = vor.u32 %v3068_v1, %v3066_v59 }
 0x416   : > { %v2629_v27 = vadd.f32 %v2626_v23, %v2494_v30 }
 0x417   : > { %v2615_v10 = vadd.f32 %v2609_v0, %v2570_v6  ;;  %v3061_v58 = vrot.slane %v3059_v53, 1  ;;  %v3023_v0 = vunpack.c.l.b16 %v12708_v63 }
 0x419   : > { %v2618_v14 = vadd.f32 %v18289_v39, %v2615_v10  ;;  %v3062_v61 = vor.u32 %v3061_v58, %v3057_v54  ;;  %v3025_v4 = vpack.c.b16 %v3023_v0, %v3023_v0 }
 0x41b   : > { %vm2621_vm4 = vcmp.ge.f32.partialorder %v2618_v14, 0.0  ;;  %v2624_v45 = vmul.f32 0.01, %v2618_v14  ;;  %v3067_v62 = vsel %vm285_vm0, %v3062_v61, %v3066_v59 }
 0x41c   : > { %v2566_v19 = vpop.f32.mrf.mxu2  ;;  %v2611_v20 = vpop.f32.mrf.mxu3 }
 0x41d   : > { %v2627_v22 = vsel %vm2621_vm4, %v2618_v14, %v2624_v45 }
 0x41e   : > { %v2630_v24 = vadd.f32 %v2627_v22, %v2495_v21  ;;  %12703 = vmatmul.msk.bf16.gmra.mxu2 %vm325_vm1, %v2914_v51 }
 0x420   : > { %12586 = vmatpush.msk.msra.mxu0 %vm702_vm8, %v2630_v24  ;;  %12588 = vmatpush.msk.msra.mxu1 %vm702_vm8, %v2630_v24 }
 0x422   : > { %2648 = vmatpush.msra.mxu0 %v2629_v27  ;;  %2668 = vmatpush.msra.mxu1 %v2629_v27 }
 0x424   : > { %2649 = vmatpush.msra.mxu0 %v2628_v32  ;;  %2669 = vmatpush.msra.mxu1 %v2628_v32  ;;  %v2759_v6 = vpop.f32.mrf.mxu2  ;;  %v17017_v32 = vld [vmem:[%s21087_s1 + $0x10] sm:$0xff] }
 0x425   : > { %12587 = vmatmul.msk.f32.vlgmr.msra.gmra.mxu0 %vm698_vm9, %v18320_v17  ;;  %12589 = vmatmul.msk.f32.vlgmr.msra.gmra.mxu1 %vm698_vm9, %v18327_v18 }
 0x426   : > { %2872 = vmatpush.bf16.msrb.mxu0 %v17008_v33  ;;  %2949 = vmatpush.bf16.msrb.mxu1 %v17012_v34 }
 0x42a   : > { %2873 = vmatpush.bf16.msrb.mxu0 %v17007_v37  ;;  %2950 = vmatpush.bf16.msrb.mxu1 %v17011_v38 }
 0x42c   : > { %v2761_v8 = vpop.f32.mrf.mxu2 }
 0x42e   : > { %2874 = vmatpush.bf16.msrb.mxu0 %v17006_v42  ;;  %2951 = vmatpush.bf16.msrb.mxu1 %v17010_v43 }
 0x432   : > { %2875 = vmatpush.bf16.msrb.mxu0 %v17005_v46  ;;  %2952 = vmatpush.bf16.msrb.mxu1 %v17009_v47 }
 0x434   : > { %v2764_v10 = vpop.f32.mrf.mxu2 }
 0x435   : > { %12673 = vmatmul.msk.bf16.vlgmr.msrb.gmra.mxu0 %vm325_vm1, %v18422_v7  ;;  %12700 = vmatmul.msk.bf16.vlgmr.msrb.gmra.mxu1 %vm325_vm1, %v2911_v41  ;;  %v2809_v7 = vpop.f32.mrf.mxu3  ;;  %v12725_v41 = vld [vmem:[%s17864_s28 + $0x98] sm:$0x7] }
 0x436   : > { %3036 = vmatpush.bf16.msra.mxu0 %v17008_v33  ;;  %3081 = vmatpush.bf16.msra.mxu1 %v17012_v34  ;;  %v17018_v33 = vld [vmem:[%s21087_s1 + $0x18] sm:$0xff]  ;;  %v17021_v34 = vld [vmem:[%s21087_s1 + $0x30] sm:$0xff] }
 0x43a   : > { %3037 = vmatpush.bf16.msra.mxu0 %v17007_v37  ;;  %3082 = vmatpush.bf16.msra.mxu1 %v17011_v38  ;;  %v17020_v37 = vld [vmem:[%s21087_s1 + $0x28] sm:$0xff] }
 0x43b   : > { %v17016_v38 = vld [vmem:[%s21087_s1 + $0x8] sm:$0xff] }
 0x43c   : > { %v2766_v12 = vpop.f32.mrf.mxu2 }
 0x43d   : > { %v2811_v9 = vpop.f32.mrf.mxu3 }
 0x43e   : > { %3038 = vmatpush.bf16.msra.mxu0 %v17006_v42  ;;  %3083 = vmatpush.bf16.msra.mxu1 %v17010_v43  ;;  %v17014_v42 = vld [vmem:[%s17864_s28 + $0x90] sm:$0xff]  ;;  %v3183_v43 = vunpack.c.l.b16 %v12725_v41  ;;  %v2812_v56 = vadd.f32 %v2811_v9, %v2761_v8  ;;  %v17027_v41 = vld [vmem:[%s21087_s1 + $0x58] sm:$0xff] }
 0x43f   : > { %v3189_v40 = vshll.u32 %v17014_v42, 16 }
 0x440   : > { %v18507_v48 = vpack.c.b16 %v3183_v43, %v3183_v43  ;;  %v17023_v43 = vld [vmem:[%s17864_s28 + $0x9c] sm:$0xff] }
 0x441   : > { %v3191_v52 = vrot.slane %v3189_v40, 1  ;;  %v17030_v40 = vld [vmem:[%s21087_s1 + $0x70] sm:$0xff] }
 0x442   : > { %3039 = vmatpush.bf16.msra.mxu0 %v17005_v46  ;;  %3084 = vmatpush.bf16.msra.mxu1 %v17009_v47  ;;  %v17019_v46 = vld [vmem:[%s21087_s1 + $0x20] sm:$0xff]  ;;  %v3194_v58 = vshll.u32 %v18507_v48, 16 }
 0x443   : > { %v17015_v47 = vld [vmem:[%s21087_s1] sm:$0xff] }
 0x445   : > { %12674 = vmatmul.msk.bf16.gmra.mxu0 %vm325_vm1, %v2837_v50  ;;  %12701 = vmatmul.msk.bf16.gmra.mxu1 %vm325_vm1, %v2914_v51  ;;  %v2814_v2 = vpop.f32.mrf.mxu3  ;;  %v3187_v51 = vshrl.u32 %v17014_v42, 16 }
 0x446   : > { %v2815_v11 = vadd.f32 %v2814_v2, %v2764_v10  ;;  %3235 = vmatpush.bf16.msrb.mxu0 %v17022_v31  ;;  %3285 = vmatpush.bf16.msrb.mxu1 %v17018_v33 }
 0x447   : > { %v3192_v61 = vor.u32 %v3191_v52, %v3187_v51  ;;  %v17025_v51 = vld [vmem:[%s21087_s1 + $0x48] sm:$0xff] }
 0x448   : > { %v17029_v52 = vld [vmem:[%s21087_s1 + $0x68] sm:$0xff] }
 0x44a   : > { %3236 = vmatpush.bf16.msrb.mxu0 %v17021_v34  ;;  %3286 = vmatpush.bf16.msrb.mxu1 %v17017_v32 }
 0x44d   : > { %v2816_v13 = vpop.f32.mrf.mxu3 }
 0x44e   : > { %3237 = vmatpush.bf16.msrb.mxu0 %v17020_v37  ;;  %3287 = vmatpush.bf16.msrb.mxu1 %v17016_v38 }
 0x452   : > { %3238 = vmatpush.bf16.msrb.mxu0 %v17019_v46  ;;  %3288 = vmatpush.bf16.msrb.mxu1 %v17015_v47 }
 0x455   : > { %12713 = vmatmul.msk.bf16.vlgmr.msra.gmra.mxu0 %vm325_vm1, %v17013_v55  ;;  %12716 = vmatmul.msk.bf16.vlgmr.msra.gmra.mxu1 %vm325_vm1, %v3067_v62  ;;  %v2810_v55 = vadd.f32 %v2809_v7, %v2759_v6  ;;  %v3196_v62 = vrot.slane %v3194_v58, 1 }
 0x456   : > { %3463 = vmatpush.bf16.msra.mxu0 %v17022_v31  ;;  %3481 = vmatpush.bf16.msra.mxu1 %v17018_v33 }
 0x45a   : > { %3464 = vmatpush.bf16.msra.mxu0 %v17021_v34  ;;  %3482 = vmatpush.bf16.msra.mxu1 %v17017_v32  ;;  %v12807_v32 = vld [vmem:[%s17864_s28 + $0xa4] sm:$0x7] }
 0x45e   : > { %3465 = vmatpush.bf16.msra.mxu0 %v17020_v37  ;;  %3483 = vmatpush.bf16.msra.mxu1 %v17016_v38 }
 0x462   : > { %3466 = vmatpush.bf16.msra.mxu0 %v17019_v46  ;;  %3484 = vmatpush.bf16.msra.mxu1 %v17015_v47  ;;  %v3380_v46 = vunpack.c.l.b16 %v12807_v32 }
 0x465   : > { %12714 = vmatmul.msk.bf16.gmra.mxu0 %vm325_vm1, %v3025_v4  ;;  %12717 = vmatmul.msk.bf16.gmra.mxu1 %vm325_vm1, %v3070_v5  ;;  %v3197_v4 = vsel %vm285_vm0, %v3192_v61, %v3196_v62 }
 0x471   : > { %v3005_v44 = vpop.f32.mrf.mxu3 }
 0x475   : > { %12772 = vmatmul.msk.bf16.vlgmr.msrb.gmra.mxu1 %vm325_vm1, %v17014_v42  ;;  %12754 = vmatmul.msk.bf16.vlgmr.msrb.gmra.mxu0 %vm325_vm1, %v3197_v4  ;;  %v17031_v42 = vld [vmem:[%s21087_s1 + $0x78] sm:$0xff] }
 0x479   : > { %v3007_v20 = vpop.f32.mrf.mxu3 }
 0x491   : > { %v2987_v15 = vpop.f32.mrf.mxu2 }
 0x492   : > { %v3006_v49 = vadd.f32 %v3005_v44, %v2987_v15 }
 0x496   : > { %v3010_v24 = vpop.f32.mrf.mxu3 }
 0x499   : > { %v2989_v19 = vpop.f32.mrf.mxu2 }
 0x49a   : > { %v3008_v50 = vadd.f32 %v3007_v20, %v2989_v19 }
 0x49e   : > { %v3012_v30 = vpop.f32.mrf.mxu3 }
 0x4a1   : > { %v2992_v23 = vpop.f32.mrf.mxu2 }
 0x4a2   : > { %v2651_v14 = vpop.f32.mrf.mxu0  ;;  %v2671_v3 = vpop.f32.mrf.mxu1  ;;  %v3011_v5 = vadd.f32 %v3010_v24, %v2992_v23 }
 0x4a3   : > { %2675 = vst [vmem:[#allocation2 + $0x8] sm:$0x1f] %v2651_v14 }
 0x4a4   : > { %2676 = vst [vmem:[#allocation2 + $0x88] sm:$0x1f] %v2671_v3  ;;  %v12724_v3 = vld [vmem:[%s17864_s28 + $0x98] sm:$0x3] }
 0x4a9   : > { %v2994_v29 = vpop.f32.mrf.mxu2 }
 0x4b2   : > { %v2877_v45 = vpop.f32.mrf.mxu0  ;;  %v18479_v16 = vpop.f32.mrf.mxu1 }
 0x4b3   : > { %v2886_v0 = vadd.f32 %v2877_v45, %v2810_v55  ;;  %v3382_v55 = vshrl.u32 %v17023_v43, 16 }
 0x4b5   : > { %v2963_v9 = vadd.f32 %v18479_v16, %v2886_v0 }
 0x4b7   : > { %v2966_v45 = vadd.f32 %v18289_v39, %v2963_v9 }
 0x4b9   : > { %vm2969_vm15 = vcmp.ge.f32.partialorder %v2966_v45, 0.0 }
 0x4ba   : > { %v2879_v21 = vpop.f32.mrf.mxu0  ;;  %v2956_v22 = vpop.f32.mrf.mxu1 }
 0x4bb   : > { %v2887_v59 = vadd.f32 %v2879_v21, %v2812_v56  ;;  %v3198_v21 = vshrl.u32 %v18507_v48, 16  ;;  %v17026_v48 = vld [vmem:[%s21087_s1 + $0x50] sm:$0xff] }
 0x4bd   : > { %v2964_v7 = vadd.f32 %v2956_v22, %v2887_v59  ;;  %v3250_v22 = vunpack.c.l.b16 %v12724_v3  ;;  %v3200_v31 = vor.u32 %v3198_v21, %v3196_v62  ;;  %v12847_v62 = vld [vmem:[%s17864_s28 + $0xb0] sm:$0x7] }
 0x4be   : > { %v3536_v4 = vunpack.c.l.b16 %v12847_v62 }
 0x4bf   : > { %v2967_v14 = vadd.f32 %v18289_v39, %v2964_v7  ;;  %v3251_v33 = vpack.c.b16 %v3250_v22, %v3250_v22  ;;  %12755 = vmatmul.msk.bf16.gmra.mxu0 %vm325_vm1, %v3200_v31 }
 0x4c1   : > { %v2973_v23 = vmul.f32 0.01, %v2967_v14  ;;  %vm2970_vm13 = vcmp.ge.f32.partialorder %v2967_v14, 0.0  ;;  %12773 = vmatmul.msk.bf16.gmra.mxu1 %vm325_vm1, %v3251_v33 }
 0x4c2   : > { %v2882_v26 = vpop.f32.mrf.mxu0  ;;  %v2959_v28 = vpop.f32.mrf.mxu1 }
 0x4c3   : > { %v2888_v57 = vadd.f32 %v2882_v26, %v2815_v11 }
 0x4c5   : > { %v2965_v1 = vadd.f32 %v2959_v28, %v2888_v57  ;;  %v2972_v28 = vmul.f32 0.01, %v2966_v45 }
 0x4c7   : > { %v2968_v10 = vadd.f32 %v18289_v39, %v2965_v1  ;;  %v2975_v38 = vsel %vm2969_vm15, %v2966_v45, %v2972_v28  ;;  %v17032_v1 = vld [vmem:[%s17864_s28 + $0xa8] sm:$0xff] }
 0x4c8   : > { %v3538_v7 = vshrl.u32 %v17032_v1, 16 }
 0x4c9   : > { %vm2971_vm10 = vcmp.ge.f32.partialorder %v2968_v10, 0.0  ;;  %v2974_v19 = vmul.f32 0.01, %v2968_v10 }
 0x4ca   : > { %v2884_v25 = vpop.f32.mrf.mxu0  ;;  %v2961_v27 = vpop.f32.mrf.mxu1 }
 0x4cb   : > { %v2977_v29 = vsel %vm2971_vm10, %v2968_v10, %v2974_v19 }
 0x4d1   : > { %12836 = vmatmul.msk.bf16.vlgmr.msra.gmra.mxu1 %vm325_vm1, %v17023_v43 }
 0x4d2   : > { %v3041_v35 = vpop.f32.mrf.mxu0  ;;  %v3086_v36 = vpop.f32.mrf.mxu1 }
 0x4d3   : > { %v3050_v63 = vadd.f32 %v3041_v35, %v3006_v49  ;;  %v2976_v35 = vsel %vm2970_vm13, %v2967_v14, %v2973_v23  ;;  %v3381_v49 = vpack.c.b16 %v3380_v46, %v3380_v46  ;;  %v17040_v46 = vld [vmem:[%s21087_s1 + $0x30] sm:$0xff] }
 0x4d5   : > { %v3095_v8 = vadd.f32 %v3086_v36, %v3050_v63  ;;  %v3389_v57 = vshll.u32 %v3381_v49, 16  ;;  %v3393_v59 = vshrl.u32 %v3381_v49, 16  ;;  %v17035_v49 = vld [vmem:[%s21087_s1 + $0x8] sm:$0xff] }
 0x4d7   : > { %v3098_v15 = vadd.f32 %v18289_v39, %v3095_v8 }
 0x4d9   : > { %v3104_v24 = vmul.f32 0.01, %v3098_v15  ;;  %vm3101_vm14 = vcmp.ge.f32.partialorder %v3098_v15, 0.0 }
 0x4da   : > { %v3043_v53 = vpop.f32.mrf.mxu0  ;;  %v3088_v54 = vpop.f32.mrf.mxu1 }
 0x4db   : > { %v3051_v60 = vadd.f32 %v3043_v53, %v3008_v50  ;;  %v3107_v36 = vsel %vm3101_vm14, %v3098_v15, %v3104_v24  ;;  %v3384_v50 = vshll.u32 %v17023_v43, 16 }
 0x4dc   : > { %v3110_v47 = vadd.f32 %v3107_v36, %v2975_v38  ;;  %v17041_v36 = vld [vmem:[%s21087_s1 + $0x38] sm:$0xff] }
 0x4dd   : > { %v3096_v6 = vadd.f32 %v3088_v54, %v3051_v60  ;;  %v3386_v56 = vrot.slane %v3384_v50, 1  ;;  %v3391_v54 = vrot.slane %v3389_v57, 1  ;;  %v12776_v60 = vld [vmem:[%s17864_s28 + $0xa4] sm:$0x3]  ;;  %v17033_v50 = vld [vmem:[%s17864_s28 + $0xa8] sm:$0xff] }
 0x4de   : > { %v3316_v61 = vunpack.c.l.b16 %v12776_v60  ;;  %v3671_v57 = vshll.u32 %v17033_v50, 16 }
 0x4df   : > { %v3099_v12 = vadd.f32 %v18289_v39, %v3096_v6  ;;  %v3387_v53 = vor.u32 %v3386_v56, %v3382_v55  ;;  %v3395_v0 = vor.u32 %v3393_v59, %v3391_v54  ;;  %v3540_v6 = vshll.u32 %v17032_v1, 16 }
 0x4e0   : > { %v3318_v63 = vpack.c.b16 %v3316_v61, %v3316_v61 }
 0x4e1   : > { %v3105_v16 = vmul.f32 0.01, %v3099_v12  ;;  %vm3102_vm11 = vcmp.ge.f32.partialorder %v3099_v12, 0.0  ;;  %v3392_v58 = vsel %vm285_vm0, %v3387_v53, %v3391_v54  ;;  %v3542_v8 = vrot.slane %v3540_v6, 1 }
 0x4e2   : > { %v3046_v2 = vpop.f32.mrf.mxu0  ;;  %v3091_v11 = vpop.f32.mrf.mxu1  ;;  %12834 = vmatmul.msk.bf16.vlgmr.msra.gmra.mxu0 %vm325_vm1, %v3392_v58  ;;  %12837 = vmatmul.msk.bf16.gmra.mxu1 %vm325_vm1, %v3318_v63  ;;  %v3669_v53 = vshrl.u32 %v17033_v50, 16  ;;  %v3673_v54 = vrot.slane %v3671_v57, 1 }
 0x4e3   : > { %v3052_v13 = vadd.f32 %v3046_v2, %v3011_v5  ;;  %v3537_v5 = vpack.c.b16 %v3536_v4, %v3536_v4  ;;  %v3543_v10 = vor.u32 %v3542_v8, %v3538_v7 }
 0x4e4   : > { %v3674_v60 = vor.u32 %v3673_v54, %v3669_v53  ;;  %v17046_v54 = vld [vmem:[%s21087_s1 + $0x58] sm:$0xff] }
 0x4e5   : > { %v3097_v44 = vadd.f32 %v3091_v11, %v3052_v13  ;;  %v3545_v9 = vshll.u32 %v3537_v5, 16  ;;  %v3549_v14 = vshrl.u32 %v3537_v5, 16 }
 0x4e7   : > { %v3100_v20 = vadd.f32 %v18289_v39, %v3097_v44  ;;  %v3108_v39 = vsel %vm3102_vm11, %v3099_v12, %v3105_v16  ;;  %v3547_v2 = vrot.slane %v3545_v9, 1  ;;  %v12840_v12 = vld [vmem:[%s17864_s28 + $0xb0] sm:$0x3] }
 0x4e8   : > { %v3111_v37 = vadd.f32 %v3108_v39, %v2976_v35  ;;  %v3504_v13 = vunpack.c.l.b16 %v12840_v12 }
 0x4e9   : > { %vm3103_vm12 = vcmp.ge.f32.partialorder %v3100_v20, 0.0  ;;  %v3106_v26 = vmul.f32 0.01, %v3100_v20  ;;  %v3548_v11 = vsel %vm285_vm0, %v3543_v10, %v3547_v2  ;;  %v3551_v15 = vor.u32 %v3549_v14, %v3547_v2 }
 0x4ea   : > { %v3048_v30 = vpop.f32.mrf.mxu0  ;;  %v3093_v25 = vpop.f32.mrf.mxu1  ;;  %v3506_v3 = vpack.c.b16 %v3504_v13, %v3504_v13 }
 0x4eb   : > { %v3109_v27 = vsel %vm3103_vm12, %v3100_v20, %v3106_v26 }
 0x4ec   : > { %v3112_v34 = vadd.f32 %v3109_v27, %v2977_v29 }
 0x4ee   : > { %12718 = vmatpush.msk.msra.mxu2 %vm702_vm8, %v3112_v34  ;;  %12720 = vmatpush.msk.msra.mxu3 %vm702_vm8, %v3112_v34 }
 0x4f0   : > { %3130 = vmatpush.msra.mxu2 %v3111_v37  ;;  %3150 = vmatpush.msra.mxu3 %v3111_v37  ;;  %v17037_v37 = vld [vmem:[%s21087_s1 + $0x18] sm:$0xff] }
 0x4f2   : > { %3131 = vmatpush.msra.mxu2 %v3110_v47  ;;  %3151 = vmatpush.msra.mxu3 %v3110_v47  ;;  %v18574_v44 = vpop.f32.mrf.mxu1  ;;  %v18576_v45 = vpop.f32.mrf.mxu0  ;;  %v17036_v47 = vld [vmem:[%s21087_s1 + $0x10] sm:$0xff] }
 0x4f3   : > { %12719 = vmatmul.msk.f32.vlgmr.msra.gmra.mxu2 %vm698_vm9, %v18320_v17  ;;  %12721 = vmatmul.msk.f32.vlgmr.msra.gmra.mxu3 %vm698_vm9, %v18327_v18  ;;  %v17024_v17 = vld [vmem:[%s21087_s1 + $0x40] sm:$0xff]  ;;  %v3291_v5 = vadd.f32 %v18574_v44, %v18576_v45 }
 0x4f4   : > { %3353 = vmatpush.bf16.msrb.mxu2 %v17027_v41  ;;  %3430 = vmatpush.bf16.msrb.mxu3 %v17031_v42  ;;  %v17028_v18 = vld [vmem:[%s21087_s1 + $0x60] sm:$0xff] }
 0x4f5   : > { %12835 = vmatmul.msk.bf16.gmra.mxu0 %vm325_vm1, %v3395_v0 }
 0x4f8   : > { %3354 = vmatpush.bf16.msrb.mxu2 %v17026_v48  ;;  %3431 = vmatpush.bf16.msrb.mxu3 %v17030_v40 }
 0x4fa   : > { %v18578_v19 = vpop.f32.mrf.mxu1  ;;  %v18580_v16 = vpop.f32.mrf.mxu0 }
 0x4fc   : > { %3355 = vmatpush.bf16.msrb.mxu2 %v17025_v51  ;;  %3432 = vmatpush.bf16.msrb.mxu3 %v17029_v52 }
 0x500   : > { %3356 = vmatpush.bf16.msrb.mxu2 %v17024_v17  ;;  %3433 = vmatpush.bf16.msrb.mxu3 %v17028_v18 }
 0x503   : > { %12805 = vmatmul.msk.bf16.vlgmr.msrb.gmra.mxu2 %vm325_vm1, %v17023_v43  ;;  %12832 = vmatmul.msk.bf16.vlgmr.msrb.gmra.mxu3 %vm325_vm1, %v3392_v58 }
 0x504   : > { %3517 = vmatpush.bf16.msra.mxu2 %v17027_v41  ;;  %3562 = vmatpush.bf16.msra.mxu3 %v17031_v42 }
 0x508   : > { %3518 = vmatpush.bf16.msra.mxu2 %v17026_v48  ;;  %3563 = vmatpush.bf16.msra.mxu3 %v17030_v40  ;;  %v12857_v48 = vld [vmem:[%s17864_s28 + $0xb0] sm:$0x7]  ;;  %v17039_v40 = vld [vmem:[%s21087_s1 + $0x28] sm:$0xff] }
 0x50c   : > { %3519 = vmatpush.bf16.msra.mxu2 %v17025_v51  ;;  %3564 = vmatpush.bf16.msra.mxu3 %v17029_v52  ;;  %v3665_v51 = vunpack.c.l.b16 %v12857_v48 }
 0x50e   : > { %v3667_v56 = vpack.c.b16 %v3665_v51, %v3665_v51 }
 0x510   : > { %3520 = vmatpush.bf16.msra.mxu2 %v17024_v17  ;;  %3565 = vmatpush.bf16.msra.mxu3 %v17028_v18  ;;  %v17038_v17 = vld [vmem:[%s21087_s1 + $0x20] sm:$0xff]  ;;  %v3676_v58 = vshll.u32 %v3667_v56, 16  ;;  %v3680_v13 = vshrl.u32 %v3667_v56, 16 }
 0x511   : > { %v17034_v18 = vld [vmem:[%s21087_s1] sm:$0xff] }
 0x512   : > { %v3678_v61 = vrot.slane %v3676_v58, 1  ;;  %v17050_v58 = vld [vmem:[%s21087_s1 + $0x78] sm:$0xff] }
 0x513   : > { %12806 = vmatmul.msk.bf16.gmra.mxu2 %vm325_vm1, %v3318_v63  ;;  %12833 = vmatmul.msk.bf16.gmra.mxu3 %vm325_vm1, %v3395_v0  ;;  %v3293_v0 = vadd.f32 %v18578_v19, %v18580_v16 }
 0x514   : > { %3717 = vmatpush.bf16.msrb.mxu2 %v17041_v36  ;;  %3767 = vmatpush.bf16.msrb.mxu3 %v17037_v37  ;;  %v3679_v59 = vsel %vm285_vm0, %v3674_v60, %v3678_v61  ;;  %v3682_v45 = vor.u32 %v3680_v13, %v3678_v61  ;;  %v12979_v13 = vld [vmem:[%s17864_s28 + $0xc8] sm:$0x7] }
 0x518   : > { %3718 = vmatpush.bf16.msrb.mxu2 %v17040_v46  ;;  %3768 = vmatpush.bf16.msrb.mxu3 %v17036_v47 }
 0x51c   : > { %3719 = vmatpush.bf16.msrb.mxu2 %v17039_v40  ;;  %3769 = vmatpush.bf16.msrb.mxu3 %v17035_v49 }
 0x520   : > { %3720 = vmatpush.bf16.msrb.mxu2 %v17038_v17  ;;  %3770 = vmatpush.bf16.msrb.mxu3 %v17034_v18 }
 0x523   : > { %12845 = vmatmul.msk.bf16.vlgmr.msra.gmra.mxu2 %vm325_vm1, %v17032_v1  ;;  %12848 = vmatmul.msk.bf16.vlgmr.msra.gmra.mxu3 %vm325_vm1, %v3548_v11  ;;  %v12856_v11 = vld [vmem:[%s17864_s28 + $0xb0] sm:$0x3] }
 0x524   : > { %3945 = vmatpush.bf16.msra.mxu2 %v17041_v36  ;;  %3963 = vmatpush.bf16.msra.mxu3 %v17037_v37  ;;  %v3732_v14 = vunpack.c.l.b16 %v12856_v11 }
 0x526   : > { %v3733_v16 = vpack.c.b16 %v3732_v14, %v3732_v14  ;;  %v17051_v14 = vld [vmem:[%s17864_s28 + $0xc0] sm:$0xff] }
 0x528   : > { %3946 = vmatpush.bf16.msra.mxu2 %v17040_v46  ;;  %3964 = vmatpush.bf16.msra.mxu3 %v17036_v47 }
 0x52c   : > { %3947 = vmatpush.bf16.msra.mxu2 %v17039_v40  ;;  %3965 = vmatpush.bf16.msra.mxu3 %v17035_v49 }
 0x530   : > { %3948 = vmatpush.bf16.msra.mxu2 %v17038_v17  ;;  %3966 = vmatpush.bf16.msra.mxu3 %v17034_v18 }
 0x533   : > { %12846 = vmatmul.msk.bf16.gmra.mxu2 %vm325_vm1, %v3506_v3  ;;  %12849 = vmatmul.msk.bf16.gmra.mxu3 %vm325_vm1, %v3551_v15 }
 0x53c   : > { %v3245_v20 = vpop.f32.mrf.mxu0 }
 0x53e   : > { %v3295_v21 = vpop.f32.mrf.mxu1 }
 0x53f   : > { %v18582_v22 = vadd.f32 %v3295_v21, %v3245_v20  ;;  %v12939_v21 = vld [vmem:[%s17864_s28 + $0xbc] sm:$0x7] }
 0x543   : > { %12886 = vmatmul.msk.bf16.vlgmr.msrb.gmra.mxu2 %vm325_vm1, %v3679_v59  ;;  %12904 = vmatmul.msk.bf16.vlgmr.msrb.gmra.mxu3 %vm325_vm1, %v17033_v50 }
 0x544   : > { %v3247_v23 = vpop.f32.mrf.mxu0 }
 0x546   : > { %v3297_v24 = vpop.f32.mrf.mxu1 }
 0x54e   : > { %v3486_v30 = vpop.f32.mrf.mxu1 }
 0x553   : > { %12887 = vmatmul.msk.bf16.gmra.mxu2 %vm325_vm1, %v3682_v45  ;;  %12905 = vmatmul.msk.bf16.gmra.mxu3 %vm325_vm1, %v3733_v16 }
 0x556   : > { %v3488_v31 = vpop.f32.mrf.mxu1 }
 0x55f   : > { %v3468_v29 = vpop.f32.mrf.mxu0  ;;  %v3491_v35 = vpop.f32.mrf.mxu1 }
 0x560   : > { %v3487_v1 = vadd.f32 %v3486_v30, %v3468_v29 }
 0x567   : > { %v3470_v39 = vpop.f32.mrf.mxu0  ;;  %v3493_v43 = vpop.f32.mrf.mxu1 }
 0x568   : > { %v3489_v4 = vadd.f32 %v3488_v31, %v3470_v39  ;;  %v18640_v39 = vld [vmem:[%s17864_s28 + $0xb4] sm:$0xff] }
 0x569   : > { %12968 = vmatmul.msk.bf16.vlgmr.msra.gmra.mxu3 %vm325_vm1, %v18640_v39 }
 0x572   : > { %v18588_v32 = vpop.f32.mrf.mxu0 }
 0x573   : > { %v3492_v19 = vadd.f32 %v3491_v35, %v18588_v32 }
 0x576   : > { %v3133_v26 = vpop.f32.mrf.mxu2  ;;  %v3153_v28 = vpop.f32.mrf.mxu3 }
 0x577   : > { %3156 = vst [vmem:[#allocation2 + $0x28] sm:$0x1f] %v3133_v26  ;;  %v18634_v26 = vld [vmem:[%s21090_s4] ss:$0 sm:$0xff] }
 0x578   : > { %3157 = vst [vmem:[#allocation2 + $0x40] sm:$0x1f] %v3153_v28 }
 0x57a   : > { %v3475_v42 = vpop.f32.mrf.mxu0 }
 0x586   : > { %v18584_v25 = vpop.f32.mrf.mxu2  ;;  %v18586_v27 = vpop.f32.mrf.mxu3 }
 0x587   : > { %v3367_v12 = vadd.f32 %v18584_v25, %v3291_v5  ;;  %v17044_v5 = vld [vmem:[%s21087_s1 + $0x48] sm:$0xff] }
 0x58e   : > { %v3360_v33 = vpop.f32.mrf.mxu2  ;;  %v3437_v34 = vpop.f32.mrf.mxu3 }
 0x58f   : > { %v3368_v8 = vadd.f32 %v3360_v33, %v3293_v0  ;;  %v18667_v0 = vld [vmem:[%s21091_s5] sm:$0x1f] }
 0x591   : > { %v3445_v3 = vadd.f32 %v3437_v34, %v3368_v8  ;;  %v17047_v8 = vld [vmem:[%s21087_s1 + $0x60] sm:$0xff] }
 0x593   : > { %v3448_v28 = vadd.f32 %v18634_v26, %v3445_v3  ;;  %v4018_v3 = vunpack.c.l.b16 %v12979_v13 }
 0x595   : > { %v3454_v32 = vmul.f32 0.01, %v3448_v28  ;;  %vm3451_vm5 = vcmp.ge.f32.partialorder %v3448_v28, 0.0 }
 0x596   : > { %v3363_v38 = vpop.f32.mrf.mxu2  ;;  %v3440_v41 = vpop.f32.mrf.mxu3 }
 0x597   : > { %v3369_v9 = vadd.f32 %v3363_v38, %v18582_v22  ;;  %v3444_v22 = vadd.f32 %v18586_v27, %v3367_v12  ;;  %v3862_v27 = vunpack.c.l.b16 %v12939_v21  ;;  %v3457_v57 = vsel %vm3451_vm5, %v3448_v28, %v3454_v32 }
 0x599   : > { %v3446_v15 = vadd.f32 %v3440_v41, %v3369_v9  ;;  %v3447_v34 = vadd.f32 %v18634_v26, %v3444_v22  ;;  %v18645_v38 = vpack.c.b16 %v3862_v27, %v3862_v27  ;;  %v3866_v41 = vshll.u32 %v18640_v39, 16  ;;  %v12908_v9 = vld [vmem:[%s17864_s28 + $0xbc] sm:$0x3] }
 0x59b   : > { %v3449_v29 = vadd.f32 %v18634_v26, %v3446_v15  ;;  %v3453_v46 = vmul.f32 0.01, %v3447_v34  ;;  %vm3450_vm7 = vcmp.ge.f32.partialorder %v3447_v34, 0.0  ;;  %v3871_v56 = vshll.u32 %v18645_v38, 16 }
 0x59c   : > { %v4019_v15 = vpack.c.b16 %v4018_v3, %v4018_v3 }
 0x59d   : > { %v3455_v35 = vmul.f32 0.01, %v3449_v29  ;;  %vm3452_vm2 = vcmp.ge.f32.partialorder %v3449_v29, 0.0  ;;  %v3456_v53 = vsel %vm3450_vm7, %v3447_v34, %v3453_v46  ;;  %v3873_v59 = vrot.slane %v3871_v56, 1 }
 0x59e   : > { %v3365_v52 = vpop.f32.mrf.mxu2  ;;  %v3442_v55 = vpop.f32.mrf.mxu3  ;;  %v4027_v16 = vshll.u32 %v4019_v15, 16  ;;  %v4031_v28 = vshrl.u32 %v4019_v15, 16 }
 0x59f   : > { %v3458_v40 = vsel %vm3452_vm2, %v3449_v29, %v3455_v35  ;;  %v3864_v52 = vshrl.u32 %v18640_v39, 16  ;;  %v3868_v55 = vrot.slane %v3866_v41, 1 }
 0x5a0   : > { %v4029_v21 = vrot.slane %v4027_v16, 1 }
 0x5a1   : > { %v3869_v61 = vor.u32 %v3868_v55, %v3864_v52 }
 0x5a6   : > { %v3522_v62 = vpop.f32.mrf.mxu2  ;;  %v3567_v63 = vpop.f32.mrf.mxu3 }
 0x5a7   : > { %v3531_v2 = vadd.f32 %v3522_v62, %v3487_v1  ;;  %v17045_v62 = vld [vmem:[%s21087_s1 + $0x50] sm:$0xff]  ;;  %v18674_v1 = vld [vmem:[%s21091_s5 + $0x5] sm:$0x1f] }
 0x5a9   : > { %v3576_v20 = vadd.f32 %v3567_v63, %v3531_v2  ;;  %v17049_v63 = vld [vmem:[%s21087_s1 + $0x70] sm:$0xff]  ;;  %v3875_v2 = vshrl.u32 %v18645_v38, 16 }
 0x5ab   : > { %v3579_v31 = vadd.f32 %v18634_v26, %v3576_v20  ;;  %v3877_v12 = vor.u32 %v3875_v2, %v3873_v59 }
 0x5ad   : > { %v3585_v42 = vmul.f32 0.01, %v3579_v31  ;;  %vm3582_vm6 = vcmp.ge.f32.partialorder %v3579_v31, 0.0 }
 0x5ae   : > { %v3524_v6 = vpop.f32.mrf.mxu2  ;;  %v3569_v7 = vpop.f32.mrf.mxu3 }
 0x5af   : > { %v3532_v10 = vadd.f32 %v3524_v6, %v3489_v4  ;;  %v3588_v17 = vsel %vm3582_vm6, %v3579_v31, %v3585_v42  ;;  %v3874_v4 = vsel %vm285_vm0, %v3869_v61, %v3873_v59  ;;  %v17048_v6 = vld [vmem:[%s21087_s1 + $0x68] sm:$0xff] }
 0x5b0   : > { %v3591_v60 = vadd.f32 %v3588_v17, %v3456_v53  ;;  %12966 = vmatmul.msk.bf16.vlgmr.msra.gmra.mxu2 %vm325_vm1, %v3874_v4  ;;  %v17060_v53 = vld [vmem:[%s21087_s1 + $0x38] sm:$0xff] }
 0x5b1   : > { %v3577_v44 = vadd.f32 %v3569_v7, %v3532_v10  ;;  %v17043_v7 = vld [vmem:[%s21087_s1 + $0x40] sm:$0xff]  ;;  %v3798_v10 = vunpack.c.l.b16 %v12908_v9 }
 0x5b3   : > { %v3580_v30 = vadd.f32 %v18634_v26, %v3577_v44  ;;  %v3800_v11 = vpack.c.b16 %v3798_v10, %v3798_v10  ;;  %v4020_v44 = vshrl.u32 %v17051_v14, 16 }
 0x5b5   : > { %v3586_v36 = vmul.f32 0.01, %v3580_v30  ;;  %vm3583_vm3 = vcmp.ge.f32.partialorder %v3580_v30, 0.0  ;;  %12969 = vmatmul.msk.bf16.gmra.mxu3 %vm325_vm1, %v3800_v11 }
 0x5b6   : > { %v3527_v23 = vpop.f32.mrf.mxu2  ;;  %v3572_v24 = vpop.f32.mrf.mxu3 }
 0x5b7   : > { %v3533_v25 = vadd.f32 %v3527_v23, %v3492_v19  ;;  %v3589_v50 = vsel %vm3583_vm3, %v3580_v30, %v3586_v36  ;;  %v4022_v19 = vshll.u32 %v17051_v14, 16  ;;  %v12972_v23 = vld [vmem:[%s17864_s28 + $0xc8] sm:$0x3]  ;;  %v4033_v30 = vor.u32 %v4031_v28, %v4029_v21 }
 0x5b8   : > { %v3592_v18 = vadd.f32 %v3589_v50, %v3457_v57 }
 0x5b9   : > { %v3578_v33 = vadd.f32 %v3572_v24, %v3533_v25  ;;  %v4024_v45 = vrot.slane %v4022_v19, 1  ;;  %v3986_v24 = vunpack.c.l.b16 %v12972_v23 }
 0x5bb   : > { %v3581_v37 = vadd.f32 %v18634_v26, %v3578_v33  ;;  %v4025_v20 = vor.u32 %v4024_v45, %v4020_v44  ;;  %v3988_v29 = vpack.c.b16 %v3986_v24, %v3986_v24 }
 0x5bd   : > { %vm3584_vm4 = vcmp.ge.f32.partialorder %v3581_v37, 0.0  ;;  %v3587_v43 = vmul.f32 0.01, %v3581_v37  ;;  %v4030_v22 = vsel %vm285_vm0, %v4025_v20, %v4029_v21 }
 0x5be   : > { %v3529_v47 = vpop.f32.mrf.mxu2  ;;  %v3574_v48 = vpop.f32.mrf.mxu3 }
 0x5bf   : > { %v3590_v49 = vsel %vm3584_vm4, %v3581_v37, %v3587_v43 }
 0x5c0   : > { %v3593_v51 = vadd.f32 %v3590_v49, %v3458_v40  ;;  %12967 = vmatmul.msk.bf16.gmra.mxu2 %vm325_vm1, %v3877_v12 }
 0x5c2   : > { %12850 = vmatpush.msk.msrb.mxu0 %vm702_vm8, %v3593_v51  ;;  %12852 = vmatpush.msk.msrb.mxu1 %vm702_vm8, %v3593_v51 }
 0x5c4   : > { %3611 = vmatpush.msrb.mxu0 %v3592_v18  ;;  %3631 = vmatpush.msrb.mxu1 %v3592_v18 }
 0x5c6   : > { %3612 = vmatpush.msrb.mxu0 %v3591_v60  ;;  %3632 = vmatpush.msrb.mxu1 %v3591_v60  ;;  %v3722_v25 = vpop.f32.mrf.mxu2  ;;  %v17055_v60 = vld [vmem:[%s21087_s1 + $0x10] sm:$0xff] }
 0x5c7   : > { %12851 = vmatmul.msk.f32.vlgmr.msrb.gmra.mxu0 %vm698_vm9, %v18667_v0  ;;  %12853 = vmatmul.msk.f32.vlgmr.msrb.gmra.mxu1 %vm698_vm9, %v18674_v1 }
 0x5c8   : > { %3835 = vmatpush.bf16.msra.mxu0 %v17046_v54  ;;  %3912 = vmatpush.bf16.msra.mxu1 %v17050_v58 }
 0x5cc   : > { %3836 = vmatpush.bf16.msra.mxu0 %v17045_v62  ;;  %3913 = vmatpush.bf16.msra.mxu1 %v17049_v63 }
 0x5ce   : > { %v3724_v27 = vpop.f32.mrf.mxu2 }
 0x5d0   : > { %3837 = vmatpush.bf16.msra.mxu0 %v17044_v5  ;;  %3914 = vmatpush.bf16.msra.mxu1 %v17048_v6 }
 0x5d4   : > { %3838 = vmatpush.bf16.msra.mxu0 %v17043_v7  ;;  %3915 = vmatpush.bf16.msra.mxu1 %v17047_v8 }
 0x5d6   : > { %v3727_v33 = vpop.f32.mrf.mxu2 }
 0x5d7   : > { %12937 = vmatmul.msk.bf16.vlgmr.msra.gmra.mxu0 %vm325_vm1, %v18640_v39  ;;  %12964 = vmatmul.msk.bf16.vlgmr.msra.gmra.mxu1 %vm325_vm1, %v3874_v4  ;;  %v3772_v39 = vpop.f32.mrf.mxu3  ;;  %v12989_v4 = vld [vmem:[%s17864_s28 + $0xc8] sm:$0x7] }
 0x5d8   : > { %3999 = vmatpush.bf16.msrb.mxu0 %v17046_v54  ;;  %4044 = vmatpush.bf16.msrb.mxu1 %v17050_v58  ;;  %v17056_v54 = vld [vmem:[%s21087_s1 + $0x18] sm:$0xff]  ;;  %v17059_v58 = vld [vmem:[%s21087_s1 + $0x30] sm:$0xff] }
 0x5dc   : > { %4000 = vmatpush.bf16.msrb.mxu0 %v17045_v62  ;;  %4045 = vmatpush.bf16.msrb.mxu1 %v17049_v63  ;;  %v17058_v62 = vld [vmem:[%s21087_s1 + $0x28] sm:$0xff] }
 0x5dd   : > { %v17054_v63 = vld [vmem:[%s21087_s1 + $0x8] sm:$0xff] }
 0x5de   : > { %v3729_v35 = vpop.f32.mrf.mxu2 }
 0x5df   : > { %v3774_v31 = vpop.f32.mrf.mxu3 }
 0x5e0   : > { %4001 = vmatpush.bf16.msrb.mxu0 %v17044_v5  ;;  %4046 = vmatpush.bf16.msrb.mxu1 %v17048_v6  ;;  %v17052_v5 = vld [vmem:[%s17864_s28 + $0xc0] sm:$0xff]  ;;  %v4146_v6 = vunpack.c.l.b16 %v12989_v4  ;;  %v3775_v3 = vadd.f32 %v3774_v31, %v3724_v27 }
 0x5e1   : > { %v4152_v10 = vshll.u32 %v17052_v5, 16 }
 0x5e2   : > { %v18739_v9 = vpack.c.b16 %v4146_v6, %v4146_v6  ;;  %v17069_v6 = vld [vmem:[%s21087_s1 + $0x78] sm:$0xff] }
 0x5e3   : > { %v4154_v13 = vrot.slane %v4152_v10, 1  ;;  %v17064_v10 = vld [vmem:[%s21087_s1 + $0x50] sm:$0xff] }
 0x5e4   : > { %4002 = vmatpush.bf16.msrb.mxu0 %v17043_v7  ;;  %4047 = vmatpush.bf16.msrb.mxu1 %v17047_v8  ;;  %v17057_v7 = vld [vmem:[%s21087_s1 + $0x20] sm:$0xff]  ;;  %v4157_v45 = vshll.u32 %v18739_v9, 16 }
 0x5e5   : > { %v17053_v8 = vld [vmem:[%s21087_s1] sm:$0xff] }
 0x5e7   : > { %12938 = vmatmul.msk.bf16.gmra.mxu0 %vm325_vm1, %v3800_v11  ;;  %12965 = vmatmul.msk.bf16.gmra.mxu1 %vm325_vm1, %v3877_v12  ;;  %v3777_v34 = vpop.f32.mrf.mxu3  ;;  %v4150_v12 = vshrl.u32 %v17052_v5, 16 }
 0x5e8   : > { %v3778_v32 = vadd.f32 %v3777_v34, %v3727_v33  ;;  %4198 = vmatpush.bf16.msra.mxu0 %v17060_v53  ;;  %4248 = vmatpush.bf16.msra.mxu1 %v17056_v54 }
 0x5e9   : > { %v4155_v20 = vor.u32 %v4154_v13, %v4150_v12  ;;  %v17063_v13 = vld [vmem:[%s21087_s1 + $0x48] sm:$0xff] }
 0x5ec   : > { %4199 = vmatpush.bf16.msra.mxu0 %v17059_v58  ;;  %4249 = vmatpush.bf16.msra.mxu1 %v17055_v60 }
 0x5ef   : > { %v3779_v36 = vpop.f32.mrf.mxu3 }
 0x5f0   : > { %4200 = vmatpush.bf16.msra.mxu0 %v17058_v62  ;;  %4250 = vmatpush.bf16.msra.mxu1 %v17054_v63 }
 0x5f4   : > { %4201 = vmatpush.bf16.msra.mxu0 %v17057_v7  ;;  %4251 = vmatpush.bf16.msra.mxu1 %v17053_v8 }
 0x5f7   : > { %12977 = vmatmul.msk.bf16.vlgmr.msrb.gmra.mxu0 %vm325_vm1, %v17051_v14  ;;  %12980 = vmatmul.msk.bf16.vlgmr.msrb.gmra.mxu1 %vm325_vm1, %v4030_v22  ;;  %v3968_v42 = vpop.f32.mrf.mxu3  ;;  %v3773_v14 = vadd.f32 %v3772_v39, %v3722_v25  ;;  %v4159_v22 = vrot.slane %v4157_v45, 1  ;;  %v17066_v45 = vld [vmem:[%s21087_s1 + $0x60] sm:$0xff] }
 0x5f8   : > { %4426 = vmatpush.bf16.msrb.mxu0 %v17060_v53  ;;  %4444 = vmatpush.bf16.msrb.mxu1 %v17056_v54 }
 0x5fc   : > { %4427 = vmatpush.bf16.msrb.mxu0 %v17059_v58  ;;  %4445 = vmatpush.bf16.msrb.mxu1 %v17055_v60 }
 0x5ff   : > { %v3970_v48 = vpop.f32.mrf.mxu3 }
 0x600   : > { %4428 = vmatpush.bf16.msrb.mxu0 %v17058_v62  ;;  %4446 = vmatpush.bf16.msrb.mxu1 %v17054_v63 }
 0x604   : > { %4429 = vmatpush.bf16.msrb.mxu0 %v17057_v7  ;;  %4447 = vmatpush.bf16.msrb.mxu1 %v17053_v8  ;;  %v17061_v7 = vld [vmem:[%s17864_s28 + $0xcc] sm:$0xff] }
 0x605   : > { %v4347_v12 = vshll.u32 %v17061_v7, 16 }
 0x607   : > { %12978 = vmatmul.msk.bf16.gmra.mxu0 %vm325_vm1, %v3988_v29  ;;  %12981 = vmatmul.msk.bf16.gmra.mxu1 %vm325_vm1, %v4033_v30  ;;  %v4160_v29 = vsel %vm285_vm0, %v4155_v20, %v4159_v22 }
 0x617   : > { %13036 = vmatmul.msk.bf16.vlgmr.msra.gmra.mxu1 %vm325_vm1, %v17052_v5  ;;  %13018 = vmatmul.msk.bf16.vlgmr.msra.gmra.mxu0 %vm325_vm1, %v4160_v29  ;;  %v17065_v5 = vld [vmem:[%s21087_s1 + $0x58] sm:$0xff] }
 0x633   : > { %v3950_v41 = vpop.f32.mrf.mxu2 }
 0x634   : > { %v3969_v2 = vadd.f32 %v3968_v42, %v3950_v41 }
 0x638   : > { %v3973_v51 = vpop.f32.mrf.mxu3 }
 0x63b   : > { %v3952_v47 = vpop.f32.mrf.mxu2 }
 0x63c   : > { %v3971_v11 = vadd.f32 %v3970_v48, %v3952_v47 }
 0x640   : > { %v3975_v57 = vpop.f32.mrf.mxu3 }
 0x643   : > { %v3955_v50 = vpop.f32.mrf.mxu2 }
 0x644   : > { %v3614_v37 = vpop.f32.mrf.mxu0  ;;  %v3634_v38 = vpop.f32.mrf.mxu1  ;;  %v3974_v30 = vadd.f32 %v3973_v51, %v3955_v50 }
 0x645   : > { %3638 = vst [vmem:[#allocation2 + $0x58] sm:$0x1f] %v3614_v37 }
 0x646   : > { %3639 = vst [vmem:[#allocation2 + $0x10] sm:$0x1f] %v3634_v38  ;;  %v12988_v38 = vld [vmem:[%s17864_s28 + $0xc8] sm:$0x3] }
 0x64b   : > { %v3957_v56 = vpop.f32.mrf.mxu2 }
 0x654   : > { %v3840_v43 = vpop.f32.mrf.mxu0  ;;  %v18711_v46 = vpop.f32.mrf.mxu1 }
 0x655   : > { %v3849_v24 = vadd.f32 %v3840_v43, %v3773_v14  ;;  %v17067_v14 = vld [vmem:[%s21087_s1 + $0x68] sm:$0xff] }
 0x657   : > { %v3926_v31 = vadd.f32 %v18711_v46, %v3849_v24 }
 0x659   : > { %v3929_v43 = vadd.f32 %v18634_v26, %v3926_v31 }
 0x65b   : > { %vm3932_vm15 = vcmp.ge.f32.partialorder %v3929_v43, 0.0 }
 0x65c   : > { %v3842_v40 = vpop.f32.mrf.mxu0  ;;  %v3919_v49 = vpop.f32.mrf.mxu1 }
 0x65d   : > { %v3850_v21 = vadd.f32 %v3842_v40, %v3775_v3  ;;  %v4161_v40 = vshrl.u32 %v18739_v9, 16  ;;  %v4345_v3 = vshrl.u32 %v17061_v7, 16 }
 0x65f   : > { %v3927_v39 = vadd.f32 %v3919_v49, %v3850_v21  ;;  %v4213_v49 = vunpack.c.l.b16 %v12988_v38  ;;  %v4163_v54 = vor.u32 %v4161_v40, %v4159_v22  ;;  %v13040_v22 = vld [vmem:[%s17864_s28 + $0xd4] sm:$0x3]  ;;  %v13104_v38 = vld [vmem:[%s17864_s28 + $0xe0] sm:$0x3] }
 0x661   : > { %v3930_v37 = vadd.f32 %v18634_v26, %v3927_v39  ;;  %v4214_v58 = vpack.c.b16 %v4213_v49, %v4213_v49  ;;  %13019 = vmatmul.msk.bf16.gmra.mxu0 %vm325_vm1, %v4163_v54 }
 0x663   : > { %v3936_v50 = vmul.f32 0.01, %v3930_v37  ;;  %vm3933_vm13 = vcmp.ge.f32.partialorder %v3930_v37, 0.0  ;;  %13037 = vmatmul.msk.bf16.gmra.mxu1 %vm325_vm1, %v4214_v58 }
 0x664   : > { %v3845_v52 = vpop.f32.mrf.mxu0  ;;  %v3922_v55 = vpop.f32.mrf.mxu1 }
 0x665   : > { %v3851_v15 = vadd.f32 %v3845_v52, %v3778_v32 }
 0x667   : > { %v3928_v28 = vadd.f32 %v3922_v55, %v3851_v15  ;;  %v3935_v55 = vmul.f32 0.01, %v3929_v43  ;;  %v4349_v15 = vrot.slane %v4347_v12, 1  ;;  %v13121_v12 = vld [vmem:[%s17864_s28 + $0xe0] sm:$0x7] }
 0x669   : > { %v3931_v33 = vadd.f32 %v18634_v26, %v3928_v28  ;;  %v3938_v4 = vsel %vm3932_vm15, %v3929_v43, %v3935_v55  ;;  %v13111_v28 = vld [vmem:[%s17864_s28 + $0xe0] sm:$0x7] }
 0x66a   : > { %v4499_v39 = vunpack.c.l.b16 %v13111_v28 }
 0x66b   : > { %vm3934_vm10 = vcmp.ge.f32.partialorder %v3931_v33, 0.0  ;;  %v3937_v47 = vmul.f32 0.01, %v3931_v33 }
 0x66c   : > { %v3847_v17 = vpop.f32.mrf.mxu0  ;;  %v3924_v18 = vpop.f32.mrf.mxu1 }
 0x66d   : > { %v3940_v56 = vsel %vm3934_vm10, %v3931_v33, %v3937_v47 }
 0x673   : > { %13100 = vmatmul.msk.bf16.vlgmr.msrb.gmra.mxu1 %vm325_vm1, %v17061_v7 }
 0x674   : > { %v4004_v61 = vpop.f32.mrf.mxu0  ;;  %v4049_v59 = vpop.f32.mrf.mxu1 }
 0x675   : > { %v4013_v23 = vadd.f32 %v4004_v61, %v3969_v2  ;;  %v13071_v61 = vld [vmem:[%s17864_s28 + $0xd4] sm:$0x7] }
 0x676   : > { %v4343_v8 = vunpack.c.l.b16 %v13071_v61  ;;  %v17068_v2 = vld [vmem:[%s21087_s1 + $0x70] sm:$0xff] }
 0x677   : > { %v4058_v27 = vadd.f32 %v4049_v59, %v4013_v23  ;;  %v3939_v59 = vsel %vm3933_vm13, %v3930_v37, %v3936_v50  ;;  %v4279_v23 = vunpack.c.l.b16 %v13040_v22 }
 0x679   : > { %v4061_v41 = vadd.f32 %v18634_v26, %v4058_v27  ;;  %v4281_v29 = vpack.c.b16 %v4279_v23, %v4279_v23  ;;  %v4500_v27 = vpack.c.b16 %v4499_v39, %v4499_v39 }
 0x67b   : > { %v4067_v51 = vmul.f32 0.01, %v4061_v41  ;;  %vm4064_vm14 = vcmp.ge.f32.partialorder %v4061_v41, 0.0 }
 0x67c   : > { %v4006_v19 = vpop.f32.mrf.mxu0  ;;  %v4051_v44 = vpop.f32.mrf.mxu1 }
 0x67d   : > { %v4014_v16 = vadd.f32 %v4006_v19, %v3971_v11  ;;  %v4070_v62 = vsel %vm4064_vm14, %v4061_v41, %v4067_v51  ;;  %v4344_v11 = vpack.c.b16 %v4343_v8, %v4343_v8  ;;  %v4467_v41 = vunpack.c.l.b16 %v13104_v38 }
 0x67e   : > { %v4073_v9 = vadd.f32 %v4070_v62, %v3938_v4 }
 0x67f   : > { %v4059_v25 = vadd.f32 %v4051_v44, %v4014_v16  ;;  %v4352_v19 = vshll.u32 %v4344_v11, 16  ;;  %v17062_v44 = vld [vmem:[%s21087_s1 + $0x40] sm:$0xff]  ;;  %v4350_v16 = vor.u32 %v4349_v15, %v4345_v3  ;;  %v4356_v24 = vshrl.u32 %v4344_v11, 16  ;;  %v17074_v11 = vld [vmem:[%s21087_s1 + $0x10] sm:$0xff]  ;;  %v17071_v3 = vld [vmem:[%s17864_s28 + $0xd8] sm:$0xff] }
 0x680   : > { %v4469_v43 = vpack.c.b16 %v4467_v41, %v4467_v41  ;;  %v4628_v15 = vunpack.c.l.b16 %v13121_v12  ;;  %v4632_v22 = vshrl.u32 %v17071_v3, 16 }
 0x681   : > { %v4062_v35 = vadd.f32 %v18634_v26, %v4059_v25  ;;  %v4354_v20 = vrot.slane %v4352_v19, 1  ;;  %v17070_v25 = vld [vmem:[%s17864_s28 + $0xd8] sm:$0xff] }
 0x682   : > { %v4503_v31 = vshll.u32 %v17070_v25, 16  ;;  %v4501_v33 = vshrl.u32 %v17070_v25, 16 }
 0x683   : > { %v4068_v46 = vmul.f32 0.01, %v4062_v35  ;;  %vm4065_vm11 = vcmp.ge.f32.partialorder %v4062_v35, 0.0  ;;  %v4355_v21 = vsel %vm285_vm0, %v4350_v16, %v4354_v20  ;;  %13101 = vmatmul.msk.bf16.gmra.mxu1 %vm325_vm1, %v4281_v29  ;;  %v4634_v16 = vshll.u32 %v17071_v3, 16 }
 0x684   : > { %v4009_v34 = vpop.f32.mrf.mxu0  ;;  %v4054_v32 = vpop.f32.mrf.mxu1  ;;  %13098 = vmatmul.msk.bf16.vlgmr.msrb.gmra.mxu0 %vm325_vm1, %v4355_v21 }
 0x685   : > { %v4015_v36 = vadd.f32 %v4009_v34, %v3974_v30  ;;  %v4071_v53 = vsel %vm4065_vm11, %v4062_v35, %v4068_v46  ;;  %v4358_v30 = vor.u32 %v4356_v24, %v4354_v20  ;;  %v4505_v34 = vrot.slane %v4503_v31, 1  ;;  %v17076_v20 = vld [vmem:[%s21087_s1 + $0x20] sm:$0xff] }
 0x686   : > { %v4074_v63 = vadd.f32 %v4071_v53, %v3939_v59  ;;  %v4636_v23 = vrot.slane %v4634_v16, 1 }
 0x687   : > { %v4060_v42 = vadd.f32 %v4054_v32, %v4015_v36  ;;  %v4508_v32 = vshll.u32 %v4500_v27, 16  ;;  %v4506_v35 = vor.u32 %v4505_v34, %v4501_v33 }
 0x688   : > { %v4637_v28 = vor.u32 %v4636_v23, %v4632_v22 }
 0x689   : > { %v4063_v48 = vadd.f32 %v18634_v26, %v4060_v42  ;;  %v4510_v36 = vrot.slane %v4508_v32, 1  ;;  %v4512_v42 = vshrl.u32 %v4500_v27, 16 }
 0x68b   : > { %vm4066_vm12 = vcmp.ge.f32.partialorder %v4063_v48, 0.0  ;;  %v4069_v52 = vmul.f32 0.01, %v4063_v48  ;;  %v4511_v37 = vsel %vm285_vm0, %v4506_v35, %v4510_v36  ;;  %v4514_v47 = vor.u32 %v4512_v42, %v4510_v36  ;;  %v13120_v42 = vld [vmem:[%s17864_s28 + $0xe0] sm:$0x3] }
 0x68c   : > { %v4011_v57 = vpop.f32.mrf.mxu0  ;;  %v4056_v17 = vpop.f32.mrf.mxu1 }
 0x68d   : > { %v4072_v18 = vsel %vm4066_vm12, %v4063_v48, %v4069_v52 }
 0x68e   : > { %v4075_v60 = vadd.f32 %v4072_v18, %v3940_v56 }
 0x690   : > { %12982 = vmatpush.msk.msrb.mxu2 %vm702_vm8, %v4075_v60  ;;  %12984 = vmatpush.msk.msrb.mxu3 %vm702_vm8, %v4075_v60 }
 0x692   : > { %4093 = vmatpush.msrb.mxu2 %v4074_v63  ;;  %4113 = vmatpush.msrb.mxu3 %v4074_v63 }
 0x694   : > { %4094 = vmatpush.msrb.mxu2 %v4073_v9  ;;  %4114 = vmatpush.msrb.mxu3 %v4073_v9  ;;  %v18806_v46 = vpop.f32.mrf.mxu1  ;;  %v18808_v48 = vpop.f32.mrf.mxu0 }
 0x695   : > { %12983 = vmatmul.msk.f32.vlgmr.msrb.gmra.mxu2 %vm698_vm9, %v18667_v0  ;;  %12985 = vmatmul.msk.f32.vlgmr.msrb.gmra.mxu3 %vm698_vm9, %v18674_v1  ;;  %v4254_v34 = vadd.f32 %v18806_v46, %v18808_v48 }
 0x696   : > { %4316 = vmatpush.bf16.msra.mxu2 %v17065_v5  ;;  %4393 = vmatpush.bf16.msra.mxu3 %v17069_v6 }
 0x697   : > { %13099 = vmatmul.msk.bf16.gmra.mxu0 %vm325_vm1, %v4358_v30 }
 0x69a   : > { %4317 = vmatpush.bf16.msra.mxu2 %v17064_v10  ;;  %4394 = vmatpush.bf16.msra.mxu3 %v17068_v2 }
 0x69c   : > { %v4255_v40 = vpop.f32.mrf.mxu1  ;;  %v4205_v49 = vpop.f32.mrf.mxu0 }
 0x69d   : > { %v18810_v50 = vadd.f32 %v4255_v40, %v4205_v49  ;;  %v4695_v40 = vunpack.c.l.b16 %v13120_v42  ;;  %v17137_v42 = vld [vmem:[%s21088_s2 + $0x178] sm:$0xff] }
 0x69e   : > { %4318 = vmatpush.bf16.msra.mxu2 %v17063_v13  ;;  %4395 = vmatpush.bf16.msra.mxu3 %v17067_v14 }
 0x6a2   : > { %4319 = vmatpush.bf16.msra.mxu2 %v17062_v44  ;;  %4396 = vmatpush.bf16.msra.mxu3 %v17066_v45 }
 0x6a5   : > { %13069 = vmatmul.msk.bf16.vlgmr.msra.gmra.mxu2 %vm325_vm1, %v17061_v7  ;;  %13096 = vmatmul.msk.bf16.vlgmr.msra.gmra.mxu3 %vm325_vm1, %v4355_v21  ;;  %v17072_v21 = vld [vmem:[%s21087_s1] sm:$0xff] }
 0x6a6   : > { %4480 = vmatpush.bf16.msrb.mxu2 %v17065_v5  ;;  %4525 = vmatpush.bf16.msrb.mxu3 %v17069_v6  ;;  %v17079_v5 = vld [vmem:[%s21087_s1 + $0x38] sm:$0xff] }
 0x6a7   : > { %v17075_v6 = vld [vmem:[%s21087_s1 + $0x18] sm:$0xff] }
 0x6aa   : > { %4481 = vmatpush.bf16.msrb.mxu2 %v17064_v10  ;;  %4526 = vmatpush.bf16.msrb.mxu3 %v17068_v2  ;;  %v17078_v2 = vld [vmem:[%s21087_s1 + $0x30] sm:$0xff] }
 0x6ae   : > { %4482 = vmatpush.bf16.msrb.mxu2 %v17063_v13  ;;  %4527 = vmatpush.bf16.msrb.mxu3 %v17067_v14  ;;  %v17077_v13 = vld [vmem:[%s21087_s1 + $0x28] sm:$0xff] }
 0x6af   : > { %v17073_v14 = vld [vmem:[%s21087_s1 + $0x8] sm:$0xff] }
 0x6b2   : > { %4483 = vmatpush.bf16.msrb.mxu2 %v17062_v44  ;;  %4528 = vmatpush.bf16.msrb.mxu3 %v17066_v45  ;;  %v4630_v45 = vpack.c.b16 %v4628_v15, %v4628_v15 }
 0x6b4   : > { %v4639_v24 = vshll.u32 %v4630_v45, 16 }
 0x6b5   : > { %13070 = vmatmul.msk.bf16.gmra.mxu2 %vm325_vm1, %v4281_v29  ;;  %13097 = vmatmul.msk.bf16.gmra.mxu3 %vm325_vm1, %v4358_v30 }
 0x6b6   : > { %4680 = vmatpush.bf16.msra.mxu2 %v17079_v5  ;;  %4730 = vmatpush.bf16.msra.mxu3 %v17075_v6  ;;  %v4641_v29 = vrot.slane %v4639_v24, 1  ;;  %v17084_v24 = vld [vmem:[%s21087_s1 + $0x58] sm:$0xff] }
 0x6b8   : > { %v4642_v30 = vsel %vm285_vm0, %v4637_v28, %v4641_v29  ;;  %v17088_v28 = vld [vmem:[%s21087_s1 + $0x78] sm:$0xff] }
 0x6ba   : > { %4681 = vmatpush.bf16.msra.mxu2 %v17078_v2  ;;  %4731 = vmatpush.bf16.msra.mxu3 %v17074_v11 }
 0x6be   : > { %4682 = vmatpush.bf16.msra.mxu2 %v17077_v13  ;;  %4732 = vmatpush.bf16.msra.mxu3 %v17073_v14 }
 0x6c2   : > { %4683 = vmatpush.bf16.msra.mxu2 %v17076_v20  ;;  %4733 = vmatpush.bf16.msra.mxu3 %v17072_v21 }
 0x6c5   : > { %13109 = vmatmul.msk.bf16.vlgmr.msrb.gmra.mxu2 %vm325_vm1, %v17070_v25  ;;  %13112 = vmatmul.msk.bf16.vlgmr.msrb.gmra.mxu3 %vm325_vm1, %v4511_v37 }
 0x6c6   : > { %4908 = vmatpush.bf16.msrb.mxu2 %v17079_v5  ;;  %4926 = vmatpush.bf16.msrb.mxu3 %v17075_v6 }
 0x6ca   : > { %4909 = vmatpush.bf16.msrb.mxu2 %v17078_v2  ;;  %4927 = vmatpush.bf16.msrb.mxu3 %v17074_v11 }
 0x6ce   : > { %4910 = vmatpush.bf16.msrb.mxu2 %v17077_v13  ;;  %4928 = vmatpush.bf16.msrb.mxu3 %v17073_v14 }
 0x6d2   : > { %4911 = vmatpush.bf16.msrb.mxu2 %v17076_v20  ;;  %4929 = vmatpush.bf16.msrb.mxu3 %v17072_v21 }
 0x6d5   : > { %13110 = vmatmul.msk.bf16.gmra.mxu2 %vm325_vm1, %v4469_v43  ;;  %13113 = vmatmul.msk.bf16.gmra.mxu3 %vm325_vm1, %v4514_v47  ;;  %v4643_v47 = vshrl.u32 %v4630_v45, 16 }
 0x6de   : > { %v4208_v51 = vpop.f32.mrf.mxu0 }
 0x6e0   : > { %v4258_v52 = vpop.f32.mrf.mxu1 }
 0x6e1   : > { %v4259_v27 = vadd.f32 %v4258_v52, %v4208_v51  ;;  %v4645_v52 = vor.u32 %v4643_v47, %v4641_v29  ;;  %v17128_v47 = vld [vmem:[%s21088_s2 + $0x130] sm:$0xff] }
 0x6e5   : > { %13150 = vmatmul.msk.bf16.vlgmr.msra.gmra.mxu2 %vm325_vm1, %v4642_v30  ;;  %13168 = vmatmul.msk.bf16.vlgmr.msra.gmra.mxu3 %vm325_vm1, %v17071_v3 }
 0x6e6   : > { %v4210_v55 = vpop.f32.mrf.mxu0 }
 0x6e7   : > { %v4696_v55 = vpack.c.b16 %v4695_v40, %v4695_v40  ;;  %v17136_v40 = vld [vmem:[%s21088_s2 + $0x170] sm:$0xff] }
 0x6e8   : > { %v4260_v56 = vpop.f32.mrf.mxu1 }
 0x6e9   : > { %v13203_v56 = vld [vmem:[%s17864_s28 + $0xec] sm:$0x7] }
 0x6f0   : > { %v4449_v53 = vpop.f32.mrf.mxu1 }
 0x6f5   : > { %13151 = vmatmul.msk.bf16.gmra.mxu2 %vm325_vm1, %v4645_v52  ;;  %13169 = vmatmul.msk.bf16.gmra.mxu3 %vm325_vm1, %v4696_v55 }
 0x6f8   : > { %v4451_v61 = vpop.f32.mrf.mxu1 }
 0x700   : > { %v4454_v4 = vpop.f32.mrf.mxu1 }
 0x701   : > { %v4431_v18 = vpop.f32.mrf.mxu0 }
 0x702   : > { %v4450_v31 = vadd.f32 %v4449_v53, %v4431_v18 }
 0x708   : > { %v4456_v10 = vpop.f32.mrf.mxu1 }
 0x709   : > { %v4433_v60 = vpop.f32.mrf.mxu0 }
 0x70a   : > { %v4452_v33 = vadd.f32 %v4451_v61, %v4433_v60 }
 0x714   : > { %v18816_v63 = vpop.f32.mrf.mxu0 }
 0x715   : > { %v4455_v46 = vadd.f32 %v4454_v4, %v18816_v63 }
 0x718   : > { %v4096_v57 = vpop.f32.mrf.mxu2  ;;  %v4116_v17 = vpop.f32.mrf.mxu3 }
 0x719   : > { %4119 = vst [vmem:[#allocation2 + $0x98] sm:$0x1f] %v4096_v57 }
 0x71a   : > { %4120 = vst [vmem:[#allocation2 + $0x60] sm:$0x1f] %v4116_v17 }
 0x71c   : > { %v4438_v9 = vpop.f32.mrf.mxu0 }
 0x728   : > { %v18812_v54 = vpop.f32.mrf.mxu2  ;;  %v18814_v58 = vpop.f32.mrf.mxu3 }
 0x729   : > { %v4330_v43 = vadd.f32 %v18812_v54, %v4254_v34  ;;  %v17085_v34 = vld [vmem:[%s21087_s1 + $0x60] sm:$0xff] }
 0x72b   : > { %v4407_v57 = vadd.f32 %v18814_v58, %v4330_v43  ;;  %v13243_v43 = vld [vmem:[%s17864_s28 + $0xf8] sm:$0x7] }
 0x72d   : > { %v4410_v58 = vadd.f32 %v18634_v26, %v4407_v57 }
 0x72f   : > { %v4416_v12 = vmul.f32 0.01, %v4410_v58  ;;  %vm4413_vm7 = vcmp.ge.f32.partialorder %v4410_v58, 0.0 }
 0x730   : > { %v4323_v59 = vpop.f32.mrf.mxu2  ;;  %v4400_v62 = vpop.f32.mrf.mxu3 }
 0x731   : > { %v4331_v36 = vadd.f32 %v4323_v59, %v18810_v50  ;;  %v18861_v59 = vld [vmem:[%s17864_s28 + $0xe4] sm:$0xff]  ;;  %v4419_v23 = vsel %vm4413_vm7, %v4410_v58, %v4416_v12 }
 0x732   : > { %v4829_v10 = vshll.u32 %v18861_v59, 16  ;;  %13232 = vmatmul.msk.bf16.vlgmr.msrb.gmra.mxu3 %vm325_vm1, %v18861_v59  ;;  %v17131_v58 = vld [vmem:[%s21088_s2 + $0x148] sm:$0xff] }
 0x733   : > { %v4408_v49 = vadd.f32 %v4400_v62, %v4331_v36  ;;  %v4825_v62 = vunpack.c.l.b16 %v13203_v56  ;;  %v17134_v56 = vld [vmem:[%s21088_s2 + $0x160] sm:$0xff] }
 0x734   : > { %v4831_v45 = vrot.slane %v4829_v10, 1  ;;  %v17096_v10 = vld [vmem:[%s21088_s2 + $0x30] sm:$0xff] }
 0x735   : > { %v4411_v53 = vadd.f32 %v18634_v26, %v4408_v49  ;;  %v4826_v9 = vpack.c.b16 %v4825_v62, %v4825_v62  ;;  %v17089_v49 = vld [vmem:[%s17864_s28 + $0xf0] sm:$0xff] }
 0x736   : > { %v4985_v55 = vshll.u32 %v17089_v49, 16  ;;  %v4983_v57 = vshrl.u32 %v17089_v49, 16  ;;  %v17132_v62 = vld [vmem:[%s21088_s2 + $0x150] sm:$0xff] }
 0x737   : > { %v4417_v5 = vmul.f32 0.01, %v4411_v53  ;;  %vm4414_vm5 = vcmp.ge.f32.partialorder %v4411_v53, 0.0  ;;  %v4834_v16 = vshll.u32 %v4826_v9, 16  ;;  %v4838_v36 = vshrl.u32 %v4826_v9, 16 }
 0x738   : > { %v4326_v7 = vpop.f32.mrf.mxu2  ;;  %v4403_v8 = vpop.f32.mrf.mxu3  ;;  %v13236_v9 = vld [vmem:[%s17864_s28 + $0xf8] sm:$0x3] }
 0x739   : > { %v4332_v37 = vadd.f32 %v4326_v7, %v4259_v27  ;;  %v4420_v20 = vsel %vm4414_vm5, %v4411_v53, %v4417_v5  ;;  %v17087_v27 = vld [vmem:[%s21087_s1 + $0x70] sm:$0xff]  ;;  %v17125_v53 = vld [vmem:[%s21088_s2 + $0x118] sm:$0xff]  ;;  %v17122_v5 = vld [vmem:[%s21088_s2 + $0x100] sm:$0xff] }
 0x73b   : > { %v4409_v51 = vadd.f32 %v4403_v8, %v4332_v37 }
 0x73d   : > { %v4412_v54 = vadd.f32 %v18634_v26, %v4409_v51  ;;  %v4981_v51 = vunpack.c.l.b16 %v13243_v43  ;;  %v5084_v43 = vld [vmem:[#allocation2] sm:$0xf] }
 0x73f   : > { %v4418_v6 = vmul.f32 0.01, %v4412_v54  ;;  %vm4415_vm2 = vcmp.ge.f32.partialorder %v4412_v54, 0.0  ;;  %v4982_v52 = vpack.c.b16 %v4981_v51, %v4981_v51  ;;  %v17158_v51 = vld [vmem:[%s21088_s2 + $0x220] sm:$0xff] }
 0x740   : > { %v4328_v19 = vpop.f32.mrf.mxu2  ;;  %v4405_v44 = vpop.f32.mrf.mxu3 }
 0x741   : > { %v4421_v3 = vsel %vm4415_vm2, %v4412_v54, %v4418_v6  ;;  %v17133_v54 = vld [vmem:[%s21088_s2 + $0x158] sm:$0xff]  ;;  %v17130_v6 = vld [vmem:[%s21088_s2 + $0x140] sm:$0xff]  ;;  %v4994_v12 = vshrl.u32 %v4982_v52, 16 }
 0x748   : > { %v4485_v25 = vpop.f32.mrf.mxu2  ;;  %v4530_v39 = vpop.f32.mrf.mxu3 }
 0x749   : > { %v4494_v41 = vadd.f32 %v4485_v25, %v4450_v31  ;;  %v4836_v25 = vrot.slane %v4834_v16, 1 }
 0x74b   : > { %v4539_v50 = vadd.f32 %v4530_v39, %v4494_v41  ;;  %v17083_v39 = vld [vmem:[%s21087_s1 + $0x50] sm:$0xff]  ;;  %v17129_v41 = vld [vmem:[%s21088_s2 + $0x138] sm:$0xff] }
 0x74d   : > { %v4542_v63 = vadd.f32 %v18634_v26, %v4539_v50  ;;  %v17126_v50 = vld [vmem:[%s21088_s2 + $0x120] sm:$0xff] }
 0x74f   : > { %v4548_v2 = vmul.f32 0.01, %v4542_v63  ;;  %vm4545_vm6 = vcmp.ge.f32.partialorder %v4542_v63, 0.0 }
 0x750   : > { %v4487_v32 = vpop.f32.mrf.mxu2  ;;  %v4532_v35 = vpop.f32.mrf.mxu3 }
 0x751   : > { %v4495_v38 = vadd.f32 %v4487_v32, %v4452_v33  ;;  %v4551_v21 = vsel %vm4545_vm6, %v4542_v63, %v4548_v2  ;;  %v17082_v33 = vld [vmem:[%s21087_s1 + $0x48] sm:$0xff]  ;;  %v17104_v2 = vld [vmem:[%s21088_s2 + $0x70] sm:$0xff] }
 0x752   : > { %v4554_v29 = vadd.f32 %v4551_v21, %v4419_v23  ;;  %v13172_v32 = vld [vmem:[%s17864_s28 + $0xec] sm:$0x3]  ;;  %v17093_v21 = vld [vmem:[%s21088_s2 + $0x18] sm:$0xff] }
 0x753   : > { %v4540_v48 = vadd.f32 %v4532_v35, %v4495_v38  ;;  %v4761_v35 = vunpack.c.l.b16 %v13172_v32  ;;  %v4840_v38 = vor.u32 %v4838_v36, %v4836_v25  ;;  %v17098_v32 = vld [vmem:[%s21088_s2 + $0x40] sm:$0xff]  ;;  %v17169_v36 = vld [vmem:[%s21088_s2 + $0x278] sm:$0xff] }
 0x755   : > { %v4543_v60 = vadd.f32 %v18634_v26, %v4540_v48  ;;  %v4763_v37 = vpack.c.b16 %v4761_v35, %v4761_v35  ;;  %v17135_v48 = vld [vmem:[%s21088_s2 + $0x168] sm:$0xff]  ;;  %v17161_v35 = vld [vmem:[%s21088_s2 + $0x238] sm:$0xff] }
 0x757   : > { %v4549_v7 = vmul.f32 0.01, %v4543_v60  ;;  %vm4546_vm3 = vcmp.ge.f32.partialorder %v4543_v60, 0.0  ;;  %13233 = vmatmul.msk.bf16.gmra.mxu3 %vm325_vm1, %v4763_v37 }
 0x758   : > { %v4490_v17 = vpop.f32.mrf.mxu2  ;;  %v4535_v18 = vpop.f32.mrf.mxu3 }
 0x759   : > { %v4496_v61 = vadd.f32 %v4490_v17, %v4455_v46  ;;  %v4552_v19 = vsel %vm4546_vm3, %v4543_v60, %v4549_v7  ;;  %v17127_v46 = vld [vmem:[%s21088_s2 + $0x128] sm:$0xff]  ;;  %v4987_v17 = vrot.slane %v4985_v55, 1  ;;  %v17097_v7 = vld [vmem:[%s21088_s2 + $0x38] sm:$0xff] }
 0x75a   : > { %v4555_v22 = vadd.f32 %v4552_v19, %v4420_v20  ;;  %v5156_v19 = vld [vmem:[#allocation2] sm:$0x1e] }
 0x75b   : > { %v4541_v4 = vadd.f32 %v4535_v18, %v4496_v61  ;;  %v4990_v18 = vshll.u32 %v4982_v52, 16  ;;  %v4988_v60 = vor.u32 %v4987_v17, %v4983_v57  ;;  %v5160_v16 = vpack.c.bf16 %v5156_v19, %v5156_v19  ;;  %v17165_v52 = vld [vmem:[%s21088_s2 + $0x258] sm:$0xff]  ;;  %v17164_v57 = vld [vmem:[%s21088_s2 + $0x250] sm:$0xff]  ;;  %v17155_v17 = vld [vmem:[%s21088_s2 + $0x208] sm:$0xff] }
 0x75c   : > { %v17197_v19 = vld [vmem:[%s21088_s2 + $0x358] sm:$0xff] }
 0x75d   : > { %v4544_v8 = vadd.f32 %v18634_v26, %v4541_v4  ;;  %v4827_v26 = vshrl.u32 %v18861_v59, 16  ;;  %v4992_v61 = vrot.slane %v4990_v18, 1  ;;  %v17123_v4 = vld [vmem:[%s21088_s2 + $0x108] sm:$0xff]  ;;  %v5232_v23 = vshll.u32 %v5160_v16, 16 }
 0x75e   : > { %v17163_v18 = vld [vmem:[%s21088_s2 + $0x248] sm:$0xff] }
 0x75f   : > { %vm4547_vm4 = vcmp.ge.f32.partialorder %v4544_v8, 0.0  ;;  %v4550_v11 = vmul.f32 0.01, %v4544_v8  ;;  %v4832_v30 = vor.u32 %v4831_v45, %v4827_v26  ;;  %v4993_v63 = vsel %vm285_vm0, %v4988_v60, %v4992_v61  ;;  %v17094_v26 = vld [vmem:[%s21088_s2 + $0x20] sm:$0xff] }
 0x760   : > { %v4492_v13 = vpop.f32.mrf.mxu2  ;;  %v4537_v14 = vpop.f32.mrf.mxu3  ;;  %v17102_v45 = vld [vmem:[%s21088_s2 + $0x60] sm:$0xff] }
 0x761   : > { %v4553_v15 = vsel %vm4547_vm4, %v4544_v8, %v4550_v11  ;;  %v4837_v31 = vsel %vm285_vm0, %v4832_v30, %v4836_v25  ;;  %v17105_v8 = vld [vmem:[%s21088_s2 + $0x78] sm:$0xff]  ;;  %v4949_v11 = vunpack.c.l.b16 %v13236_v9  ;;  %v4996_v14 = vor.u32 %v4994_v12, %v4992_v61  ;;  %v17154_v61 = vld [vmem:[%s21088_s2 + $0x200] sm:$0xff] }
 0x762   : > { %v4556_v44 = vadd.f32 %v4553_v15, %v4421_v3  ;;  %13230 = vmatmul.msk.bf16.vlgmr.msrb.gmra.mxu2 %vm325_vm1, %v4837_v31  ;;  %v17095_v3 = vld [vmem:[%s21088_s2 + $0x28] sm:$0xff]  ;;  %v5230_v30 = vshrl.u32 %v5160_v16, 16  ;;  %v5234_v25 = vrot.slane %v5232_v23, 1  ;;  %v17190_v12 = vld [vmem:[%s21088_s2 + $0x320] sm:$0xff] }
 0x763   : > { %v4951_v13 = vpack.c.b16 %v4949_v11, %v4949_v11  ;;  %v17103_v15 = vld [vmem:[%s21088_s2 + $0x68] sm:$0xff] }
 0x764   : > { %13114 = vmatpush.msk.msra.mxu0 %vm702_vm8, %v4556_v44  ;;  %13116 = vmatpush.msk.msra.mxu1 %vm702_vm8, %v4556_v44  ;;  %v5157_v44 = vld [vmem:[#allocation2 + $0x38] sm:$0x1e]  ;;  %v17199_v11 = vld [vmem:[%s21088_s2 + $0x368] sm:$0xff] }
 0x765   : > { %v5161_v20 = vpack.c.bf16 %v5157_v44, %v5157_v44  ;;  %v6068_v16 = vld [vmem:[#allocation2 + $0x68] sm:$0x1e] }
 0x766   : > { %4574 = vmatpush.msra.mxu0 %v4555_v22  ;;  %4594 = vmatpush.msra.mxu1 %v4555_v22  ;;  %v17101_v22 = vld [vmem:[%s21088_s2 + $0x58] sm:$0xff]  ;;  %v6072_v23 = vpack.c.bf16 %v6068_v16, %v6068_v16 }
 0x768   : > { %4575 = vmatpush.msra.mxu0 %v4554_v29  ;;  %4595 = vmatpush.msra.mxu1 %v4554_v29  ;;  %v17100_v29 = vld [vmem:[%s21088_s2 + $0x50] sm:$0xff]  ;;  %v19044_v55 = vpop.f32.mrf.mxu2 }
 0x769   : > { %13115 = vmatmul.msk.f32.vlgmr.msra.gmra.mxu0 %vm698_vm9, %v18667_v0  ;;  %13117 = vmatmul.msk.f32.vlgmr.msra.gmra.mxu1 %vm698_vm9, %v18674_v1  ;;  %v17086_v0 = vld [vmem:[%s21087_s1 + $0x68] sm:$0xff]  ;;  %v17081_v1 = vld [vmem:[%s21087_s1 + $0x40] sm:$0xff] }
 0x76a   : > { %4798 = vmatpush.bf16.msrb.mxu0 %v17084_v24  ;;  %4875 = vmatpush.bf16.msrb.mxu1 %v17088_v28 }
 0x76e   : > { %4799 = vmatpush.bf16.msrb.mxu0 %v17083_v39  ;;  %4876 = vmatpush.bf16.msrb.mxu1 %v17087_v27 }
 0x772   : > { %4800 = vmatpush.bf16.msrb.mxu0 %v17082_v33  ;;  %4877 = vmatpush.bf16.msrb.mxu1 %v17086_v0 }
 0x773   : > { %13231 = vmatmul.msk.bf16.gmra.mxu2 %vm325_vm1, %v4840_v38 }
 0x776   : > { %4801 = vmatpush.bf16.msrb.mxu0 %v17081_v1  ;;  %4878 = vmatpush.bf16.msrb.mxu1 %v17085_v34 }
 0x779   : > { %13201 = vmatmul.msk.bf16.vlgmr.msrb.gmra.mxu0 %vm325_vm1, %v18861_v59  ;;  %13228 = vmatmul.msk.bf16.vlgmr.msrb.gmra.mxu1 %vm325_vm1, %v4837_v31  ;;  %v17124_v59 = vld [vmem:[%s21088_s2 + $0x110] sm:$0xff]  ;;  %v17091_v31 = vld [vmem:[%s21088_s2 + $0x8] sm:$0xff] }
 0x77a   : > { %4962 = vmatpush.bf16.msra.mxu0 %v17084_v24  ;;  %5007 = vmatpush.bf16.msra.mxu1 %v17088_v28  ;;  %v5239_v24 = vshll.u32 %v5161_v20, 16  ;;  %v17092_v28 = vld [vmem:[%s21088_s2 + $0x10] sm:$0xff] }
 0x77e   : > { %4963 = vmatpush.bf16.msra.mxu0 %v17083_v39  ;;  %5008 = vmatpush.bf16.msra.mxu1 %v17087_v27  ;;  %v5237_v39 = vshrl.u32 %v5161_v20, 16  ;;  %v5241_v27 = vrot.slane %v5239_v24, 1  ;;  %v17188_v20 = vld [vmem:[%s21088_s2 + $0x310] sm:$0xff] }
 0x782   : > { %4964 = vmatpush.bf16.msra.mxu0 %v17082_v33  ;;  %5009 = vmatpush.bf16.msra.mxu1 %v17086_v0  ;;  %v17099_v33 = vld [vmem:[%s21088_s2 + $0x48] sm:$0xff]  ;;  %v5235_v0 = vor.u32 %v5234_v25, %v5230_v30 }
 0x783   : > { %v17195_v30 = vld [vmem:[%s21088_s2 + $0x348] sm:$0xff] }
 0x786   : > { %4965 = vmatpush.bf16.msra.mxu0 %v17081_v1  ;;  %5010 = vmatpush.bf16.msra.mxu1 %v17085_v34  ;;  %v5242_v1 = vor.u32 %v5241_v27, %v5237_v39  ;;  %v17090_v34 = vld [vmem:[%s21088_s2] sm:$0xff]  ;;  %v6150_v39 = vshll.u32 %v6072_v23, 16 }
 0x787   : > { %v17186_v27 = vld [vmem:[%s21088_s2 + $0x300] sm:$0xff] }
 0x789   : > { %13202 = vmatmul.msk.bf16.gmra.mxu0 %vm325_vm1, %v4763_v37  ;;  %13229 = vmatmul.msk.bf16.gmra.mxu1 %vm325_vm1, %v4840_v38  ;;  %v17160_v37 = vld [vmem:[%s21088_s2 + $0x230] sm:$0xff] }
 0x78a   : > { %5453 = vmatpush.bf16.msrb.mxu0 %v17129_v41  ;;  %5466 = vmatpush.bf16.msrb.mxu1 %v17137_v42  ;;  %v17168_v38 = vld [vmem:[%s21088_s2 + $0x270] sm:$0xff]  ;;  %v17159_v41 = vld [vmem:[%s21088_s2 + $0x228] sm:$0xff] }
 0x78b   : > { %v17167_v42 = vld [vmem:[%s21088_s2 + $0x268] sm:$0xff] }
 0x78e   : > { %5454 = vmatpush.bf16.msrb.mxu0 %v17128_v47  ;;  %5467 = vmatpush.bf16.msrb.mxu1 %v17136_v40  ;;  %v5085_v47 = vld [vmem:[#allocation2 + $0x38] sm:$0xf]  ;;  %v5088_v40 = vpack.c.bf16 %v5084_v43, %v5084_v43 }
 0x792   : > { %5455 = vmatpush.bf16.msrb.mxu0 %v17127_v46  ;;  %5468 = vmatpush.bf16.msrb.mxu1 %v17135_v48  ;;  %v17166_v46 = vld [vmem:[%s21088_s2 + $0x260] sm:$0xff]  ;;  %v17157_v48 = vld [vmem:[%s21088_s2 + $0x218] sm:$0xff] }
 0x796   : > { %5456 = vmatpush.bf16.msrb.mxu0 %v17126_v50  ;;  %5469 = vmatpush.bf16.msrb.mxu1 %v17134_v56  ;;  %v19046_v50 = vpop.f32.mrf.mxu3  ;;  %v17156_v56 = vld [vmem:[%s21088_s2 + $0x210] sm:$0xff] }
 0x799   : > { %13241 = vmatmul.msk.bf16.vlgmr.msra.gmra.mxu0 %vm325_vm1, %v17089_v49  ;;  %13244 = vmatmul.msk.bf16.vlgmr.msra.gmra.mxu1 %vm325_vm1, %v4993_v63  ;;  %v5089_v49 = vpack.c.bf16 %v5085_v47, %v5085_v47  ;;  %v17201_v63 = vld [vmem:[%s21088_s2 + $0x378] sm:$0xff]  ;;  %v17256_v47 = vld [vmem:[%s21088_s2 + $0x130] sm:$0xff] }
 0x79a   : > { %5457 = vmatpush.bf16.msrb.mxu0 %v17125_v53  ;;  %5470 = vmatpush.bf16.msrb.mxu1 %v17133_v54  ;;  %v4687_v53 = vpop.f32.mrf.mxu2 }
 0x79e   : > { %5458 = vmatpush.bf16.msrb.mxu0 %v17124_v59  ;;  %5471 = vmatpush.bf16.msrb.mxu1 %v17132_v62  ;;  %v4737_v54 = vpop.f32.mrf.mxu3  ;;  %v17162_v59 = vld [vmem:[%s21088_s2 + $0x240] sm:$0xff]  ;;  %v17193_v62 = vld [vmem:[%s21088_s2 + $0x338] sm:$0xff] }
 0x79f   : > { %v19060_v60 = vadd.f32 %v4737_v54, %v4687_v53  ;;  %v17261_v53 = vld [vmem:[%s21088_s2 + $0x158] sm:$0xff] }
 0x7a2   : > { %5459 = vmatpush.bf16.msrb.mxu0 %v17123_v4  ;;  %5472 = vmatpush.bf16.msrb.mxu1 %v17131_v58  ;;  %v5749_v4 = vld [vmem:[#allocation2 + $0x30] sm:$0xf]  ;;  %v5750_v58 = vld [vmem:[#allocation2 + $0x68] sm:$0xf]  ;;  %v19080_v9 = vpop.f32.mrf.mxu2 }
 0x7a6   : > { %5460 = vmatpush.bf16.msrb.mxu0 %v17122_v5  ;;  %5473 = vmatpush.bf16.msrb.mxu1 %v17130_v6  ;;  %v5753_v5 = vpack.c.bf16 %v5749_v4, %v5749_v4  ;;  %v5754_v6 = vpack.c.bf16 %v5750_v58, %v5750_v58  ;;  %v17252_v58 = vld [vmem:[%s21088_s2 + $0x110] sm:$0xff] }
 0x7a9   : > { %13242 = vmatmul.msk.bf16.gmra.mxu0 %vm325_vm1, %v4951_v13  ;;  %13245 = vmatmul.msk.bf16.gmra.mxu1 %vm325_vm1, %v4996_v14  ;;  %v17198_v13 = vld [vmem:[%s21088_s2 + $0x360] sm:$0xff] }
 0x7aa   : > { %5697 = vmatpush.bf16.msra.mxu0 %v17097_v7  ;;  %5710 = vmatpush.bf16.msra.mxu1 %v17105_v8  ;;  %v17192_v7 = vld [vmem:[%s21088_s2 + $0x330] sm:$0xff]  ;;  %v4692_v14 = vpop.f32.mrf.mxu2 }
 0x7ab   : > { %v17200_v8 = vld [vmem:[%s21088_s2 + $0x370] sm:$0xff] }
 0x7ae   : > { %5698 = vmatpush.bf16.msra.mxu0 %v17096_v10  ;;  %5711 = vmatpush.bf16.msra.mxu1 %v17104_v2  ;;  %v19082_v10 = vpop.f32.mrf.mxu3  ;;  %v17191_v2 = vld [vmem:[%s21088_s2 + $0x328] sm:$0xff] }
 0x7b2   : > { %5699 = vmatpush.bf16.msra.mxu0 %v17095_v3  ;;  %5712 = vmatpush.bf16.msra.mxu1 %v17103_v15  ;;  %v17189_v15 = vld [vmem:[%s21088_s2 + $0x318] sm:$0xff] }
 0x7b6   : > { %5700 = vmatpush.bf16.msra.mxu0 %v17094_v26  ;;  %5713 = vmatpush.bf16.msra.mxu1 %v17102_v45  ;;  %v4742_v3 = vpop.f32.mrf.mxu3  ;;  %v6067_v45 = vld [vmem:[#allocation2 + $0x30] sm:$0x1e] }
 0x7b7   : > { %v17250_v3 = vld [vmem:[%s21088_s2 + $0x100] sm:$0xff] }
 0x7b9   : > { %5461 = vmatmul.bf16.vlgmr.msrb.gmra.mxu0 %v5235_v0  ;;  %5474 = vmatmul.bf16.vlgmr.msrb.gmra.mxu1 %v5242_v1  ;;  %v17265_v0 = vld [vmem:[%s21088_s2 + $0x178] sm:$0xff] }
 0x7ba   : > { %5701 = vmatpush.bf16.msra.mxu0 %v17093_v21  ;;  %5714 = vmatpush.bf16.msra.mxu1 %v17101_v22  ;;  %v17196_v21 = vld [vmem:[%s21088_s2 + $0x350] sm:$0xff]  ;;  %v6071_v22 = vpack.c.bf16 %v6067_v45, %v6067_v45 }
 0x7bc   : > { %v6143_v25 = vshll.u32 %v6071_v22, 16  ;;  %v6141_v1 = vshrl.u32 %v6071_v22, 16 }
 0x7be   : > { %5702 = vmatpush.bf16.msra.mxu0 %v17092_v28  ;;  %5715 = vmatpush.bf16.msra.mxu1 %v17100_v29  ;;  %v19110_v28 = vpop.f32.mrf.mxu3  ;;  %v17187_v29 = vld [vmem:[%s21088_s2 + $0x308] sm:$0xff] }
 0x7c2   : > { %5703 = vmatpush.bf16.msra.mxu0 %v17091_v31  ;;  %5716 = vmatpush.bf16.msra.mxu1 %v17099_v33  ;;  %v17194_v31 = vld [vmem:[%s21088_s2 + $0x340] sm:$0xff]  ;;  %v17257_v33 = vld [vmem:[%s21088_s2 + $0x138] sm:$0xff] }
 0x7c6   : > { %5704 = vmatpush.bf16.msra.mxu0 %v17090_v34  ;;  %5717 = vmatpush.bf16.msra.mxu1 %v17098_v32  ;;  %v6145_v34 = vrot.slane %v6143_v25, 1  ;;  %v6148_v32 = vshrl.u32 %v6072_v23, 16  ;;  %v17232_v25 = vld [vmem:[%s21088_s2 + $0x70] sm:$0xff] }
 0x7c9   : > { %5705 = vmatmul.bf16.vlgmr.msra.gmra.mxu0 %v5088_v40  ;;  %5718 = vmatmul.bf16.vlgmr.msra.gmra.mxu1 %v5089_v49  ;;  %v17264_v40 = vld [vmem:[%s21088_s2 + $0x170] sm:$0xff]  ;;  %v17255_v49 = vld [vmem:[%s21088_s2 + $0x128] sm:$0xff] }
 0x7ca   : > { %6014 = vmatpush.bf16.msrb.mxu0 %v17161_v35  ;;  %6027 = vmatpush.bf16.msrb.mxu1 %v17169_v36  ;;  %v6152_v35 = vrot.slane %v6150_v39, 1  ;;  %v17223_v39 = vld [vmem:[%s21088_s2 + $0x28] sm:$0xff] }
 0x7cc   : > { %v6153_v43 = vor.u32 %v6152_v35, %v6148_v32  ;;  %v17222_v32 = vld [vmem:[%s21088_s2 + $0x20] sm:$0xff] }
 0x7cd   : > { %v17230_v35 = vld [vmem:[%s21088_s2 + $0x60] sm:$0xff] }
 0x7ce   : > { %6015 = vmatpush.bf16.msrb.mxu0 %v17160_v37  ;;  %6028 = vmatpush.bf16.msrb.mxu1 %v17168_v38 }
 0x7d2   : > { %6016 = vmatpush.bf16.msrb.mxu0 %v17159_v41  ;;  %6029 = vmatpush.bf16.msrb.mxu1 %v17167_v42  ;;  %v19136_v41 = vpop.f32.mrf.mxu3  ;;  %v6146_v42 = vor.u32 %v6145_v34, %v6141_v1 }
 0x7d6   : > { %6017 = vmatpush.bf16.msrb.mxu0 %v17158_v51  ;;  %6030 = vmatpush.bf16.msrb.mxu1 %v17166_v46  ;;  %v17263_v51 = vld [vmem:[%s21088_s2 + $0x168] sm:$0xff] }
 0x7da   : > { %6018 = vmatpush.bf16.msrb.mxu0 %v17157_v48  ;;  %6031 = vmatpush.bf16.msrb.mxu1 %v17165_v52 }
 0x7de   : > { %6019 = vmatpush.bf16.msrb.mxu0 %v17156_v56  ;;  %6032 = vmatpush.bf16.msrb.mxu1 %v17164_v57  ;;  %v19156_v56 = vpop.f32.mrf.mxu3  ;;  %v17254_v57 = vld [vmem:[%s21088_s2 + $0x120] sm:$0xff] }
 0x7e2   : > { %6020 = vmatpush.bf16.msrb.mxu0 %v17155_v17  ;;  %6033 = vmatpush.bf16.msrb.mxu1 %v17163_v18  ;;  %v17262_v17 = vld [vmem:[%s21088_s2 + $0x160] sm:$0xff]  ;;  %v17253_v18 = vld [vmem:[%s21088_s2 + $0x118] sm:$0xff] }
 0x7e5   : > { %v19108_v24 = vpop.f32.mrf.mxu2 }
 0x7e6   : > { %6021 = vmatpush.bf16.msrb.mxu0 %v17154_v61  ;;  %6034 = vmatpush.bf16.msrb.mxu1 %v17162_v59  ;;  %v4577_v44 = vpop.f32.mrf.mxu0  ;;  %v4597_v26 = vpop.f32.mrf.mxu1  ;;  %v6493_v59 = vld [vmem:[#allocation2 + $0x30] sm:$0x1e] }
 0x7e7   : > { %4601 = vst [vmem:[#allocation2 + $0x20] sm:$0x1f] %v4577_v44  ;;  %v4938_v4 = vpop.f32.mrf.mxu3  ;;  %v17233_v44 = vld [vmem:[%s21088_s2 + $0x78] sm:$0xff] }
 0x7e8   : > { %4602 = vst [vmem:[#allocation2 + $0x48] sm:$0x1f] %v4597_v26 }
 0x7e9   : > { %6022 = vmatmul.bf16.vlgmr.msrb.gmra.mxu0 %v5753_v5  ;;  %6035 = vmatmul.bf16.vlgmr.msrb.gmra.mxu1 %v5754_v6  ;;  %v17260_v5 = vld [vmem:[%s21088_s2 + $0x150] sm:$0xff]  ;;  %v6497_v6 = vpack.c.bf16 %v6493_v59, %v6493_v59  ;;  %v17227_v59 = vld [vmem:[%s21088_s2 + $0x48] sm:$0xff] }
 0x7ea   : > { %6364 = vmatpush.bf16.msra.mxu0 %v17193_v62  ;;  %6377 = vmatpush.bf16.msra.mxu1 %v17201_v63  ;;  %v6494_v62 = vld [vmem:[#allocation2 + $0x68] sm:$0x1e] }
 0x7eb   : > { %v6566_v26 = vshrl.u32 %v6497_v6, 16 }
 0x7ed   : > { %v19134_v38 = vpop.f32.mrf.mxu2 }
 0x7ee   : > { %6365 = vmatpush.bf16.msra.mxu0 %v17192_v7  ;;  %6378 = vmatpush.bf16.msra.mxu1 %v17200_v8  ;;  %v6498_v7 = vpack.c.bf16 %v6494_v62, %v6494_v62  ;;  %v17251_v8 = vld [vmem:[%s21088_s2 + $0x108] sm:$0xff] }
 0x7f0   : > { %v6575_v14 = vshll.u32 %v6498_v7, 16  ;;  %v6573_v16 = vshrl.u32 %v6498_v7, 16 }
 0x7f2   : > { %6366 = vmatpush.bf16.msra.mxu0 %v17191_v2  ;;  %6379 = vmatpush.bf16.msra.mxu1 %v17199_v11  ;;  %v17259_v2 = vld [vmem:[%s21088_s2 + $0x148] sm:$0xff] }
 0x7f6   : > { %6367 = vmatpush.bf16.msra.mxu0 %v17190_v12  ;;  %6380 = vmatpush.bf16.msra.mxu1 %v17198_v13  ;;  %v19130_v36 = vpop.f32.mrf.mxu0  ;;  %v19132_v37 = vpop.f32.mrf.mxu1  ;;  %v6568_v13 = vshll.u32 %v6497_v6, 16 }
 0x7f7   : > { %v19154_v52 = vpop.f32.mrf.mxu2 }
 0x7f8   : > { %v6570_v45 = vrot.slane %v6568_v13, 1 }
 0x7fa   : > { %6368 = vmatpush.bf16.msra.mxu0 %v17189_v15  ;;  %6381 = vmatpush.bf16.msra.mxu1 %v17197_v19  ;;  %v17258_v15 = vld [vmem:[%s21088_s2 + $0x140] sm:$0xff]  ;;  %v17225_v19 = vld [vmem:[%s21088_s2 + $0x38] sm:$0xff]  ;;  %v6571_v23 = vor.u32 %v6570_v45, %v6566_v26  ;;  %v6421_v26 = vld [vmem:[#allocation2 + $0x30] sm:$0xf] }
 0x7fb   : > { %v6422_v45 = vld [vmem:[#allocation2 + $0x68] sm:$0xf] }
 0x7fe   : > { %6369 = vmatpush.bf16.msra.mxu0 %v17188_v20  ;;  %6382 = vmatpush.bf16.msra.mxu1 %v17196_v21  ;;  %v19150_v46 = vpop.f32.mrf.mxu0  ;;  %v19152_v48 = vpop.f32.mrf.mxu1  ;;  %v6577_v20 = vrot.slane %v6575_v14, 1 }
 0x7ff   : > { %v4920_v63 = vpop.f32.mrf.mxu2 }
 0x802   : > { %6370 = vmatpush.bf16.msra.mxu0 %v17187_v29  ;;  %6383 = vmatpush.bf16.msra.mxu1 %v17195_v30  ;;  %v6578_v29 = vor.u32 %v6577_v20, %v6573_v16  ;;  %v17224_v30 = vld [vmem:[%s21088_s2 + $0x30] sm:$0xff] }
 0x806   : > { %6371 = vmatpush.bf16.msra.mxu0 %v17186_v27  ;;  %6384 = vmatpush.bf16.msra.mxu1 %v17194_v31  ;;  %v4808_v54 = vpop.f32.mrf.mxu0  ;;  %v19170_v61 = vpop.f32.mrf.mxu1  ;;  %v17231_v27 = vld [vmem:[%s21088_s2 + $0x68] sm:$0xff]  ;;  %v4741_v31 = vadd.f32 %v19082_v10, %v19080_v9  ;;  %v4736_v9 = vadd.f32 %v19046_v50, %v19044_v55  ;;  %v4937_v55 = vadd.f32 %v19156_v56, %v19154_v52 }
 0x808   : > { %v4812_v50 = vadd.f32 %v19130_v36, %v4736_v9  ;;  %v17764_v36 = vld [vmem:[%s21090_s4] ss:$0 sm:$0xff] }
 0x809   : > { %6372 = vmatmul.bf16.vlgmr.msra.gmra.mxu0 %v6146_v42  ;;  %6385 = vmatmul.bf16.vlgmr.msra.gmra.mxu1 %v6153_v43  ;;  %v4814_v42 = vadd.f32 %v4808_v54, %v4741_v31  ;;  %v17153_v31 = vld [vmem:[%s21088_s2 + $0x1f8] sm:$0xff]  ;;  %v17765_v9 = vld [vmem:[%s21091_s5] sm:$0x1f] }
 0x80a   : > { %6789 = vmatpush.bf16.msrb.mxu0 %v17257_v33  ;;  %6802 = vmatpush.bf16.msrb.mxu1 %v17265_v0  ;;  %v4932_v33 = vadd.f32 %v19110_v28, %v19108_v24  ;;  %v4934_v0 = vadd.f32 %v19136_v41, %v19134_v38  ;;  %v4813_v24 = vadd.f32 %v19150_v46, %v19060_v60  ;;  %v17221_v38 = vld [vmem:[%s21088_s2 + $0x18] sm:$0xff]  ;;  %v17220_v46 = vld [vmem:[%s21088_s2 + $0x10] sm:$0xff] }
 0x80b   : > { %v17229_v41 = vld [vmem:[%s21088_s2 + $0x58] sm:$0xff]  ;;  %v4891_v43 = vadd.f32 %v19170_v61, %v4814_v42  ;;  %v17219_v61 = vld [vmem:[%s21088_s2 + $0x8] sm:$0xff]  ;;  %v17152_v42 = vld [vmem:[%s21088_s2 + $0x1f0] sm:$0xff] }
 0x80c   : > { %v4890_v60 = vadd.f32 %v19152_v48, %v4813_v24  ;;  %v4889_v48 = vadd.f32 %v19132_v37, %v4812_v50  ;;  %v17286_v24 = vld [vmem:[%s21088_s2 + $0x220] sm:$0xff]  ;;  %v17285_v50 = vld [vmem:[%s21088_s2 + $0x218] sm:$0xff] }
 0x80d   : > { %v4894_v52 = vadd.f32 %v17764_v36, %v4891_v43 }
 0x80e   : > { %6790 = vmatpush.bf16.msrb.mxu0 %v17256_v47  ;;  %6803 = vmatpush.bf16.msrb.mxu1 %v17264_v40  ;;  %v4810_v11 = vpop.f32.mrf.mxu0  ;;  %v4887_v12 = vpop.f32.mrf.mxu1  ;;  %v4892_v4 = vadd.f32 %v17764_v36, %v4889_v48  ;;  %v5159_v48 = vld [vmem:[#allocation2 + $0x18] sm:$0x1e] }
 0x80f   : > { %v4900_v62 = vmul.f32 0.01, %v4894_v52  ;;  %vm4897_vm0 = vcmp.ge.f32.partialorder %v4894_v52, 0.0  ;;  %v17226_v11 = vld [vmem:[%s21088_s2 + $0x40] sm:$0xff] }
 0x810   : > { %v4898_v14 = vmul.f32 0.01, %v4892_v4  ;;  %vm4895_vm13 = vcmp.ge.f32.partialorder %v4892_v4, 0.0 }
 0x811   : > { %v4903_v12 = vsel %vm4897_vm0, %v4894_v52, %v4900_v62  ;;  %v17282_v62 = vld [vmem:[%s21088_s2 + $0x200] sm:$0xff] }
 0x812   : > { %6791 = vmatpush.bf16.msrb.mxu0 %v17255_v49  ;;  %6804 = vmatpush.bf16.msrb.mxu1 %v17263_v51 }
 0x816   : > { %6792 = vmatpush.bf16.msrb.mxu0 %v17254_v57  ;;  %6805 = vmatpush.bf16.msrb.mxu1 %v17262_v17  ;;  %v4967_v21 = vpop.f32.mrf.mxu0  ;;  %v5012_v22 = vpop.f32.mrf.mxu1  ;;  %v17228_v57 = vld [vmem:[%s21088_s2 + $0x50] sm:$0xff] }
 0x817   : > { %v4976_v28 = vadd.f32 %v4967_v21, %v4932_v33 }
 0x819   : > { %v5021_v40 = vadd.f32 %v5012_v22, %v4976_v28  ;;  %v6425_v22 = vpack.c.bf16 %v6421_v26, %v6421_v26  ;;  %v17294_v28 = vld [vmem:[%s21088_s2 + $0x260] sm:$0xff] }
 0x81a   : > { %6793 = vmatpush.bf16.msrb.mxu0 %v17253_v18  ;;  %6806 = vmatpush.bf16.msrb.mxu1 %v17261_v53  ;;  %v4893_v53 = vadd.f32 %v17764_v36, %v4890_v60  ;;  %v17142_v60 = vld [vmem:[%s21088_s2 + $0x1a0] sm:$0xff] }
 0x81b   : > { %v5024_v54 = vadd.f32 %v17764_v36, %v5021_v40  ;;  %v17150_v40 = vld [vmem:[%s21088_s2 + $0x1e0] sm:$0xff] }
 0x81c   : > { %vm4896_vm12 = vcmp.ge.f32.partialorder %v4893_v53, 0.0 }
 0x81d   : > { %v5030_v6 = vmul.f32 0.01, %v5024_v54  ;;  %vm5027_vm11 = vcmp.ge.f32.partialorder %v5024_v54, 0.0 }
 0x81e   : > { %6794 = vmatpush.bf16.msrb.mxu0 %v17252_v58  ;;  %6807 = vmatpush.bf16.msrb.mxu1 %v17260_v5  ;;  %v4969_v1 = vpop.f32.mrf.mxu0  ;;  %v5014_v34 = vpop.f32.mrf.mxu1  ;;  %v4899_v5 = vmul.f32 0.01, %v4893_v53 }
 0x81f   : > { %v4977_v10 = vadd.f32 %v4969_v1, %v4934_v0  ;;  %v5033_v20 = vsel %vm5027_vm11, %v5024_v54, %v5030_v6  ;;  %v17148_v54 = vld [vmem:[%s21088_s2 + $0x1d0] sm:$0xff] }
 0x820   : > { %v4902_v16 = vsel %vm4896_vm12, %v4893_v53, %v4899_v5  ;;  %v17140_v53 = vld [vmem:[%s21088_s2 + $0x190] sm:$0xff] }
 0x821   : > { %v5022_v47 = vadd.f32 %v5014_v34, %v4977_v10  ;;  %v17287_v34 = vld [vmem:[%s21088_s2 + $0x228] sm:$0xff] }
 0x822   : > { %6795 = vmatpush.bf16.msrb.mxu0 %v17251_v8  ;;  %6808 = vmatpush.bf16.msrb.mxu1 %v17259_v2  ;;  %v17218_v2 = vld [vmem:[%s21088_s2] sm:$0xff] }
 0x823   : > { %v5025_v17 = vadd.f32 %v17764_v36, %v5022_v47  ;;  %v17766_v10 = vld [vmem:[%s21091_s5 + $0x5] sm:$0x1f]  ;;  %v17293_v47 = vld [vmem:[%s21088_s2 + $0x258] sm:$0xff] }
 0x825   : > { %v5031_v58 = vmul.f32 0.01, %v5025_v17  ;;  %vm5028_vm10 = vcmp.ge.f32.partialorder %v5025_v17, 0.0 }
 0x826   : > { %6796 = vmatpush.bf16.msrb.mxu0 %v17250_v3  ;;  %6809 = vmatpush.bf16.msrb.mxu1 %v17258_v15  ;;  %v4972_v49 = vpop.f32.mrf.mxu0  ;;  %v5017_v51 = vpop.f32.mrf.mxu1  ;;  %v17289_v15 = vld [vmem:[%s21088_s2 + $0x238] sm:$0xff] }
 0x827   : > { %v4978_v56 = vadd.f32 %v4972_v49, %v4937_v55  ;;  %v17284_v49 = vld [vmem:[%s21088_s2 + $0x210] sm:$0xff] }
 0x829   : > { %6797 = vmatmul.bf16.vlgmr.msrb.gmra.mxu0 %v6571_v23  ;;  %6810 = vmatmul.bf16.vlgmr.msrb.gmra.mxu1 %v6578_v29  ;;  %v5023_v18 = vadd.f32 %v5017_v51, %v4978_v56  ;;  %v6426_v23 = vpack.c.bf16 %v6422_v45, %v6422_v45  ;;  %v4901_v29 = vsel %vm4895_vm13, %v4892_v4, %v4898_v14  ;;  %v17292_v51 = vld [vmem:[%s21088_s2 + $0x250] sm:$0xff]  ;;  %v17139_v4 = vld [vmem:[%s21088_s2 + $0x188] sm:$0xff] }
 0x82a   : > { %7033 = vmatpush.bf16.msra.mxu0 %v17225_v19  ;;  %7046 = vmatpush.bf16.msra.mxu1 %v17233_v44  ;;  %v17297_v19 = vld [vmem:[%s21088_s2 + $0x278] sm:$0xff]  ;;  %v5034_v44 = vsel %vm5028_vm10, %v5025_v17, %v5031_v58  ;;  %v5158_v56 = vld [vmem:[#allocation2 + $0x50] sm:$0x1e]  ;;  %v17283_v17 = vld [vmem:[%s21088_s2 + $0x208] sm:$0xff] }
 0x82b   : > { %v5026_v63 = vadd.f32 %v17764_v36, %v5023_v18  ;;  %v5037_v21 = vadd.f32 %v5034_v44, %v4902_v16  ;;  %v17291_v18 = vld [vmem:[%s21088_s2 + $0x248] sm:$0xff]  ;;  %v17328_v44 = vld [vmem:[%s21088_s2 + $0x370] sm:$0xff] }
 0x82c   : > { %v17147_v58 = vld [vmem:[%s21088_s2 + $0x1c8] sm:$0xff] }
 0x82d   : > { %vm5029_vm1 = vcmp.ge.f32.partialorder %v5026_v63, 0.0  ;;  %v5032_v37 = vmul.f32 0.01, %v5026_v63 }
 0x82e   : > { %7034 = vmatpush.bf16.msra.mxu0 %v17224_v30  ;;  %7047 = vmatpush.bf16.msra.mxu1 %v17232_v25  ;;  %v4974_v7 = vpop.f32.mrf.mxu0  ;;  %v5019_v8 = vpop.f32.mrf.mxu1  ;;  %v17288_v30 = vld [vmem:[%s21088_s2 + $0x230] sm:$0xff] }
 0x82f   : > { %v5035_v13 = vsel %vm5029_vm1, %v5026_v63, %v5032_v37  ;;  %v17296_v25 = vld [vmem:[%s21088_s2 + $0x270] sm:$0xff]  ;;  %v17290_v63 = vld [vmem:[%s21088_s2 + $0x240] sm:$0xff]  ;;  %v7085_v37 = vld [vmem:[#allocation2 + $0x8] sm:$0xf] }
 0x830   : > { %v5038_v3 = vadd.f32 %v5035_v13, %v4903_v12  ;;  %v17321_v7 = vld [vmem:[%s21088_s2 + $0x338] sm:$0xff]  ;;  %v7089_v13 = vpack.c.bf16 %v7085_v37, %v7085_v37 }
 0x831   : > { %v17329_v8 = vld [vmem:[%s21088_s2 + $0x378] sm:$0xff] }
 0x832   : > { %7035 = vmatpush.bf16.msra.mxu0 %v17223_v39  ;;  %7048 = vmatpush.bf16.msra.mxu1 %v17231_v27  ;;  %v5036_v39 = vadd.f32 %v5033_v20, %v4901_v29  ;;  %v17145_v27 = vld [vmem:[%s21088_s2 + $0x1b8] sm:$0xff] }
 0x833   : > { %13246 = vmatpush.msk.msra.mxu2 %vm702_vm8, %v5038_v3  ;;  %13248 = vmatpush.msk.msra.mxu3 %vm702_vm8, %v5038_v3  ;;  %v17138_v3 = vld [vmem:[%s21088_s2 + $0x180] sm:$0xff]  ;;  %v17385_v37 = vld [vmem:[%s21088_s2 + $0x138] sm:$0xff] }
 0x835   : > { %5056 = vmatpush.msra.mxu2 %v5037_v21  ;;  %5076 = vmatpush.msra.mxu3 %v5037_v21  ;;  %v17113_v21 = vld [vmem:[%s21088_s2 + $0xb8] sm:$0xff] }
 0x836   : > { %7036 = vmatpush.bf16.msra.mxu0 %v17222_v32  ;;  %7049 = vmatpush.bf16.msra.mxu1 %v17230_v35  ;;  %v5462_v33 = vpop.f32.mrf.mxu0  ;;  %v5475_v0 = vpop.f32.mrf.mxu1  ;;  %v17295_v32 = vld [vmem:[%s21088_s2 + $0x268] sm:$0xff]  ;;  %v17144_v35 = vld [vmem:[%s21088_s2 + $0x1b0] sm:$0xff] }
 0x837   : > { %5057 = vmatpush.msra.mxu2 %v5036_v39  ;;  %5077 = vmatpush.msra.mxu3 %v5036_v39  ;;  %v19278_v1 = vadd.f32 %v5475_v0, %v5462_v33  ;;  %v17112_v39 = vld [vmem:[%s21088_s2 + $0xb0] sm:$0xff]  ;;  %v17326_v33 = vld [vmem:[%s21088_s2 + $0x360] sm:$0xff] }
 0x838   : > { %13247 = vmatmul.msk.f32.vlgmr.msra.gmra.mxu2 %vm698_vm9, %v17765_v9  ;;  %13249 = vmatmul.msk.f32.vlgmr.msra.gmra.mxu3 %vm698_vm9, %v17766_v10  ;;  %v17317_v9 = vld [vmem:[%s21088_s2 + $0x318] sm:$0xff] }
 0x839   : > { %5479 = vmatpush.bf16.msrb.mxu2 %v17145_v27  ;;  %5492 = vmatpush.bf16.msrb.mxu3 %v17153_v31  ;;  %v17120_v27 = vld [vmem:[%s21088_s2 + $0xf0] sm:$0xff]  ;;  %v17318_v31 = vld [vmem:[%s21088_s2 + $0x320] sm:$0xff]  ;;  %v17325_v10 = vld [vmem:[%s21088_s2 + $0x358] sm:$0xff] }
 0x83a   : > { %7037 = vmatpush.bf16.msra.mxu0 %v17221_v38  ;;  %7050 = vmatpush.bf16.msra.mxu1 %v17229_v41  ;;  %v17143_v38 = vld [vmem:[%s21088_s2 + $0x1a8] sm:$0xff] }
 0x83b   : > { %v17151_v41 = vld [vmem:[%s21088_s2 + $0x1e8] sm:$0xff] }
 0x83d   : > { %5480 = vmatpush.bf16.msrb.mxu2 %v17144_v35  ;;  %5493 = vmatpush.bf16.msrb.mxu3 %v17152_v42  ;;  %v17119_v35 = vld [vmem:[%s21088_s2 + $0xe8] sm:$0xff] }
 0x83e   : > { %7038 = vmatpush.bf16.msra.mxu0 %v17220_v46  ;;  %7051 = vmatpush.bf16.msra.mxu1 %v17228_v57  ;;  %v5464_v43 = vpop.f32.mrf.mxu0  ;;  %v5477_v55 = vpop.f32.mrf.mxu1  ;;  %v17141_v46 = vld [vmem:[%s21088_s2 + $0x198] sm:$0xff] }
 0x83f   : > { %v17149_v57 = vld [vmem:[%s21088_s2 + $0x1d8] sm:$0xff]  ;;  %v17316_v43 = vld [vmem:[%s21088_s2 + $0x310] sm:$0xff] }
 0x840   : > { %v17324_v55 = vld [vmem:[%s21088_s2 + $0x350] sm:$0xff] }
 0x841   : > { %5481 = vmatpush.bf16.msrb.mxu2 %v17143_v38  ;;  %5494 = vmatpush.bf16.msrb.mxu3 %v17151_v41  ;;  %v7402_v38 = vld [vmem:[#allocation2 + $0x8] sm:$0x1e] }
 0x842   : > { %7039 = vmatpush.bf16.msra.mxu0 %v17219_v61  ;;  %7052 = vmatpush.bf16.msra.mxu1 %v17227_v59  ;;  %v5162_v61 = vpack.c.bf16 %v5158_v56, %v5158_v56  ;;  %v5163_v59 = vpack.c.bf16 %v5159_v48, %v5159_v48  ;;  %v7403_v41 = vld [vmem:[#allocation2 + $0x88] sm:$0x1e]  ;;  %v17108_v56 = vld [vmem:[%s21088_s2 + $0x90] sm:$0xff] }
 0x843   : > { %v17116_v48 = vld [vmem:[%s21088_s2 + $0xd0] sm:$0xff] }
 0x844   : > { %v5253_v12 = vshll.u32 %v5163_v59, 16  ;;  %v5244_v26 = vshrl.u32 %v5162_v61, 16  ;;  %v5251_v16 = vshrl.u32 %v5163_v59, 16  ;;  %v17115_v59 = vld [vmem:[%s21088_s2 + $0xc8] sm:$0xff] }
 0x845   : > { %5482 = vmatpush.bf16.msrb.mxu2 %v17142_v60  ;;  %5495 = vmatpush.bf16.msrb.mxu3 %v17150_v40  ;;  %v17109_v60 = vld [vmem:[%s21088_s2 + $0x98] sm:$0xff] }
 0x846   : > { %7040 = vmatpush.bf16.msra.mxu0 %v17218_v2  ;;  %7053 = vmatpush.bf16.msra.mxu1 %v17226_v11  ;;  %v19336_v36 = vpop.f32.mrf.mxu0  ;;  %v19338_v52 = vpop.f32.mrf.mxu1  ;;  %v7086_v2 = vld [vmem:[#allocation2 + $0x88] sm:$0xf]  ;;  %v5246_v11 = vshll.u32 %v5162_v61, 16  ;;  %v5255_v20 = vrot.slane %v5253_v12, 1  ;;  %v17117_v40 = vld [vmem:[%s21088_s2 + $0xd8] sm:$0xff]  ;;  %v17392_v12 = vld [vmem:[%s21088_s2 + $0x170] sm:$0xff] }
 0x847   : > { %v7090_v14 = vpack.c.bf16 %v7086_v2, %v7086_v2  ;;  %v17107_v61 = vld [vmem:[%s21088_s2 + $0x88] sm:$0xff]  ;;  %v17114_v2 = vld [vmem:[%s21088_s2 + $0xc0] sm:$0xff] }
 0x848   : > { %v5248_v45 = vrot.slane %v5246_v11, 1  ;;  %v5256_v29 = vor.u32 %v5255_v20, %v5251_v16  ;;  %v17384_v11 = vld [vmem:[%s21088_s2 + $0x130] sm:$0xff] }
 0x849   : > { %7041 = vmatmul.bf16.vlgmr.msra.gmra.mxu0 %v6425_v22  ;;  %7054 = vmatmul.bf16.vlgmr.msra.gmra.mxu1 %v6426_v23  ;;  %v17121_v22 = vld [vmem:[%s21088_s2 + $0xf8] sm:$0xff]  ;;  %v17176_v16 = vld [vmem:[%s21088_s2 + $0x2b0] sm:$0xff] }
 0x84a   : > { %7349 = vmatpush.bf16.msrb.mxu0 %v17289_v15  ;;  %7362 = vmatpush.bf16.msrb.mxu1 %v17297_v19  ;;  %v17146_v15 = vld [vmem:[%s21088_s2 + $0x1c0] sm:$0xff]  ;;  %v17320_v19 = vld [vmem:[%s21088_s2 + $0x330] sm:$0xff]  ;;  %v5249_v23 = vor.u32 %v5248_v45, %v5244_v26  ;;  %v17383_v26 = vld [vmem:[%s21088_s2 + $0x128] sm:$0xff] }
 0x84b   : > { %5483 = vmatpush.bf16.msrb.mxu2 %v17141_v46  ;;  %5496 = vmatpush.bf16.msrb.mxu3 %v17149_v57  ;;  %v17315_v46 = vld [vmem:[%s21088_s2 + $0x308] sm:$0xff]  ;;  %v17184_v20 = vld [vmem:[%s21088_s2 + $0x2f0] sm:$0xff] }
 0x84c   : > { %v17323_v57 = vld [vmem:[%s21088_s2 + $0x348] sm:$0xff] }
 0x84d   : > { %v17391_v45 = vld [vmem:[%s21088_s2 + $0x168] sm:$0xff] }
 0x84e   : > { %7350 = vmatpush.bf16.msrb.mxu0 %v17288_v30  ;;  %7363 = vmatpush.bf16.msrb.mxu1 %v17296_v25  ;;  %v5708_v5 = vpop.f32.mrf.mxu0  ;;  %v5721_v6 = vpop.f32.mrf.mxu1  ;;  %v17319_v30 = vld [vmem:[%s21088_s2 + $0x328] sm:$0xff] }
 0x84f   : > { %5484 = vmatpush.bf16.msrb.mxu2 %v17140_v53  ;;  %5497 = vmatpush.bf16.msrb.mxu3 %v17148_v54  ;;  %v17327_v25 = vld [vmem:[%s21088_s2 + $0x368] sm:$0xff]  ;;  %v17314_v53 = vld [vmem:[%s21088_s2 + $0x300] sm:$0xff]  ;;  %v17393_v5 = vld [vmem:[%s21088_s2 + $0x178] sm:$0xff] }
 0x850   : > { %v17322_v54 = vld [vmem:[%s21088_s2 + $0x340] sm:$0xff] }
 0x852   : > { %7351 = vmatpush.bf16.msrb.mxu0 %v17287_v34  ;;  %7364 = vmatpush.bf16.msrb.mxu1 %v17295_v32  ;;  %v17111_v32 = vld [vmem:[%s21088_s2 + $0xa8] sm:$0xff] }
 0x853   : > { %5485 = vmatpush.bf16.msrb.mxu2 %v17139_v4  ;;  %5498 = vmatpush.bf16.msrb.mxu3 %v17147_v58 }
 0x856   : > { %7352 = vmatpush.bf16.msrb.mxu0 %v17286_v24  ;;  %7365 = vmatpush.bf16.msrb.mxu1 %v17294_v28  ;;  %v17110_v24 = vld [vmem:[%s21088_s2 + $0xa0] sm:$0xff] }
 0x857   : > { %5486 = vmatpush.bf16.msrb.mxu2 %v17138_v3  ;;  %5499 = vmatpush.bf16.msrb.mxu3 %v17146_v15  ;;  %v17118_v28 = vld [vmem:[%s21088_s2 + $0xe0] sm:$0xff]  ;;  %v17185_v3 = vld [vmem:[%s21088_s2 + $0x2f8] sm:$0xff] }
 0x858   : > { %v5087_v15 = vld [vmem:[#allocation2 + $0x18] sm:$0xf] }
 0x85a   : > { %7353 = vmatpush.bf16.msrb.mxu0 %v17285_v50  ;;  %7366 = vmatpush.bf16.msrb.mxu1 %v17293_v47 }
 0x85b   : > { %5723 = vmatpush.bf16.msra.mxu2 %v17113_v21  ;;  %5736 = vmatpush.bf16.msra.mxu3 %v17121_v22 }
 0x85c   : > { %5487 = vmatmul.bf16.vlgmr.msrb.gmra.mxu2 %v5249_v23  ;;  %5500 = vmatmul.bf16.vlgmr.msrb.gmra.mxu3 %v5256_v29  ;;  %v17382_v23 = vld [vmem:[%s21088_s2 + $0x120] sm:$0xff] }
 0x85d   : > { %v17390_v29 = vld [vmem:[%s21088_s2 + $0x160] sm:$0xff] }
 0x85e   : > { %7354 = vmatpush.bf16.msrb.mxu0 %v17284_v49  ;;  %7367 = vmatpush.bf16.msrb.mxu1 %v17292_v51  ;;  %v7406_v49 = vpack.c.bf16 %v7402_v38, %v7402_v38  ;;  %v7407_v51 = vpack.c.bf16 %v7403_v41, %v7403_v41  ;;  %v17181_v38 = vld [vmem:[%s21088_s2 + $0x2d8] sm:$0xff] }
 0x85f   : > { %5724 = vmatpush.bf16.msra.mxu2 %v17112_v39  ;;  %5737 = vmatpush.bf16.msra.mxu3 %v17120_v27  ;;  %v17183_v39 = vld [vmem:[%s21088_s2 + $0x2e8] sm:$0xff]  ;;  %v17381_v27 = vld [vmem:[%s21088_s2 + $0x118] sm:$0xff] }
 0x860   : > { %v7482_v4 = vshrl.u32 %v7407_v51, 16 }
 0x862   : > { %7355 = vmatpush.bf16.msrb.mxu0 %v17283_v17  ;;  %7368 = vmatpush.bf16.msrb.mxu1 %v17291_v18  ;;  %v7477_v17 = vshll.u32 %v7406_v49, 16  ;;  %v7484_v18 = vshll.u32 %v7407_v51, 16  ;;  %v17378_v51 = vld [vmem:[%s21088_s2 + $0x100] sm:$0xff] }
 0x863   : > { %5725 = vmatpush.bf16.msra.mxu2 %v17111_v32  ;;  %5738 = vmatpush.bf16.msra.mxu3 %v17119_v35  ;;  %v7828_v32 = vld [vmem:[#allocation2 + $0x88] sm:$0x1e] }
 0x864   : > { %v7486_v58 = vrot.slane %v7484_v18, 1 }
 0x866   : > { %7356 = vmatpush.bf16.msrb.mxu0 %v17282_v62  ;;  %7369 = vmatpush.bf16.msrb.mxu1 %v17290_v63  ;;  %v6023_v0 = vpop.f32.mrf.mxu0  ;;  %v6036_v34 = vpop.f32.mrf.mxu1  ;;  %v7475_v62 = vshrl.u32 %v7406_v49, 16  ;;  %v7479_v63 = vrot.slane %v7477_v17, 1 }
 0x867   : > { %v19412_v42 = vadd.f32 %v6036_v34, %v6023_v0  ;;  %5726 = vmatpush.bf16.msra.mxu2 %v17110_v24  ;;  %5739 = vmatpush.bf16.msra.mxu3 %v17118_v28  ;;  %v17182_v0 = vld [vmem:[%s21088_s2 + $0x2e0] sm:$0xff]  ;;  %v7827_v34 = vld [vmem:[#allocation2 + $0x8] sm:$0x1e]  ;;  %v17388_v24 = vld [vmem:[%s21088_s2 + $0x150] sm:$0xff] }
 0x868   : > { %v7480_v6 = vor.u32 %v7479_v63, %v7475_v62  ;;  %v17173_v28 = vld [vmem:[%s21088_s2 + $0x298] sm:$0xff]  ;;  %v7831_v41 = vpack.c.bf16 %v7827_v34, %v7827_v34  ;;  %v17170_v63 = vld [vmem:[%s21088_s2 + $0x280] sm:$0xff] }
 0x869   : > { %7357 = vmatmul.bf16.vlgmr.msrb.gmra.mxu0 %v7089_v13  ;;  %7370 = vmatmul.bf16.vlgmr.msrb.gmra.mxu1 %v7090_v14  ;;  %v5086_v13 = vld [vmem:[#allocation2 + $0x50] sm:$0xf]  ;;  %v17177_v14 = vld [vmem:[%s21088_s2 + $0x2b8] sm:$0xff] }
 0x86a   : > { %7698 = vmatpush.bf16.msra.mxu0 %v17321_v7  ;;  %7711 = vmatpush.bf16.msra.mxu1 %v17329_v8  ;;  %v7487_v7 = vor.u32 %v7486_v58, %v7482_v4  ;;  %v17106_v8 = vld [vmem:[%s21088_s2 + $0x80] sm:$0xff]  ;;  %v17352_v58 = vld [vmem:[%s21088_s2 + $0x30] sm:$0xff]  ;;  %v6069_v34 = vld [vmem:[#allocation2 + $0x78] sm:$0x1e] }
 0x86b   : > { %5727 = vmatpush.bf16.msra.mxu2 %v17109_v60  ;;  %5740 = vmatpush.bf16.msra.mxu3 %v17117_v40  ;;  %v17180_v60 = vld [vmem:[%s21088_s2 + $0x2d0] sm:$0xff]  ;;  %v7902_v40 = vshll.u32 %v7831_v41, 16  ;;  %v17178_v4 = vld [vmem:[%s21088_s2 + $0x2c0] sm:$0xff] }
 0x86d   : > { %v7904_v17 = vrot.slane %v7902_v40, 1  ;;  %v17425_v40 = vld [vmem:[%s21088_s2 + $0x278] sm:$0xff] }
 0x86e   : > { %7699 = vmatpush.bf16.msra.mxu0 %v17320_v19  ;;  %7712 = vmatpush.bf16.msra.mxu1 %v17328_v44  ;;  %v6025_v50 = vpop.f32.mrf.mxu0  ;;  %v6038_v47 = vpop.f32.mrf.mxu1  ;;  %v5090_v19 = vpack.c.bf16 %v5086_v13, %v5086_v13  ;;  %v5091_v44 = vpack.c.bf16 %v5087_v15, %v5087_v15  ;;  %v17359_v13 = vld [vmem:[%s21088_s2 + $0x68] sm:$0xff] }
 0x86f   : > { %5728 = vmatpush.bf16.msra.mxu2 %v17108_v56  ;;  %5741 = vmatpush.bf16.msra.mxu3 %v17116_v48  ;;  %v17387_v50 = vld [vmem:[%s21088_s2 + $0x148] sm:$0xff]  ;;  %v17172_v47 = vld [vmem:[%s21088_s2 + $0x290] sm:$0xff]  ;;  %v7900_v48 = vshrl.u32 %v7831_v41, 16  ;;  %v17346_v41 = vld [vmem:[%s21088_s2] sm:$0xff] }
 0x870   : > { %v17179_v56 = vld [vmem:[%s21088_s2 + $0x2c8] sm:$0xff] }
 0x872   : > { %7700 = vmatpush.bf16.msra.mxu0 %v17319_v30  ;;  %7713 = vmatpush.bf16.msra.mxu1 %v17327_v25  ;;  %v17175_v25 = vld [vmem:[%s21088_s2 + $0x2a8] sm:$0xff] }
 0x873   : > { %5729 = vmatpush.bf16.msra.mxu2 %v17107_v61  ;;  %5742 = vmatpush.bf16.msra.mxu3 %v17115_v59  ;;  %v17361_v61 = vld [vmem:[%s21088_s2 + $0x78] sm:$0xff]  ;;  %v7905_v59 = vor.u32 %v7904_v17, %v7900_v48  ;;  %v17202_v48 = vld [vmem:[%s21088_s2 + $0x380] sm:$0xff] }
 0x874   : > { %v17210_v17 = vld [vmem:[%s21088_s2 + $0x3c0] sm:$0xff] }
 0x876   : > { %7701 = vmatpush.bf16.msra.mxu0 %v17318_v31  ;;  %7714 = vmatpush.bf16.msra.mxu1 %v17326_v33  ;;  %v17389_v31 = vld [vmem:[%s21088_s2 + $0x158] sm:$0xff]  ;;  %v17174_v33 = vld [vmem:[%s21088_s2 + $0x2a0] sm:$0xff] }
 0x877   : > { %5730 = vmatpush.bf16.msra.mxu2 %v17106_v8  ;;  %5743 = vmatpush.bf16.msra.mxu3 %v17114_v2  ;;  %v5752_v8 = vld [vmem:[#allocation2 + $0x80] sm:$0xf] }
 0x87a   : > { %7702 = vmatpush.bf16.msra.mxu0 %v17317_v9  ;;  %7715 = vmatpush.bf16.msra.mxu1 %v17325_v10  ;;  %v17380_v10 = vld [vmem:[%s21088_s2 + $0x110] sm:$0xff] }
 0x87b   : > { %6040 = vmatpush.bf16.msrb.mxu2 %v17177_v14  ;;  %6053 = vmatpush.bf16.msrb.mxu3 %v17185_v3  ;;  %v17208_v14 = vld [vmem:[%s21088_s2 + $0x3b0] sm:$0xff] }
 0x87c   : > { %5731 = vmatmul.bf16.vlgmr.msra.gmra.mxu2 %v5090_v19  ;;  %5744 = vmatmul.bf16.vlgmr.msra.gmra.mxu3 %v5091_v44  ;;  %v17216_v3 = vld [vmem:[%s21088_s2 + $0x3f0] sm:$0xff] }
 0x87e   : > { %7703 = vmatpush.bf16.msra.mxu0 %v17316_v43  ;;  %7716 = vmatpush.bf16.msra.mxu1 %v17324_v55  ;;  %v7832_v43 = vpack.c.bf16 %v7828_v32, %v7828_v32  ;;  %v17379_v55 = vld [vmem:[%s21088_s2 + $0x108] sm:$0xff]  ;;  %v6070_v32 = vld [vmem:[#allocation2 + $0x80] sm:$0x1e] }
 0x87f   : > { %6041 = vmatpush.bf16.msrb.mxu2 %v17176_v16  ;;  %6054 = vmatpush.bf16.msrb.mxu3 %v17184_v20  ;;  %v17207_v16 = vld [vmem:[%s21088_s2 + $0x3a8] sm:$0xff] }
 0x880   : > { %v7909_v49 = vshll.u32 %v7832_v43, 16  ;;  %v7907_v18 = vshrl.u32 %v7832_v43, 16  ;;  %v17215_v20 = vld [vmem:[%s21088_s2 + $0x3e8] sm:$0xff]  ;;  %v17354_v43 = vld [vmem:[%s21088_s2 + $0x40] sm:$0xff] }
 0x882   : > { %7704 = vmatpush.bf16.msra.mxu0 %v17315_v46  ;;  %7717 = vmatpush.bf16.msra.mxu1 %v17323_v57  ;;  %v17386_v46 = vld [vmem:[%s21088_s2 + $0x140] sm:$0xff]  ;;  %v17171_v57 = vld [vmem:[%s21088_s2 + $0x288] sm:$0xff] }
 0x883   : > { %6042 = vmatpush.bf16.msrb.mxu2 %v17175_v25  ;;  %6055 = vmatpush.bf16.msrb.mxu3 %v17183_v39 }
 0x886   : > { %7705 = vmatpush.bf16.msra.mxu0 %v17314_v53  ;;  %7718 = vmatpush.bf16.msra.mxu1 %v17322_v54  ;;  %v6373_v21 = vpop.f32.mrf.mxu0  ;;  %v6386_v22 = vpop.f32.mrf.mxu1  ;;  %v7911_v53 = vrot.slane %v7909_v49, 1  ;;  %v17353_v54 = vld [vmem:[%s21088_s2 + $0x38] sm:$0xff]  ;;  %v7756_v49 = vld [vmem:[#allocation2 + $0x88] sm:$0xf] }
 0x887   : > { %v19504_v30 = vadd.f32 %v6386_v22, %v6373_v21  ;;  %6043 = vmatpush.bf16.msrb.mxu2 %v17174_v33  ;;  %6056 = vmatpush.bf16.msrb.mxu3 %v17182_v0  ;;  %v17349_v21 = vld [vmem:[%s21088_s2 + $0x18] sm:$0xff] }
 0x888   : > { %v7912_v62 = vor.u32 %v7911_v53, %v7907_v18  ;;  %v17357_v22 = vld [vmem:[%s21088_s2 + $0x58] sm:$0xff]  ;;  %v17416_v18 = vld [vmem:[%s21088_s2 + $0x230] sm:$0xff] }
 0x889   : > { %7706 = vmatmul.bf16.vlgmr.msra.gmra.mxu0 %v7480_v6  ;;  %7719 = vmatmul.bf16.vlgmr.msra.gmra.mxu1 %v7487_v7  ;;  %v17209_v6 = vld [vmem:[%s21088_s2 + $0x3b8] sm:$0xff]  ;;  %v17424_v53 = vld [vmem:[%s21088_s2 + $0x270] sm:$0xff] }
 0x88a   : > { %8123 = vmatpush.bf16.msrb.mxu0 %v17385_v37  ;;  %8136 = vmatpush.bf16.msrb.mxu1 %v17393_v5  ;;  %v17360_v37 = vld [vmem:[%s21088_s2 + $0x70] sm:$0xff]  ;;  %v5751_v5 = vld [vmem:[#allocation2 + $0x78] sm:$0xf] }
 0x88b   : > { %6044 = vmatpush.bf16.msrb.mxu2 %v17173_v28  ;;  %6057 = vmatpush.bf16.msrb.mxu3 %v17181_v38  ;;  %v17217_v7 = vld [vmem:[%s21088_s2 + $0x3f8] sm:$0xff]  ;;  %v5755_v2 = vpack.c.bf16 %v5751_v5, %v5751_v5  ;;  %v6073_v28 = vpack.c.bf16 %v6069_v34, %v6069_v34  ;;  %v6074_v38 = vpack.c.bf16 %v6070_v32, %v6070_v32  ;;  %v17415_v5 = vld [vmem:[%s21088_s2 + $0x228] sm:$0xff]  ;;  %v17268_v34 = vld [vmem:[%s21088_s2 + $0x190] sm:$0xff] }
 0x88c   : > { %v17205_v33 = vld [vmem:[%s21088_s2 + $0x398] sm:$0xff]  ;;  %v17276_v32 = vld [vmem:[%s21088_s2 + $0x1d0] sm:$0xff] }
 0x88d   : > { %v17213_v0 = vld [vmem:[%s21088_s2 + $0x3d8] sm:$0xff] }
 0x88e   : > { %8124 = vmatpush.bf16.msrb.mxu0 %v17384_v11  ;;  %8137 = vmatpush.bf16.msrb.mxu1 %v17392_v12  ;;  %v6375_v35 = vpop.f32.mrf.mxu0  ;;  %v6388_v9 = vpop.f32.mrf.mxu1  ;;  %v5756_v11 = vpack.c.bf16 %v5752_v8, %v5752_v8  ;;  %v17351_v12 = vld [vmem:[%s21088_s2 + $0x28] sm:$0xff]  ;;  %v17280_v8 = vld [vmem:[%s21088_s2 + $0x1f0] sm:$0xff] }
 0x88f   : > { %6045 = vmatpush.bf16.msrb.mxu2 %v17172_v47  ;;  %6058 = vmatpush.bf16.msrb.mxu3 %v17180_v60  ;;  %v17347_v35 = vld [vmem:[%s21088_s2 + $0x8] sm:$0xff]  ;;  %v17417_v60 = vld [vmem:[%s21088_s2 + $0x238] sm:$0xff] }
 0x890   : > { %v17355_v9 = vld [vmem:[%s21088_s2 + $0x48] sm:$0xff] }
 0x891   : > { %v7755_v47 = vld [vmem:[#allocation2 + $0x8] sm:$0xf] }
 0x892   : > { %8125 = vmatpush.bf16.msrb.mxu0 %v17383_v26  ;;  %8138 = vmatpush.bf16.msrb.mxu1 %v17391_v45  ;;  %v17350_v26 = vld [vmem:[%s21088_s2 + $0x20] sm:$0xff] }
 0x893   : > { %6046 = vmatpush.bf16.msrb.mxu2 %v17171_v57  ;;  %6059 = vmatpush.bf16.msrb.mxu3 %v17179_v56  ;;  %v17358_v45 = vld [vmem:[%s21088_s2 + $0x60] sm:$0xff]  ;;  %v7759_v57 = vpack.c.bf16 %v7755_v47, %v7755_v47  ;;  %v7760_v56 = vpack.c.bf16 %v7756_v49, %v7756_v49 }
 0x896   : > { %8126 = vmatpush.bf16.msrb.mxu0 %v17382_v23  ;;  %8139 = vmatpush.bf16.msrb.mxu1 %v17390_v29  ;;  %v17206_v23 = vld [vmem:[%s21088_s2 + $0x3a0] sm:$0xff] }
 0x897   : > { %6047 = vmatpush.bf16.msrb.mxu2 %v17170_v63  ;;  %6060 = vmatpush.bf16.msrb.mxu3 %v17178_v4  ;;  %v17214_v29 = vld [vmem:[%s21088_s2 + $0x3e0] sm:$0xff]  ;;  %v17273_v63 = vld [vmem:[%s21088_s2 + $0x1b8] sm:$0xff] }
 0x898   : > { %v17281_v4 = vld [vmem:[%s21088_s2 + $0x1f8] sm:$0xff] }
 0x89a   : > { %8127 = vmatpush.bf16.msrb.mxu0 %v17381_v27  ;;  %8140 = vmatpush.bf16.msrb.mxu1 %v17389_v31  ;;  %v17348_v27 = vld [vmem:[%s21088_s2 + $0x10] sm:$0xff] }
 0x89b   : > { %6390 = vmatpush.bf16.msra.mxu2 %v17209_v6  ;;  %6403 = vmatpush.bf16.msra.mxu3 %v17217_v7  ;;  %v17356_v31 = vld [vmem:[%s21088_s2 + $0x50] sm:$0xff]  ;;  %v17423_v6 = vld [vmem:[%s21088_s2 + $0x268] sm:$0xff] }
 0x89c   : > { %6048 = vmatmul.bf16.vlgmr.msrb.gmra.mxu2 %v5755_v2  ;;  %6061 = vmatmul.bf16.vlgmr.msrb.gmra.mxu3 %v5756_v11  ;;  %v17272_v7 = vld [vmem:[%s21088_s2 + $0x1b0] sm:$0xff] }
 0x89e   : > { %8128 = vmatpush.bf16.msrb.mxu0 %v17380_v10  ;;  %8141 = vmatpush.bf16.msrb.mxu1 %v17388_v24  ;;  %v17204_v10 = vld [vmem:[%s21088_s2 + $0x390] sm:$0xff] }
 0x89f   : > { %6391 = vmatpush.bf16.msra.mxu2 %v17208_v14  ;;  %6404 = vmatpush.bf16.msra.mxu3 %v17216_v3  ;;  %v17212_v24 = vld [vmem:[%s21088_s2 + $0x3d0] sm:$0xff]  ;;  %v17271_v14 = vld [vmem:[%s21088_s2 + $0x1a8] sm:$0xff] }
 0x8a0   : > { %v17279_v3 = vld [vmem:[%s21088_s2 + $0x1e8] sm:$0xff] }
 0x8a2   : > { %8129 = vmatpush.bf16.msrb.mxu0 %v17379_v55  ;;  %8142 = vmatpush.bf16.msrb.mxu1 %v17387_v50  ;;  %v17203_v55 = vld [vmem:[%s21088_s2 + $0x388] sm:$0xff] }
 0x8a3   : > { %6392 = vmatpush.bf16.msra.mxu2 %v17207_v16  ;;  %6405 = vmatpush.bf16.msra.mxu3 %v17215_v20  ;;  %v17211_v50 = vld [vmem:[%s21088_s2 + $0x3c8] sm:$0xff] }
 0x8a6   : > { %8130 = vmatpush.bf16.msrb.mxu0 %v17378_v51  ;;  %8143 = vmatpush.bf16.msrb.mxu1 %v17386_v46  ;;  %v6798_v15 = vpop.f32.mrf.mxu0  ;;  %v6811_v19 = vpop.f32.mrf.mxu1  ;;  %v6157_v51 = vshll.u32 %v6073_v28, 16  ;;  %v6164_v46 = vshll.u32 %v6074_v38, 16 }
 0x8a7   : > { %v19596_v44 = vadd.f32 %v6811_v19, %v6798_v15  ;;  %6393 = vmatpush.bf16.msra.mxu2 %v17206_v23  ;;  %6406 = vmatpush.bf16.msra.mxu3 %v17214_v29  ;;  %v17413_v15 = vld [vmem:[%s21088_s2 + $0x218] sm:$0xff] }
 0x8a8   : > { %v17421_v19 = vld [vmem:[%s21088_s2 + $0x258] sm:$0xff] }
 0x8a9   : > { %8131 = vmatmul.bf16.vlgmr.msrb.gmra.mxu0 %v7905_v59  ;;  %8144 = vmatmul.bf16.vlgmr.msrb.gmra.mxu1 %v7912_v62  ;;  %v6162_v59 = vshrl.u32 %v6074_v38, 16  ;;  %v6166_v62 = vrot.slane %v6164_v46, 1  ;;  %v17269_v23 = vld [vmem:[%s21088_s2 + $0x198] sm:$0xff]  ;;  %v17275_v38 = vld [vmem:[%s21088_s2 + $0x1c8] sm:$0xff]  ;;  %v17274_v46 = vld [vmem:[%s21088_s2 + $0x1c0] sm:$0xff] }
 0x8aa   : > { %8367 = vmatpush.bf16.msra.mxu0 %v17353_v54  ;;  %8380 = vmatpush.bf16.msra.mxu1 %v17361_v61  ;;  %v6155_v54 = vshrl.u32 %v6073_v28, 16  ;;  %v6159_v61 = vrot.slane %v6157_v51, 1  ;;  %v17277_v29 = vld [vmem:[%s21088_s2 + $0x1d8] sm:$0xff]  ;;  %v17267_v28 = vld [vmem:[%s21088_s2 + $0x188] sm:$0xff]  ;;  %v17266_v51 = vld [vmem:[%s21088_s2 + $0x180] sm:$0xff] }
 0x8ab   : > { %6394 = vmatpush.bf16.msra.mxu2 %v17205_v33  ;;  %6407 = vmatpush.bf16.msra.mxu3 %v17213_v0  ;;  %v17411_v33 = vld [vmem:[%s21088_s2 + $0x208] sm:$0xff] }
 0x8ac   : > { %v17419_v0 = vld [vmem:[%s21088_s2 + $0x248] sm:$0xff] }
 0x8ae   : > { %8368 = vmatpush.bf16.msra.mxu0 %v17352_v58  ;;  %8381 = vmatpush.bf16.msra.mxu1 %v17360_v37  ;;  %v6800_v25 = vpop.f32.mrf.mxu0  ;;  %v6813_v39 = vpop.f32.mrf.mxu1  ;;  %v6160_v58 = vor.u32 %v6159_v61, %v6155_v54  ;;  %v6167_v37 = vor.u32 %v6166_v62, %v6162_v59  ;;  %v17241_v54 = vld [vmem:[%s21088_s2 + $0xb8] sm:$0xff] }
 0x8af   : > { %6395 = vmatpush.bf16.msra.mxu2 %v17204_v10  ;;  %6408 = vmatpush.bf16.msra.mxu3 %v17212_v24  ;;  %v17410_v10 = vld [vmem:[%s21088_s2 + $0x200] sm:$0xff]  ;;  %v17249_v61 = vld [vmem:[%s21088_s2 + $0xf8] sm:$0xff] }
 0x8b0   : > { %v17418_v24 = vld [vmem:[%s21088_s2 + $0x240] sm:$0xff] }
 0x8b2   : > { %8369 = vmatpush.bf16.msra.mxu0 %v17351_v12  ;;  %8382 = vmatpush.bf16.msra.mxu1 %v17359_v13  ;;  %v17414_v12 = vld [vmem:[%s21088_s2 + $0x220] sm:$0xff] }
 0x8b3   : > { %6396 = vmatpush.bf16.msra.mxu2 %v17203_v55  ;;  %6409 = vmatpush.bf16.msra.mxu3 %v17211_v50  ;;  %v17422_v13 = vld [vmem:[%s21088_s2 + $0x260] sm:$0xff]  ;;  %v17457_v55 = vld [vmem:[%s21088_s2 + $0x378] sm:$0xff]  ;;  %v8420_v50 = vld [vmem:[#allocation2 + $0x10] sm:$0xf] }
 0x8b4   : > { %v8424_v49 = vpack.c.bf16 %v8420_v50, %v8420_v50 }
 0x8b6   : > { %8370 = vmatpush.bf16.msra.mxu0 %v17350_v26  ;;  %8383 = vmatpush.bf16.msra.mxu1 %v17358_v45  ;;  %v17270_v26 = vld [vmem:[%s21088_s2 + $0x1a0] sm:$0xff] }
 0x8b7   : > { %6397 = vmatpush.bf16.msra.mxu2 %v17202_v48  ;;  %6410 = vmatpush.bf16.msra.mxu3 %v17210_v17  ;;  %v17278_v45 = vld [vmem:[%s21088_s2 + $0x1e0] sm:$0xff] }
 0x8ba   : > { %8371 = vmatpush.bf16.msra.mxu0 %v17349_v21  ;;  %8384 = vmatpush.bf16.msra.mxu1 %v17357_v22  ;;  %v17412_v21 = vld [vmem:[%s21088_s2 + $0x210] sm:$0xff] }
 0x8bb   : > { %6815 = vmatpush.bf16.msrb.mxu2 %v17273_v63  ;;  %6828 = vmatpush.bf16.msrb.mxu3 %v17281_v4  ;;  %v17420_v22 = vld [vmem:[%s21088_s2 + $0x250] sm:$0xff]  ;;  %v5059_v25 = vpop.f32.mrf.mxu2  ;;  %v5079_v39 = vpop.f32.mrf.mxu3  ;;  %v17447_v63 = vld [vmem:[%s21088_s2 + $0x328] sm:$0xff] }
 0x8bc   : > { %6398 = vmatmul.bf16.vlgmr.msra.gmra.mxu2 %v6160_v58  ;;  %6411 = vmatmul.bf16.vlgmr.msra.gmra.mxu3 %v6167_v37  ;;  %5082 = vst [vmem:[#allocation2 + $0x70] sm:$0x1f] %v5059_v25  ;;  %v17455_v4 = vld [vmem:[%s21088_s2 + $0x368] sm:$0xff]  ;;  %v17240_v58 = vld [vmem:[%s21088_s2 + $0xb0] sm:$0xff]  ;;  %v17245_v25 = vld [vmem:[%s21088_s2 + $0xd8] sm:$0xff] }
 0x8bd   : > { %5083 = vst [vmem:[#allocation2 + $0x90] sm:$0x1f] %v5079_v39  ;;  %v17248_v37 = vld [vmem:[%s21088_s2 + $0xf0] sm:$0xff] }
 0x8be   : > { %8372 = vmatpush.bf16.msra.mxu0 %v17348_v27  ;;  %8385 = vmatpush.bf16.msra.mxu1 %v17356_v31  ;;  %v6495_v27 = vld [vmem:[#allocation2 + $0x78] sm:$0x1e]  ;;  %v6496_v31 = vld [vmem:[#allocation2 + $0x80] sm:$0x1e] }
 0x8bf   : > { %6816 = vmatpush.bf16.msrb.mxu2 %v17272_v7  ;;  %6829 = vmatpush.bf16.msrb.mxu3 %v17280_v8  ;;  %v17446_v8 = vld [vmem:[%s21088_s2 + $0x320] sm:$0xff] }
 0x8c2   : > { %8373 = vmatpush.bf16.msra.mxu0 %v17347_v35  ;;  %8386 = vmatpush.bf16.msra.mxu1 %v17355_v9  ;;  %v6499_v35 = vpack.c.bf16 %v6495_v27, %v6495_v27  ;;  %v6500_v9 = vpack.c.bf16 %v6496_v31, %v6496_v31 }
 0x8c3   : > { %6817 = vmatpush.bf16.msrb.mxu2 %v17271_v14  ;;  %6830 = vmatpush.bf16.msrb.mxu3 %v17279_v3  ;;  %v17247_v14 = vld [vmem:[%s21088_s2 + $0xe8] sm:$0xff]  ;;  %v17445_v3 = vld [vmem:[%s21088_s2 + $0x318] sm:$0xff] }
 0x8c4   : > { %v6582_v47 = vshll.u32 %v6499_v35, 16  ;;  %v6580_v48 = vshrl.u32 %v6499_v35, 16  ;;  %v17451_v35 = vld [vmem:[%s21088_s2 + $0x348] sm:$0xff] }
 0x8c6   : > { %8374 = vmatpush.bf16.msra.mxu0 %v17346_v41  ;;  %8387 = vmatpush.bf16.msra.mxu1 %v17354_v43  ;;  %v19694_v2 = vpop.f32.mrf.mxu0  ;;  %v19696_v11 = vpop.f32.mrf.mxu1  ;;  %v8419_v41 = vld [vmem:[#allocation2 + $0x58] sm:$0xf]  ;;  %v6584_v17 = vrot.slane %v6582_v47, 1 }
 0x8c7   : > { %6818 = vmatpush.bf16.msrb.mxu2 %v17270_v26  ;;  %6831 = vmatpush.bf16.msrb.mxu3 %v17278_v45  ;;  %v17449_v43 = vld [vmem:[%s21088_s2 + $0x338] sm:$0xff]  ;;  %v17246_v26 = vld [vmem:[%s21088_s2 + $0xe0] sm:$0xff] }
 0x8c8   : > { %v6585_v59 = vor.u32 %v6584_v17, %v6580_v48  ;;  %v17234_v48 = vld [vmem:[%s21088_s2 + $0x80] sm:$0xff] }
 0x8c9   : > { %8375 = vmatmul.bf16.vlgmr.msra.gmra.mxu0 %v7759_v57  ;;  %8388 = vmatmul.bf16.vlgmr.msra.gmra.mxu1 %v7760_v56  ;;  %v17448_v57 = vld [vmem:[%s21088_s2 + $0x330] sm:$0xff]  ;;  %v17242_v17 = vld [vmem:[%s21088_s2 + $0xc0] sm:$0xff] }
 0x8ca   : > { %8683 = vmatpush.bf16.msrb.mxu0 %v17417_v60  ;;  %8696 = vmatpush.bf16.msrb.mxu1 %v17425_v40  ;;  %v6589_v60 = vshll.u32 %v6500_v9, 16  ;;  %v8423_v40 = vpack.c.bf16 %v8419_v41, %v8419_v41  ;;  %v17456_v56 = vld [vmem:[%s21088_s2 + $0x370] sm:$0xff]  ;;  %v17235_v41 = vld [vmem:[%s21088_s2 + $0x88] sm:$0xff] }
 0x8cb   : > { %6819 = vmatpush.bf16.msrb.mxu2 %v17269_v23  ;;  %6832 = vmatpush.bf16.msrb.mxu3 %v17277_v29  ;;  %v17452_v23 = vld [vmem:[%s21088_s2 + $0x350] sm:$0xff]  ;;  %v17237_v29 = vld [vmem:[%s21088_s2 + $0x98] sm:$0xff] }
 0x8ce   : > { %8684 = vmatpush.bf16.msrb.mxu0 %v17416_v18  ;;  %8697 = vmatpush.bf16.msrb.mxu1 %v17424_v53  ;;  %v7044_v16 = vpop.f32.mrf.mxu0  ;;  %v7057_v20 = vpop.f32.mrf.mxu1  ;;  %v6587_v18 = vshrl.u32 %v6500_v9, 16  ;;  %v6591_v53 = vrot.slane %v6589_v60, 1  ;;  %v17236_v9 = vld [vmem:[%s21088_s2 + $0x90] sm:$0xff] }
 0x8cf   : > { %6820 = vmatpush.bf16.msrb.mxu2 %v17268_v34  ;;  %6833 = vmatpush.bf16.msrb.mxu3 %v17276_v32  ;;  %v8736_v20 = vld [vmem:[#allocation2 + $0x58] sm:$0x1e]  ;;  %v17443_v32 = vld [vmem:[%s21088_s2 + $0x308] sm:$0xff] }
 0x8d0   : > { %v6592_v62 = vor.u32 %v6591_v53, %v6587_v18  ;;  %v8740_v31 = vpack.c.bf16 %v8736_v20, %v8736_v20  ;;  %v17512_v18 = vld [vmem:[%s21088_s2 + $0x130] sm:$0xff]  ;;  %v17310_v20 = vld [vmem:[%s21088_s2 + $0x2e0] sm:$0xff] }
 0x8d1   : > { %v17520_v53 = vld [vmem:[%s21088_s2 + $0x170] sm:$0xff] }
 0x8d2   : > { %8685 = vmatpush.bf16.msrb.mxu0 %v17415_v5  ;;  %8698 = vmatpush.bf16.msrb.mxu1 %v17423_v6  ;;  %v8809_v47 = vshrl.u32 %v8740_v31, 16 }
 0x8d3   : > { %6821 = vmatpush.bf16.msrb.mxu2 %v17267_v28  ;;  %6834 = vmatpush.bf16.msrb.mxu3 %v17275_v38  ;;  %v17442_v28 = vld [vmem:[%s21088_s2 + $0x300] sm:$0xff] }
 0x8d4   : > { %v17450_v38 = vld [vmem:[%s21088_s2 + $0x340] sm:$0xff] }
 0x8d6   : > { %8686 = vmatpush.bf16.msrb.mxu0 %v17414_v12  ;;  %8699 = vmatpush.bf16.msrb.mxu1 %v17422_v13  ;;  %v17454_v12 = vld [vmem:[%s21088_s2 + $0x360] sm:$0xff]  ;;  %v17239_v13 = vld [vmem:[%s21088_s2 + $0xa8] sm:$0xff] }
 0x8d7   : > { %6822 = vmatpush.bf16.msrb.mxu2 %v17266_v51  ;;  %6835 = vmatpush.bf16.msrb.mxu3 %v17274_v46  ;;  %v17513_v51 = vld [vmem:[%s21088_s2 + $0x138] sm:$0xff] }
 0x8d8   : > { %v17521_v46 = vld [vmem:[%s21088_s2 + $0x178] sm:$0xff] }
 0x8da   : > { %8687 = vmatpush.bf16.msrb.mxu0 %v17413_v15  ;;  %8700 = vmatpush.bf16.msrb.mxu1 %v17421_v19  ;;  %v17453_v15 = vld [vmem:[%s21088_s2 + $0x358] sm:$0xff]  ;;  %v17238_v19 = vld [vmem:[%s21088_s2 + $0xa0] sm:$0xff] }
 0x8db   : > { %7059 = vmatpush.bf16.msra.mxu2 %v17241_v54  ;;  %7072 = vmatpush.bf16.msra.mxu3 %v17249_v61  ;;  %v6423_v54 = vld [vmem:[#allocation2 + $0x78] sm:$0xf] }
 0x8dc   : > { %6823 = vmatmul.bf16.vlgmr.msrb.gmra.mxu2 %v6585_v59  ;;  %6836 = vmatmul.bf16.vlgmr.msrb.gmra.mxu3 %v6592_v62  ;;  %v17305_v61 = vld [vmem:[%s21088_s2 + $0x2b8] sm:$0xff]  ;;  %v6424_v62 = vld [vmem:[#allocation2 + $0x80] sm:$0xf] }
 0x8dd   : > { %v17313_v59 = vld [vmem:[%s21088_s2 + $0x2f8] sm:$0xff] }
 0x8de   : > { %8688 = vmatpush.bf16.msrb.mxu0 %v17412_v21  ;;  %8701 = vmatpush.bf16.msrb.mxu1 %v17420_v22  ;;  %v8737_v21 = vld [vmem:[#allocation2 + $0x10] sm:$0x1e] }
 0x8df   : > { %7060 = vmatpush.bf16.msra.mxu2 %v17240_v58  ;;  %7073 = vmatpush.bf16.msra.mxu3 %v17248_v37  ;;  %v17444_v22 = vld [vmem:[%s21088_s2 + $0x310] sm:$0xff]  ;;  %v5488_v39 = vpop.f32.mrf.mxu2  ;;  %v5501_v27 = vpop.f32.mrf.mxu3  ;;  %v17511_v58 = vld [vmem:[%s21088_s2 + $0x128] sm:$0xff] }
 0x8e0   : > { %v17519_v37 = vld [vmem:[%s21088_s2 + $0x168] sm:$0xff] }
 0x8e2   : > { %8689 = vmatpush.bf16.msrb.mxu0 %v17411_v33  ;;  %8702 = vmatpush.bf16.msrb.mxu1 %v17419_v0  ;;  %v8741_v33 = vpack.c.bf16 %v8737_v21, %v8737_v21  ;;  %v5489_v0 = vadd.f32 %v5488_v39, %v19278_v1  ;;  %v17244_v1 = vld [vmem:[%s21088_s2 + $0xd0] sm:$0xff] }
 0x8e3   : > { %7061 = vmatpush.bf16.msra.mxu2 %v17239_v13  ;;  %7074 = vmatpush.bf16.msra.mxu3 %v17247_v14  ;;  %v17510_v14 = vld [vmem:[%s21088_s2 + $0x120] sm:$0xff]  ;;  %v17516_v39 = vld [vmem:[%s21088_s2 + $0x150] sm:$0xff] }
 0x8e4   : > { %v19833_v34 = vadd.f32 %v5501_v27, %v5489_v0  ;;  %v17301_v27 = vld [vmem:[%s21088_s2 + $0x298] sm:$0xff] }
 0x8e6   : > { %8690 = vmatpush.bf16.msrb.mxu0 %v17410_v10  ;;  %8703 = vmatpush.bf16.msrb.mxu1 %v17418_v24  ;;  %v7358_v5 = vpop.f32.mrf.mxu0  ;;  %v7371_v6 = vpop.f32.mrf.mxu1  ;;  %v8811_v10 = vshll.u32 %v8740_v31, 16  ;;  %v8818_v24 = vshll.u32 %v8741_v33, 16  ;;  %v17309_v31 = vld [vmem:[%s21088_s2 + $0x2d8] sm:$0xff] }
 0x8e7   : > { %v19794_v7 = vadd.f32 %v7371_v6, %v7358_v5  ;;  %7062 = vmatpush.bf16.msra.mxu2 %v17238_v19  ;;  %7075 = vmatpush.bf16.msra.mxu3 %v17246_v26  ;;  %v5503_v50 = vpop.f32.mrf.mxu3  ;;  %v17304_v5 = vld [vmem:[%s21088_s2 + $0x2b0] sm:$0xff]  ;;  %v17311_v19 = vld [vmem:[%s21088_s2 + $0x2e8] sm:$0xff]  ;;  %v17509_v26 = vld [vmem:[%s21088_s2 + $0x118] sm:$0xff] }
 0x8e8   : > { %v8813_v60 = vrot.slane %v8811_v10, 1  ;;  %v17312_v6 = vld [vmem:[%s21088_s2 + $0x2f0] sm:$0xff]  ;;  %v17307_v50 = vld [vmem:[%s21088_s2 + $0x2c8] sm:$0xff] }
 0x8e9   : > { %8691 = vmatmul.bf16.vlgmr.msrb.gmra.mxu0 %v8423_v40  ;;  %8704 = vmatmul.bf16.vlgmr.msrb.gmra.mxu1 %v8424_v49  ;;  %v8816_v40 = vshrl.u32 %v8741_v33, 16  ;;  %v8820_v49 = vrot.slane %v8818_v24, 1  ;;  %v17300_v10 = vld [vmem:[%s21088_s2 + $0x290] sm:$0xff] }
 0x8ea   : > { %9032 = vmatpush.bf16.msra.mxu0 %v17449_v43  ;;  %9045 = vmatpush.bf16.msra.mxu1 %v17457_v55  ;;  %v17243_v43 = vld [vmem:[%s21088_s2 + $0xc8] sm:$0xff]  ;;  %v5490_v55 = vpop.f32.mrf.mxu2  ;;  %v17308_v24 = vld [vmem:[%s21088_s2 + $0x2d0] sm:$0xff] }
 0x8eb   : > { %7063 = vmatpush.bf16.msra.mxu2 %v17237_v29  ;;  %7076 = vmatpush.bf16.msra.mxu3 %v17245_v25  ;;  %v9162_v29 = vld [vmem:[#allocation2 + $0x10] sm:$0x1e]  ;;  %v17299_v55 = vld [vmem:[%s21088_s2 + $0x288] sm:$0xff] }
 0x8ec   : > { %v17508_v25 = vld [vmem:[%s21088_s2 + $0x110] sm:$0xff] }
 0x8ee   : > { %9033 = vmatpush.bf16.msra.mxu0 %v17448_v57  ;;  %9046 = vmatpush.bf16.msra.mxu1 %v17456_v56  ;;  %v7360_v45 = vpop.f32.mrf.mxu0  ;;  %v7373_v16 = vpop.f32.mrf.mxu1  ;;  %v8814_v57 = vor.u32 %v8813_v60, %v8809_v47  ;;  %v8821_v56 = vor.u32 %v8820_v49, %v8816_v40 }
 0x8ef   : > { %7064 = vmatpush.bf16.msra.mxu2 %v17236_v9  ;;  %7077 = vmatpush.bf16.msra.mxu3 %v17244_v1  ;;  %v17517_v45 = vld [vmem:[%s21088_s2 + $0x158] sm:$0xff]  ;;  %v17302_v16 = vld [vmem:[%s21088_s2 + $0x2a0] sm:$0xff]  ;;  %v17507_v9 = vld [vmem:[%s21088_s2 + $0x108] sm:$0xff] }
 0x8f0   : > { %v17515_v1 = vld [vmem:[%s21088_s2 + $0x148] sm:$0xff] }
 0x8f2   : > { %9034 = vmatpush.bf16.msra.mxu0 %v17447_v63  ;;  %9047 = vmatpush.bf16.msra.mxu1 %v17455_v4  ;;  %v6427_v63 = vpack.c.bf16 %v6423_v54, %v6423_v54  ;;  %v6428_v4 = vpack.c.bf16 %v6424_v62, %v6424_v62  ;;  %v17480_v54 = vld [vmem:[%s21088_s2 + $0x30] sm:$0xff]  ;;  %v17337_v62 = vld [vmem:[%s21088_s2 + $0x3b8] sm:$0xff] }
 0x8f3   : > { %7065 = vmatpush.bf16.msra.mxu2 %v17235_v41  ;;  %7078 = vmatpush.bf16.msra.mxu3 %v17243_v43  ;;  %v17506_v41 = vld [vmem:[%s21088_s2 + $0x100] sm:$0xff] }
 0x8f4   : > { %v17514_v43 = vld [vmem:[%s21088_s2 + $0x140] sm:$0xff] }
 0x8f6   : > { %9035 = vmatpush.bf16.msra.mxu0 %v17446_v8  ;;  %9048 = vmatpush.bf16.msra.mxu1 %v17454_v12 }
 0x8f7   : > { %7066 = vmatpush.bf16.msra.mxu2 %v17234_v48  ;;  %7079 = vmatpush.bf16.msra.mxu3 %v17242_v17 }
 0x8fa   : > { %9036 = vmatpush.bf16.msra.mxu0 %v17445_v3  ;;  %9049 = vmatpush.bf16.msra.mxu1 %v17453_v15  ;;  %v17518_v3 = vld [vmem:[%s21088_s2 + $0x160] sm:$0xff]  ;;  %v17303_v15 = vld [vmem:[%s21088_s2 + $0x2a8] sm:$0xff] }
 0x8fb   : > { %7375 = vmatpush.bf16.msrb.mxu2 %v17305_v61  ;;  %7388 = vmatpush.bf16.msrb.mxu3 %v17313_v59  ;;  %v17488_v61 = vld [vmem:[%s21088_s2 + $0x70] sm:$0xff]  ;;  %v7087_v59 = vld [vmem:[#allocation2 + $0x28] sm:$0xf] }
 0x8fc   : > { %7067 = vmatmul.bf16.vlgmr.msra.gmra.mxu2 %v6427_v63  ;;  %7080 = vmatmul.bf16.vlgmr.msra.gmra.mxu3 %v6428_v4  ;;  %v17345_v63 = vld [vmem:[%s21088_s2 + $0x3f8] sm:$0xff]  ;;  %v7088_v4 = vld [vmem:[#allocation2 + $0x40] sm:$0xf] }
 0x8fe   : > { %9037 = vmatpush.bf16.msra.mxu0 %v17444_v22  ;;  %9050 = vmatpush.bf16.msra.mxu1 %v17452_v23  ;;  %v9161_v23 = vld [vmem:[#allocation2 + $0x58] sm:$0x1e] }
 0x8ff   : > { %7376 = vmatpush.bf16.msrb.mxu2 %v17304_v5  ;;  %7389 = vmatpush.bf16.msrb.mxu3 %v17312_v6  ;;  %v19933_v33 = vpop.f32.mrf.mxu2  ;;  %v19935_v0 = vpop.f32.mrf.mxu3  ;;  %v17479_v5 = vld [vmem:[%s21088_s2 + $0x28] sm:$0xff] }
 0x900   : > { %v17487_v6 = vld [vmem:[%s21088_s2 + $0x68] sm:$0xff] }
 0x902   : > { %9038 = vmatpush.bf16.msra.mxu0 %v17443_v32  ;;  %9051 = vmatpush.bf16.msra.mxu1 %v17451_v35  ;;  %v9165_v32 = vpack.c.bf16 %v9161_v23, %v9161_v23  ;;  %v9166_v35 = vpack.c.bf16 %v9162_v29, %v9162_v29  ;;  %v17334_v23 = vld [vmem:[%s21088_s2 + $0x3a0] sm:$0xff] }
 0x903   : > { %7377 = vmatpush.bf16.msrb.mxu2 %v17303_v15  ;;  %7390 = vmatpush.bf16.msrb.mxu3 %v17311_v19  ;;  %v17478_v19 = vld [vmem:[%s21088_s2 + $0x20] sm:$0xff] }
 0x904   : > { %v9234_v40 = vshrl.u32 %v9165_v32, 16 }
 0x906   : > { %9039 = vmatpush.bf16.msra.mxu0 %v17442_v28  ;;  %9052 = vmatpush.bf16.msra.mxu1 %v17450_v38  ;;  %v7707_v8 = vpop.f32.mrf.mxu0  ;;  %v7720_v12 = vpop.f32.mrf.mxu1  ;;  %v9236_v28 = vshll.u32 %v9165_v32, 16  ;;  %v9243_v38 = vshll.u32 %v9166_v35, 16 }
 0x907   : > { %v19895_v13 = vadd.f32 %v7720_v12, %v7707_v8  ;;  %7378 = vmatpush.bf16.msrb.mxu2 %v17302_v16  ;;  %7391 = vmatpush.bf16.msrb.mxu3 %v17310_v20  ;;  %v5734_v47 = vpop.f32.mrf.mxu2  ;;  %v5747_v60 = vpop.f32.mrf.mxu3  ;;  %v17336_v8 = vld [vmem:[%s21088_s2 + $0x3b0] sm:$0xff]  ;;  %v17343_v16 = vld [vmem:[%s21088_s2 + $0x3e8] sm:$0xff]  ;;  %v5707_v20 = vadd.f32 %v19336_v36, %v19833_v34  ;;  %v17342_v36 = vld [vmem:[%s21088_s2 + $0x3e0] sm:$0xff] }
 0x908   : > { %v9238_v49 = vrot.slane %v9236_v28, 1  ;;  %v17344_v12 = vld [vmem:[%s21088_s2 + $0x3f0] sm:$0xff]  ;;  %v17474_v47 = vld [vmem:[%s21088_s2] sm:$0xff] }
 0x909   : > { %9040 = vmatmul.bf16.vlgmr.msra.gmra.mxu0 %v8814_v57  ;;  %9053 = vmatmul.bf16.vlgmr.msra.gmra.mxu1 %v8821_v56  ;;  %v17481_v57 = vld [vmem:[%s21088_s2 + $0x38] sm:$0xff]  ;;  %v5720_v34 = vadd.f32 %v19338_v52, %v5707_v20  ;;  %v17482_v60 = vld [vmem:[%s21088_s2 + $0x40] sm:$0xff] }
 0x90a   : > { %9457 = vmatpush.bf16.msrb.mxu0 %v17513_v51  ;;  %9470 = vmatpush.bf16.msrb.mxu1 %v17521_v46  ;;  %v9241_v51 = vshrl.u32 %v9166_v35, 16  ;;  %v9245_v46 = vrot.slane %v9243_v38, 1  ;;  %v17489_v56 = vld [vmem:[%s21088_s2 + $0x78] sm:$0xff]  ;;  %v9239_v48 = vor.u32 %v9238_v49, %v9234_v40  ;;  %v17475_v38 = vld [vmem:[%s21088_s2 + $0x8] sm:$0xff] }
 0x90b   : > { %7379 = vmatpush.bf16.msrb.mxu2 %v17301_v27  ;;  %7392 = vmatpush.bf16.msrb.mxu3 %v17309_v31  ;;  %v17476_v27 = vld [vmem:[%s21088_s2 + $0x10] sm:$0xff]  ;;  %v17333_v52 = vld [vmem:[%s21088_s2 + $0x398] sm:$0xff]  ;;  %v17331_v40 = vld [vmem:[%s21088_s2 + $0x388] sm:$0xff] }
 0x90c   : > { %v9246_v17 = vor.u32 %v9245_v46, %v9241_v51  ;;  %v17484_v31 = vld [vmem:[%s21088_s2 + $0x50] sm:$0xff]  ;;  %v17339_v49 = vld [vmem:[%s21088_s2 + $0x3c8] sm:$0xff] }
 0x90e   : > { %9458 = vmatpush.bf16.msrb.mxu0 %v17512_v18  ;;  %9471 = vmatpush.bf16.msrb.mxu1 %v17520_v53  ;;  %v7709_v21 = vpop.f32.mrf.mxu0  ;;  %v7722_v22 = vpop.f32.mrf.mxu1  ;;  %v17298_v18 = vld [vmem:[%s21088_s2 + $0x280] sm:$0xff] }
 0x90f   : > { %7380 = vmatpush.bf16.msrb.mxu2 %v17300_v10  ;;  %7393 = vmatpush.bf16.msrb.mxu3 %v17308_v24  ;;  %v17306_v53 = vld [vmem:[%s21088_s2 + $0x2c0] sm:$0xff]  ;;  %v17477_v21 = vld [vmem:[%s21088_s2 + $0x18] sm:$0xff] }
 0x910   : > { %v17485_v22 = vld [vmem:[%s21088_s2 + $0x58] sm:$0xff]  ;;  %v7405_v10 = vld [vmem:[#allocation2 + $0x40] sm:$0x1e] }
 0x912   : > { %9459 = vmatpush.bf16.msrb.mxu0 %v17511_v58  ;;  %9472 = vmatpush.bf16.msrb.mxu1 %v17519_v37  ;;  %v7091_v58 = vpack.c.bf16 %v7087_v59, %v7087_v59  ;;  %v7092_v37 = vpack.c.bf16 %v7088_v4, %v7088_v4  ;;  %v17330_v59 = vld [vmem:[%s21088_s2 + $0x380] sm:$0xff]  ;;  %v17552_v4 = vld [vmem:[%s21088_s2 + $0x270] sm:$0xff] }
 0x913   : > { %7381 = vmatpush.bf16.msrb.mxu2 %v17299_v55  ;;  %7394 = vmatpush.bf16.msrb.mxu3 %v17307_v50  ;;  %v7409_v50 = vpack.c.bf16 %v7405_v10, %v7405_v10 }
 0x916   : > { %9460 = vmatpush.bf16.msrb.mxu0 %v17510_v14  ;;  %9473 = vmatpush.bf16.msrb.mxu1 %v17518_v3 }
 0x917   : > { %7382 = vmatpush.bf16.msrb.mxu2 %v17298_v18  ;;  %7395 = vmatpush.bf16.msrb.mxu3 %v17306_v53  ;;  %v7498_v53 = vshll.u32 %v7409_v50, 16 }
 0x91a   : > { %9461 = vmatpush.bf16.msrb.mxu0 %v17509_v26  ;;  %9474 = vmatpush.bf16.msrb.mxu1 %v17517_v45  ;;  %v17486_v26 = vld [vmem:[%s21088_s2 + $0x60] sm:$0xff]  ;;  %v17335_v45 = vld [vmem:[%s21088_s2 + $0x3a8] sm:$0xff] }
 0x91b   : > { %7724 = vmatpush.bf16.msra.mxu2 %v17337_v62  ;;  %7737 = vmatpush.bf16.msra.mxu3 %v17345_v63  ;;  %v17338_v62 = vld [vmem:[%s21088_s2 + $0x3c0] sm:$0xff]  ;;  %v17544_v63 = vld [vmem:[%s21088_s2 + $0x230] sm:$0xff] }
 0x91c   : > { %7383 = vmatmul.bf16.vlgmr.msrb.gmra.mxu2 %v7091_v58  ;;  %7396 = vmatmul.bf16.vlgmr.msrb.gmra.mxu3 %v7092_v37 }
 0x91e   : > { %9462 = vmatpush.bf16.msrb.mxu0 %v17508_v25  ;;  %9475 = vmatpush.bf16.msrb.mxu1 %v17516_v39  ;;  %v5733_v39 = vadd.f32 %v19933_v33, %v5720_v34  ;;  %v17341_v33 = vld [vmem:[%s21088_s2 + $0x3d8] sm:$0xff]  ;;  %v17407_v34 = vld [vmem:[%s21088_s2 + $0x1e8] sm:$0xff] }
 0x91f   : > { %7725 = vmatpush.bf16.msra.mxu2 %v17336_v8  ;;  %7738 = vmatpush.bf16.msra.mxu3 %v17344_v12  ;;  %v6049_v32 = vpop.f32.mrf.mxu2  ;;  %v6062_v35 = vpop.f32.mrf.mxu3  ;;  %v17401_v8 = vld [vmem:[%s21088_s2 + $0x1b8] sm:$0xff] }
 0x920   : > { %v5746_v24 = vadd.f32 %v19935_v0, %v5733_v39  ;;  %v17340_v0 = vld [vmem:[%s21088_s2 + $0x3d0] sm:$0xff]  ;;  %v17409_v12 = vld [vmem:[%s21088_s2 + $0x1f8] sm:$0xff]  ;;  %v17398_v39 = vld [vmem:[%s21088_s2 + $0x1a0] sm:$0xff] }
 0x922   : > { %9463 = vmatpush.bf16.msrb.mxu0 %v17507_v9  ;;  %9476 = vmatpush.bf16.msrb.mxu1 %v17515_v1  ;;  %v6050_v9 = vadd.f32 %v6049_v32, %v19412_v42  ;;  %v7404_v1 = vld [vmem:[#allocation2 + $0x28] sm:$0x1e]  ;;  %v17332_v42 = vld [vmem:[%s21088_s2 + $0x390] sm:$0xff] }
 0x923   : > { %7726 = vmatpush.bf16.msra.mxu2 %v17335_v45  ;;  %7739 = vmatpush.bf16.msra.mxu3 %v17343_v16  ;;  %v7408_v55 = vpack.c.bf16 %v7404_v1, %v7404_v1  ;;  %v17400_v45 = vld [vmem:[%s21088_s2 + $0x1b0] sm:$0xff] }
 0x924   : > { %v6063_v28 = vadd.f32 %v6062_v35, %v6050_v9  ;;  %v17408_v16 = vld [vmem:[%s21088_s2 + $0x1f0] sm:$0xff]  ;;  %v17397_v35 = vld [vmem:[%s21088_s2 + $0x198] sm:$0xff] }
 0x925   : > { %v7491_v18 = vshll.u32 %v7408_v55, 16  ;;  %v7489_v58 = vshrl.u32 %v7408_v55, 16  ;;  %v17548_v32 = vld [vmem:[%s21088_s2 + $0x250] sm:$0xff]  ;;  %v17405_v9 = vld [vmem:[%s21088_s2 + $0x1d8] sm:$0xff]  ;;  %v17547_v55 = vld [vmem:[%s21088_s2 + $0x248] sm:$0xff] }
 0x926   : > { %9464 = vmatpush.bf16.msrb.mxu0 %v17506_v41  ;;  %9477 = vmatpush.bf16.msrb.mxu1 %v17514_v43  ;;  %v8132_v14 = vpop.f32.mrf.mxu0  ;;  %v8145_v3 = vpop.f32.mrf.mxu1  ;;  %v17483_v41 = vld [vmem:[%s21088_s2 + $0x48] sm:$0xff]  ;;  %v20053_v43 = vadd.f32 %v6063_v28, %v5746_v24 }
 0x927   : > { %v19997_v15 = vadd.f32 %v8145_v3, %v8132_v14  ;;  %7727 = vmatpush.bf16.msra.mxu2 %v17334_v23  ;;  %7740 = vmatpush.bf16.msra.mxu3 %v17342_v36  ;;  %v6051_v51 = vpop.f32.mrf.mxu2  ;;  %v6064_v46 = vpop.f32.mrf.mxu3  ;;  %v7493_v37 = vrot.slane %v7491_v18, 1  ;;  %v17550_v23 = vld [vmem:[%s21088_s2 + $0x260] sm:$0xff]  ;;  %v17399_v36 = vld [vmem:[%s21088_s2 + $0x1a8] sm:$0xff] }
 0x928   : > { %v7829_v28 = vld [vmem:[#allocation2 + $0x28] sm:$0x1e]  ;;  %v17538_v51 = vld [vmem:[%s21088_s2 + $0x200] sm:$0xff] }
 0x929   : > { %9465 = vmatmul.bf16.vlgmr.msrb.gmra.mxu0 %v9239_v48  ;;  %9478 = vmatmul.bf16.vlgmr.msrb.gmra.mxu1 %v9246_v17  ;;  %v17553_v48 = vld [vmem:[%s21088_s2 + $0x278] sm:$0xff]  ;;  %v9090_v17 = vld [vmem:[#allocation2 + $0x10] sm:$0xf]  ;;  %v7494_v14 = vor.u32 %v7493_v37, %v7489_v58  ;;  %v17546_v46 = vld [vmem:[%s21088_s2 + $0x240] sm:$0xff] }
 0x92a   : > { %9701 = vmatpush.bf16.msra.mxu0 %v17481_v57  ;;  %9714 = vmatpush.bf16.msra.mxu1 %v17489_v56  ;;  %v9089_v57 = vld [vmem:[#allocation2 + $0x58] sm:$0xf]  ;;  %v17394_v58 = vld [vmem:[%s21088_s2 + $0x180] sm:$0xff] }
 0x92b   : > { %7728 = vmatpush.bf16.msra.mxu2 %v17333_v52  ;;  %7741 = vmatpush.bf16.msra.mxu3 %v17341_v33  ;;  %v17545_v56 = vld [vmem:[%s21088_s2 + $0x238] sm:$0xff]  ;;  %v17540_v33 = vld [vmem:[%s21088_s2 + $0x210] sm:$0xff]  ;;  %v17402_v37 = vld [vmem:[%s21088_s2 + $0x1c0] sm:$0xff] }
 0x92e   : > { %9702 = vmatpush.bf16.msra.mxu0 %v17480_v54  ;;  %9715 = vmatpush.bf16.msra.mxu1 %v17488_v61  ;;  %v8134_v29 = vpop.f32.mrf.mxu0  ;;  %v8147_v25 = vpop.f32.mrf.mxu1  ;;  %v9093_v54 = vpack.c.bf16 %v9089_v57, %v9089_v57  ;;  %v9094_v61 = vpack.c.bf16 %v9090_v17, %v9090_v17  ;;  %v17395_v57 = vld [vmem:[%s21088_s2 + $0x188] sm:$0xff]  ;;  %v9753_v17 = vld [vmem:[#allocation2 + $0x20] sm:$0xf] }
 0x92f   : > { %7729 = vmatpush.bf16.msra.mxu2 %v17332_v42  ;;  %7742 = vmatpush.bf16.msra.mxu3 %v17340_v0  ;;  %v17541_v29 = vld [vmem:[%s21088_s2 + $0x218] sm:$0xff]  ;;  %v20147_v42 = vld [vmem:[%s21090_s4 + $0x1] ss:$0 sm:$0xff]  ;;  %v17539_v0 = vld [vmem:[%s21088_s2 + $0x208] sm:$0xff] }
 0x930   : > { %v17549_v25 = vld [vmem:[%s21088_s2 + $0x258] sm:$0xff] }
 0x932   : > { %9703 = vmatpush.bf16.msra.mxu0 %v17479_v5  ;;  %9716 = vmatpush.bf16.msra.mxu1 %v17487_v6  ;;  %v7496_v5 = vshrl.u32 %v7409_v50, 16  ;;  %v7500_v6 = vrot.slane %v7498_v53, 1  ;;  %v17404_v50 = vld [vmem:[%s21088_s2 + $0x1d0] sm:$0xff] }
 0x933   : > { %7730 = vmatpush.bf16.msra.mxu2 %v17331_v40  ;;  %7743 = vmatpush.bf16.msra.mxu3 %v17339_v49 }
 0x934   : > { %v7501_v3 = vor.u32 %v7500_v6, %v7496_v5  ;;  %v17576_v5 = vld [vmem:[%s21088_s2 + $0x330] sm:$0xff] }
 0x935   : > { %v17584_v6 = vld [vmem:[%s21088_s2 + $0x370] sm:$0xff] }
 0x936   : > { %9704 = vmatpush.bf16.msra.mxu0 %v17478_v19  ;;  %9717 = vmatpush.bf16.msra.mxu1 %v17486_v26  ;;  %v17543_v19 = vld [vmem:[%s21088_s2 + $0x228] sm:$0xff] }
 0x937   : > { %7731 = vmatpush.bf16.msra.mxu2 %v17330_v59  ;;  %7744 = vmatpush.bf16.msra.mxu3 %v17338_v62  ;;  %v17551_v26 = vld [vmem:[%s21088_s2 + $0x268] sm:$0xff] }
 0x938   : > { %v9754_v59 = vld [vmem:[#allocation2 + $0x48] sm:$0xf] }
 0x93a   : > { %9705 = vmatpush.bf16.msra.mxu0 %v17477_v21  ;;  %9718 = vmatpush.bf16.msra.mxu1 %v17485_v22  ;;  %v17542_v22 = vld [vmem:[%s21088_s2 + $0x220] sm:$0xff] }
 0x93b   : > { %8149 = vmatpush.bf16.msrb.mxu2 %v17401_v8  ;;  %8162 = vmatpush.bf16.msrb.mxu3 %v17409_v12 }
 0x93c   : > { %7732 = vmatmul.bf16.vlgmr.msra.gmra.mxu2 %v7494_v14  ;;  %7745 = vmatmul.bf16.vlgmr.msra.gmra.mxu3 %v7501_v3 }
 0x93e   : > { %9706 = vmatpush.bf16.msra.mxu0 %v17476_v27  ;;  %9719 = vmatpush.bf16.msra.mxu1 %v17484_v31  ;;  %v17406_v27 = vld [vmem:[%s21088_s2 + $0x1e0] sm:$0xff] }
 0x93f   : > { %8150 = vmatpush.bf16.msrb.mxu2 %v17400_v45  ;;  %8163 = vmatpush.bf16.msrb.mxu3 %v17408_v16  ;;  %v6399_v1 = vpop.f32.mrf.mxu2  ;;  %v6412_v10 = vpop.f32.mrf.mxu3 }
 0x940   : > { %v6400_v24 = vadd.f32 %v6399_v1, %v19504_v30  ;;  %v17396_v30 = vld [vmem:[%s21088_s2 + $0x190] sm:$0xff]  ;;  %v17374_v1 = vld [vmem:[%s21088_s2 + $0xe0] sm:$0xff] }
 0x942   : > { %9707 = vmatpush.bf16.msra.mxu0 %v17475_v38  ;;  %9720 = vmatpush.bf16.msra.mxu1 %v17483_v41  ;;  %v7830_v38 = vld [vmem:[#allocation2 + $0x40] sm:$0x1e]  ;;  %v6413_v41 = vadd.f32 %v6412_v10, %v6400_v24 }
 0x943   : > { %8151 = vmatpush.bf16.msrb.mxu2 %v17399_v36  ;;  %8164 = vmatpush.bf16.msrb.mxu3 %v17407_v34  ;;  %v7834_v40 = vpack.c.bf16 %v7830_v38, %v7830_v38  ;;  %v17368_v36 = vld [vmem:[%s21088_s2 + $0xb0] sm:$0xff]  ;;  %v10071_v38 = vld [vmem:[#allocation2 + $0x48] sm:$0x1e] }
 0x944   : > { %v17376_v34 = vld [vmem:[%s21088_s2 + $0xf0] sm:$0xff] }
 0x945   : > { %v7923_v62 = vshll.u32 %v7834_v40, 16  ;;  %v7921_v14 = vshrl.u32 %v7834_v40, 16  ;;  %v10075_v40 = vpack.c.bf16 %v10071_v38, %v10071_v38  ;;  %v17438_v38 = vld [vmem:[%s21088_s2 + $0x2e0] sm:$0xff] }
 0x946   : > { %9708 = vmatpush.bf16.msra.mxu0 %v17474_v47  ;;  %9721 = vmatpush.bf16.msra.mxu1 %v17482_v60  ;;  %v20103_v20 = vpop.f32.mrf.mxu0  ;;  %v20105_v21 = vpop.f32.mrf.mxu1  ;;  %v7833_v47 = vpack.c.bf16 %v7829_v28, %v7829_v28  ;;  %v6416_v60 = vadd.f32 %v6413_v41, %v20053_v43  ;;  %v17403_v43 = vld [vmem:[%s21088_s2 + $0x1c8] sm:$0xff]  ;;  %v10070_v28 = vld [vmem:[#allocation2 + $0x20] sm:$0x1e]  ;;  %v17572_v41 = vld [vmem:[%s21088_s2 + $0x310] sm:$0xff] }
 0x947   : > { %8152 = vmatpush.bf16.msrb.mxu2 %v17398_v39  ;;  %8165 = vmatpush.bf16.msrb.mxu3 %v17406_v27  ;;  %v7925_v3 = vrot.slane %v7923_v62, 1  ;;  %v17574_v27 = vld [vmem:[%s21088_s2 + $0x320] sm:$0xff] }
 0x948   : > { %v6418_v49 = vadd.f32 %v20147_v42, %v6416_v60  ;;  %v7916_v18 = vshll.u32 %v7833_v47, 16  ;;  %v7914_v8 = vshrl.u32 %v7833_v47, 16  ;;  %v10074_v60 = vpack.c.bf16 %v10070_v28, %v10070_v28  ;;  %v17430_v28 = vld [vmem:[%s21088_s2 + $0x2a0] sm:$0xff] }
 0x949   : > { %9709 = vmatmul.bf16.vlgmr.msra.gmra.mxu0 %v9093_v54  ;;  %9722 = vmatmul.bf16.vlgmr.msra.gmra.mxu1 %v9094_v61  ;;  %v17577_v54 = vld [vmem:[%s21088_s2 + $0x338] sm:$0xff]  ;;  %v7926_v16 = vor.u32 %v7925_v3, %v7921_v14  ;;  %v17370_v14 = vld [vmem:[%s21088_s2 + $0xc0] sm:$0xff]  ;;  %v17616_v3 = vld [vmem:[%s21089_s3 + $0x70] sm:$0xff] }
 0x94a   : > { %10017 = vmatpush.bf16.msrb.mxu0 %v17545_v56  ;;  %10030 = vmatpush.bf16.msrb.mxu1 %v17553_v48  ;;  %v6401_v56 = vpop.f32.mrf.mxu2  ;;  %v6414_v48 = vpop.f32.mrf.mxu3  ;;  %v6419_v53 = vmax.f32 %v6418_v49, 0.0  ;;  %v17585_v61 = vld [vmem:[%s21088_s2 + $0x378] sm:$0xff]  ;;  %v7918_v12 = vrot.slane %v7916_v18, 1  ;;  %v17578_v18 = vld [vmem:[%s21088_s2 + $0x340] sm:$0xff]  ;;  %v10143_v62 = vshrl.u32 %v10074_v60, 16 }
 0x94b   : > { %8153 = vmatpush.bf16.msrb.mxu2 %v17397_v35  ;;  %8166 = vmatpush.bf16.msrb.mxu3 %v17405_v9  ;;  %v17581_v35 = vld [vmem:[%s21088_s2 + $0x358] sm:$0xff]  ;;  %v17366_v9 = vld [vmem:[%s21088_s2 + $0xa0] sm:$0xff]  ;;  %v10145_v56 = vshll.u32 %v10074_v60, 16  ;;  %v10152_v48 = vshll.u32 %v10075_v40, 16 }
 0x94c   : > { %6420 = vst [vmem:[#allocation3] sm:$0xf] %v6419_v53  ;;  %v7919_v45 = vor.u32 %v7918_v12, %v7914_v8  ;;  %v17363_v53 = vld [vmem:[%s21088_s2 + $0x88] sm:$0xff]  ;;  %v17362_v12 = vld [vmem:[%s21088_s2 + $0x80] sm:$0xff] }
 0x94e   : > { %10018 = vmatpush.bf16.msrb.mxu0 %v17544_v63  ;;  %10031 = vmatpush.bf16.msrb.mxu1 %v17552_v4  ;;  %v8378_v31 = vpop.f32.mrf.mxu0  ;;  %v8391_v52 = vpop.f32.mrf.mxu1  ;;  %v9757_v63 = vpack.c.bf16 %v9753_v17, %v9753_v17  ;;  %v9758_v4 = vpack.c.bf16 %v9754_v59, %v9754_v59  ;;  %v17570_v17 = vld [vmem:[%s21088_s2 + $0x300] sm:$0xff] }
 0x94f   : > { %8154 = vmatpush.bf16.msrb.mxu2 %v17396_v30  ;;  %8167 = vmatpush.bf16.msrb.mxu3 %v17404_v50  ;;  %v17582_v31 = vld [vmem:[%s21088_s2 + $0x360] sm:$0xff]  ;;  %v17367_v52 = vld [vmem:[%s21088_s2 + $0xa8] sm:$0xff]  ;;  %v17373_v30 = vld [vmem:[%s21088_s2 + $0xd8] sm:$0xff] }
 0x952   : > { %10019 = vmatpush.bf16.msrb.mxu0 %v17543_v19  ;;  %10032 = vmatpush.bf16.msrb.mxu1 %v17551_v26  ;;  %v17369_v19 = vld [vmem:[%s21088_s2 + $0xb8] sm:$0xff] }
 0x953   : > { %8155 = vmatpush.bf16.msrb.mxu2 %v17395_v57  ;;  %8168 = vmatpush.bf16.msrb.mxu3 %v17403_v43  ;;  %v17377_v26 = vld [vmem:[%s21088_s2 + $0xf8] sm:$0xff]  ;;  %v17579_v57 = vld [vmem:[%s21088_s2 + $0x348] sm:$0xff]  ;;  %v17364_v43 = vld [vmem:[%s21088_s2 + $0x90] sm:$0xff] }
 0x956   : > { %10020 = vmatpush.bf16.msrb.mxu0 %v17542_v22  ;;  %10033 = vmatpush.bf16.msrb.mxu1 %v17550_v23  ;;  %v17575_v22 = vld [vmem:[%s21088_s2 + $0x328] sm:$0xff] }
 0x957   : > { %8156 = vmatpush.bf16.msrb.mxu2 %v17394_v58  ;;  %8169 = vmatpush.bf16.msrb.mxu3 %v17402_v37  ;;  %v17583_v23 = vld [vmem:[%s21088_s2 + $0x368] sm:$0xff]  ;;  %v10154_v58 = vrot.slane %v10152_v48, 1  ;;  %v17617_v37 = vld [vmem:[%s21089_s3 + $0x78] sm:$0xff] }
 0x958   : > { %v17427_v48 = vld [vmem:[%s21088_s2 + $0x288] sm:$0xff] }
 0x95a   : > { %10021 = vmatpush.bf16.msrb.mxu0 %v17541_v29  ;;  %10034 = vmatpush.bf16.msrb.mxu1 %v17549_v25 }
 0x95b   : > { %8393 = vmatpush.bf16.msra.mxu2 %v17369_v19  ;;  %8406 = vmatpush.bf16.msra.mxu3 %v17377_v26  ;;  %v17608_v19 = vld [vmem:[%s21089_s3 + $0x30] sm:$0xff]  ;;  %v7757_v26 = vld [vmem:[#allocation2 + $0x28] sm:$0xf] }
 0x95c   : > { %8157 = vmatmul.bf16.vlgmr.msrb.gmra.mxu2 %v7919_v45  ;;  %8170 = vmatmul.bf16.vlgmr.msrb.gmra.mxu3 %v7926_v16  ;;  %v17433_v45 = vld [vmem:[%s21088_s2 + $0x2b8] sm:$0xff] }
 0x95d   : > { %v17441_v16 = vld [vmem:[%s21088_s2 + $0x2f8] sm:$0xff] }
 0x95e   : > { %10022 = vmatpush.bf16.msrb.mxu0 %v17540_v33  ;;  %10035 = vmatpush.bf16.msrb.mxu1 %v17548_v32  ;;  %v17375_v33 = vld [vmem:[%s21088_s2 + $0xe8] sm:$0xff]  ;;  %v17573_v32 = vld [vmem:[%s21088_s2 + $0x318] sm:$0xff] }
 0x95f   : > { %8394 = vmatpush.bf16.msra.mxu2 %v17368_v36  ;;  %8407 = vmatpush.bf16.msra.mxu3 %v17376_v34  ;;  %v6824_v50 = vpop.f32.mrf.mxu2  ;;  %v6837_v47 = vpop.f32.mrf.mxu3  ;;  %v17615_v34 = vld [vmem:[%s21089_s3 + $0x68] sm:$0xff] }
 0x960   : > { %v6825_v49 = vadd.f32 %v6824_v50, %v19596_v44  ;;  %v17372_v44 = vld [vmem:[%s21088_s2 + $0xd0] sm:$0xff]  ;;  %v17429_v50 = vld [vmem:[%s21088_s2 + $0x298] sm:$0xff] }
 0x962   : > { %10023 = vmatpush.bf16.msrb.mxu0 %v17539_v0  ;;  %10036 = vmatpush.bf16.msrb.mxu1 %v17547_v55  ;;  %v17580_v0 = vld [vmem:[%s21088_s2 + $0x350] sm:$0xff]  ;;  %v17365_v55 = vld [vmem:[%s21088_s2 + $0x98] sm:$0xff] }
 0x963   : > { %8395 = vmatpush.bf16.msra.mxu2 %v17367_v52  ;;  %8408 = vmatpush.bf16.msra.mxu3 %v17375_v33 }
 0x966   : > { %10024 = vmatpush.bf16.msrb.mxu0 %v17538_v51  ;;  %10037 = vmatpush.bf16.msrb.mxu1 %v17546_v46  ;;  %v8692_v29 = vpop.f32.mrf.mxu0  ;;  %v8705_v25 = vpop.f32.mrf.mxu1  ;;  %v20250_v51 = vadd.f32 %v6837_v47, %v6825_v49  ;;  %v17571_v46 = vld [vmem:[%s21088_s2 + $0x308] sm:$0xff]  ;;  %v17437_v47 = vld [vmem:[%s21088_s2 + $0x2d8] sm:$0xff] }
 0x967   : > { %v20211_v39 = vadd.f32 %v8705_v25, %v8692_v29  ;;  %8396 = vmatpush.bf16.msra.mxu2 %v17366_v9  ;;  %8409 = vmatpush.bf16.msra.mxu3 %v17374_v1  ;;  %v6839_v59 = vpop.f32.mrf.mxu3  ;;  %v17607_v29 = vld [vmem:[%s21089_s3 + $0x28] sm:$0xff]  ;;  %v17432_v25 = vld [vmem:[%s21088_s2 + $0x2b0] sm:$0xff] }
 0x968   : > { %v17431_v9 = vld [vmem:[%s21088_s2 + $0x2a8] sm:$0xff]  ;;  %v17649_v59 = vld [vmem:[%s21089_s3 + $0x178] sm:$0xff] }
 0x969   : > { %10025 = vmatmul.bf16.vlgmr.msrb.gmra.mxu0 %v9757_v63  ;;  %10038 = vmatmul.bf16.vlgmr.msrb.gmra.mxu1 %v9758_v4  ;;  %v10147_v63 = vrot.slane %v10145_v56, 1  ;;  %v10150_v4 = vshrl.u32 %v10075_v40, 16  ;;  %v17439_v1 = vld [vmem:[%s21088_s2 + $0x2e8] sm:$0xff]  ;;  %v17602_v56 = vld [vmem:[%s21089_s3] sm:$0xff] }
 0x96a   : > { %10366 = vmatpush.bf16.msra.mxu0 %v17577_v54  ;;  %10379 = vmatpush.bf16.msra.mxu1 %v17585_v61  ;;  %v17371_v54 = vld [vmem:[%s21088_s2 + $0xc8] sm:$0xff]  ;;  %v6826_v61 = vpop.f32.mrf.mxu2 }
 0x96b   : > { %8397 = vmatpush.bf16.msra.mxu2 %v17365_v55  ;;  %8410 = vmatpush.bf16.msra.mxu3 %v17373_v30  ;;  %v10155_v8 = vor.u32 %v10154_v58, %v10150_v4  ;;  %v17612_v55 = vld [vmem:[%s21089_s3 + $0x50] sm:$0xff]  ;;  %v17611_v49 = vld [vmem:[%s21089_s3 + $0x48] sm:$0xff]  ;;  %v10423_v61 = vld [vmem:[#allocation3] sm:$0x3] }
 0x96c   : > { %v17604_v30 = vld [vmem:[%s21089_s3 + $0x10] sm:$0xff]  ;;  %v17426_v4 = vld [vmem:[%s21088_s2 + $0x280] sm:$0xff] }
 0x96d   : > { %v17434_v58 = vld [vmem:[%s21088_s2 + $0x2c0] sm:$0xff] }
 0x96e   : > { %10367 = vmatpush.bf16.msra.mxu0 %v17576_v5  ;;  %10380 = vmatpush.bf16.msra.mxu1 %v17584_v6  ;;  %v8694_v10 = vpop.f32.mrf.mxu0  ;;  %v8707_v24 = vpop.f32.mrf.mxu1  ;;  %v17609_v5 = vld [vmem:[%s21089_s3 + $0x38] sm:$0xff]  ;;  %v10148_v6 = vor.u32 %v10147_v63, %v10143_v62  ;;  %v10424_v63 = vpack.c.bf16 %v10423_v61, %v10423_v61  ;;  %v17642_v61 = vld [vmem:[%s21089_s3 + $0x140] sm:$0xff] }
 0x96f   : > { %8398 = vmatpush.bf16.msra.mxu2 %v17364_v43  ;;  %8411 = vmatpush.bf16.msra.mxu3 %v17372_v44  ;;  %v17613_v10 = vld [vmem:[%s21089_s3 + $0x58] sm:$0xff]  ;;  %v17436_v43 = vld [vmem:[%s21088_s2 + $0x2d0] sm:$0xff]  ;;  %v17610_v44 = vld [vmem:[%s21089_s3 + $0x40] sm:$0xff] }
 0x970   : > { %v17605_v24 = vld [vmem:[%s21089_s3 + $0x18] sm:$0xff] }
 0x972   : > { %10368 = vmatpush.bf16.msra.mxu0 %v17575_v22  ;;  %10381 = vmatpush.bf16.msra.mxu1 %v17583_v23  ;;  %v7758_v22 = vld [vmem:[#allocation2 + $0x40] sm:$0xf]  ;;  %v7761_v23 = vpack.c.bf16 %v7757_v26, %v7757_v26  ;;  %v17472_v26 = vld [vmem:[%s21088_s2 + $0x3f0] sm:$0xff] }
 0x973   : > { %8399 = vmatpush.bf16.msra.mxu2 %v17363_v53  ;;  %8412 = vmatpush.bf16.msra.mxu3 %v17371_v54  ;;  %v7762_v36 = vpack.c.bf16 %v7758_v22, %v7758_v22  ;;  %v10441_v54 = vld [vmem:[#allocation3 + $0x1] sm:$0x3] }
 0x974   : > { %v10442_v62 = vpack.c.bf16 %v10441_v54, %v10441_v54 }
 0x976   : > { %10369 = vmatpush.bf16.msra.mxu0 %v17574_v27  ;;  %10382 = vmatpush.bf16.msra.mxu1 %v17582_v31  ;;  %v17440_v27 = vld [vmem:[%s21088_s2 + $0x2f0] sm:$0xff] }
 0x977   : > { %8400 = vmatpush.bf16.msra.mxu2 %v17362_v12  ;;  %8413 = vmatpush.bf16.msra.mxu3 %v17370_v14  ;;  %v17648_v12 = vld [vmem:[%s21089_s3 + $0x170] sm:$0xff] }
 0x97a   : > { %10370 = vmatpush.bf16.msra.mxu0 %v17573_v32  ;;  %10383 = vmatpush.bf16.msra.mxu1 %v17581_v35  ;;  %v17614_v32 = vld [vmem:[%s21089_s3 + $0x60] sm:$0xff] }
 0x97b   : > { %8709 = vmatpush.bf16.msrb.mxu2 %v17433_v45  ;;  %8722 = vmatpush.bf16.msrb.mxu3 %v17441_v16  ;;  %v17606_v35 = vld [vmem:[%s21089_s3 + $0x20] sm:$0xff]  ;;  %v17647_v45 = vld [vmem:[%s21089_s3 + $0x168] sm:$0xff]  ;;  %v17641_v16 = vld [vmem:[%s21089_s3 + $0x138] sm:$0xff] }
 0x97c   : > { %8401 = vmatmul.bf16.vlgmr.msra.gmra.mxu2 %v7761_v23  ;;  %8414 = vmatmul.bf16.vlgmr.msra.gmra.mxu3 %v7762_v36 }
 0x97e   : > { %10371 = vmatpush.bf16.msra.mxu0 %v17572_v41  ;;  %10384 = vmatpush.bf16.msra.mxu1 %v17580_v0 }
 0x97f   : > { %8710 = vmatpush.bf16.msrb.mxu2 %v17432_v25  ;;  %8723 = vmatpush.bf16.msrb.mxu3 %v17440_v27  ;;  %v20350_v60 = vpop.f32.mrf.mxu2  ;;  %v20352_v40 = vpop.f32.mrf.mxu3  ;;  %v17646_v25 = vld [vmem:[%s21089_s3 + $0x160] sm:$0xff]  ;;  %v17640_v27 = vld [vmem:[%s21089_s3 + $0x130] sm:$0xff] }
 0x982   : > { %10372 = vmatpush.bf16.msra.mxu0 %v17571_v46  ;;  %10385 = vmatpush.bf16.msra.mxu1 %v17579_v57  ;;  %v17603_v46 = vld [vmem:[%s21089_s3 + $0x8] sm:$0xff]  ;;  %v17428_v57 = vld [vmem:[%s21088_s2 + $0x290] sm:$0xff] }
 0x983   : > { %8711 = vmatpush.bf16.msrb.mxu2 %v17431_v9  ;;  %8724 = vmatpush.bf16.msrb.mxu3 %v17439_v1 }
 0x986   : > { %10373 = vmatpush.bf16.msra.mxu0 %v17570_v17  ;;  %10386 = vmatpush.bf16.msra.mxu1 %v17578_v18  ;;  %v9041_v31 = vpop.f32.mrf.mxu0  ;;  %v9054_v52 = vpop.f32.mrf.mxu1  ;;  %v17435_v17 = vld [vmem:[%s21088_s2 + $0x2c8] sm:$0xff] }
 0x987   : > { %v20312_v33 = vadd.f32 %v9054_v52, %v9041_v31  ;;  %8712 = vmatpush.bf16.msrb.mxu2 %v17430_v28  ;;  %8725 = vmatpush.bf16.msrb.mxu3 %v17438_v38  ;;  %v7070_v18 = vpop.f32.mrf.mxu2  ;;  %v7083_v53 = vpop.f32.mrf.mxu3  ;;  %v7043_v31 = vadd.f32 %v19694_v2, %v20250_v51  ;;  %v17462_v52 = vld [vmem:[%s21088_s2 + $0x3a0] sm:$0xff]  ;;  %v17639_v2 = vld [vmem:[%s21089_s3 + $0x128] sm:$0xff]  ;;  %v17469_v28 = vld [vmem:[%s21088_s2 + $0x3d8] sm:$0xff] }
 0x989   : > { %10374 = vmatmul.bf16.vlgmr.msra.gmra.mxu0 %v10148_v6  ;;  %10387 = vmatmul.bf16.vlgmr.msra.gmra.mxu1 %v10155_v8  ;;  %v8421_v6 = vld [vmem:[#allocation2 + $0x98] sm:$0xf]  ;;  %v8422_v8 = vld [vmem:[#allocation2 + $0x60] sm:$0xf]  ;;  %v7056_v51 = vadd.f32 %v19696_v11, %v7043_v31  ;;  %v17644_v11 = vld [vmem:[%s21089_s3 + $0x150] sm:$0xff] }
 0x98a   : > { %10508 = vmatpush.bf16.msrb.mxu0 %v17617_v37  ;;  %10569 = vmatpush.bf16.msrb.mxu1 %v17609_v5  ;;  %v17465_v37 = vld [vmem:[%s21088_s2 + $0x3b8] sm:$0xff]  ;;  %v8425_v14 = vpack.c.bf16 %v8421_v6, %v8421_v6  ;;  %v17686_v31 = vld [vmem:[%s21089_s3 + $0x60] sm:$0xff] }
 0x98b   : > { %8713 = vmatpush.bf16.msrb.mxu2 %v17429_v50  ;;  %8726 = vmatpush.bf16.msrb.mxu3 %v17437_v47  ;;  %v17473_v5 = vld [vmem:[%s21088_s2 + $0x3f8] sm:$0xff]  ;;  %v17638_v50 = vld [vmem:[%s21089_s3 + $0x120] sm:$0xff] }
 0x98e   : > { %10509 = vmatpush.bf16.msrb.mxu0 %v17616_v3  ;;  %10570 = vmatpush.bf16.msrb.mxu1 %v17608_v19  ;;  %v9043_v41 = vpop.f32.mrf.mxu0  ;;  %v9056_v0 = vpop.f32.mrf.mxu1  ;;  %v8426_v3 = vpack.c.bf16 %v8422_v8, %v8422_v8  ;;  %v17464_v19 = vld [vmem:[%s21088_s2 + $0x3b0] sm:$0xff] }
 0x98f   : > { %8714 = vmatpush.bf16.msrb.mxu2 %v17428_v57  ;;  %8727 = vmatpush.bf16.msrb.mxu3 %v17436_v43  ;;  %v17643_v43 = vld [vmem:[%s21089_s3 + $0x148] sm:$0xff] }
 0x992   : > { %10510 = vmatpush.bf16.msrb.mxu0 %v17615_v34  ;;  %10571 = vmatpush.bf16.msrb.mxu1 %v17607_v29  ;;  %v17463_v34 = vld [vmem:[%s21088_s2 + $0x3a8] sm:$0xff] }
 0x993   : > { %8715 = vmatpush.bf16.msrb.mxu2 %v17427_v48  ;;  %8728 = vmatpush.bf16.msrb.mxu3 %v17435_v17  ;;  %v17471_v29 = vld [vmem:[%s21088_s2 + $0x3e8] sm:$0xff] }
 0x994   : > { %v17467_v48 = vld [vmem:[%s21088_s2 + $0x3c8] sm:$0xff] }
 0x996   : > { %10511 = vmatpush.bf16.msrb.mxu0 %v17614_v32  ;;  %10572 = vmatpush.bf16.msrb.mxu1 %v17606_v35  ;;  %v17470_v32 = vld [vmem:[%s21088_s2 + $0x3e0] sm:$0xff]  ;;  %v17645_v35 = vld [vmem:[%s21089_s3 + $0x158] sm:$0xff] }
 0x997   : > { %8716 = vmatpush.bf16.msrb.mxu2 %v17426_v4  ;;  %8729 = vmatpush.bf16.msrb.mxu3 %v17434_v58  ;;  %v17466_v4 = vld [vmem:[%s21088_s2 + $0x3c0] sm:$0xff]  ;;  %v17529_v58 = vld [vmem:[%s21088_s2 + $0x1b8] sm:$0xff] }
 0x99a   : > { %10512 = vmatpush.bf16.msrb.mxu0 %v17613_v10  ;;  %10573 = vmatpush.bf16.msrb.mxu1 %v17605_v24  ;;  %v7069_v10 = vadd.f32 %v20350_v60, %v7056_v51  ;;  %v17461_v24 = vld [vmem:[%s21088_s2 + $0x398] sm:$0xff] }
 0x99b   : > { %9058 = vmatpush.bf16.msra.mxu2 %v17465_v37  ;;  %9071 = vmatpush.bf16.msra.mxu3 %v17473_v5  ;;  %v17537_v37 = vld [vmem:[%s21088_s2 + $0x1f8] sm:$0xff] }
 0x99c   : > { %8717 = vmatmul.bf16.vlgmr.msrb.gmra.mxu2 %v8425_v14  ;;  %8730 = vmatmul.bf16.vlgmr.msrb.gmra.mxu3 %v8426_v3  ;;  %v7082_v47 = vadd.f32 %v20352_v40, %v7069_v10  ;;  %v17688_v14 = vld [vmem:[%s21089_s3 + $0x70] sm:$0xff]  ;;  %v17635_v3 = vld [vmem:[%s21089_s3 + $0x108] sm:$0xff] }
 0x99d   : > { %v17684_v10 = vld [vmem:[%s21089_s3 + $0x50] sm:$0xff] }
 0x99e   : > { %10513 = vmatpush.bf16.msrb.mxu0 %v17612_v55  ;;  %10574 = vmatpush.bf16.msrb.mxu1 %v17604_v30  ;;  %v8738_v55 = vld [vmem:[#allocation2 + $0x98] sm:$0x1e]  ;;  %v8739_v30 = vld [vmem:[#allocation2 + $0x60] sm:$0x1e] }
 0x99f   : > { %9059 = vmatpush.bf16.msra.mxu2 %v17464_v19  ;;  %9072 = vmatpush.bf16.msra.mxu3 %v17472_v26  ;;  %v7384_v38 = vpop.f32.mrf.mxu2  ;;  %v7397_v41 = vpop.f32.mrf.mxu3  ;;  %v8743_v57 = vpack.c.bf16 %v8739_v30, %v8739_v30 }
 0x9a0   : > { %v7385_v0 = vadd.f32 %v7384_v38, %v19794_v7  ;;  %v8742_v7 = vpack.c.bf16 %v8738_v55, %v8738_v55  ;;  %v9163_v38 = vld [vmem:[#allocation2 + $0x98] sm:$0x1e]  ;;  %v17532_v55 = vld [vmem:[%s21088_s2 + $0x1d0] sm:$0xff] }
 0x9a1   : > { %v8832_v54 = vshll.u32 %v8743_v57, 16  ;;  %v8830_v8 = vshrl.u32 %v8743_v57, 16 }
 0x9a2   : > { %10514 = vmatpush.bf16.msrb.mxu0 %v17611_v49  ;;  %10575 = vmatpush.bf16.msrb.mxu1 %v17603_v46  ;;  %v7398_v60 = vadd.f32 %v7397_v41, %v7385_v0  ;;  %v17460_v49 = vld [vmem:[%s21088_s2 + $0x390] sm:$0xff]  ;;  %v8825_v53 = vshll.u32 %v8742_v7, 16  ;;  %v8823_v5 = vshrl.u32 %v8742_v7, 16  ;;  %v9164_v41 = vld [vmem:[#allocation2 + $0x60] sm:$0x1e] }
 0x9a3   : > { %9060 = vmatpush.bf16.msra.mxu2 %v17463_v34  ;;  %9073 = vmatpush.bf16.msra.mxu3 %v17471_v29  ;;  %v17468_v46 = vld [vmem:[%s21088_s2 + $0x3d0] sm:$0xff] }
 0x9a4   : > { %v20461_v40 = vadd.f32 %v7398_v60, %v7082_v47  ;;  %v8827_v6 = vrot.slane %v8825_v53, 1  ;;  %v17524_v0 = vld [vmem:[%s21088_s2 + $0x190] sm:$0xff]  ;;  %v9168_v47 = vpack.c.bf16 %v9164_v41, %v9164_v41  ;;  %v17683_v60 = vld [vmem:[%s21089_s3 + $0x48] sm:$0xff]  ;;  %v17490_v41 = vld [vmem:[%s21088_s2 + $0x80] sm:$0xff] }
 0x9a6   : > { %10515 = vmatpush.bf16.msrb.mxu0 %v17610_v44  ;;  %10576 = vmatpush.bf16.msrb.mxu1 %v17602_v56  ;;  %v9466_v22 = vpop.f32.mrf.mxu0  ;;  %v9479_v23 = vpop.f32.mrf.mxu1  ;;  %v17637_v44 = vld [vmem:[%s21089_s3 + $0x118] sm:$0xff]  ;;  %v17459_v56 = vld [vmem:[%s21088_s2 + $0x388] sm:$0xff]  ;;  %v8828_v19 = vor.u32 %v8827_v6, %v8823_v5  ;;  %v9255_v53 = vshrl.u32 %v9168_v47, 16 }
 0x9a7   : > { %v20408_v36 = vadd.f32 %v9479_v23, %v9466_v22  ;;  %9061 = vmatpush.bf16.msra.mxu2 %v17462_v52  ;;  %9074 = vmatpush.bf16.msra.mxu3 %v17470_v32  ;;  %v7386_v17 = vpop.f32.mrf.mxu2  ;;  %v7399_v18 = vpop.f32.mrf.mxu3  ;;  %v17687_v22 = vld [vmem:[%s21089_s3 + $0x68] sm:$0xff]  ;;  %v17634_v23 = vld [vmem:[%s21089_s3 + $0x100] sm:$0xff] }
 0x9a8   : > { %v17526_v52 = vld [vmem:[%s21088_s2 + $0x1a0] sm:$0xff] }
 0x9a9   : > { %10516 = vmatmul.bf16.vlgmr.msrb.gmra.mxu0 %v10442_v62  ;;  %10577 = vmatmul.bf16.vlgmr.msrb.gmra.mxu1 %v10424_v63  ;;  %v17636_v62 = vld [vmem:[%s21089_s3 + $0x110] sm:$0xff]  ;;  %v17458_v63 = vld [vmem:[%s21088_s2 + $0x380] sm:$0xff] }
 0x9aa   : > { %10892 = vmatpush.bf16.msra.mxu1 %v17649_v59  ;;  %10811 = vmatpush.bf16.msra.mxu0 %v17641_v16  ;;  %v17689_v59 = vld [vmem:[%s21089_s3 + $0x78] sm:$0xff]  ;;  %v17536_v16 = vld [vmem:[%s21088_s2 + $0x1f0] sm:$0xff]  ;;  %v17534_v32 = vld [vmem:[%s21088_s2 + $0x1e0] sm:$0xff] }
 0x9ab   : > { %9062 = vmatpush.bf16.msra.mxu2 %v17461_v24  ;;  %9075 = vmatpush.bf16.msra.mxu3 %v17469_v28  ;;  %v17522_v17 = vld [vmem:[%s21088_s2 + $0x180] sm:$0xff] }
 0x9ae   : > { %10893 = vmatpush.bf16.msra.mxu1 %v17648_v12  ;;  %10812 = vmatpush.bf16.msra.mxu0 %v17640_v27  ;;  %v9468_v9 = vpop.f32.mrf.mxu0  ;;  %v9481_v1 = vpop.f32.mrf.mxu1  ;;  %v8834_v12 = vrot.slane %v8832_v54, 1  ;;  %v17535_v27 = vld [vmem:[%s21088_s2 + $0x1e8] sm:$0xff]  ;;  %v17497_v54 = vld [vmem:[%s21088_s2 + $0xb8] sm:$0xff] }
 0x9af   : > { %9063 = vmatpush.bf16.msra.mxu2 %v17460_v49  ;;  %9076 = vmatpush.bf16.msra.mxu3 %v17468_v46  ;;  %v17525_v9 = vld [vmem:[%s21088_s2 + $0x198] sm:$0xff]  ;;  %v17523_v49 = vld [vmem:[%s21088_s2 + $0x188] sm:$0xff] }
 0x9b0   : > { %v8835_v26 = vor.u32 %v8834_v12, %v8830_v8  ;;  %v17533_v1 = vld [vmem:[%s21088_s2 + $0x1d8] sm:$0xff]  ;;  %v17531_v46 = vld [vmem:[%s21088_s2 + $0x1c8] sm:$0xff] }
 0x9b2   : > { %10894 = vmatpush.bf16.msra.mxu1 %v17647_v45  ;;  %10813 = vmatpush.bf16.msra.mxu0 %v17639_v2  ;;  %v17528_v45 = vld [vmem:[%s21088_s2 + $0x1b0] sm:$0xff] }
 0x9b3   : > { %9064 = vmatpush.bf16.msra.mxu2 %v17459_v56  ;;  %9077 = vmatpush.bf16.msra.mxu3 %v17467_v48 }
 0x9b6   : > { %10895 = vmatpush.bf16.msra.mxu1 %v17646_v25  ;;  %10814 = vmatpush.bf16.msra.mxu0 %v17638_v50  ;;  %v17527_v25 = vld [vmem:[%s21088_s2 + $0x1a8] sm:$0xff]  ;;  %v9167_v50 = vpack.c.bf16 %v9163_v38, %v9163_v38 }
 0x9b7   : > { %9065 = vmatpush.bf16.msra.mxu2 %v17458_v63  ;;  %9078 = vmatpush.bf16.msra.mxu3 %v17466_v4 }
 0x9b8   : > { %v9250_v57 = vshll.u32 %v9167_v50, 16  ;;  %v9248_v18 = vshrl.u32 %v9167_v50, 16  ;;  %v9092_v50 = vld [vmem:[#allocation2 + $0x60] sm:$0xf] }
 0x9ba   : > { %10896 = vmatpush.bf16.msra.mxu1 %v17645_v35  ;;  %10815 = vmatpush.bf16.msra.mxu0 %v17637_v44  ;;  %v17685_v35 = vld [vmem:[%s21089_s3 + $0x58] sm:$0xff]  ;;  %v17682_v44 = vld [vmem:[%s21089_s3 + $0x40] sm:$0xff] }
 0x9bb   : > { %9483 = vmatpush.bf16.msrb.mxu2 %v17529_v58  ;;  %9496 = vmatpush.bf16.msrb.mxu3 %v17537_v37  ;;  %v17496_v58 = vld [vmem:[%s21088_s2 + $0xb0] sm:$0xff] }
 0x9bc   : > { %9066 = vmatmul.bf16.vlgmr.msra.gmra.mxu2 %v8828_v19  ;;  %9079 = vmatmul.bf16.vlgmr.msra.gmra.mxu3 %v8835_v26  ;;  %v17504_v37 = vld [vmem:[%s21088_s2 + $0xf0] sm:$0xff] }
 0x9be   : > { %10897 = vmatpush.bf16.msra.mxu1 %v17644_v11  ;;  %10816 = vmatpush.bf16.msra.mxu0 %v17636_v62 }
 0x9bf   : > { %9484 = vmatpush.bf16.msrb.mxu2 %v17528_v45  ;;  %9497 = vmatpush.bf16.msrb.mxu3 %v17536_v16  ;;  %v7733_v24 = vpop.f32.mrf.mxu2  ;;  %v7746_v28 = vpop.f32.mrf.mxu3  ;;  %v17494_v16 = vld [vmem:[%s21088_s2 + $0xa0] sm:$0xff] }
 0x9c0   : > { %v7734_v11 = vadd.f32 %v7733_v24, %v19895_v13 }
 0x9c2   : > { %10898 = vmatpush.bf16.msra.mxu1 %v17643_v43  ;;  %10817 = vmatpush.bf16.msra.mxu0 %v17635_v3  ;;  %v7747_v30 = vadd.f32 %v7746_v28, %v7734_v11  ;;  %v9257_v43 = vshll.u32 %v9168_v47, 16  ;;  %v17503_v3 = vld [vmem:[%s21088_s2 + $0xe8] sm:$0xff]  ;;  %v17498_v11 = vld [vmem:[%s21088_s2 + $0xc0] sm:$0xff] }
 0x9c3   : > { %9485 = vmatpush.bf16.msrb.mxu2 %v17527_v25  ;;  %9498 = vmatpush.bf16.msrb.mxu3 %v17535_v27  ;;  %v17493_v27 = vld [vmem:[%s21088_s2 + $0x98] sm:$0xff] }
 0x9c4   : > { %v7750_v13 = vadd.f32 %v7747_v30, %v20461_v40  ;;  %v9259_v62 = vrot.slane %v9257_v43, 1  ;;  %v9091_v30 = vld [vmem:[#allocation2 + $0x98] sm:$0xf] }
 0x9c5   : > { %v9095_v47 = vpack.c.bf16 %v9091_v30, %v9091_v30 }
 0x9c6   : > { %10899 = vmatpush.bf16.msra.mxu1 %v17642_v61  ;;  %v20511_v34 = vpop.f32.mrf.mxu0  ;;  %v20513_v29 = vpop.f32.mrf.mxu1  ;;  %10818 = vmatpush.bf16.msra.mxu0 %v17634_v23  ;;  %v7751_v7 = vadd.f32 %v20147_v42, %v7750_v13  ;;  %v17530_v42 = vld [vmem:[%s21088_s2 + $0x1c0] sm:$0xff]  ;;  %v17505_v61 = vld [vmem:[%s21088_s2 + $0xf8] sm:$0xff]  ;;  %v9260_v4 = vor.u32 %v9259_v62, %v9255_v53  ;;  %v17560_v13 = vld [vmem:[%s21088_s2 + $0x2b0] sm:$0xff] }
 0x9c7   : > { %9486 = vmatpush.bf16.msrb.mxu2 %v17526_v52  ;;  %9499 = vmatpush.bf16.msrb.mxu3 %v17534_v32  ;;  %v7735_v40 = vpop.f32.mrf.mxu2  ;;  %v7748_v56 = vpop.f32.mrf.mxu3  ;;  %v17673_v62 = vld [vmem:[%s21089_s3 + $0x238] sm:$0xff] }
 0x9c8   : > { %v7752_v48 = vmax.f32 %v7751_v7, 0.0  ;;  %v17567_v7 = vld [vmem:[%s21088_s2 + $0x2e8] sm:$0xff]  ;;  %v17558_v40 = vld [vmem:[%s21088_s2 + $0x2a0] sm:$0xff] }
 0x9c9   : > { %v17566_v56 = vld [vmem:[%s21088_s2 + $0x2e0] sm:$0xff] }
 0x9ca   : > { %11237 = vmatpush.bf16.msrb.mxu1 %v17689_v59  ;;  %7754 = vst [vmem:[#allocation3 + $0x4] sm:$0xf] %v7752_v48  ;;  %v9252_v59 = vrot.slane %v9250_v57, 1  ;;  %v17557_v48 = vld [vmem:[%s21088_s2 + $0x298] sm:$0xff]  ;;  %11135 = vmatpush.bf16.msrb.mxu0 %v17673_v62 }
 0x9cb   : > { %9487 = vmatpush.bf16.msrb.mxu2 %v17525_v9  ;;  %9500 = vmatpush.bf16.msrb.mxu3 %v17533_v1 }
 0x9cc   : > { %v9253_v63 = vor.u32 %v9252_v59, %v9248_v18  ;;  %v17564_v59 = vld [vmem:[%s21088_s2 + $0x2d0] sm:$0xff] }
 0x9ce   : > { %11238 = vmatpush.bf16.msrb.mxu1 %v17688_v14  ;;  %v9712_v2 = vpop.f32.mrf.mxu0  ;;  %v9725_v51 = vpop.f32.mrf.mxu1  ;;  %v17495_v14 = vld [vmem:[%s21088_s2 + $0xa8] sm:$0xff] }
 0x9cf   : > { %9488 = vmatpush.bf16.msrb.mxu2 %v17524_v0  ;;  %9501 = vmatpush.bf16.msrb.mxu3 %v17532_v55  ;;  %v17492_v2 = vld [vmem:[%s21088_s2 + $0x90] sm:$0xff]  ;;  %v17561_v0 = vld [vmem:[%s21088_s2 + $0x2b8] sm:$0xff] }
 0x9d0   : > { %v17500_v51 = vld [vmem:[%s21088_s2 + $0xd0] sm:$0xff]  ;;  %v17569_v55 = vld [vmem:[%s21088_s2 + $0x2f8] sm:$0xff] }
 0x9d1   : > { %v10744_v5 = vld [vmem:[#allocation3 + $0x5] sm:$0x3] }
 0x9d2   : > { %11239 = vmatpush.bf16.msrb.mxu1 %v17687_v22  ;;  %v10825_v6 = vld [vmem:[#allocation3 + $0x6] sm:$0x3]  ;;  %v10745_v19 = vpack.c.bf16 %v10744_v5, %v10744_v5 }
 0x9d3   : > { %9489 = vmatpush.bf16.msrb.mxu2 %v17523_v49  ;;  %9502 = vmatpush.bf16.msrb.mxu3 %v17531_v46  ;;  %v10826_v26 = vpack.c.bf16 %v10825_v6, %v10825_v6  ;;  %v17502_v22 = vld [vmem:[%s21088_s2 + $0xe0] sm:$0xff]  ;;  %v17568_v49 = vld [vmem:[%s21088_s2 + $0x2f0] sm:$0xff]  ;;  %v17559_v46 = vld [vmem:[%s21088_s2 + $0x2a8] sm:$0xff] }
 0x9d4   : > { %10819 = vmatmul.bf16.vlgmr.msra.gmra.mxu0 %v10745_v19  ;;  %v11171_v9 = vld [vmem:[#allocation3 + $0x5] sm:$0x3]  ;;  %v9756_v19 = vld [vmem:[#allocation2 + $0x90] sm:$0xf] }
 0x9d5   : > { %10900 = vmatmul.bf16.vlgmr.msra.gmra.mxu1 %v10826_v26  ;;  %v11172_v24 = vpack.c.bf16 %v11171_v9, %v11171_v9  ;;  %v17554_v6 = vld [vmem:[%s21088_s2 + $0x280] sm:$0xff]  ;;  %v17671_v26 = vld [vmem:[%s21089_s3 + $0x228] sm:$0xff] }
 0x9d6   : > { %11240 = vmatpush.bf16.msrb.mxu1 %v17686_v31  ;;  %v17501_v31 = vld [vmem:[%s21088_s2 + $0xd8] sm:$0xff] }
 0x9d7   : > { %9490 = vmatpush.bf16.msrb.mxu2 %v17522_v17  ;;  %9503 = vmatpush.bf16.msrb.mxu3 %v17530_v42  ;;  %v17565_v17 = vld [vmem:[%s21088_s2 + $0x2d8] sm:$0xff] }
 0x9da   : > { %11241 = vmatpush.bf16.msrb.mxu1 %v17685_v35  ;;  %9491 = vmatmul.bf16.vlgmr.msrb.gmra.mxu2 %v9253_v63  ;;  %v17555_v63 = vld [vmem:[%s21088_s2 + $0x288] sm:$0xff] }
 0x9db   : > { %9727 = vmatpush.bf16.msra.mxu2 %v17497_v54  ;;  %9740 = vmatpush.bf16.msra.mxu3 %v17505_v61  ;;  %v17556_v61 = vld [vmem:[%s21088_s2 + $0x290] sm:$0xff] }
 0x9dc   : > { %9504 = vmatmul.bf16.vlgmr.msrb.gmra.mxu3 %v9260_v4  ;;  %v17563_v4 = vld [vmem:[%s21088_s2 + $0x2c8] sm:$0xff] }
 0x9de   : > { %11242 = vmatpush.bf16.msrb.mxu1 %v17684_v10  ;;  %v17491_v10 = vld [vmem:[%s21088_s2 + $0x88] sm:$0xff] }
 0x9df   : > { %9728 = vmatpush.bf16.msra.mxu2 %v17496_v58  ;;  %9741 = vmatpush.bf16.msra.mxu3 %v17504_v37  ;;  %v8158_v52 = vpop.f32.mrf.mxu2  ;;  %v8171_v32 = vpop.f32.mrf.mxu3  ;;  %v17672_v58 = vld [vmem:[%s21089_s3 + $0x230] sm:$0xff] }
 0x9e0   : > { %v8159_v35 = vadd.f32 %v8158_v52, %v19997_v15  ;;  %v17499_v15 = vld [vmem:[%s21088_s2 + $0xc8] sm:$0xff]  ;;  %11136 = vmatpush.bf16.msrb.mxu0 %v17672_v58  ;;  %v17594_v58 = vld [vmem:[%s21088_s2 + $0x3c0] sm:$0xff] }
 0x9e1   : > { %v17591_v52 = vld [vmem:[%s21088_s2 + $0x3a8] sm:$0xff] }
 0x9e2   : > { %11243 = vmatpush.bf16.msrb.mxu1 %v17683_v60  ;;  %v20608_v1 = vadd.f32 %v8171_v32, %v8159_v35  ;;  %v9096_v60 = vpack.c.bf16 %v9092_v50, %v9092_v50  ;;  %v17599_v32 = vld [vmem:[%s21088_s2 + $0x3e8] sm:$0xff]  ;;  %v17669_v35 = vld [vmem:[%s21089_s3 + $0x218] sm:$0xff] }
 0x9e3   : > { %9729 = vmatpush.bf16.msra.mxu2 %v17495_v14  ;;  %9742 = vmatpush.bf16.msra.mxu3 %v17503_v3  ;;  %v17601_v14 = vld [vmem:[%s21088_s2 + $0x3f8] sm:$0xff]  ;;  %v9755_v3 = vld [vmem:[#allocation2 + $0x70] sm:$0xf] }
 0x9e4   : > { %11137 = vmatpush.bf16.msrb.mxu0 %v17671_v26  ;;  %v17703_v26 = vld [vmem:[%s21089_s3 + $0xe8] sm:$0xff] }
 0x9e6   : > { %11244 = vmatpush.bf16.msrb.mxu1 %v17682_v44  ;;  %v10026_v8 = vpop.f32.mrf.mxu0  ;;  %v10039_v12 = vpop.f32.mrf.mxu1 }
 0x9e7   : > { %v20587_v45 = vadd.f32 %v10039_v12, %v10026_v8  ;;  %9730 = vmatpush.bf16.msra.mxu2 %v17494_v16  ;;  %9743 = vmatpush.bf16.msra.mxu3 %v17502_v22  ;;  %v8160_v28 = vpop.f32.mrf.mxu2  ;;  %v8173_v38 = vpop.f32.mrf.mxu3  ;;  %v17562_v8 = vld [vmem:[%s21088_s2 + $0x2c0] sm:$0xff]  ;;  %v17593_v12 = vld [vmem:[%s21088_s2 + $0x3b8] sm:$0xff]  ;;  %v9759_v16 = vpack.c.bf16 %v9755_v3, %v9755_v3  ;;  %v9760_v22 = vpack.c.bf16 %v9756_v19, %v9756_v19 }
 0x9e8   : > { %v17668_v28 = vld [vmem:[%s21089_s3 + $0x210] sm:$0xff]  ;;  %v17711_v38 = vld [vmem:[%s21089_s3 + $0x128] sm:$0xff] }
 0x9e9   : > { %11245 = vmatmul.bf16.vlgmr.msrb.gmra.mxu1 %v11172_v24  ;;  %v17598_v24 = vld [vmem:[%s21088_s2 + $0x3e0] sm:$0xff] }
 0x9eb   : > { %9731 = vmatpush.bf16.msra.mxu2 %v17493_v27  ;;  %9744 = vmatpush.bf16.msra.mxu3 %v17501_v31  ;;  %v17670_v27 = vld [vmem:[%s21089_s3 + $0x220] sm:$0xff]  ;;  %v17713_v31 = vld [vmem:[%s21089_s3 + $0x138] sm:$0xff] }
 0x9ec   : > { %11537 = vmatpush.bf16.msra.mxu1 %v17713_v31  ;;  %11138 = vmatpush.bf16.msrb.mxu0 %v17670_v27  ;;  %v17632_v27 = vld [vmem:[%s21089_s3 + $0xf0] sm:$0xff]  ;;  %v17702_v31 = vld [vmem:[%s21089_s3 + $0xe0] sm:$0xff] }
 0x9ee   : > { %v10028_v23 = vpop.f32.mrf.mxu0  ;;  %v10041_v25 = vpop.f32.mrf.mxu1 }
 0x9ef   : > { %9732 = vmatpush.bf16.msra.mxu2 %v17492_v2  ;;  %9745 = vmatpush.bf16.msra.mxu3 %v17500_v51  ;;  %v17592_v23 = vld [vmem:[%s21088_s2 + $0x3b0] sm:$0xff] }
 0x9f0   : > { %v17600_v25 = vld [vmem:[%s21088_s2 + $0x3f0] sm:$0xff]  ;;  %11139 = vmatpush.bf16.msrb.mxu0 %v17669_v35  ;;  %v17631_v35 = vld [vmem:[%s21089_s3 + $0xe8] sm:$0xff] }
 0x9f1   : > { %v17712_v2 = vld [vmem:[%s21089_s3 + $0x130] sm:$0xff] }
 0x9f2   : > { %11538 = vmatpush.bf16.msra.mxu1 %v17712_v2  ;;  %v17701_v2 = vld [vmem:[%s21089_s3 + $0xd8] sm:$0xff] }
 0x9f3   : > { %9733 = vmatpush.bf16.msra.mxu2 %v17491_v10  ;;  %9746 = vmatpush.bf16.msra.mxu3 %v17499_v15  ;;  %v17590_v15 = vld [vmem:[%s21088_s2 + $0x3a0] sm:$0xff] }
 0x9f4   : > { %11140 = vmatpush.bf16.msrb.mxu0 %v17668_v28  ;;  %v17629_v28 = vld [vmem:[%s21089_s3 + $0xd8] sm:$0xff] }
 0x9f6   : > { %11539 = vmatpush.bf16.msra.mxu1 %v17711_v38  ;;  %v17699_v38 = vld [vmem:[%s21089_s3 + $0xc8] sm:$0xff] }
 0x9f7   : > { %9734 = vmatpush.bf16.msra.mxu2 %v17490_v41  ;;  %9747 = vmatpush.bf16.msra.mxu3 %v17498_v11  ;;  %v8377_v41 = vadd.f32 %v20103_v20, %v20608_v1  ;;  %v17589_v11 = vld [vmem:[%s21088_s2 + $0x398] sm:$0xff]  ;;  %v10072_v1 = vld [vmem:[#allocation2 + $0x70] sm:$0x1e] }
 0x9f9   : > { %v8390_v30 = vadd.f32 %v20105_v21, %v8377_v41  ;;  %v17596_v21 = vld [vmem:[%s21088_s2 + $0x3d0] sm:$0xff] }
 0x9fa   : > { %9735 = vmatmul.bf16.vlgmr.msra.gmra.mxu2 %v9095_v47  ;;  %9748 = vmatmul.bf16.vlgmr.msra.gmra.mxu3 %v9096_v60  ;;  %v10073_v47 = vld [vmem:[#allocation2 + $0x90] sm:$0x1e]  ;;  %v17710_v60 = vld [vmem:[%s21089_s3 + $0x120] sm:$0xff] }
 0x9fb   : > { %10043 = vmatpush.bf16.msrb.mxu2 %v17561_v0  ;;  %10056 = vmatpush.bf16.msrb.mxu3 %v17569_v55  ;;  %v17597_v0 = vld [vmem:[%s21088_s2 + $0x3d8] sm:$0xff]  ;;  %v17667_v55 = vld [vmem:[%s21089_s3 + $0x208] sm:$0xff]  ;;  %v17620_v41 = vld [vmem:[%s21089_s3 + $0x90] sm:$0xff] }
 0x9fc   : > { %11141 = vmatpush.bf16.msrb.mxu0 %v17667_v55  ;;  %11540 = vmatpush.bf16.msra.mxu1 %v17710_v60 }
 0x9ff   : > { %10044 = vmatpush.bf16.msrb.mxu2 %v17560_v13  ;;  %10057 = vmatpush.bf16.msrb.mxu3 %v17568_v49  ;;  %v20654_v53 = vpop.f32.mrf.mxu2  ;;  %v20656_v54 = vpop.f32.mrf.mxu3  ;;  %v17588_v49 = vld [vmem:[%s21088_s2 + $0x390] sm:$0xff] }
 0xa00   : > { %v8403_v13 = vadd.f32 %v20654_v53, %v8390_v30  ;;  %v17587_v53 = vld [vmem:[%s21088_s2 + $0x388] sm:$0xff]  ;;  %v17698_v30 = vld [vmem:[%s21089_s3 + $0xc0] sm:$0xff] }
 0xa03   : > { %10045 = vmatpush.bf16.msrb.mxu2 %v17559_v46  ;;  %10058 = vmatpush.bf16.msrb.mxu3 %v17567_v7 }
 0xa06   : > { %v10375_v57 = vpop.f32.mrf.mxu0  ;;  %v10388_v43 = vpop.f32.mrf.mxu1 }
 0xa07   : > { %v20640_v44 = vadd.f32 %v10388_v43, %v10375_v57  ;;  %10046 = vmatpush.bf16.msrb.mxu2 %v17558_v40  ;;  %10059 = vmatpush.bf16.msrb.mxu3 %v17566_v56  ;;  %v8404_v37 = vpop.f32.mrf.mxu2  ;;  %v8417_v5 = vpop.f32.mrf.mxu3  ;;  %v10076_v57 = vpack.c.bf16 %v10072_v1, %v10072_v1  ;;  %v10077_v43 = vpack.c.bf16 %v10073_v47, %v10073_v47  ;;  %v17666_v40 = vld [vmem:[%s21089_s3 + $0x200] sm:$0xff]  ;;  %v17619_v1 = vld [vmem:[%s21089_s3 + $0x88] sm:$0xff] }
 0xa08   : > { %11142 = vmatpush.bf16.msrb.mxu0 %v17666_v40  ;;  %v17627_v47 = vld [vmem:[%s21089_s3 + $0xc8] sm:$0xff] }
 0xa09   : > { %v10164_v3 = vshrl.u32 %v10077_v43, 16 }
 0xa0b   : > { %10047 = vmatpush.bf16.msrb.mxu2 %v17557_v48  ;;  %10060 = vmatpush.bf16.msrb.mxu3 %v17565_v17  ;;  %v17705_v48 = vld [vmem:[%s21089_s3 + $0xf8] sm:$0xff] }
 0xa0c   : > { %v17709_v17 = vld [vmem:[%s21089_s3 + $0x118] sm:$0xff]  ;;  %11457 = vmatpush.bf16.msra.mxu0 %v17705_v48  ;;  %v10663_v48 = vld [vmem:[#allocation3 + $0x4] sm:$0x3] }
 0xa0d   : > { %11541 = vmatpush.bf16.msra.mxu1 %v17709_v17 }
 0xa0e   : > { %v10377_v42 = vpop.f32.mrf.mxu0  ;;  %v10390_v18 = vpop.f32.mrf.mxu1 }
 0xa0f   : > { %10048 = vmatpush.bf16.msrb.mxu2 %v17556_v61  ;;  %10061 = vmatpush.bf16.msrb.mxu3 %v17564_v59  ;;  %v8416_v42 = vadd.f32 %v20656_v54, %v8403_v13  ;;  %v10159_v61 = vshll.u32 %v10076_v57, 16  ;;  %v10166_v59 = vshll.u32 %v10077_v43, 16  ;;  %v17704_v54 = vld [vmem:[%s21089_s3 + $0xf0] sm:$0xff]  ;;  %v20853_v13 = vld [vmem:[%s21090_s4 + $0x1] ss:$0 sm:$0xff]  ;;  %v17665_v43 = vld [vmem:[%s21089_s3 + $0x1f8] sm:$0xff] }
 0xa10   : > { %11458 = vmatpush.bf16.msra.mxu0 %v17704_v54 }
 0xa11   : > { %v10168_v19 = vrot.slane %v10166_v59, 1 }
 0xa13   : > { %10049 = vmatpush.bf16.msrb.mxu2 %v17555_v63  ;;  %10062 = vmatpush.bf16.msrb.mxu3 %v17563_v4  ;;  %v17708_v63 = vld [vmem:[%s21089_s3 + $0x110] sm:$0xff]  ;;  %v17586_v4 = vld [vmem:[%s21088_s2 + $0x380] sm:$0xff] }
 0xa14   : > { %11542 = vmatpush.bf16.msra.mxu1 %v17708_v63  ;;  %11459 = vmatpush.bf16.msra.mxu0 %v17703_v26 }
 0xa17   : > { %10050 = vmatpush.bf16.msrb.mxu2 %v17554_v6  ;;  %10063 = vmatpush.bf16.msrb.mxu3 %v17562_v8  ;;  %v17625_v6 = vld [vmem:[%s21089_s3 + $0xb8] sm:$0xff] }
 0xa18   : > { %v17633_v8 = vld [vmem:[%s21089_s3 + $0xf8] sm:$0xff]  ;;  %11460 = vmatpush.bf16.msra.mxu0 %v17702_v31 }
 0xa1a   : > { %10051 = vmatmul.bf16.vlgmr.msrb.gmra.mxu2 %v9759_v16  ;;  %10064 = vmatmul.bf16.vlgmr.msrb.gmra.mxu3 %v9760_v22  ;;  %v17707_v16 = vld [vmem:[%s21089_s3 + $0x108] sm:$0xff] }
 0xa1b   : > { %10392 = vmatpush.bf16.msra.mxu2 %v17593_v12  ;;  %10405 = vmatpush.bf16.msra.mxu3 %v17601_v14  ;;  %v10157_v12 = vshrl.u32 %v10076_v57, 16  ;;  %v10161_v14 = vrot.slane %v10159_v61, 1  ;;  %v17657_v57 = vld [vmem:[%s21089_s3 + $0x1b8] sm:$0xff]  ;;  %v17663_v61 = vld [vmem:[%s21089_s3 + $0x1e8] sm:$0xff] }
 0xa1c   : > { %11543 = vmatpush.bf16.msra.mxu1 %v17707_v16  ;;  %11461 = vmatpush.bf16.msra.mxu0 %v17701_v2 }
 0xa1d   : > { %v10162_v22 = vor.u32 %v10161_v14, %v10157_v12  ;;  %v17652_v12 = vld [vmem:[%s21089_s3 + $0x190] sm:$0xff] }
 0xa1e   : > { %v17660_v14 = vld [vmem:[%s21089_s3 + $0x1d0] sm:$0xff] }
 0xa1f   : > { %10393 = vmatpush.bf16.msra.mxu2 %v17592_v23  ;;  %10406 = vmatpush.bf16.msra.mxu3 %v17600_v25  ;;  %v8718_v46 = vpop.f32.mrf.mxu2  ;;  %v8731_v7 = vpop.f32.mrf.mxu3  ;;  %v10169_v23 = vor.u32 %v10168_v19, %v10164_v3  ;;  %v17624_v25 = vld [vmem:[%s21089_s3 + $0xb0] sm:$0xff] }
 0xa20   : > { %v8719_v56 = vadd.f32 %v8718_v46, %v20211_v39  ;;  %v17595_v39 = vld [vmem:[%s21088_s2 + $0x3c8] sm:$0xff] }
 0xa22   : > { %v8732_v18 = vadd.f32 %v8731_v7, %v8719_v56  ;;  %v10582_v56 = vld [vmem:[#allocation3 + $0x2] sm:$0x3] }
 0xa23   : > { %10394 = vmatpush.bf16.msra.mxu2 %v17591_v52  ;;  %10407 = vmatpush.bf16.msra.mxu3 %v17599_v32  ;;  %v17706_v52 = vld [vmem:[%s21089_s3 + $0x100] sm:$0xff]  ;;  %v17623_v32 = vld [vmem:[%s21089_s3 + $0xa8] sm:$0xff]  ;;  %v10583_v17 = vpack.c.bf16 %v10582_v56, %v10582_v56 }
 0xa24   : > { %v20768_v62 = vadd.f32 %v8732_v18, %v8416_v42  ;;  %11544 = vmatpush.bf16.msra.mxu1 %v17706_v52  ;;  %v10664_v42 = vpack.c.bf16 %v10663_v48, %v10663_v48  ;;  %v17656_v18 = vld [vmem:[%s21089_s3 + $0x1b0] sm:$0xff] }
 0xa26   : > { %v10517_v51 = vpop.f32.mrf.mxu0  ;;  %v10578_v9 = vpop.f32.mrf.mxu1 }
 0xa27   : > { %v20715_v10 = vadd.f32 %v10578_v9, %v10517_v51  ;;  %10395 = vmatpush.bf16.msra.mxu2 %v17590_v15  ;;  %10408 = vmatpush.bf16.msra.mxu3 %v17598_v24  ;;  %v8720_v37 = vpop.f32.mrf.mxu2  ;;  %v8733_v5 = vpop.f32.mrf.mxu3  ;;  %v17622_v51 = vld [vmem:[%s21089_s3 + $0xa0] sm:$0xff]  ;;  %v17700_v15 = vld [vmem:[%s21089_s3 + $0xd0] sm:$0xff]  ;;  %v17621_v24 = vld [vmem:[%s21089_s3 + $0x98] sm:$0xff] }
 0xa28   : > { %v17630_v9 = vld [vmem:[%s21089_s3 + $0xe0] sm:$0xff]  ;;  %11462 = vmatpush.bf16.msra.mxu0 %v17700_v15  ;;  %v17653_v37 = vld [vmem:[%s21089_s3 + $0x198] sm:$0xff] }
 0xa29   : > { %v17661_v5 = vld [vmem:[%s21089_s3 + $0x1d8] sm:$0xff] }
 0xa2b   : > { %10396 = vmatpush.bf16.msra.mxu2 %v17589_v11  ;;  %10409 = vmatpush.bf16.msra.mxu3 %v17597_v0  ;;  %v17628_v11 = vld [vmem:[%s21089_s3 + $0xd0] sm:$0xff] }
 0xa2c   : > { %11463 = vmatpush.bf16.msra.mxu0 %v17699_v38 }
 0xa2e   : > { %v10519_v50 = vpop.f32.mrf.mxu0  ;;  %v10580_v20 = vpop.f32.mrf.mxu1 }
 0xa2f   : > { %10397 = vmatpush.bf16.msra.mxu2 %v17588_v49  ;;  %10410 = vmatpush.bf16.msra.mxu3 %v17596_v21  ;;  %v17618_v49 = vld [vmem:[%s21089_s3 + $0x80] sm:$0xff] }
 0xa30   : > { %11464 = vmatpush.bf16.msra.mxu0 %v17698_v30  ;;  %v17626_v21 = vld [vmem:[%s21089_s3 + $0xc0] sm:$0xff]  ;;  %v17695_v30 = vld [vmem:[%s21089_s3 + $0xa8] sm:$0xff] }
 0xa33   : > { %10398 = vmatpush.bf16.msra.mxu2 %v17587_v53  ;;  %10411 = vmatpush.bf16.msra.mxu3 %v17595_v39  ;;  %v17664_v53 = vld [vmem:[%s21089_s3 + $0x1f0] sm:$0xff]  ;;  %v17655_v39 = vld [vmem:[%s21089_s3 + $0x1a8] sm:$0xff] }
 0xa37   : > { %10399 = vmatpush.bf16.msra.mxu2 %v17586_v4  ;;  %10412 = vmatpush.bf16.msra.mxu3 %v17594_v58  ;;  %v17654_v4 = vld [vmem:[%s21089_s3 + $0x1a0] sm:$0xff] }
 0xa38   : > { %v17662_v58 = vld [vmem:[%s21089_s3 + $0x1e0] sm:$0xff] }
 0xa3a   : > { %10400 = vmatmul.bf16.vlgmr.msra.gmra.mxu2 %v10162_v22  ;;  %10413 = vmatmul.bf16.vlgmr.msra.gmra.mxu3 %v10169_v23  ;;  %v17651_v22 = vld [vmem:[%s21089_s3 + $0x188] sm:$0xff] }
 0xa3b   : > { %10649 = vmatpush.bf16.msrb.mxu2 %v17625_v6  ;;  %10730 = vmatpush.bf16.msrb.mxu3 %v17633_v8  ;;  %v17659_v23 = vld [vmem:[%s21089_s3 + $0x1c8] sm:$0xff] }
 0xa3f   : > { %10650 = vmatpush.bf16.msrb.mxu2 %v17624_v25  ;;  %10731 = vmatpush.bf16.msrb.mxu3 %v17632_v27  ;;  %v9067_v0 = vpop.f32.mrf.mxu2  ;;  %v9080_v55 = vpop.f32.mrf.mxu3 }
 0xa40   : > { %v9068_v50 = vadd.f32 %v9067_v0, %v20312_v33 }
 0xa42   : > { %v9081_v20 = vadd.f32 %v9080_v55, %v9068_v50  ;;  %v17679_v55 = vld [vmem:[%s21089_s3 + $0x28] sm:$0xff]  ;;  %v17678_v50 = vld [vmem:[%s21089_s3 + $0x20] sm:$0xff] }
 0xa43   : > { %10651 = vmatpush.bf16.msrb.mxu2 %v17623_v32  ;;  %10732 = vmatpush.bf16.msrb.mxu3 %v17631_v35  ;;  %v17658_v32 = vld [vmem:[%s21089_s3 + $0x1c0] sm:$0xff] }
 0xa44   : > { %v9084_v60 = vadd.f32 %v9081_v20, %v20768_v62  ;;  %v17694_v20 = vld [vmem:[%s21089_s3 + $0xa0] sm:$0xff] }
 0xa46   : > { %v9085_v33 = vadd.f32 %v20853_v13, %v9084_v60  ;;  %v17693_v60 = vld [vmem:[%s21089_s3 + $0x98] sm:$0xff] }
 0xa47   : > { %10652 = vmatpush.bf16.msrb.mxu2 %v17622_v51  ;;  %10733 = vmatpush.bf16.msrb.mxu3 %v17630_v9  ;;  %v9069_v46 = vpop.f32.mrf.mxu2  ;;  %v9082_v7 = vpop.f32.mrf.mxu3  ;;  %v17681_v51 = vld [vmem:[%s21089_s3 + $0x38] sm:$0xff] }
 0xa48   : > { %v9086_v40 = vmax.f32 %v9085_v33, 0.0  ;;  %v17697_v9 = vld [vmem:[%s21089_s3 + $0xb8] sm:$0xff]  ;;  %v17676_v33 = vld [vmem:[%s21089_s3 + $0x10] sm:$0xff]  ;;  %v17675_v7 = vld [vmem:[%s21089_s3 + $0x8] sm:$0xff] }
 0xa4a   : > { %9088 = vst [vmem:[#allocation3 + $0x8] sm:$0xf] %v9086_v40  ;;  %v17690_v40 = vld [vmem:[%s21089_s3 + $0x80] sm:$0xff] }
 0xa4b   : > { %10653 = vmatpush.bf16.msrb.mxu2 %v17621_v24  ;;  %10734 = vmatpush.bf16.msrb.mxu3 %v17629_v28 }
 0xa4f   : > { %10654 = vmatpush.bf16.msrb.mxu2 %v17620_v41  ;;  %10735 = vmatpush.bf16.msrb.mxu3 %v17628_v11  ;;  %v17680_v41 = vld [vmem:[%s21089_s3 + $0x30] sm:$0xff] }
 0xa50   : > { %v17696_v11 = vld [vmem:[%s21089_s3 + $0xb0] sm:$0xff] }
 0xa51   : > { %v11068_v59 = vld [vmem:[#allocation3 + $0xa] sm:$0x3]  ;;  %v20892_v6 = vpop.f32.mrf.mxu0  ;;  %v11391_v25 = vld [vmem:[#allocation3 + $0x8] sm:$0x3] }
 0xa52   : > { %v11471_v62 = vld [vmem:[#allocation3 + $0x9] sm:$0x3]  ;;  %v11069_v54 = vpack.c.bf16 %v11068_v59, %v11068_v59  ;;  %v20894_v8 = vpop.f32.mrf.mxu1  ;;  %v11392_v27 = vpack.c.bf16 %v11391_v25, %v11391_v25  ;;  %v17734_v25 = vld [vmem:[%s21089_s3 + $0x1e0] sm:$0xff] }
 0xa53   : > { %10655 = vmatpush.bf16.msrb.mxu2 %v17619_v1  ;;  %10736 = vmatpush.bf16.msrb.mxu3 %v17627_v47  ;;  %v11472_v63 = vpack.c.bf16 %v11471_v62, %v11471_v62  ;;  %v10906_v15 = vld [vmem:[#allocation3 + $0x8] sm:$0x3]  ;;  %v17677_v47 = vld [vmem:[%s21089_s3 + $0x18] sm:$0xff] }
 0xa54   : > { %11143 = vmatmul.bf16.vlgmr.msrb.gmra.mxu0 %v11069_v54  ;;  %v10987_v24 = vld [vmem:[#allocation3 + $0x9] sm:$0x3]  ;;  %v10907_v28 = vpack.c.bf16 %v10906_v15, %v10906_v15  ;;  %v17720_v54 = vld [vmem:[%s21089_s3 + $0x170] sm:$0xff] }
 0xa55   : > { %11545 = vmatmul.bf16.vlgmr.msra.gmra.mxu1 %v11472_v63  ;;  %v10988_v38 = vpack.c.bf16 %v10987_v24, %v10987_v24  ;;  %v17728_v63 = vld [vmem:[%s21089_s3 + $0x1b0] sm:$0xff] }
 0xa56   : > { %v17724_v15 = vld [vmem:[%s21089_s3 + $0x190] sm:$0xff] }
 0xa57   : > { %10656 = vmatpush.bf16.msrb.mxu2 %v17618_v49  ;;  %10737 = vmatpush.bf16.msrb.mxu3 %v17626_v21  ;;  %v17692_v49 = vld [vmem:[%s21089_s3 + $0x90] sm:$0xff] }
 0xa58   : > { %v17732_v24 = vld [vmem:[%s21089_s3 + $0x1d0] sm:$0xff] }
 0xa59   : > { %v10822_v31 = vpop.f32.mrf.mxu0 }
 0xa5a   : > { %10657 = vmatmul.bf16.vlgmr.msrb.gmra.mxu2 %v10583_v17  ;;  %10738 = vmatmul.bf16.vlgmr.msrb.gmra.mxu3 %v10664_v42  ;;  %v10903_v52 = vpop.f32.mrf.mxu1  ;;  %v17721_v17 = vld [vmem:[%s21089_s3 + $0x178] sm:$0xff]  ;;  %v11153_v42 = vld [vmem:[#allocation3 + $0x4] sm:$0x3] }
 0xa5b   : > { %10973 = vmatpush.bf16.msra.mxu2 %v17657_v57  ;;  %11054 = vmatpush.bf16.msra.mxu3 %v17665_v43  ;;  %v17691_v57 = vld [vmem:[%s21089_s3 + $0x88] sm:$0xff]  ;;  %v17674_v43 = vld [vmem:[%s21089_s3] sm:$0xff]  ;;  %v11154_v59 = vpack.c.bf16 %v11153_v42, %v11153_v42 }
 0xa5d   : > { %v9492_v3 = vpop.f32.mrf.mxu2 }
 0xa5e   : > { %v9493_v26 = vadd.f32 %v9492_v3, %v20408_v36  ;;  %v17650_v36 = vld [vmem:[%s21089_s3 + $0x180] sm:$0xff] }
 0xa5f   : > { %10974 = vmatpush.bf16.msra.mxu2 %v17656_v18  ;;  %11055 = vmatpush.bf16.msra.mxu3 %v17664_v53  ;;  %v9505_v19 = vpop.f32.mrf.mxu3  ;;  %v11311_v18 = vld [vmem:[#allocation3 + $0x6] sm:$0x3]  ;;  %v17729_v53 = vld [vmem:[%s21089_s3 + $0x1b8] sm:$0xff] }
 0xa60   : > { %v20903_v16 = vadd.f32 %v9505_v19, %v9493_v26  ;;  %v11312_v62 = vpack.c.bf16 %v11311_v18, %v11311_v18  ;;  %v17718_v3 = vld [vmem:[%s21089_s3 + $0x160] sm:$0xff]  ;;  %v17717_v26 = vld [vmem:[%s21089_s3 + $0x158] sm:$0xff] }
 0xa62   : > { %v9711_v19 = vadd.f32 %v20511_v34, %v20903_v16  ;;  %v17742_v34 = vld [vmem:[%s21089_s3 + $0x220] sm:$0xff] }
 0xa63   : > { %10975 = vmatpush.bf16.msra.mxu2 %v17655_v39  ;;  %11056 = vmatpush.bf16.msra.mxu3 %v17663_v61  ;;  %v17737_v39 = vld [vmem:[%s21089_s3 + $0x1f8] sm:$0xff] }
 0xa64   : > { %11465 = vmatmul.bf16.vlgmr.msra.gmra.mxu0 %v11392_v27  ;;  %v17745_v61 = vld [vmem:[%s21089_s3 + $0x238] sm:$0xff]  ;;  %v17716_v27 = vld [vmem:[%s21089_s3 + $0x150] sm:$0xff] }
 0xa65   : > { %v9494_v35 = vpop.f32.mrf.mxu2  ;;  %11777 = vmatpush.bf16.msrb.mxu0 %v17737_v39  ;;  %11857 = vmatpush.bf16.msrb.mxu1 %v17745_v61 }
 0xa66   : > { %v20929_v0 = vpop.f32.mrf.mxu1  ;;  %v17741_v35 = vld [vmem:[%s21089_s3 + $0x218] sm:$0xff] }
 0xa67   : > { %10976 = vmatpush.bf16.msra.mxu2 %v17654_v4  ;;  %11057 = vmatpush.bf16.msra.mxu3 %v17662_v58  ;;  %v9507_v2 = vpop.f32.mrf.mxu3  ;;  %v17736_v4 = vld [vmem:[%s21089_s3 + $0x1f0] sm:$0xff] }
 0xa68   : > { %v17744_v58 = vld [vmem:[%s21089_s3 + $0x230] sm:$0xff] }
 0xa69   : > { %11778 = vmatpush.bf16.msrb.mxu0 %v17736_v4  ;;  %11858 = vmatpush.bf16.msrb.mxu1 %v17744_v58 }
 0xa6b   : > { %10977 = vmatpush.bf16.msra.mxu2 %v17653_v37  ;;  %11058 = vmatpush.bf16.msra.mxu3 %v17661_v5  ;;  %v17719_v37 = vld [vmem:[%s21089_s3 + $0x168] sm:$0xff] }
 0xa6c   : > { %v17727_v5 = vld [vmem:[%s21089_s3 + $0x1a8] sm:$0xff] }
 0xa6e   : > { %v11248_v1 = vpop.f32.mrf.mxu1 }
 0xa6f   : > { %10978 = vmatpush.bf16.msra.mxu2 %v17652_v12  ;;  %11059 = vmatpush.bf16.msra.mxu3 %v17660_v14  ;;  %v17735_v12 = vld [vmem:[%s21089_s3 + $0x1e8] sm:$0xff] }
 0xa70   : > { %v17743_v14 = vld [vmem:[%s21089_s3 + $0x228] sm:$0xff]  ;;  %11779 = vmatpush.bf16.msrb.mxu0 %v17735_v12 }
 0xa71   : > { %11859 = vmatpush.bf16.msrb.mxu1 %v17743_v14 }
 0xa73   : > { %10979 = vmatpush.bf16.msra.mxu2 %v17651_v22  ;;  %11060 = vmatpush.bf16.msra.mxu3 %v17659_v23  ;;  %v9724_v22 = vadd.f32 %v20513_v29, %v9711_v19  ;;  %v17726_v23 = vld [vmem:[%s21089_s3 + $0x1a0] sm:$0xff] }
 0xa74   : > { %11780 = vmatpush.bf16.msrb.mxu0 %v17734_v25 }
 0xa75   : > { %11860 = vmatpush.bf16.msrb.mxu1 %v17742_v34  ;;  %v17757_v34 = vld [vmem:[%s21090_s4 + $0x2] ss:$0 sm:$0xff] }
 0xa77   : > { %10980 = vmatpush.bf16.msra.mxu2 %v17650_v36  ;;  %11061 = vmatpush.bf16.msra.mxu3 %v17658_v32  ;;  %v17725_v36 = vld [vmem:[%s21089_s3 + $0x198] sm:$0xff] }
 0xa78   : > { %v17733_v32 = vld [vmem:[%s21089_s3 + $0x1d8] sm:$0xff] }
 0xa79   : > { %11781 = vmatpush.bf16.msrb.mxu0 %v17733_v32  ;;  %11861 = vmatpush.bf16.msrb.mxu1 %v17741_v35 }
 0xa7a   : > { %10981 = vmatmul.bf16.vlgmr.msra.gmra.mxu2 %v10907_v28  ;;  %11062 = vmatmul.bf16.vlgmr.msra.gmra.mxu3 %v10988_v38  ;;  %v17740_v28 = vld [vmem:[%s21089_s3 + $0x210] sm:$0xff]  ;;  %v17714_v38 = vld [vmem:[%s21089_s3 + $0x140] sm:$0xff] }
 0xa7b   : > { %11298 = vmatpush.bf16.msrb.mxu2 %v17681_v51  ;;  %11377 = vmatpush.bf16.msrb.mxu3 %v17697_v9 }
 0xa7d   : > { %v9736_v21 = vpop.f32.mrf.mxu2  ;;  %v20955_v46 = vpop.f32.mrf.mxu3  ;;  %11782 = vmatpush.bf16.msrb.mxu0 %v17732_v24  ;;  %11862 = vmatpush.bf16.msrb.mxu1 %v17740_v28 }
 0xa7e   : > { %v9737_v16 = vadd.f32 %v9736_v21, %v9724_v22 }
 0xa7f   : > { %11299 = vmatpush.bf16.msrb.mxu2 %v17680_v41  ;;  %11378 = vmatpush.bf16.msrb.mxu3 %v17696_v11 }
 0xa80   : > { %v9750_v2 = vadd.f32 %v20955_v46, %v9737_v16 }
 0xa83   : > { %11300 = vmatpush.bf16.msrb.mxu2 %v17679_v55  ;;  %11379 = vmatpush.bf16.msrb.mxu3 %v17695_v30  ;;  %v17723_v55 = vld [vmem:[%s21089_s3 + $0x188] sm:$0xff] }
 0xa84   : > { %v17731_v30 = vld [vmem:[%s21089_s3 + $0x1c8] sm:$0xff] }
 0xa85   : > { %v9738_v56 = vpop.f32.mrf.mxu2  ;;  %v9751_v48 = vpop.f32.mrf.mxu3  ;;  %11783 = vmatpush.bf16.msrb.mxu0 %v17731_v30 }
 0xa87   : > { %11301 = vmatpush.bf16.msrb.mxu2 %v17678_v50  ;;  %11380 = vmatpush.bf16.msrb.mxu3 %v17694_v20  ;;  %v11551_v50 = vld [vmem:[#allocation3 + $0xa] sm:$0x3] }
 0xa88   : > { %v17739_v20 = vld [vmem:[%s21089_s3 + $0x208] sm:$0xff]  ;;  %v11552_v1 = vpack.c.bf16 %v11551_v50, %v11551_v50 }
 0xa89   : > { %11863 = vmatpush.bf16.msrb.mxu1 %v17739_v20 }
 0xa8b   : > { %11302 = vmatpush.bf16.msrb.mxu2 %v17677_v47  ;;  %11381 = vmatpush.bf16.msrb.mxu3 %v17693_v60  ;;  %v17722_v47 = vld [vmem:[%s21089_s3 + $0x180] sm:$0xff] }
 0xa8c   : > { %v17730_v60 = vld [vmem:[%s21089_s3 + $0x1c0] sm:$0xff] }
 0xa8d   : > { %11784 = vmatpush.bf16.msrb.mxu0 %v17730_v60 }
 0xa8f   : > { %11303 = vmatpush.bf16.msrb.mxu2 %v17676_v33  ;;  %11382 = vmatpush.bf16.msrb.mxu3 %v17692_v49  ;;  %v17738_v33 = vld [vmem:[%s21089_s3 + $0x200] sm:$0xff] }
 0xa90   : > { %11864 = vmatpush.bf16.msrb.mxu1 %v17738_v33 }
 0xa93   : > { %11304 = vmatpush.bf16.msrb.mxu2 %v17675_v7  ;;  %11383 = vmatpush.bf16.msrb.mxu3 %v17691_v57 }
 0xa97   : > { %11305 = vmatpush.bf16.msrb.mxu2 %v17674_v43  ;;  %11384 = vmatpush.bf16.msrb.mxu3 %v17690_v40 }
 0xa9a   : > { %11306 = vmatmul.bf16.vlgmr.msrb.gmra.mxu2 %v11154_v59  ;;  %11385 = vmatmul.bf16.vlgmr.msrb.gmra.mxu3 %v11312_v62 }
 0xa9b   : > { %11617 = vmatpush.bf16.msra.mxu2 %v17721_v17  ;;  %11697 = vmatpush.bf16.msra.mxu3 %v17729_v53 }
 0xa9d   : > { %v10052_v31 = vpop.f32.mrf.mxu2  ;;  %v10065_v29 = vpop.f32.mrf.mxu3 }
 0xa9e   : > { %v10053_v52 = vadd.f32 %v10052_v31, %v20587_v45  ;;  %v17715_v45 = vld [vmem:[%s21089_s3 + $0x148] sm:$0xff] }
 0xa9f   : > { %11618 = vmatpush.bf16.msra.mxu2 %v17720_v54  ;;  %11698 = vmatpush.bf16.msra.mxu3 %v17728_v63 }
 0xaa0   : > { %v10066_v51 = vadd.f32 %v10065_v29, %v10053_v52 }
 0xaa2   : > { %v10069_v9 = vadd.f32 %v10066_v51, %v9750_v2 }
 0xaa3   : > { %11619 = vmatpush.bf16.msra.mxu2 %v17719_v37  ;;  %11699 = vmatpush.bf16.msra.mxu3 %v17727_v5 }
 0xaa5   : > { %v10054_v41 = vpop.f32.mrf.mxu2  ;;  %v10067_v11 = vpop.f32.mrf.mxu3 }
 0xaa7   : > { %11620 = vmatpush.bf16.msra.mxu2 %v17718_v3  ;;  %11700 = vmatpush.bf16.msra.mxu3 %v17726_v23 }
 0xaab   : > { %11621 = vmatpush.bf16.msra.mxu2 %v17717_v26  ;;  %11701 = vmatpush.bf16.msra.mxu3 %v17725_v36 }
 0xaaf   : > { %11622 = vmatpush.bf16.msra.mxu2 %v17716_v27  ;;  %11702 = vmatpush.bf16.msra.mxu3 %v17724_v15 }
 0xab3   : > { %11623 = vmatpush.bf16.msra.mxu2 %v17715_v45  ;;  %11703 = vmatpush.bf16.msra.mxu3 %v17723_v55 }
 0xab7   : > { %11624 = vmatpush.bf16.msra.mxu2 %v17714_v38  ;;  %11704 = vmatpush.bf16.msra.mxu3 %v17722_v47 }
 0xaba   : > { %11625 = vmatmul.bf16.vlgmr.msra.gmra.mxu2 %v11552_v1 }
 0xabd   : > { %v10401_v49 = vpop.f32.mrf.mxu2  ;;  %v10414_v21 = vpop.f32.mrf.mxu3 }
 0xabe   : > { %v10402_v46 = vadd.f32 %v10401_v49, %v20640_v44 }
 0xac0   : > { %v10415_v7 = vadd.f32 %v10414_v21, %v10402_v46 }
 0xac2   : > { %v10418_v57 = vadd.f32 %v10415_v7, %v10069_v9 }
 0xac4   : > { %v10419_v43 = vadd.f32 %v20853_v13, %v10418_v57 }
 0xac5   : > { %v10403_v40 = vpop.f32.mrf.mxu2  ;;  %v10416_v56 = vpop.f32.mrf.mxu3 }
 0xac6   : > { %v10420_v48 = vmax.f32 %v10419_v43, 0.0 }
 0xac8   : > { %10422 = vst [vmem:[#allocation3 + $0xc] sm:$0xf] %v10420_v48 }
 0xacf   : > { %v11631_v17 = vld [vmem:[#allocation3 + $0xc] sm:$0x3]  ;;  %v11791_v18 = vld [vmem:[#allocation3 + $0xe] sm:$0x3] }
 0xad0   : > { %v11711_v42 = vld [vmem:[#allocation3 + $0xd] sm:$0x3]  ;;  %v11632_v53 = vpack.c.bf16 %v11631_v17, %v11631_v17  ;;  %v11792_v61 = vpack.c.bf16 %v11791_v18, %v11791_v18 }
 0xad1   : > { %v11712_v39 = vpack.c.bf16 %v11711_v42, %v11711_v42  ;;  %v11144_v44 = vpop.f32.mrf.mxu0 }
 0xad2   : > { %11705 = vmatmul.bf16.vlgmr.msra.gmra.mxu3 %v11632_v53  ;;  %11865 = vmatmul.bf16.vlgmr.msrb.gmra.mxu1 %v11792_v61  ;;  %v11546_v54 = vpop.f32.mrf.mxu1 }
 0xad3   : > { %11785 = vmatmul.bf16.vlgmr.msrb.gmra.mxu0 %v11712_v39 }
 0xad9   : > { %v11146_v4 = vpop.f32.mrf.mxu0 }
 0xada   : > { %v11548_v58 = vpop.f32.mrf.mxu1 }
 0xadd   : > { %v10658_v59 = vpop.f32.mrf.mxu2  ;;  %v10739_v62 = vpop.f32.mrf.mxu3 }
 0xade   : > { %v10662_v37 = vadd.f32 %v10658_v59, %v20715_v10 }
 0xae0   : > { %v10743_v12 = vadd.f32 %v10739_v62, %v10662_v37 }
 0xae1   : > { %v11466_v5 = vpop.f32.mrf.mxu0 }
 0xae2   : > { %v10824_v14 = vadd.f32 %v20892_v6, %v10743_v12 }
 0xae4   : > { %v10905_v19 = vadd.f32 %v20894_v8, %v10824_v14 }
 0xae5   : > { %v10660_v63 = vpop.f32.mrf.mxu2  ;;  %v10741_v13 = vpop.f32.mrf.mxu3 }
 0xae9   : > { %v11468_v3 = vpop.f32.mrf.mxu0 }
 0xafd   : > { %v10982_v26 = vpop.f32.mrf.mxu2  ;;  %v11063_v22 = vpop.f32.mrf.mxu3 }
 0xafe   : > { %v10986_v23 = vadd.f32 %v10982_v26, %v10905_v19 }
 0xb00   : > { %v11067_v25 = vadd.f32 %v11063_v22, %v10986_v23 }
 0xb02   : > { %v11148_v16 = vadd.f32 %v11144_v44, %v11067_v25 }
 0xb04   : > { %v11150_v27 = vadd.f32 %v17757_v34, %v11148_v16 }
 0xb05   : > { %v10984_v10 = vpop.f32.mrf.mxu2  ;;  %v11065_v6 = vpop.f32.mrf.mxu3 }
 0xb06   : > { %v11151_v31 = vmax.f32 %v11150_v27, 0.0 }
 0xb08   : > { %11152 = vst [vmem:[%s249_s12] sm:$0x3] %v11151_v31 }
 0xb1d   : > { %v11307_v8 = vpop.f32.mrf.mxu2  ;;  %v11386_v29 = vpop.f32.mrf.mxu3 }
 0xb1e   : > { %v11308_v52 = vadd.f32 %v11307_v8, %v20929_v0 }
 0xb20   : > { %v11390_v36 = vadd.f32 %v11386_v29, %v11308_v52 }
 0xb22   : > { %v11470_v32 = vadd.f32 %v11466_v5, %v11390_v36 }
 0xb24   : > { %v11550_v35 = vadd.f32 %v11546_v54, %v11470_v32 }
 0xb25   : > { %v11309_v2 = vpop.f32.mrf.mxu2  ;;  %v11388_v51 = vpop.f32.mrf.mxu3 }
 0xb3d   : > { %v11626_v45 = vpop.f32.mrf.mxu2 }
 0xb3e   : > { %v11630_v28 = vadd.f32 %v11626_v45, %v11550_v35 }
 0xb45   : > { %v11628_v9 = vpop.f32.mrf.mxu2 }
 0xb4f   : > { %v11866_v24 = vpop.f32.mrf.mxu1 }
 0xb50   : > { %v11786_v15 = vpop.f32.mrf.mxu0 }
 0xb55   : > { %v11706_v38 = vpop.f32.mrf.mxu3 }
 0xb56   : > { %v11710_v41 = vadd.f32 %v11706_v38, %v11630_v28 }
 0xb57   : > { %v11868_v30 = vpop.f32.mrf.mxu1 }
 0xb58   : > { %v11788_v11 = vpop.f32.mrf.mxu0  ;;  %v11790_v55 = vadd.f32 %v11786_v15, %v11710_v41 }
 0xb5a   : > { %v11870_v50 = vadd.f32 %v11866_v24, %v11790_v55 }
 0xb5c   : > { %v11871_v20 = vadd.f32 %v17757_v34, %v11870_v50 }
 0xb5d   : > { %v11708_v1 = vpop.f32.mrf.mxu3 }
 0xb5e   : > { %v11872_v47 = vmax.f32 %v11871_v20, 0.0 }
 0xb60   : > { %11873 = vst [vmem:[%s249_s12 + $0x2] sm:$0x3] %v11872_v47 }
 0xb61 PF: > { %s16_s21 = sadd.s32 1, %s17774_s21  }
 0xb62   : > { %p13_p4 = scmp.ge.s32.totalorder %s16_s21, 4  }
 0xb64   :  { %15 = sbr.rel (!%p13_p4) target bundleno = 1 (0x1), region = 115 }

</bundles_post_ra>
